<compile_context>
chip_gen: v6e
topology: v6e:2x2x1
jax: 0.10.0
libtpu: 0.0.40
codegen_flags: <defaults>
</compile_context>

<pallas_src>
import math

import jax
import jax.numpy as jnp
from jax import lax
from jax.experimental import pallas as pl
from jax.experimental.pallas import tpu as pltpu


# ----------------------------------------------------------------------------
# Pallas kernels
# ----------------------------------------------------------------------------

def _conv_trunk_kernel(p_ref, w1_ref, b1_ref, pool1_ref, w2_ref, b2_ref,
                       pool2_ref, o_ref, tap_ref):
    """Fused conv1+tanh+pool1+conv2+tanh+pool2 for a block of BB images.

    p_ref    : (BB, 784, 25)   bf16  im2col patches of the 32x32 input (conv1)
    w1_ref   : (25, 128)       bf16  conv1 weight, out-channels padded to 128
    b1_ref   : (1, 128)        f32
    pool1_ref: (256, 784)      bf16  28x28 -> 14x14 avg-pool matrix, zero-padded
                                     to 256 rows (so shifted slices stay in-bounds)
    w2_ref   : (25, 128, 128)  bf16  conv2 weight per tap t=ki*5+kj (in->out lanes)
    b2_ref   : (1, 128)        f32
    pool2_ref: (25, 196)       bf16  picks+averages the valid 10x10 conv2 outputs
                                     (rows q=i*14+j, i,j<10) into the 5x5 map
    o_ref    : (BB, 25, 128)   bf16  rows = 5x5 spatial, lanes = 16 channels (padded)
    tap_ref  : (256, 128)      f32   scratch holding one tap's full matmul result
    """
    bf16 = jnp.bfloat16
    nb = p_ref.shape[0]

    def body(b, carry):
        # conv1: (784,25) @ (25,128) -> f32, bias + tanh
        patches = p_ref[b]                                              # (784, 25)
        acc1 = jnp.dot(patches, w1_ref[...],
                       preferred_element_type=jnp.float32)              # (784, 128)
        act1 = jnp.tanh(acc1 + b1_ref[...]).astype(bf16)

        # pool1 (bf16 MXU): (256,784) @ (784,128) -> padded 14x14 map, 256 rows
        pooled1 = jnp.dot(pool1_ref[...], act1,
                          preferred_element_type=jnp.float32).astype(bf16)

        # conv2 as 25 shifted-row accumulations of (256,128)@(128,128) matmuls.
        # acc2[q] = sum_t (pooled1 @ W2[t])[q + ki*14 + kj]; invalid q rows are
        # garbage but are zero-weighted by pool2_ref.
        acc2 = jnp.zeros((196, 128), jnp.float32)
        for t in range(25):
            tap_ref[...] = jnp.dot(pooled1, w2_ref[t],
                                   preferred_element_type=jnp.float32)  # (256,128)
            off = (t // 5) * 14 + (t % 5)
            acc2 = acc2 + tap_ref[pl.ds(off, 196), :]

        act2 = jnp.tanh(acc2 + b2_ref[...]).astype(bf16)                # (196, 128)

        # pool2 (bf16 MXU): (25,196) @ (196,128) -> 5x5 spatial x 16 channels
        pooled2 = jnp.dot(pool2_ref[...], act2,
                          preferred_element_type=jnp.float32)           # (25, 128)
        o_ref[b] = pooled2.astype(o_ref.dtype)
        return carry

    lax.fori_loop(0, nb, body, 0)


def _fc_fused_kernel(x_ref, w1_ref, b1_ref, w2_ref, b2_ref, w3_ref, b3_ref, o_ref):
    """fc1 -> tanh -> fc2 -> tanh -> fc3 for one batch tile; bf16 MXU, f32 acc."""
    bf16 = jnp.bfloat16
    h = jnp.dot(x_ref[...], w1_ref[...], preferred_element_type=jnp.float32)
    h = jnp.tanh(h + b1_ref[...]).astype(bf16)                          # (TB, 128)
    h = jnp.dot(h, w2_ref[...], preferred_element_type=jnp.float32)
    h = jnp.tanh(h + b2_ref[...]).astype(bf16)                          # (TB, 128)
    o_ref[...] = (jnp.dot(h, w3_ref[...], preferred_element_type=jnp.float32)
                  + b3_ref[...])                                        # (TB, 128) f32


# ----------------------------------------------------------------------------
# pallas_call wrappers
# ----------------------------------------------------------------------------

def conv_trunk(patches, w1, b1, pool1, w2, b2, pool2, *, block_b):
    """patches: (Bp, 784, 25) bf16 -> (Bp, 25, 128) bf16 pooled conv2 activations."""
    Bp, P, K = patches.shape
    assert Bp % block_b == 0
    return pl.pallas_call(
        _conv_trunk_kernel,
        out_shape=jax.ShapeDtypeStruct((Bp, 25, 128), jnp.bfloat16),
        grid=(Bp // block_b,),
        in_specs=[
            pl.BlockSpec((block_b, P, K), lambda i: (i, 0, 0)),
            pl.BlockSpec((K, 128), lambda i: (0, 0)),
            pl.BlockSpec((1, 128), lambda i: (0, 0)),
            pl.BlockSpec((256, P), lambda i: (0, 0)),
            pl.BlockSpec((25, 128, 128), lambda i: (0, 0, 0)),
            pl.BlockSpec((1, 128), lambda i: (0, 0)),
            pl.BlockSpec((25, 196), lambda i: (0, 0)),
        ],
        out_specs=pl.BlockSpec((block_b, 25, 128), lambda i: (i, 0, 0)),
        scratch_shapes=[pltpu.VMEM((256, 128), jnp.float32)],
        compiler_params=pltpu.CompilerParams(dimension_semantics=("parallel",)),
    )(patches, w1, b1, pool1, w2, b2, pool2)


def fc_fused(x, w1, b1, w2, b2, w3, b3, *, tile_b):
    """x: (Bp, 3200) bf16 -> (Bp, 128) f32 logits (lanes 10..127 are junk/zero)."""
    Bp, K1 = x.shape
    assert Bp % tile_b == 0
    N = 128
    return pl.pallas_call(
        _fc_fused_kernel,
        out_shape=jax.ShapeDtypeStruct((Bp, N), jnp.float32),
        grid=(Bp // tile_b,),
        in_specs=[
            pl.BlockSpec((tile_b, K1), lambda i: (i, 0)),
            pl.BlockSpec((K1, N), lambda i: (0, 0)),
            pl.BlockSpec((1, N), lambda i: (0, 0)),
            pl.BlockSpec((N, N), lambda i: (0, 0)),
            pl.BlockSpec((1, N), lambda i: (0, 0)),
            pl.BlockSpec((N, N), lambda i: (0, 0)),
            pl.BlockSpec((1, N), lambda i: (0, 0)),
        ],
        out_specs=pl.BlockSpec((tile_b, N), lambda i: (i, 0)),
        compiler_params=pltpu.CompilerParams(dimension_semantics=("parallel",)),
    )(x, w1, b1, w2, b2, w3, b3)


# ----------------------------------------------------------------------------
# Host-side helpers (run once / fused by jit)
# ----------------------------------------------------------------------------

def im2col_nhwc(x, k):
    """x: (B, H, W, C) -> (B, Ho*Wo, C*k*k); column order (c, ki, kj) matches
    PyTorch Conv2d weight.reshape(OC, C*k*k).  Only used for conv1 (C=1)."""
    B, H, W, C = x.shape
    Ho, Wo = H - k + 1, W - k + 1
    cols = []
    for c in range(C):
        for ki in range(k):
            for kj in range(k):
                cols.append(x[:, ki:ki + Ho, kj:kj + Wo, c])
    return jnp.stack(cols, axis=-1).reshape(B, Ho * Wo, C * k * k)


def _make_pool1_matrix():
    """(256, 784) bf16: rows 0..195 average the 28x28 conv1 map (row-major) into
    the 14x14 map; rows 196..255 are zero padding for the in-kernel row shifts."""
    r = jnp.arange(28 * 28)
    h, w = r // 28, r % 28
    p = jnp.arange(14 * 14)
    i, j = p // 14, p % 14
    mask = (i[:, None] == h[None, :] // 2) & (j[:, None] == w[None, :] // 2)
    m = jnp.where(mask, 0.25, 0.0).astype(jnp.float32)
    m = jnp.pad(m, ((0, 256 - 196), (0, 0)))
    return m.astype(jnp.bfloat16)


def _make_pool2_matrix():
    """(25, 196) bf16: averages the valid 10x10 conv2 outputs (stored at rows
    q = i*14 + j, i,j < 10) into the 5x5 map; invalid rows get weight 0."""
    q = jnp.arange(196)
    qi, qj = q // 14, q % 14
    p = jnp.arange(25)
    pi, pj = p // 5, p % 5
    valid = (qi < 10) & (qj < 10)
    mask = ((pi[:, None] == qi[None, :] // 2)
            & (pj[:, None] == qj[None, :] // 2)
            & valid[None, :])
    return jnp.where(mask, 0.25, 0.0).astype(jnp.bfloat16)


def init_params(key):
    ks = jax.random.split(key, 10)
    s = 0.1
    return {
        "conv1_w": s * jax.random.normal(ks[0], (6, 1, 5, 5), jnp.float32),
        "conv1_b": s * jax.random.normal(ks[1], (6,), jnp.float32),
        "conv2_w": s * jax.random.normal(ks[2], (16, 6, 5, 5), jnp.float32),
        "conv2_b": s * jax.random.normal(ks[3], (16,), jnp.float32),
        # PyTorch nn.Linear weight layout: (out_features, in_features)
        "fc1_w": s * jax.random.normal(ks[4], (120, 400), jnp.float32),
        "fc1_b": s * jax.random.normal(ks[5], (120,), jnp.float32),
        "fc2_w": s * jax.random.normal(ks[6], (84, 120), jnp.float32),
        "fc2_b": s * jax.random.normal(ks[7], (84,), jnp.float32),
        "fc3_w": s * jax.random.normal(ks[8], (10, 84), jnp.float32),
        "fc3_b": s * jax.random.normal(ks[9], (10,), jnp.float32),
    }


def prepare_params(params):
    """One-time weight prep: pad output dims to 128 lanes, cast all MXU operands
    to bf16, build the bf16 pooling matrices, and permute fc1's weight to absorb
    PyTorch's .view(-1, 400) flatten order (no activation transpose needed)."""
    f32, bf16 = jnp.float32, jnp.bfloat16

    # conv1: (6,1,5,5) -> (25, 6) -> (25, 128) bf16
    w1 = params["conv1_w"].reshape(6, 25).T
    w1p = jnp.zeros((25, 128), f32).at[:, :6].set(w1).astype(bf16)
    b1p = jnp.zeros((1, 128), f32).at[0, :6].set(params["conv1_b"])

    # conv2: (16,6,5,5) -> per-tap (in->out) matrices (25, 6, 16) -> (25,128,128)
    w2 = params["conv2_w"].transpose(2, 3, 1, 0).reshape(25, 6, 16)
    w2p = jnp.zeros((25, 128, 128), f32).at[:, :6, :16].set(w2).astype(bf16)
    b2p = jnp.zeros((1, 128), f32).at[0, :16].set(params["conv2_b"])

    # fc1: torch flatten index f = c*25 + s; our flattened activation index is
    # g = s*128 + c (s = 5x5 spatial row, c = channel lane).  Scatter accordingly.
    wf1 = params["fc1_w"].reshape(120, 16, 25).transpose(2, 1, 0)       # (25,16,120)
    wf1p = (jnp.zeros((25, 128, 128), f32).at[:, :16, :120].set(wf1)
            .reshape(25 * 128, 128).astype(bf16))
    bf1p = jnp.zeros((1, 128), f32).at[0, :120].set(params["fc1_b"])

    wf2p = jnp.zeros((128, 128), f32).at[:120, :84].set(params["fc2_w"].T).astype(bf16)
    bf2p = jnp.zeros((1, 128), f32).at[0, :84].set(params["fc2_b"])
    wf3p = jnp.zeros((128, 128), f32).at[:84, :10].set(params["fc3_w"].T).astype(bf16)
    bf3p = jnp.zeros((1, 128), f32).at[0, :10].set(params["fc3_b"])

    return {
        "conv1_w": w1p, "conv1_b": b1p,
        "conv2_w": w2p, "conv2_b": b2p,
        "pool1": _make_pool1_matrix(), "pool2": _make_pool2_matrix(),
        "fc1_w": wf1p, "fc1_b": bf1p,
        "fc2_w": wf2p, "fc2_b": bf2p,
        "fc3_w": wf3p, "fc3_b": bf3p,
    }


def _round_up(n, m):
    return ((n + m - 1) // m) * m


# ----------------------------------------------------------------------------
# LeNet-5 forward
# ----------------------------------------------------------------------------

@jax.jit
def lenet5_forward(pp, x):
    """pp: prepare_params output; x: (B, 1, 32, 32) f32 -> logits (B, 10) f32."""
    B = x.shape[0]
    BB = 8                                   # images per conv-trunk grid step
    Bp = _round_up(B, BB)
    if Bp != B:
        x = jnp.pad(x, ((0, Bp - B), (0, 0), (0, 0), (0, 0)))

    # conv1 im2col (only host-side im2col left: 1 channel, 25 shifted views).
    x_nhwc = jnp.transpose(x, (0, 2, 3, 1))                  # (Bp, 32, 32, 1)
    patches1 = im2col_nhwc(x_nhwc, 5).astype(jnp.bfloat16)   # (Bp, 784, 25)

    # Fused conv trunk: conv1 + tanh + pool1 + conv2 + tanh + pool2.
    a2 = conv_trunk(patches1, pp["conv1_w"], pp["conv1_b"], pp["pool1"],
                    pp["conv2_w"], pp["conv2_b"], pp["pool2"],
                    block_b=BB)                              # (Bp, 25, 128) bf16

    # Fused FC stack; fc1 weight was permuted to this flatten order.
    xflat = a2.reshape(Bp, 25 * 128)                         # (Bp, 3200) bf16
    TB = Bp if Bp <= 128 else math.gcd(Bp, 128)              # batch tile for FC
    logits = fc_fused(xflat, pp["fc1_w"], pp["fc1_b"], pp["fc2_w"], pp["fc2_b"],
                      pp["fc3_w"], pp["fc3_b"], tile_b=TB)   # (Bp, 128) f32
    return logits[:B, :10]


# ----------------------------------------------------------------------------
# Pure-JAX f32 reference (loose numerical sanity check)
# ----------------------------------------------------------------------------

def lenet5_reference(params, x):
    def conv(a, w, b):
        out = lax.conv_general_dilated(
            a, w, window_strides=(1, 1), padding="VALID",
            dimension_numbers=("NCHW", "OIHW", "NCHW"))
        return out + b[None, :, None, None]

    def pool(a):
        B, C, H, W = a.shape
        return a.reshape(B, C, H // 2, 2, W // 2, 2).mean(axis=(3, 5))

    a = pool(jnp.tanh(conv(x, params["conv1_w"], params["conv1_b"])))
    a = pool(jnp.tanh(conv(a, params["conv2_w"], params["conv2_b"])))
    a = a.reshape(a.shape[0], 400)
    a = jnp.tanh(a @ params["fc1_w"].T + params["fc1_b"])
    a = jnp.tanh(a @ params["fc2_w"].T + params["fc2_b"])
    return a @ params["fc3_w"].T + params["fc3_b"]


if __name__ == "__main__":
    key = jax.random.PRNGKey(0)
    pkey, xkey = jax.random.split(key)
    params = init_params(pkey)
    # LeNet-5 requires 1x32x32 inputs (fc1 expects 16*5*5 = 400 features).
    x = jax.random.normal(xkey, (16, 1, 32, 32), jnp.float32)

    pp = prepare_params(params)
    logits = lenet5_forward(pp, x)
    logits = jax.block_until_ready(logits)
    assert logits.shape == (16, 10), logits.shape

    # Loose tolerance: all MXU operands (conv, pool, fc) are bf16 with f32 acc.
    ref = lenet5_reference(params, x)
    max_err = float(jnp.max(jnp.abs(logits - ref)))
    assert max_err < 0.1, f"max abs err vs f32 reference: {max_err}"

    print("KERNEL_OK")
</pallas_src>

<mosaic_0001>
module attributes {stable_mosaic.version = 11 : i64} {
  func.func @_conv_trunk_kernel(%arg0: i32, %arg1: memref<8x784x25xbf16, #tpu.memory_space<vmem>>, %arg2: memref<25x128xbf16, #tpu.memory_space<vmem>>, %arg3: memref<1x128xf32, #tpu.memory_space<vmem>>, %arg4: memref<256x784xbf16, #tpu.memory_space<vmem>>, %arg5: memref<25x128x128xbf16, #tpu.memory_space<vmem>>, %arg6: memref<1x128xf32, #tpu.memory_space<vmem>>, %arg7: memref<25x196xbf16, #tpu.memory_space<vmem>>, %arg8: memref<8x25x128xbf16, #tpu.memory_space<vmem>>, %arg9: memref<256x128xf32, #tpu.memory_space<vmem>>) attributes {dimension_semantics = [#tpu.dimension_semantics<parallel>], iteration_bounds = array<i64: 2>, scalar_prefetch = 0 : i64, scratch_operands = 1 : i64, tpu.core_type = #tpu.core_type<tc>, window_params = [{transform_indices = @transform_0, window_bounds = array<i64: 8, 784, 25>}, {pipeline_mode = #tpu.pipeline_mode<synchronous>, transform_indices = @transform_1, window_bounds = array<i64: 25, 128>}, {pipeline_mode = #tpu.pipeline_mode<synchronous>, transform_indices = @transform_2, window_bounds = array<i64: 1, 128>}, {pipeline_mode = #tpu.pipeline_mode<synchronous>, transform_indices = @transform_3, window_bounds = array<i64: 256, 784>}, {pipeline_mode = #tpu.pipeline_mode<synchronous>, transform_indices = @transform_4, window_bounds = array<i64: 25, 128, 128>}, {pipeline_mode = #tpu.pipeline_mode<synchronous>, transform_indices = @transform_5, window_bounds = array<i64: 1, 128>}, {pipeline_mode = #tpu.pipeline_mode<synchronous>, transform_indices = @transform_6, window_bounds = array<i64: 25, 196>}, {transform_indices = @transform_7, window_bounds = array<i64: 8, 25, 128>}]} {
    %c0_i32 = arith.constant 0 : i32
    %c8_i32 = arith.constant 8 : i32
    %0 = arith.addi %c0_i32, %c8_i32 : i32
    %c1_i32 = arith.constant 1 : i32
    scf.for %arg10 = %c0_i32 to %0 step %c1_i32  : i32 {
      %1 = arith.index_cast %arg10 : i32 to index
      %c0 = arith.constant 0 : index
      %c0_1 = arith.constant 0 : index
      %2 = vector.load %arg1[%1, %c0, %c0_1] : memref<8x784x25xbf16, #tpu.memory_space<vmem>>, vector<1x784x25xbf16>
      %3 = vector.shape_cast %2 : vector<1x784x25xbf16> to vector<784x25xbf16>
      %c0_2 = arith.constant 0 : index
      %c0_3 = arith.constant 0 : index
      %4 = vector.load %arg2[%c0_2, %c0_3] : memref<25x128xbf16, #tpu.memory_space<vmem>>, vector<25x128xbf16>
      %cst = arith.constant dense<0.000000e+00> : vector<784x128xf32>
      %5 = tpu.matmul %3, %4, %cst {dimension_numbers = #tpu.dot_dimension_numbers<[1], [0], [0], [1], [0, 0, 1, 1], [], []>} : vector<784x25xbf16>, vector<25x128xbf16>, vector<784x128xf32> -> vector<784x128xf32>
      %c0_4 = arith.constant 0 : index
      %c0_5 = arith.constant 0 : index
      %6 = vector.load %arg3[%c0_4, %c0_5] : memref<1x128xf32, #tpu.memory_space<vmem>>, vector<1x128xf32>
      %7 = vector.broadcast %6 : vector<1x128xf32> to vector<784x128xf32>
      %8 = arith.addf %5, %7 : vector<784x128xf32>
      %9 = math.tanh %8 : vector<784x128xf32>
      %10 = arith.truncf %9 : vector<784x128xf32> to vector<784x128xbf16>
      %c0_6 = arith.constant 0 : index
      %c0_7 = arith.constant 0 : index
      %11 = vector.load %arg4[%c0_6, %c0_7] : memref<256x784xbf16, #tpu.memory_space<vmem>>, vector<256x784xbf16>
      %cst_8 = arith.constant dense<0.000000e+00> : vector<256x128xf32>
      %12 = tpu.matmul %11, %10, %cst_8 {dimension_numbers = #tpu.dot_dimension_numbers<[1], [0], [0], [1], [0, 0, 1, 1], [], []>} : vector<256x784xbf16>, vector<784x128xbf16>, vector<256x128xf32> -> vector<256x128xf32>
      %13 = arith.truncf %12 : vector<256x128xf32> to vector<256x128xbf16>
      %cst_9 = arith.constant 0.000000e+00 : f32
      %14 = vector.broadcast %cst_9 : f32 to vector<196x128xf32>
      %c0_10 = arith.constant 0 : index
      %c0_11 = arith.constant 0 : index
      %c0_12 = arith.constant 0 : index
      %15 = vector.load %arg5[%c0_10, %c0_11, %c0_12] : memref<25x128x128xbf16, #tpu.memory_space<vmem>>, vector<1x128x128xbf16>
      %16 = vector.shape_cast %15 : vector<1x128x128xbf16> to vector<128x128xbf16>
      %cst_13 = arith.constant dense<0.000000e+00> : vector<256x128xf32>
      %17 = tpu.matmul %13, %16, %cst_13 {dimension_numbers = #tpu.dot_dimension_numbers<[1], [0], [0], [1], [0, 0, 1, 1], [], []>} : vector<256x128xbf16>, vector<128x128xbf16>, vector<256x128xf32> -> vector<256x128xf32>
      %c0_14 = arith.constant 0 : index
      %c0_15 = arith.constant 0 : index
      %18 = vector.load %arg9[%c0_14, %c0_15] : memref<256x128xf32, #tpu.memory_space<vmem>>, vector<256x128xf32>
      tpu.vector_store %arg9[%c0_14, %c0_15], %17 {strides = array<i32>} : memref<256x128xf32, #tpu.memory_space<vmem>>, vector<256x128xf32>,
      %c0_16 = arith.constant 0 : index
      %c0_17 = arith.constant 0 : index
      %19 = vector.load %arg9[%c0_16, %c0_17] : memref<256x128xf32, #tpu.memory_space<vmem>>, vector<196x128xf32>
      %20 = arith.addf %14, %19 : vector<196x128xf32>
      %c1 = arith.constant 1 : index
      %c0_18 = arith.constant 0 : index
      %c0_19 = arith.constant 0 : index
      %21 = vector.load %arg5[%c1, %c0_18, %c0_19] : memref<25x128x128xbf16, #tpu.memory_space<vmem>>, vector<1x128x128xbf16>
      %22 = vector.shape_cast %21 : vector<1x128x128xbf16> to vector<128x128xbf16>
      %cst_20 = arith.constant dense<0.000000e+00> : vector<256x128xf32>
      %23 = tpu.matmul %13, %22, %cst_20 {dimension_numbers = #tpu.dot_dimension_numbers<[1], [0], [0], [1], [0, 0, 1, 1], [], []>} : vector<256x128xbf16>, vector<128x128xbf16>, vector<256x128xf32> -> vector<256x128xf32>
      %c0_21 = arith.constant 0 : index
      %c0_22 = arith.constant 0 : index
      %24 = vector.load %arg9[%c0_21, %c0_22] : memref<256x128xf32, #tpu.memory_space<vmem>>, vector<256x128xf32>
      tpu.vector_store %arg9[%c0_21, %c0_22], %23 {strides = array<i32>} : memref<256x128xf32, #tpu.memory_space<vmem>>, vector<256x128xf32>,
      %c1_23 = arith.constant 1 : index
      %c0_24 = arith.constant 0 : index
      %25 = vector.load %arg9[%c1_23, %c0_24] : memref<256x128xf32, #tpu.memory_space<vmem>>, vector<196x128xf32>
      %26 = arith.addf %20, %25 : vector<196x128xf32>
      %c2 = arith.constant 2 : index
      %c0_25 = arith.constant 0 : index
      %c0_26 = arith.constant 0 : index
      %27 = vector.load %arg5[%c2, %c0_25, %c0_26] : memref<25x128x128xbf16, #tpu.memory_space<vmem>>, vector<1x128x128xbf16>
      %28 = vector.shape_cast %27 : vector<1x128x128xbf16> to vector<128x128xbf16>
      %cst_27 = arith.constant dense<0.000000e+00> : vector<256x128xf32>
      %29 = tpu.matmul %13, %28, %cst_27 {dimension_numbers = #tpu.dot_dimension_numbers<[1], [0], [0], [1], [0, 0, 1, 1], [], []>} : vector<256x128xbf16>, vector<128x128xbf16>, vector<256x128xf32> -> vector<256x128xf32>
      %c0_28 = arith.constant 0 : index
      %c0_29 = arith.constant 0 : index
      %30 = vector.load %arg9[%c0_28, %c0_29] : memref<256x128xf32, #tpu.memory_space<vmem>>, vector<256x128xf32>
      tpu.vector_store %arg9[%c0_28, %c0_29], %29 {strides = array<i32>} : memref<256x128xf32, #tpu.memory_space<vmem>>, vector<256x128xf32>,
      %c2_30 = arith.constant 2 : index
      %c0_31 = arith.constant 0 : index
      %31 = vector.load %arg9[%c2_30, %c0_31] : memref<256x128xf32, #tpu.memory_space<vmem>>, vector<196x128xf32>
      %32 = arith.addf %26, %31 : vector<196x128xf32>
      %c3 = arith.constant 3 : index
      %c0_32 = arith.constant 0 : index
      %c0_33 = arith.constant 0 : index
      %33 = vector.load %arg5[%c3, %c0_32, %c0_33] : memref<25x128x128xbf16, #tpu.memory_space<vmem>>, vector<1x128x128xbf16>
      %34 = vector.shape_cast %33 : vector<1x128x128xbf16> to vector<128x128xbf16>
      %cst_34 = arith.constant dense<0.000000e+00> : vector<256x128xf32>
      %35 = tpu.matmul %13, %34, %cst_34 {dimension_numbers = #tpu.dot_dimension_numbers<[1], [0], [0], [1], [0, 0, 1, 1], [], []>} : vector<256x128xbf16>, vector<128x128xbf16>, vector<256x128xf32> -> vector<256x128xf32>
      %c0_35 = arith.constant 0 : index
      %c0_36 = arith.constant 0 : index
      %36 = vector.load %arg9[%c0_35, %c0_36] : memref<256x128xf32, #tpu.memory_space<vmem>>, vector<256x128xf32>
      tpu.vector_store %arg9[%c0_35, %c0_36], %35 {strides = array<i32>} : memref<256x128xf32, #tpu.memory_space<vmem>>, vector<256x128xf32>,
      %c3_37 = arith.constant 3 : index
      %c0_38 = arith.constant 0 : index
      %37 = vector.load %arg9[%c3_37, %c0_38] : memref<256x128xf32, #tpu.memory_space<vmem>>, vector<196x128xf32>
      %38 = arith.addf %32, %37 : vector<196x128xf32>
      %c4 = arith.constant 4 : index
      %c0_39 = arith.constant 0 : index
      %c0_40 = arith.constant 0 : index
      %39 = vector.load %arg5[%c4, %c0_39, %c0_40] : memref<25x128x128xbf16, #tpu.memory_space<vmem>>, vector<1x128x128xbf16>
      %40 = vector.shape_cast %39 : vector<1x128x128xbf16> to vector<128x128xbf16>
      %cst_41 = arith.constant dense<0.000000e+00> : vector<256x128xf32>
      %41 = tpu.matmul %13, %40, %cst_41 {dimension_numbers = #tpu.dot_dimension_numbers<[1], [0], [0], [1], [0, 0, 1, 1], [], []>} : vector<256x128xbf16>, vector<128x128xbf16>, vector<256x128xf32> -> vector<256x128xf32>
      %c0_42 = arith.constant 0 : index
      %c0_43 = arith.constant 0 : index
      %42 = vector.load %arg9[%c0_42, %c0_43] : memref<256x128xf32, #tpu.memory_space<vmem>>, vector<256x128xf32>
      tpu.vector_store %arg9[%c0_42, %c0_43], %41 {strides = array<i32>} : memref<256x128xf32, #tpu.memory_space<vmem>>, vector<256x128xf32>,
      %c4_44 = arith.constant 4 : index
      %c0_45 = arith.constant 0 : index
      %43 = vector.load %arg9[%c4_44, %c0_45] : memref<256x128xf32, #tpu.memory_space<vmem>>, vector<196x128xf32>
      %44 = arith.addf %38, %43 : vector<196x128xf32>
      %c5 = arith.constant 5 : index
      %c0_46 = arith.constant 0 : index
      %c0_47 = arith.constant 0 : index
      %45 = vector.load %arg5[%c5, %c0_46, %c0_47] : memref<25x128x128xbf16, #tpu.memory_space<vmem>>, vector<1x128x128xbf16>
      %46 = vector.shape_cast %45 : vector<1x128x128xbf16> to vector<128x128xbf16>
      %cst_48 = arith.constant dense<0.000000e+00> : vector<256x128xf32>
      %47 = tpu.matmul %13, %46, %cst_48 {dimension_numbers = #tpu.dot_dimension_numbers<[1], [0], [0], [1], [0, 0, 1, 1], [], []>} : vector<256x128xbf16>, vector<128x128xbf16>, vector<256x128xf32> -> vector<256x128xf32>
      %c0_49 = arith.constant 0 : index
      %c0_50 = arith.constant 0 : index
      %48 = vector.load %arg9[%c0_49, %c0_50] : memref<256x128xf32, #tpu.memory_space<vmem>>, vector<256x128xf32>
      tpu.vector_store %arg9[%c0_49, %c0_50], %47 {strides = array<i32>} : memref<256x128xf32, #tpu.memory_space<vmem>>, vector<256x128xf32>,
      %c14 = arith.constant 14 : index
      %c0_51 = arith.constant 0 : index
      %49 = vector.load %arg9[%c14, %c0_51] : memref<256x128xf32, #tpu.memory_space<vmem>>, vector<196x128xf32>
      %50 = arith.addf %44, %49 : vector<196x128xf32>
      %c6 = arith.constant 6 : index
      %c0_52 = arith.constant 0 : index
      %c0_53 = arith.constant 0 : index
      %51 = vector.load %arg5[%c6, %c0_52, %c0_53] : memref<25x128x128xbf16, #tpu.memory_space<vmem>>, vector<1x128x128xbf16>
      %52 = vector.shape_cast %51 : vector<1x128x128xbf16> to vector<128x128xbf16>
      %cst_54 = arith.constant dense<0.000000e+00> : vector<256x128xf32>
      %53 = tpu.matmul %13, %52, %cst_54 {dimension_numbers = #tpu.dot_dimension_numbers<[1], [0], [0], [1], [0, 0, 1, 1], [], []>} : vector<256x128xbf16>, vector<128x128xbf16>, vector<256x128xf32> -> vector<256x128xf32>
      %c0_55 = arith.constant 0 : index
      %c0_56 = arith.constant 0 : index
      %54 = vector.load %arg9[%c0_55, %c0_56] : memref<256x128xf32, #tpu.memory_space<vmem>>, vector<256x128xf32>
      tpu.vector_store %arg9[%c0_55, %c0_56], %53 {strides = array<i32>} : memref<256x128xf32, #tpu.memory_space<vmem>>, vector<256x128xf32>,
      %c15 = arith.constant 15 : index
      %c0_57 = arith.constant 0 : index
      %55 = vector.load %arg9[%c15, %c0_57] : memref<256x128xf32, #tpu.memory_space<vmem>>, vector<196x128xf32>
      %56 = arith.addf %50, %55 : vector<196x128xf32>
      %c7 = arith.constant 7 : index
      %c0_58 = arith.constant 0 : index
      %c0_59 = arith.constant 0 : index
      %57 = vector.load %arg5[%c7, %c0_58, %c0_59] : memref<25x128x128xbf16, #tpu.memory_space<vmem>>, vector<1x128x128xbf16>
      %58 = vector.shape_cast %57 : vector<1x128x128xbf16> to vector<128x128xbf16>
      %cst_60 = arith.constant dense<0.000000e+00> : vector<256x128xf32>
      %59 = tpu.matmul %13, %58, %cst_60 {dimension_numbers = #tpu.dot_dimension_numbers<[1], [0], [0], [1], [0, 0, 1, 1], [], []>} : vector<256x128xbf16>, vector<128x128xbf16>, vector<256x128xf32> -> vector<256x128xf32>
      %c0_61 = arith.constant 0 : index
      %c0_62 = arith.constant 0 : index
      %60 = vector.load %arg9[%c0_61, %c0_62] : memref<256x128xf32, #tpu.memory_space<vmem>>, vector<256x128xf32>
      tpu.vector_store %arg9[%c0_61, %c0_62], %59 {strides = array<i32>} : memref<256x128xf32, #tpu.memory_space<vmem>>, vector<256x128xf32>,
      %c16 = arith.constant 16 : index
      %c0_63 = arith.constant 0 : index
      %61 = vector.load %arg9[%c16, %c0_63] : memref<256x128xf32, #tpu.memory_space<vmem>>, vector<196x128xf32>
      %62 = arith.addf %56, %61 : vector<196x128xf32>
      %c8 = arith.constant 8 : index
      %c0_64 = arith.constant 0 : index
      %c0_65 = arith.constant 0 : index
      %63 = vector.load %arg5[%c8, %c0_64, %c0_65] : memref<25x128x128xbf16, #tpu.memory_space<vmem>>, vector<1x128x128xbf16>
      %64 = vector.shape_cast %63 : vector<1x128x128xbf16> to vector<128x128xbf16>
      %cst_66 = arith.constant dense<0.000000e+00> : vector<256x128xf32>
      %65 = tpu.matmul %13, %64, %cst_66 {dimension_numbers = #tpu.dot_dimension_numbers<[1], [0], [0], [1], [0, 0, 1, 1], [], []>} : vector<256x128xbf16>, vector<128x128xbf16>, vector<256x128xf32> -> vector<256x128xf32>
      %c0_67 = arith.constant 0 : index
      %c0_68 = arith.constant 0 : index
      %66 = vector.load %arg9[%c0_67, %c0_68] : memref<256x128xf32, #tpu.memory_space<vmem>>, vector<256x128xf32>
      tpu.vector_store %arg9[%c0_67, %c0_68], %65 {strides = array<i32>} : memref<256x128xf32, #tpu.memory_space<vmem>>, vector<256x128xf32>,
      %c17 = arith.constant 17 : index
      %c0_69 = arith.constant 0 : index
      %67 = vector.load %arg9[%c17, %c0_69] : memref<256x128xf32, #tpu.memory_space<vmem>>, vector<196x128xf32>
      %68 = arith.addf %62, %67 : vector<196x128xf32>
      %c9 = arith.constant 9 : index
      %c0_70 = arith.constant 0 : index
      %c0_71 = arith.constant 0 : index
      %69 = vector.load %arg5[%c9, %c0_70, %c0_71] : memref<25x128x128xbf16, #tpu.memory_space<vmem>>, vector<1x128x128xbf16>
      %70 = vector.shape_cast %69 : vector<1x128x128xbf16> to vector<128x128xbf16>
      %cst_72 = arith.constant dense<0.000000e+00> : vector<256x128xf32>
      %71 = tpu.matmul %13, %70, %cst_72 {dimension_numbers = #tpu.dot_dimension_numbers<[1], [0], [0], [1], [0, 0, 1, 1], [], []>} : vector<256x128xbf16>, vector<128x128xbf16>, vector<256x128xf32> -> vector<256x128xf32>
      %c0_73 = arith.constant 0 : index
      %c0_74 = arith.constant 0 : index
      %72 = vector.load %arg9[%c0_73, %c0_74] : memref<256x128xf32, #tpu.memory_space<vmem>>, vector<256x128xf32>
      tpu.vector_store %arg9[%c0_73, %c0_74], %71 {strides = array<i32>} : memref<256x128xf32, #tpu.memory_space<vmem>>, vector<256x128xf32>,
      %c18 = arith.constant 18 : index
      %c0_75 = arith.constant 0 : index
      %73 = vector.load %arg9[%c18, %c0_75] : memref<256x128xf32, #tpu.memory_space<vmem>>, vector<196x128xf32>
      %74 = arith.addf %68, %73 : vector<196x128xf32>
      %c10 = arith.constant 10 : index
      %c0_76 = arith.constant 0 : index
      %c0_77 = arith.constant 0 : index
      %75 = vector.load %arg5[%c10, %c0_76, %c0_77] : memref<25x128x128xbf16, #tpu.memory_space<vmem>>, vector<1x128x128xbf16>
      %76 = vector.shape_cast %75 : vector<1x128x128xbf16> to vector<128x128xbf16>
      %cst_78 = arith.constant dense<0.000000e+00> : vector<256x128xf32>
      %77 = tpu.matmul %13, %76, %cst_78 {dimension_numbers = #tpu.dot_dimension_numbers<[1], [0], [0], [1], [0, 0, 1, 1], [], []>} : vector<256x128xbf16>, vector<128x128xbf16>, vector<256x128xf32> -> vector<256x128xf32>
      %c0_79 = arith.constant 0 : index
      %c0_80 = arith.constant 0 : index
      %78 = vector.load %arg9[%c0_79, %c0_80] : memref<256x128xf32, #tpu.memory_space<vmem>>, vector<256x128xf32>
      tpu.vector_store %arg9[%c0_79, %c0_80], %77 {strides = array<i32>} : memref<256x128xf32, #tpu.memory_space<vmem>>, vector<256x128xf32>,
      %c28 = arith.constant 28 : index
      %c0_81 = arith.constant 0 : index
      %79 = vector.load %arg9[%c28, %c0_81] : memref<256x128xf32, #tpu.memory_space<vmem>>, vector<196x128xf32>
      %80 = arith.addf %74, %79 : vector<196x128xf32>
      %c11 = arith.constant 11 : index
      %c0_82 = arith.constant 0 : index
      %c0_83 = arith.constant 0 : index
      %81 = vector.load %arg5[%c11, %c0_82, %c0_83] : memref<25x128x128xbf16, #tpu.memory_space<vmem>>, vector<1x128x128xbf16>
      %82 = vector.shape_cast %81 : vector<1x128x128xbf16> to vector<128x128xbf16>
      %cst_84 = arith.constant dense<0.000000e+00> : vector<256x128xf32>
      %83 = tpu.matmul %13, %82, %cst_84 {dimension_numbers = #tpu.dot_dimension_numbers<[1], [0], [0], [1], [0, 0, 1, 1], [], []>} : vector<256x128xbf16>, vector<128x128xbf16>, vector<256x128xf32> -> vector<256x128xf32>
      %c0_85 = arith.constant 0 : index
      %c0_86 = arith.constant 0 : index
      %84 = vector.load %arg9[%c0_85, %c0_86] : memref<256x128xf32, #tpu.memory_space<vmem>>, vector<256x128xf32>
      tpu.vector_store %arg9[%c0_85, %c0_86], %83 {strides = array<i32>} : memref<256x128xf32, #tpu.memory_space<vmem>>, vector<256x128xf32>,
      %c29 = arith.constant 29 : index
      %c0_87 = arith.constant 0 : index
      %85 = vector.load %arg9[%c29, %c0_87] : memref<256x128xf32, #tpu.memory_space<vmem>>, vector<196x128xf32>
      %86 = arith.addf %80, %85 : vector<196x128xf32>
      %c12 = arith.constant 12 : index
      %c0_88 = arith.constant 0 : index
      %c0_89 = arith.constant 0 : index
      %87 = vector.load %arg5[%c12, %c0_88, %c0_89] : memref<25x128x128xbf16, #tpu.memory_space<vmem>>, vector<1x128x128xbf16>
      %88 = vector.shape_cast %87 : vector<1x128x128xbf16> to vector<128x128xbf16>
      %cst_90 = arith.constant dense<0.000000e+00> : vector<256x128xf32>
      %89 = tpu.matmul %13, %88, %cst_90 {dimension_numbers = #tpu.dot_dimension_numbers<[1], [0], [0], [1], [0, 0, 1, 1], [], []>} : vector<256x128xbf16>, vector<128x128xbf16>, vector<256x128xf32> -> vector<256x128xf32>
      %c0_91 = arith.constant 0 : index
      %c0_92 = arith.constant 0 : index
      %90 = vector.load %arg9[%c0_91, %c0_92] : memref<256x128xf32, #tpu.memory_space<vmem>>, vector<256x128xf32>
      tpu.vector_store %arg9[%c0_91, %c0_92], %89 {strides = array<i32>} : memref<256x128xf32, #tpu.memory_space<vmem>>, vector<256x128xf32>,
      %c30 = arith.constant 30 : index
      %c0_93 = arith.constant 0 : index
      %91 = vector.load %arg9[%c30, %c0_93] : memref<256x128xf32, #tpu.memory_space<vmem>>, vector<196x128xf32>
      %92 = arith.addf %86, %91 : vector<196x128xf32>
      %c13 = arith.constant 13 : index
      %c0_94 = arith.constant 0 : index
      %c0_95 = arith.constant 0 : index
      %93 = vector.load %arg5[%c13, %c0_94, %c0_95] : memref<25x128x128xbf16, #tpu.memory_space<vmem>>, vector<1x128x128xbf16>
      %94 = vector.shape_cast %93 : vector<1x128x128xbf16> to vector<128x128xbf16>
      %cst_96 = arith.constant dense<0.000000e+00> : vector<256x128xf32>
      %95 = tpu.matmul %13, %94, %cst_96 {dimension_numbers = #tpu.dot_dimension_numbers<[1], [0], [0], [1], [0, 0, 1, 1], [], []>} : vector<256x128xbf16>, vector<128x128xbf16>, vector<256x128xf32> -> vector<256x128xf32>
      %c0_97 = arith.constant 0 : index
      %c0_98 = arith.constant 0 : index
      %96 = vector.load %arg9[%c0_97, %c0_98] : memref<256x128xf32, #tpu.memory_space<vmem>>, vector<256x128xf32>
      tpu.vector_store %arg9[%c0_97, %c0_98], %95 {strides = array<i32>} : memref<256x128xf32, #tpu.memory_space<vmem>>, vector<256x128xf32>,
      %c31 = arith.constant 31 : index
      %c0_99 = arith.constant 0 : index
      %97 = vector.load %arg9[%c31, %c0_99] : memref<256x128xf32, #tpu.memory_space<vmem>>, vector<196x128xf32>
      %98 = arith.addf %92, %97 : vector<196x128xf32>
      %c14_100 = arith.constant 14 : index
      %c0_101 = arith.constant 0 : index
      %c0_102 = arith.constant 0 : index
      %99 = vector.load %arg5[%c14_100, %c0_101, %c0_102] : memref<25x128x128xbf16, #tpu.memory_space<vmem>>, vector<1x128x128xbf16>
      %100 = vector.shape_cast %99 : vector<1x128x128xbf16> to vector<128x128xbf16>
      %cst_103 = arith.constant dense<0.000000e+00> : vector<256x128xf32>
      %101 = tpu.matmul %13, %100, %cst_103 {dimension_numbers = #tpu.dot_dimension_numbers<[1], [0], [0], [1], [0, 0, 1, 1], [], []>} : vector<256x128xbf16>, vector<128x128xbf16>, vector<256x128xf32> -> vector<256x128xf32>
      %c0_104 = arith.constant 0 : index
      %c0_105 = arith.constant 0 : index
      %102 = vector.load %arg9[%c0_104, %c0_105] : memref<256x128xf32, #tpu.memory_space<vmem>>, vector<256x128xf32>
      tpu.vector_store %arg9[%c0_104, %c0_105], %101 {strides = array<i32>} : memref<256x128xf32, #tpu.memory_space<vmem>>, vector<256x128xf32>,
      %c32 = arith.constant 32 : index
      %c0_106 = arith.constant 0 : index
      %103 = vector.load %arg9[%c32, %c0_106] : memref<256x128xf32, #tpu.memory_space<vmem>>, vector<196x128xf32>
      %104 = arith.addf %98, %103 : vector<196x128xf32>
      %c15_107 = arith.constant 15 : index
      %c0_108 = arith.constant 0 : index
      %c0_109 = arith.constant 0 : index
      %105 = vector.load %arg5[%c15_107, %c0_108, %c0_109] : memref<25x128x128xbf16, #tpu.memory_space<vmem>>, vector<1x128x128xbf16>
      %106 = vector.shape_cast %105 : vector<1x128x128xbf16> to vector<128x128xbf16>
      %cst_110 = arith.constant dense<0.000000e+00> : vector<256x128xf32>
      %107 = tpu.matmul %13, %106, %cst_110 {dimension_numbers = #tpu.dot_dimension_numbers<[1], [0], [0], [1], [0, 0, 1, 1], [], []>} : vector<256x128xbf16>, vector<128x128xbf16>, vector<256x128xf32> -> vector<256x128xf32>
      %c0_111 = arith.constant 0 : index
      %c0_112 = arith.constant 0 : index
      %108 = vector.load %arg9[%c0_111, %c0_112] : memref<256x128xf32, #tpu.memory_space<vmem>>, vector<256x128xf32>
      tpu.vector_store %arg9[%c0_111, %c0_112], %107 {strides = array<i32>} : memref<256x128xf32, #tpu.memory_space<vmem>>, vector<256x128xf32>,
      %c42 = arith.constant 42 : index
      %c0_113 = arith.constant 0 : index
      %109 = vector.load %arg9[%c42, %c0_113] : memref<256x128xf32, #tpu.memory_space<vmem>>, vector<196x128xf32>
      %110 = arith.addf %104, %109 : vector<196x128xf32>
      %c16_114 = arith.constant 16 : index
      %c0_115 = arith.constant 0 : index
      %c0_116 = arith.constant 0 : index
      %111 = vector.load %arg5[%c16_114, %c0_115, %c0_116] : memref<25x128x128xbf16, #tpu.memory_space<vmem>>, vector<1x128x128xbf16>
      %112 = vector.shape_cast %111 : vector<1x128x128xbf16> to vector<128x128xbf16>
      %cst_117 = arith.constant dense<0.000000e+00> : vector<256x128xf32>
      %113 = tpu.matmul %13, %112, %cst_117 {dimension_numbers = #tpu.dot_dimension_numbers<[1], [0], [0], [1], [0, 0, 1, 1], [], []>} : vector<256x128xbf16>, vector<128x128xbf16>, vector<256x128xf32> -> vector<256x128xf32>
      %c0_118 = arith.constant 0 : index
      %c0_119 = arith.constant 0 : index
      %114 = vector.load %arg9[%c0_118, %c0_119] : memref<256x128xf32, #tpu.memory_space<vmem>>, vector<256x128xf32>
      tpu.vector_store %arg9[%c0_118, %c0_119], %113 {strides = array<i32>} : memref<256x128xf32, #tpu.memory_space<vmem>>, vector<256x128xf32>,
      %c43 = arith.constant 43 : index
      %c0_120 = arith.constant 0 : index
      %115 = vector.load %arg9[%c43, %c0_120] : memref<256x128xf32, #tpu.memory_space<vmem>>, vector<196x128xf32>
      %116 = arith.addf %110, %115 : vector<196x128xf32>
      %c17_121 = arith.constant 17 : index
      %c0_122 = arith.constant 0 : index
      %c0_123 = arith.constant 0 : index
      %117 = vector.load %arg5[%c17_121, %c0_122, %c0_123] : memref<25x128x128xbf16, #tpu.memory_space<vmem>>, vector<1x128x128xbf16>
      %118 = vector.shape_cast %117 : vector<1x128x128xbf16> to vector<128x128xbf16>
      %cst_124 = arith.constant dense<0.000000e+00> : vector<256x128xf32>
      %119 = tpu.matmul %13, %118, %cst_124 {dimension_numbers = #tpu.dot_dimension_numbers<[1], [0], [0], [1], [0, 0, 1, 1], [], []>} : vector<256x128xbf16>, vector<128x128xbf16>, vector<256x128xf32> -> vector<256x128xf32>
      %c0_125 = arith.constant 0 : index
      %c0_126 = arith.constant 0 : index
      %120 = vector.load %arg9[%c0_125, %c0_126] : memref<256x128xf32, #tpu.memory_space<vmem>>, vector<256x128xf32>
      tpu.vector_store %arg9[%c0_125, %c0_126], %119 {strides = array<i32>} : memref<256x128xf32, #tpu.memory_space<vmem>>, vector<256x128xf32>,
      %c44 = arith.constant 44 : index
      %c0_127 = arith.constant 0 : index
      %121 = vector.load %arg9[%c44, %c0_127] : memref<256x128xf32, #tpu.memory_space<vmem>>, vector<196x128xf32>
      %122 = arith.addf %116, %121 : vector<196x128xf32>
      %c18_128 = arith.constant 18 : index
      %c0_129 = arith.constant 0 : index
      %c0_130 = arith.constant 0 : index
      %123 = vector.load %arg5[%c18_128, %c0_129, %c0_130] : memref<25x128x128xbf16, #tpu.memory_space<vmem>>, vector<1x128x128xbf16>
      %124 = vector.shape_cast %123 : vector<1x128x128xbf16> to vector<128x128xbf16>
      %cst_131 = arith.constant dense<0.000000e+00> : vector<256x128xf32>
      %125 = tpu.matmul %13, %124, %cst_131 {dimension_numbers = #tpu.dot_dimension_numbers<[1], [0], [0], [1], [0, 0, 1, 1], [], []>} : vector<256x128xbf16>, vector<128x128xbf16>, vector<256x128xf32> -> vector<256x128xf32>
      %c0_132 = arith.constant 0 : index
      %c0_133 = arith.constant 0 : index
      %126 = vector.load %arg9[%c0_132, %c0_133] : memref<256x128xf32, #tpu.memory_space<vmem>>, vector<256x128xf32>
      tpu.vector_store %arg9[%c0_132, %c0_133], %125 {strides = array<i32>} : memref<256x128xf32, #tpu.memory_space<vmem>>, vector<256x128xf32>,
      %c45 = arith.constant 45 : index
      %c0_134 = arith.constant 0 : index
      %127 = vector.load %arg9[%c45, %c0_134] : memref<256x128xf32, #tpu.memory_space<vmem>>, vector<196x128xf32>
      %128 = arith.addf %122, %127 : vector<196x128xf32>
      %c19 = arith.constant 19 : index
      %c0_135 = arith.constant 0 : index
      %c0_136 = arith.constant 0 : index
      %129 = vector.load %arg5[%c19, %c0_135, %c0_136] : memref<25x128x128xbf16, #tpu.memory_space<vmem>>, vector<1x128x128xbf16>
      %130 = vector.shape_cast %129 : vector<1x128x128xbf16> to vector<128x128xbf16>
      %cst_137 = arith.constant dense<0.000000e+00> : vector<256x128xf32>
      %131 = tpu.matmul %13, %130, %cst_137 {dimension_numbers = #tpu.dot_dimension_numbers<[1], [0], [0], [1], [0, 0, 1, 1], [], []>} : vector<256x128xbf16>, vector<128x128xbf16>, vector<256x128xf32> -> vector<256x128xf32>
      %c0_138 = arith.constant 0 : index
      %c0_139 = arith.constant 0 : index
      %132 = vector.load %arg9[%c0_138, %c0_139] : memref<256x128xf32, #tpu.memory_space<vmem>>, vector<256x128xf32>
      tpu.vector_store %arg9[%c0_138, %c0_139], %131 {strides = array<i32>} : memref<256x128xf32, #tpu.memory_space<vmem>>, vector<256x128xf32>,
      %c46 = arith.constant 46 : index
      %c0_140 = arith.constant 0 : index
      %133 = vector.load %arg9[%c46, %c0_140] : memref<256x128xf32, #tpu.memory_space<vmem>>, vector<196x128xf32>
      %134 = arith.addf %128, %133 : vector<196x128xf32>
      %c20 = arith.constant 20 : index
      %c0_141 = arith.constant 0 : index
      %c0_142 = arith.constant 0 : index
      %135 = vector.load %arg5[%c20, %c0_141, %c0_142] : memref<25x128x128xbf16, #tpu.memory_space<vmem>>, vector<1x128x128xbf16>
      %136 = vector.shape_cast %135 : vector<1x128x128xbf16> to vector<128x128xbf16>
      %cst_143 = arith.constant dense<0.000000e+00> : vector<256x128xf32>
      %137 = tpu.matmul %13, %136, %cst_143 {dimension_numbers = #tpu.dot_dimension_numbers<[1], [0], [0], [1], [0, 0, 1, 1], [], []>} : vector<256x128xbf16>, vector<128x128xbf16>, vector<256x128xf32> -> vector<256x128xf32>
      %c0_144 = arith.constant 0 : index
      %c0_145 = arith.constant 0 : index
      %138 = vector.load %arg9[%c0_144, %c0_145] : memref<256x128xf32, #tpu.memory_space<vmem>>, vector<256x128xf32>
      tpu.vector_store %arg9[%c0_144, %c0_145], %137 {strides = array<i32>} : memref<256x128xf32, #tpu.memory_space<vmem>>, vector<256x128xf32>,
      %c56 = arith.constant 56 : index
      %c0_146 = arith.constant 0 : index
      %139 = vector.load %arg9[%c56, %c0_146] : memref<256x128xf32, #tpu.memory_space<vmem>>, vector<196x128xf32>
      %140 = arith.addf %134, %139 : vector<196x128xf32>
      %c21 = arith.constant 21 : index
      %c0_147 = arith.constant 0 : index
      %c0_148 = arith.constant 0 : index
      %141 = vector.load %arg5[%c21, %c0_147, %c0_148] : memref<25x128x128xbf16, #tpu.memory_space<vmem>>, vector<1x128x128xbf16>
      %142 = vector.shape_cast %141 : vector<1x128x128xbf16> to vector<128x128xbf16>
      %cst_149 = arith.constant dense<0.000000e+00> : vector<256x128xf32>
      %143 = tpu.matmul %13, %142, %cst_149 {dimension_numbers = #tpu.dot_dimension_numbers<[1], [0], [0], [1], [0, 0, 1, 1], [], []>} : vector<256x128xbf16>, vector<128x128xbf16>, vector<256x128xf32> -> vector<256x128xf32>
      %c0_150 = arith.constant 0 : index
      %c0_151 = arith.constant 0 : index
      %144 = vector.load %arg9[%c0_150, %c0_151] : memref<256x128xf32, #tpu.memory_space<vmem>>, vector<256x128xf32>
      tpu.vector_store %arg9[%c0_150, %c0_151], %143 {strides = array<i32>} : memref<256x128xf32, #tpu.memory_space<vmem>>, vector<256x128xf32>,
      %c57 = arith.constant 57 : index
      %c0_152 = arith.constant 0 : index
      %145 = vector.load %arg9[%c57, %c0_152] : memref<256x128xf32, #tpu.memory_space<vmem>>, vector<196x128xf32>
      %146 = arith.addf %140, %145 : vector<196x128xf32>
      %c22 = arith.constant 22 : index
      %c0_153 = arith.constant 0 : index
      %c0_154 = arith.constant 0 : index
      %147 = vector.load %arg5[%c22, %c0_153, %c0_154] : memref<25x128x128xbf16, #tpu.memory_space<vmem>>, vector<1x128x128xbf16>
      %148 = vector.shape_cast %147 : vector<1x128x128xbf16> to vector<128x128xbf16>
      %cst_155 = arith.constant dense<0.000000e+00> : vector<256x128xf32>
      %149 = tpu.matmul %13, %148, %cst_155 {dimension_numbers = #tpu.dot_dimension_numbers<[1], [0], [0], [1], [0, 0, 1, 1], [], []>} : vector<256x128xbf16>, vector<128x128xbf16>, vector<256x128xf32> -> vector<256x128xf32>
      %c0_156 = arith.constant 0 : index
      %c0_157 = arith.constant 0 : index
      %150 = vector.load %arg9[%c0_156, %c0_157] : memref<256x128xf32, #tpu.memory_space<vmem>>, vector<256x128xf32>
      tpu.vector_store %arg9[%c0_156, %c0_157], %149 {strides = array<i32>} : memref<256x128xf32, #tpu.memory_space<vmem>>, vector<256x128xf32>,
      %c58 = arith.constant 58 : index
      %c0_158 = arith.constant 0 : index
      %151 = vector.load %arg9[%c58, %c0_158] : memref<256x128xf32, #tpu.memory_space<vmem>>, vector<196x128xf32>
      %152 = arith.addf %146, %151 : vector<196x128xf32>
      %c23 = arith.constant 23 : index
      %c0_159 = arith.constant 0 : index
      %c0_160 = arith.constant 0 : index
      %153 = vector.load %arg5[%c23, %c0_159, %c0_160] : memref<25x128x128xbf16, #tpu.memory_space<vmem>>, vector<1x128x128xbf16>
      %154 = vector.shape_cast %153 : vector<1x128x128xbf16> to vector<128x128xbf16>
      %cst_161 = arith.constant dense<0.000000e+00> : vector<256x128xf32>
      %155 = tpu.matmul %13, %154, %cst_161 {dimension_numbers = #tpu.dot_dimension_numbers<[1], [0], [0], [1], [0, 0, 1, 1], [], []>} : vector<256x128xbf16>, vector<128x128xbf16>, vector<256x128xf32> -> vector<256x128xf32>
      %c0_162 = arith.constant 0 : index
      %c0_163 = arith.constant 0 : index
      %156 = vector.load %arg9[%c0_162, %c0_163] : memref<256x128xf32, #tpu.memory_space<vmem>>, vector<256x128xf32>
      tpu.vector_store %arg9[%c0_162, %c0_163], %155 {strides = array<i32>} : memref<256x128xf32, #tpu.memory_space<vmem>>, vector<256x128xf32>,
      %c59 = arith.constant 59 : index
      %c0_164 = arith.constant 0 : index
      %157 = vector.load %arg9[%c59, %c0_164] : memref<256x128xf32, #tpu.memory_space<vmem>>, vector<196x128xf32>
      %158 = arith.addf %152, %157 : vector<196x128xf32>
      %c24 = arith.constant 24 : index
      %c0_165 = arith.constant 0 : index
      %c0_166 = arith.constant 0 : index
      %159 = vector.load %arg5[%c24, %c0_165, %c0_166] : memref<25x128x128xbf16, #tpu.memory_space<vmem>>, vector<1x128x128xbf16>
      %160 = vector.shape_cast %159 : vector<1x128x128xbf16> to vector<128x128xbf16>
      %cst_167 = arith.constant dense<0.000000e+00> : vector<256x128xf32>
      %161 = tpu.matmul %13, %160, %cst_167 {dimension_numbers = #tpu.dot_dimension_numbers<[1], [0], [0], [1], [0, 0, 1, 1], [], []>} : vector<256x128xbf16>, vector<128x128xbf16>, vector<256x128xf32> -> vector<256x128xf32>
      %c0_168 = arith.constant 0 : index
      %c0_169 = arith.constant 0 : index
      %162 = vector.load %arg9[%c0_168, %c0_169] : memref<256x128xf32, #tpu.memory_space<vmem>>, vector<256x128xf32>
      tpu.vector_store %arg9[%c0_168, %c0_169], %161 {strides = array<i32>} : memref<256x128xf32, #tpu.memory_space<vmem>>, vector<256x128xf32>,
      %c60 = arith.constant 60 : index
      %c0_170 = arith.constant 0 : index
      %163 = vector.load %arg9[%c60, %c0_170] : memref<256x128xf32, #tpu.memory_space<vmem>>, vector<196x128xf32>
      %164 = arith.addf %158, %163 : vector<196x128xf32>
      %c0_171 = arith.constant 0 : index
      %c0_172 = arith.constant 0 : index
      %165 = vector.load %arg6[%c0_171, %c0_172] : memref<1x128xf32, #tpu.memory_space<vmem>>, vector<1x128xf32>
      %166 = vector.broadcast %165 : vector<1x128xf32> to vector<196x128xf32>
      %167 = arith.addf %164, %166 : vector<196x128xf32>
      %168 = math.tanh %167 : vector<196x128xf32>
      %169 = arith.truncf %168 : vector<196x128xf32> to vector<196x128xbf16>
      %c0_173 = arith.constant 0 : index
      %c0_174 = arith.constant 0 : index
      %170 = vector.load %arg7[%c0_173, %c0_174] : memref<25x196xbf16, #tpu.memory_space<vmem>>, vector<25x196xbf16>
      %cst_175 = arith.constant dense<0.000000e+00> : vector<25x128xf32>
      %171 = tpu.matmul %170, %169, %cst_175 {dimension_numbers = #tpu.dot_dimension_numbers<[1], [0], [0], [1], [0, 0, 1, 1], [], []>} : vector<25x196xbf16>, vector<196x128xbf16>, vector<25x128xf32> -> vector<25x128xf32>
      %172 = arith.truncf %171 : vector<25x128xf32> to vector<25x128xbf16>
      %173 = arith.index_cast %arg10 : i32 to index
      %c0_176 = arith.constant 0 : index
      %c0_177 = arith.constant 0 : index
      %174 = vector.load %arg8[%173, %c0_176, %c0_177] : memref<8x25x128xbf16, #tpu.memory_space<vmem>>, vector<1x25x128xbf16>
      %175 = vector.shape_cast %174 : vector<1x25x128xbf16> to vector<25x128xbf16>
      %176 = vector.shape_cast %172 : vector<25x128xbf16> to vector<1x25x128xbf16>
      tpu.vector_store %arg8[%173, %c0_176, %c0_177], %176 {strides = array<i32>} : memref<8x25x128xbf16, #tpu.memory_space<vmem>>, vector<1x25x128xbf16>,
    }
    %c8_i32_0 = arith.constant 8 : i32
    return
  }
  func.func @transform_0(%arg0: i32) -> (i32, i32, i32) {
    %c0_i32 = arith.constant 0 : i32
    %c0_i32_0 = arith.constant 0 : i32
    %c0_i32_1 = arith.constant 0 : i32
    return %arg0, %c0_i32, %c0_i32_0 : i32, i32, i32
  }
  func.func @transform_1(%arg0: i32) -> (i32, i32) {
    %c0_i32 = arith.constant 0 : i32
    %c0_i32_0 = arith.constant 0 : i32
    %c0_i32_1 = arith.constant 0 : i32
    return %c0_i32, %c0_i32_0 : i32, i32
  }
  func.func @transform_2(%arg0: i32) -> (i32, i32) {
    %c0_i32 = arith.constant 0 : i32
    %c0_i32_0 = arith.constant 0 : i32
    %c0_i32_1 = arith.constant 0 : i32
    return %c0_i32, %c0_i32_0 : i32, i32
  }
  func.func @transform_3(%arg0: i32) -> (i32, i32) {
    %c0_i32 = arith.constant 0 : i32
    %c0_i32_0 = arith.constant 0 : i32
    %c0_i32_1 = arith.constant 0 : i32
    return %c0_i32, %c0_i32_0 : i32, i32
  }
  func.func @transform_4(%arg0: i32) -> (i32, i32, i32) {
    %c0_i32 = arith.constant 0 : i32
    %c0_i32_0 = arith.constant 0 : i32
    %c0_i32_1 = arith.constant 0 : i32
    %c0_i32_2 = arith.constant 0 : i32
    return %c0_i32, %c0_i32_0, %c0_i32_1 : i32, i32, i32
  }
  func.func @transform_5(%arg0: i32) -> (i32, i32) {
    %c0_i32 = arith.constant 0 : i32
    %c0_i32_0 = arith.constant 0 : i32
    %c0_i32_1 = arith.constant 0 : i32
    return %c0_i32, %c0_i32_0 : i32, i32
  }
  func.func @transform_6(%arg0: i32) -> (i32, i32) {
    %c0_i32 = arith.constant 0 : i32
    %c0_i32_0 = arith.constant 0 : i32
    %c0_i32_1 = arith.constant 0 : i32
    return %c0_i32, %c0_i32_0 : i32, i32
  }
  func.func @transform_7(%arg0: i32) -> (i32, i32, i32) {
    %c0_i32 = arith.constant 0 : i32
    %c0_i32_0 = arith.constant 0 : i32
    %c0_i32_1 = arith.constant 0 : i32
    return %arg0, %c0_i32, %c0_i32_0 : i32, i32, i32
  }
}

module attributes {stable_mosaic.version = 11 : i64} {
  func.func @_fc_fused_kernel(%arg0: i32, %arg1: memref<16x3200xbf16, #tpu.memory_space<vmem>>, %arg2: memref<3200x128xbf16, #tpu.memory_space<vmem>>, %arg3: memref<1x128xf32, #tpu.memory_space<vmem>>, %arg4: memref<128x128xbf16, #tpu.memory_space<vmem>>, %arg5: memref<1x128xf32, #tpu.memory_space<vmem>>, %arg6: memref<128x128xbf16, #tpu.memory_space<vmem>>, %arg7: memref<1x128xf32, #tpu.memory_space<vmem>>, %arg8: memref<16x128xf32, #tpu.memory_space<vmem>>) attributes {dimension_semantics = [#tpu.dimension_semantics<parallel>], iteration_bounds = array<i64: 1>, scalar_prefetch = 0 : i64, scratch_operands = 0 : i64, tpu.core_type = #tpu.core_type<tc>, window_params = [{transform_indices = @transform_0, window_bounds = array<i64: 16, 3200>}, {pipeline_mode = #tpu.pipeline_mode<synchronous>, transform_indices = @transform_1, window_bounds = array<i64: 3200, 128>}, {pipeline_mode = #tpu.pipeline_mode<synchronous>, transform_indices = @transform_2, window_bounds = array<i64: 1, 128>}, {pipeline_mode = #tpu.pipeline_mode<synchronous>, transform_indices = @transform_3, window_bounds = array<i64: 128, 128>}, {pipeline_mode = #tpu.pipeline_mode<synchronous>, transform_indices = @transform_4, window_bounds = array<i64: 1, 128>}, {pipeline_mode = #tpu.pipeline_mode<synchronous>, transform_indices = @transform_5, window_bounds = array<i64: 128, 128>}, {pipeline_mode = #tpu.pipeline_mode<synchronous>, transform_indices = @transform_6, window_bounds = array<i64: 1, 128>}, {transform_indices = @transform_7, window_bounds = array<i64: 16, 128>}]} {
    %c0 = arith.constant 0 : index
    %c0_0 = arith.constant 0 : index
    %0 = vector.load %arg1[%c0, %c0_0] : memref<16x3200xbf16, #tpu.memory_space<vmem>>, vector<16x3200xbf16>
    %c0_1 = arith.constant 0 : index
    %c0_2 = arith.constant 0 : index
    %1 = vector.load %arg2[%c0_1, %c0_2] : memref<3200x128xbf16, #tpu.memory_space<vmem>>, vector<3200x128xbf16>
    %cst = arith.constant dense<0.000000e+00> : vector<16x128xf32>
    %2 = tpu.matmul %0, %1, %cst {dimension_numbers = #tpu.dot_dimension_numbers<[1], [0], [0], [1], [0, 0, 1, 1], [], []>} : vector<16x3200xbf16>, vector<3200x128xbf16>, vector<16x128xf32> -> vector<16x128xf32>
    %c0_3 = arith.constant 0 : index
    %c0_4 = arith.constant 0 : index
    %3 = vector.load %arg3[%c0_3, %c0_4] : memref<1x128xf32, #tpu.memory_space<vmem>>, vector<1x128xf32>
    %4 = vector.broadcast %3 : vector<1x128xf32> to vector<16x128xf32>
    %5 = arith.addf %2, %4 : vector<16x128xf32>
    %6 = math.tanh %5 : vector<16x128xf32>
    %7 = arith.truncf %6 : vector<16x128xf32> to vector<16x128xbf16>
    %c0_5 = arith.constant 0 : index
    %c0_6 = arith.constant 0 : index
    %8 = vector.load %arg4[%c0_5, %c0_6] : memref<128x128xbf16, #tpu.memory_space<vmem>>, vector<128x128xbf16>
    %cst_7 = arith.constant dense<0.000000e+00> : vector<16x128xf32>
    %9 = tpu.matmul %7, %8, %cst_7 {dimension_numbers = #tpu.dot_dimension_numbers<[1], [0], [0], [1], [0, 0, 1, 1], [], []>} : vector<16x128xbf16>, vector<128x128xbf16>, vector<16x128xf32> -> vector<16x128xf32>
    %c0_8 = arith.constant 0 : index
    %c0_9 = arith.constant 0 : index
    %10 = vector.load %arg5[%c0_8, %c0_9] : memref<1x128xf32, #tpu.memory_space<vmem>>, vector<1x128xf32>
    %11 = vector.broadcast %10 : vector<1x128xf32> to vector<16x128xf32>
    %12 = arith.addf %9, %11 : vector<16x128xf32>
    %13 = math.tanh %12 : vector<16x128xf32>
    %14 = arith.truncf %13 : vector<16x128xf32> to vector<16x128xbf16>
    %c0_10 = arith.constant 0 : index
    %c0_11 = arith.constant 0 : index
    %15 = vector.load %arg6[%c0_10, %c0_11] : memref<128x128xbf16, #tpu.memory_space<vmem>>, vector<128x128xbf16>
    %cst_12 = arith.constant dense<0.000000e+00> : vector<16x128xf32>
    %16 = tpu.matmul %14, %15, %cst_12 {dimension_numbers = #tpu.dot_dimension_numbers<[1], [0], [0], [1], [0, 0, 1, 1], [], []>} : vector<16x128xbf16>, vector<128x128xbf16>, vector<16x128xf32> -> vector<16x128xf32>
    %c0_13 = arith.constant 0 : index
    %c0_14 = arith.constant 0 : index
    %17 = vector.load %arg7[%c0_13, %c0_14] : memref<1x128xf32, #tpu.memory_space<vmem>>, vector<1x128xf32>
    %18 = vector.broadcast %17 : vector<1x128xf32> to vector<16x128xf32>
    %19 = arith.addf %16, %18 : vector<16x128xf32>
    %c0_15 = arith.constant 0 : index
    %c0_16 = arith.constant 0 : index
    %20 = vector.load %arg8[%c0_15, %c0_16] : memref<16x128xf32, #tpu.memory_space<vmem>>, vector<16x128xf32>
    tpu.vector_store %arg8[%c0_15, %c0_16], %19 {strides = array<i32>} : memref<16x128xf32, #tpu.memory_space<vmem>>, vector<16x128xf32>,
    return
  }
  func.func @transform_0(%arg0: i32) -> (i32, i32) {
    %c0_i32 = arith.constant 0 : i32
    %c0_i32_0 = arith.constant 0 : i32
    return %arg0, %c0_i32 : i32, i32
  }
  func.func @transform_1(%arg0: i32) -> (i32, i32) {
    %c0_i32 = arith.constant 0 : i32
    %c0_i32_0 = arith.constant 0 : i32
    %c0_i32_1 = arith.constant 0 : i32
    return %c0_i32, %c0_i32_0 : i32, i32
  }
  func.func @transform_2(%arg0: i32) -> (i32, i32) {
    %c0_i32 = arith.constant 0 : i32
    %c0_i32_0 = arith.constant 0 : i32
    %c0_i32_1 = arith.constant 0 : i32
    return %c0_i32, %c0_i32_0 : i32, i32
  }
  func.func @transform_3(%arg0: i32) -> (i32, i32) {
    %c0_i32 = arith.constant 0 : i32
    %c0_i32_0 = arith.constant 0 : i32
    %c0_i32_1 = arith.constant 0 : i32
    return %c0_i32, %c0_i32_0 : i32, i32
  }
  func.func @transform_4(%arg0: i32) -> (i32, i32) {
    %c0_i32 = arith.constant 0 : i32
    %c0_i32_0 = arith.constant 0 : i32
    %c0_i32_1 = arith.constant 0 : i32
    return %c0_i32, %c0_i32_0 : i32, i32
  }
  func.func @transform_5(%arg0: i32) -> (i32, i32) {
    %c0_i32 = arith.constant 0 : i32
    %c0_i32_0 = arith.constant 0 : i32
    %c0_i32_1 = arith.constant 0 : i32
    return %c0_i32, %c0_i32_0 : i32, i32
  }
  func.func @transform_6(%arg0: i32) -> (i32, i32) {
    %c0_i32 = arith.constant 0 : i32
    %c0_i32_0 = arith.constant 0 : i32
    %c0_i32_1 = arith.constant 0 : i32
    return %c0_i32, %c0_i32_0 : i32, i32
  }
  func.func @transform_7(%arg0: i32) -> (i32, i32) {
    %c0_i32 = arith.constant 0 : i32
    %c0_i32_0 = arith.constant 0 : i32
    return %arg0, %c0_i32 : i32, i32
  }
}

</mosaic_0001>

<bundles_post_ra>
// kernel: lenet5_forward.3
= control target key start
LH: loop header
LB: loop body
LE: loop exit
PB: predicated region body
PF: predicated region fallthrough
CT: control target
= control target key end

     0   :  { %vm3452_vm0 = vmmov 0   ;;  %s4261_s0 = inlined_call_operand.vmem [shape: bf16[16,3200], index: 0, kind: input, shape index: {}]   ;;  %s4262_s1 = inlined_call_operand.vmem [shape: bf16[3200,128], index: 1, kind: input, shape index: {}]   ;;  %s4263_s2 = inlined_call_operand.vmem [shape: f32[1,128], index: 2, kind: input, shape index: {}]   ;;  %s4264_s3 = inlined_call_operand.vmem [shape: bf16[128,128], index: 3, kind: input, shape index: {}]   ;;  %s4265_s4 = inlined_call_operand.vmem [shape: f32[1,128], index: 4, kind: input, shape index: {}]   ;;  %s4266_s5 = inlined_call_operand.vmem [shape: bf16[128,128], index: 5, kind: input, shape index: {}]   ;;  %s4267_s6 = inlined_call_operand.vmem [shape: f32[1,128], index: 6, kind: input, shape index: {}]   ;;  %s4268_s7 = inlined_call_operand.hbm [shape: f32[16,128], index: 7, kind: output, shape index: {}]  }
   0x1   :  { %v3168_v0 = vld [vmem:[%s4262_s1 + $0x78] sm:$0xff]   ;;  %v3172_v4 = vld [vmem:[%s4262_s1 + $0x70] sm:$0xff]   ;;  %v3176_v8 = vld [vmem:[%s4262_s1 + $0x68] sm:$0xff]  }
   0x2   :  { %v3169_v1 = vld [vmem:[%s4262_s1 + $0x38] sm:$0xff]   ;;  %2812 = vmatprep.subr.bf16.mxu0 %v3168_v0  ;;  %v3173_v5 = vld [vmem:[%s4262_s1 + $0x30] sm:$0xff]   ;;  %v3177_v9 = vld [vmem:[%s4262_s1 + $0x28] sm:$0xff]  }
   0x3   :  { %v3170_v2 = vld [vmem:[%s4262_s1 + $0xf8] sm:$0xff]   ;;  %2813 = vmatpush3.bf16.msra.mxu0 %v3169_v1  ;;  %v3174_v6 = vld [vmem:[%s4262_s1 + $0xf0] sm:$0xff]   ;;  %v3178_v10 = vld [vmem:[%s4262_s1 + $0xe8] sm:$0xff]  }
   0x4   :  { %v3171_v3 = vld [vmem:[%s4262_s1 + $0xb8] sm:$0xff]   ;;  %2834 = vmatprep.subr.bf16.mxu1 %v3170_v2  ;;  %2814 = vmatprep.subr.bf16.mxu0 %v3172_v4  ;;  %v3175_v7 = vld [vmem:[%s4262_s1 + $0xb0] sm:$0xff]   ;;  %v3179_v11 = vld [vmem:[%s4262_s1 + $0xa8] sm:$0xff]  }
   0x5   :  { %2835 = vmatpush3.bf16.msra.mxu1 %v3171_v3  ;;  %v3180_v12 = vld [vmem:[%s4262_s1 + $0x60] sm:$0xff]   ;;  %v3184_v16 = vld [vmem:[%s4262_s1 + $0x58] sm:$0xff]   ;;  %v3188_v20 = vld [vmem:[%s4262_s1 + $0x50] sm:$0xff]  }
   0x6   :  { %2836 = vmatprep.subr.bf16.mxu1 %v3174_v6  ;;  %v3181_v13 = vld [vmem:[%s4262_s1 + $0x20] sm:$0xff]   ;;  %v3185_v17 = vld [vmem:[%s4262_s1 + $0x18] sm:$0xff]   ;;  %v3189_v21 = vld [vmem:[%s4262_s1 + $0x10] sm:$0xff]  }
   0x7   :  { %2815 = vmatpush3.bf16.msra.mxu0 %v3173_v5  ;;  %v3182_v14 = vld [vmem:[%s4262_s1 + $0xe0] sm:$0xff]   ;;  %v3186_v18 = vld [vmem:[%s4262_s1 + $0xd8] sm:$0xff]   ;;  %v3190_v22 = vld [vmem:[%s4262_s1 + $0xd0] sm:$0xff]  }
   0x8   :  { %2816 = vmatprep.subr.bf16.mxu0 %v3176_v8  ;;  %v3183_v15 = vld [vmem:[%s4262_s1 + $0xa0] sm:$0xff]   ;;  %v3187_v19 = vld [vmem:[%s4262_s1 + $0x98] sm:$0xff]   ;;  %v3191_v23 = vld [vmem:[%s4262_s1 + $0x90] sm:$0xff]  }
   0x9   :  { %2837 = vmatpush3.bf16.msra.mxu1 %v3175_v7  ;;  %v3192_v24 = vld [vmem:[%s4262_s1 + $0x48] sm:$0xff]   ;;  %v3196_v28 = vld [vmem:[%s4262_s1 + $0x40] sm:$0xff]   ;;  %v3203_v34 = vld [vmem:[%s4262_s1 + $0x178] sm:$0xff]  }
   0xa   :  { %2838 = vmatprep.subr.bf16.mxu1 %v3178_v10  ;;  %v3193_v25 = vld [vmem:[%s4262_s1 + $0x8] sm:$0xff]   ;;  %v3197_v29 = vld [vmem:[%s4262_s1] sm:$0xff]   ;;  %v3207_v37 = vld [vmem:[%s4262_s1 + $0x138] sm:$0xff]  }
   0xb   :  { %2817 = vmatpush3.bf16.msra.mxu0 %v3177_v9  ;;  %v3194_v26 = vld [vmem:[%s4262_s1 + $0xc8] sm:$0xff]   ;;  %v3198_v30 = vld [vmem:[%s4262_s1 + $0xc0] sm:$0xff]   ;;  %v3208_v38 = vld [vmem:[%s4262_s1 + $0x1f8] sm:$0xff]  }
   0xc   :  { %2818 = vmatprep.subr.bf16.mxu0 %v3180_v12  ;;  %v3195_v27 = vld [vmem:[%s4262_s1 + $0x88] sm:$0xff]   ;;  %v3199_v31 = vld [vmem:[%s4261_s0] ss:$100 sps:$4 sm:$0xff]   ;;  %v3209_v39 = vld [vmem:[%s4262_s1 + $0x1b8] sm:$0xff]  }
   0xd   :  { %2839 = vmatpush3.bf16.msra.mxu1 %v3179_v11  ;;  %v3201_v32 = vld [vmem:[%s4261_s0 + $0x4] ss:$100 sps:$4 sm:$0xff]   ;;  %v3206_v36 = vld [vmem:[%s4261_s0 + $0xc] ss:$100 sps:$4 sm:$0xff]   ;;  %v3222_v52 = vld [vmem:[%s4262_s1 + $0x158] sm:$0xff]  }
   0xe   :  { %2840 = vmatprep.subr.bf16.mxu1 %v3182_v14  ;;  %v3202_v33 = vld [vmem:[%s4262_s1 + $0x80] sm:$0xff]   ;;  %1819 = vmatprep.mubr.bf16.mxu0 %v3201_v32  ;;  %v3204_v35 = vld [vmem:[%s4261_s0 + $0x8] ss:$100 sps:$4 sm:$0xff]   ;;  %v3210_v40 = vld [vmem:[%s4262_s1 + $0x170] sm:$0xff]  }
   0xf   :  { %2819 = vmatpush3.bf16.msra.mxu0 %v3181_v13  ;;  %1860 = vmatprep.mubr.bf16.mxu1 %v3206_v36  ;;  %v3211_v41 = vld [vmem:[%s4262_s1 + $0x130] sm:$0xff]   ;;  %v3214_v44 = vld [vmem:[%s4262_s1 + $0x168] sm:$0xff]   ;;  %v3218_v48 = vld [vmem:[%s4262_s1 + $0x160] sm:$0xff]  }
  0x10   :  { %2820 = vmatprep.subr.bf16.mxu0 %v3184_v16  ;;  %v3212_v42 = vld [vmem:[%s4262_s1 + $0x1f0] sm:$0xff]   ;;  %v3215_v45 = vld [vmem:[%s4262_s1 + $0x128] sm:$0xff]   ;;  %v3219_v49 = vld [vmem:[%s4262_s1 + $0x120] sm:$0xff]  }
  0x11   :  { %2841 = vmatpush3.bf16.msra.mxu1 %v3183_v15  ;;  %v3213_v43 = vld [vmem:[%s4262_s1 + $0x1b0] sm:$0xff]   ;;  %v3216_v46 = vld [vmem:[%s4262_s1 + $0x1e8] sm:$0xff]   ;;  %v3220_v50 = vld [vmem:[%s4262_s1 + $0x1e0] sm:$0xff]  }
  0x12   :  { %2842 = vmatprep.subr.bf16.mxu1 %v3186_v18  ;;  %v3217_v47 = vld [vmem:[%s4262_s1 + $0x1a8] sm:$0xff]   ;;  %v3221_v51 = vld [vmem:[%s4262_s1 + $0x1a0] sm:$0xff]   ;;  %v3223_v53 = vld [vmem:[%s4262_s1 + $0x118] sm:$0xff]  }
  0x13   :  { %2821 = vmatpush3.bf16.msra.mxu0 %v3185_v17  ;;  %v3224_v54 = vld [vmem:[%s4262_s1 + $0x1d8] sm:$0xff]   ;;  %v3226_v56 = vld [vmem:[%s4262_s1 + $0x150] sm:$0xff]   ;;  %v3230_v60 = vld [vmem:[%s4262_s1 + $0x148] sm:$0xff]  }
  0x14   :  { %2822 = vmatprep.subr.bf16.mxu0 %v3188_v20  ;;  %v3225_v55 = vld [vmem:[%s4262_s1 + $0x198] sm:$0xff]   ;;  %v3227_v57 = vld [vmem:[%s4262_s1 + $0x110] sm:$0xff]   ;;  %v3231_v61 = vld [vmem:[%s4262_s1 + $0x108] sm:$0xff]  }
  0x15   :  { %2843 = vmatpush3.bf16.msra.mxu1 %v3187_v19  ;;  %v3228_v58 = vld [vmem:[%s4262_s1 + $0x1d0] sm:$0xff]   ;;  %v3232_v62 = vld [vmem:[%s4262_s1 + $0x1c8] sm:$0xff]   ;;  %v3234_v0 = vld [vmem:[%s4262_s1 + $0x140] sm:$0xff]  }
  0x16   :  { %2844 = vmatprep.subr.bf16.mxu1 %v3190_v22  ;;  %v3229_v59 = vld [vmem:[%s4262_s1 + $0x190] sm:$0xff]   ;;  %v3233_v63 = vld [vmem:[%s4262_s1 + $0x188] sm:$0xff]   ;;  %v3235_v1 = vld [vmem:[%s4262_s1 + $0x100] sm:$0xff]  }
  0x17   :  { %2823 = vmatpush3.bf16.msra.mxu0 %v3189_v21  ;;  %v3236_v2 = vld [vmem:[%s4262_s1 + $0x1c0] sm:$0xff]   ;;  %v3237_v3 = vld [vmem:[%s4261_s0 + $0x10] ss:$100 sps:$4 sm:$0xff]   ;;  %v3241_v6 = vld [vmem:[%s4262_s1 + $0x278] sm:$0xff]  }
  0x18   :  { %2824 = vmatprep.subr.bf16.mxu0 %v3192_v24  ;;  %v3239_v4 = vld [vmem:[%s4261_s0 + $0x14] ss:$100 sps:$4 sm:$0xff]   ;;  %v3240_v5 = vld [vmem:[%s4262_s1 + $0x180] sm:$0xff]   ;;  %v3252_v16 = vld [vmem:[%s4262_s1 + $0x268] sm:$0xff]  }
  0x19   :  { %2845 = vmatpush3.bf16.msra.mxu1 %v3191_v23  ;;  %v3242_v7 = vld [vmem:[%s4261_s0 + $0x18] ss:$100 sps:$4 sm:$0xff]   ;;  %v3248_v12 = vld [vmem:[%s4262_s1 + $0x270] sm:$0xff]   ;;  %v3253_v17 = vld [vmem:[%s4262_s1 + $0x228] sm:$0xff]  }
  0x1a   :  { %2846 = vmatprep.subr.bf16.mxu1 %v3194_v26  ;;  %v3244_v8 = vld [vmem:[%s4261_s0 + $0x1c] ss:$100 sps:$4 sm:$0xff]   ;;  %v3249_v13 = vld [vmem:[%s4262_s1 + $0x230] sm:$0xff]   ;;  %v3254_v18 = vld [vmem:[%s4262_s1 + $0x2e8] sm:$0xff]  }
  0x1b   :  { %2825 = vmatpush3.bf16.msra.mxu0 %v3193_v25  ;;  %v3245_v9 = vld [vmem:[%s4262_s1 + $0x238] sm:$0xff]   ;;  %v3250_v14 = vld [vmem:[%s4262_s1 + $0x2f0] sm:$0xff]   ;;  %v3255_v19 = vld [vmem:[%s4262_s1 + $0x2a8] sm:$0xff]  }
  0x1c   :  { %2826 = vmatprep.subr.bf16.mxu0 %v3196_v28  ;;  %v3246_v10 = vld [vmem:[%s4262_s1 + $0x2f8] sm:$0xff]   ;;  %v3251_v15 = vld [vmem:[%s4262_s1 + $0x2b0] sm:$0xff]   ;;  %v3256_v20 = vld [vmem:[%s4262_s1 + $0x260] sm:$0xff]  }
  0x1d   :  { %2847 = vmatpush3.bf16.msra.mxu1 %v3195_v27  ;;  %v3247_v11 = vld [vmem:[%s4262_s1 + $0x2b8] sm:$0xff]   ;;  %v3257_v21 = vld [vmem:[%s4262_s1 + $0x220] sm:$0xff]   ;;  %v3264_v28 = vld [vmem:[%s4262_s1 + $0x250] sm:$0xff]  }
  0x1e   :  { %2848 = vmatprep.subr.bf16.mxu1 %v3198_v30  ;;  %v3258_v22 = vld [vmem:[%s4262_s1 + $0x2e0] sm:$0xff]   ;;  %v3260_v24 = vld [vmem:[%s4262_s1 + $0x258] sm:$0xff]   ;;  %v3266_v30 = vld [vmem:[%s4262_s1 + $0x2d0] sm:$0xff]  }
  0x1f   :  { %2827 = vmatpush3.bf16.msra.mxu0 %v3197_v29  ;;  %v3259_v23 = vld [vmem:[%s4262_s1 + $0x2a0] sm:$0xff]   ;;  %v3261_v25 = vld [vmem:[%s4262_s1 + $0x218] sm:$0xff]   ;;  %v3265_v29 = vld [vmem:[%s4262_s1 + $0x210] sm:$0xff]  }
  0x20   :  { %2856 = vmatprep.subr.bf16.mxu0 %v3203_v34  ;;  %v3262_v26 = vld [vmem:[%s4262_s1 + $0x2d8] sm:$0xff]   ;;  %v3268_v32 = vld [vmem:[%s4262_s1 + $0x248] sm:$0xff]   ;;  %v3272_v36 = vld [vmem:[%s4262_s1 + $0x240] sm:$0xff]  }
  0x21   :  { %2849 = vmatpush3.bf16.msra.mxu1 %v3202_v33  ;;  %v3263_v27 = vld [vmem:[%s4262_s1 + $0x298] sm:$0xff]   ;;  %v3269_v33 = vld [vmem:[%s4262_s1 + $0x208] sm:$0xff]  }
  0x22   :  { %1820 = vmatmul.mubr.bf16.vlgmr.msra.gmra.mxu0 %v3199_v31  ;;  %2878 = vmatprep.subr.bf16.mxu1 %v3208_v38  ;;  %v3267_v31 = vld [vmem:[%s4262_s1 + $0x290] sm:$0xff]   ;;  %v3270_v34 = vld [vmem:[%s4262_s1 + $0x2c8] sm:$0xff]   ;;  %v3274_v38 = vld [vmem:[%s4262_s1 + $0x2c0] sm:$0xff]  }
  0x23   :  { %2857 = vmatpush3.bf16.msra.mxu0 %v3207_v37  ;;  %1901 = vmatprep.mubr.bf16.mxu0 %v3239_v4  ;;  %v3273_v37 = vld [vmem:[%s4262_s1 + $0x200] sm:$0xff]   ;;  %v3306_v4 = vld [vmem:[%s4262_s1 + $0x348] sm:$0xff]  }
  0x24   :  { %1861 = vmatmul.mubr.bf16.vlgmr.msra.gmra.mxu1 %v3204_v35  ;;  %2858 = vmatprep.subr.bf16.mxu0 %v3210_v40  ;;  %v3271_v35 = vld [vmem:[%s4262_s1 + $0x288] sm:$0xff]  }
  0x25   :  { %2879 = vmatpush3.bf16.msra.mxu1 %v3209_v39  ;;  %1942 = vmatprep.mubr.bf16.mxu1 %v3244_v8  ;;  %v3275_v39 = vld [vmem:[%s4261_s0 + $0x20] ss:$100 sps:$4 sm:$0xff]  }
  0x26   :  { %2880 = vmatprep.subr.bf16.mxu1 %v3212_v42  ;;  %v3277_v40 = vld [vmem:[%s4261_s0 + $0x24] ss:$100 sps:$4 sm:$0xff]   ;;  %v3279_v42 = vld [vmem:[%s4262_s1 + $0x378] sm:$0xff]  }
  0x27   :  { %2859 = vmatpush3.bf16.msra.mxu0 %v3211_v41  ;;  %v3278_v41 = vld [vmem:[%s4262_s1 + $0x280] sm:$0xff]  }
  0x28   :  { %2860 = vmatprep.subr.bf16.mxu0 %v3214_v44  ;;  %v3282_v44 = vld [vmem:[%s4261_s0 + $0x2c] ss:$100 sps:$4 sm:$0xff]   ;;  %v3310_v8 = vld [vmem:[%s4262_s1 + $0x340] sm:$0xff]  }
  0x29   :  { %2881 = vmatpush3.bf16.msra.mxu1 %v3213_v43  ;;  %v3280_v43 = vld [vmem:[%s4261_s0 + $0x28] ss:$100 sps:$4 sm:$0xff]  }
  0x2a   :  { %2882 = vmatprep.subr.bf16.mxu1 %v3216_v46  ;;  %v3284_v46 = vld [vmem:[%s4262_s1 + $0x3f8] sm:$0xff]  }
  0x2b   :  { %2861 = vmatpush3.bf16.msra.mxu0 %v3215_v45  ;;  %v3283_v45 = vld [vmem:[%s4262_s1 + $0x338] sm:$0xff]  }
  0x2c   :  { %2862 = vmatprep.subr.bf16.mxu0 %v3218_v48  ;;  %v3286_v48 = vld [vmem:[%s4262_s1 + $0x370] sm:$0xff]  }
  0x2d   :  { %2883 = vmatpush3.bf16.msra.mxu1 %v3217_v47  ;;  %v3285_v47 = vld [vmem:[%s4262_s1 + $0x3b8] sm:$0xff]  }
  0x2e   :  { %2884 = vmatprep.subr.bf16.mxu1 %v3220_v50  ;;  %v3288_v50 = vld [vmem:[%s4262_s1 + $0x3f0] sm:$0xff]  }
  0x2f   :  { %2863 = vmatpush3.bf16.msra.mxu0 %v3219_v49  ;;  %v3287_v49 = vld [vmem:[%s4262_s1 + $0x330] sm:$0xff]  }
  0x30   :  { %2864 = vmatprep.subr.bf16.mxu0 %v3222_v52  ;;  %v3290_v52 = vld [vmem:[%s4262_s1 + $0x368] sm:$0xff]  }
  0x31   :  { %2885 = vmatpush3.bf16.msra.mxu1 %v3221_v51  ;;  %v3289_v51 = vld [vmem:[%s4262_s1 + $0x3b0] sm:$0xff]  }
  0x32   :  { %2886 = vmatprep.subr.bf16.mxu1 %v3224_v54  ;;  %v3292_v54 = vld [vmem:[%s4262_s1 + $0x3e8] sm:$0xff]  }
  0x33   :  { %2865 = vmatpush3.bf16.msra.mxu0 %v3223_v53  ;;  %v3291_v53 = vld [vmem:[%s4262_s1 + $0x328] sm:$0xff]  }
  0x34   :  { %2866 = vmatprep.subr.bf16.mxu0 %v3226_v56  ;;  %v3294_v56 = vld [vmem:[%s4262_s1 + $0x360] sm:$0xff]  }
  0x35   :  { %2887 = vmatpush3.bf16.msra.mxu1 %v3225_v55  ;;  %v3293_v55 = vld [vmem:[%s4262_s1 + $0x3a8] sm:$0xff]  }
  0x36   :  { %2888 = vmatprep.subr.bf16.mxu1 %v3228_v58  ;;  %v3296_v58 = vld [vmem:[%s4262_s1 + $0x3e0] sm:$0xff]  }
  0x37   :  { %2867 = vmatpush3.bf16.msra.mxu0 %v3227_v57  ;;  %v3295_v57 = vld [vmem:[%s4262_s1 + $0x320] sm:$0xff]  }
  0x38   :  { %2868 = vmatprep.subr.bf16.mxu0 %v3230_v60  ;;  %v3298_v60 = vld [vmem:[%s4262_s1 + $0x358] sm:$0xff]  }
  0x39   :  { %2889 = vmatpush3.bf16.msra.mxu1 %v3229_v59  ;;  %v3297_v59 = vld [vmem:[%s4262_s1 + $0x3a0] sm:$0xff]  }
  0x3a   :  { %2890 = vmatprep.subr.bf16.mxu1 %v3232_v62  ;;  %v3300_v62 = vld [vmem:[%s4262_s1 + $0x3d8] sm:$0xff]  }
  0x3b   :  { %2869 = vmatpush3.bf16.msra.mxu0 %v3231_v61  ;;  %v3299_v61 = vld [vmem:[%s4262_s1 + $0x318] sm:$0xff]  }
  0x3c   :  { %2870 = vmatprep.subr.bf16.mxu0 %v3234_v0  ;;  %v3302_v0 = vld [vmem:[%s4262_s1 + $0x350] sm:$0xff]  }
  0x3d   :  { %2891 = vmatpush3.bf16.msra.mxu1 %v3233_v63  ;;  %v3301_v63 = vld [vmem:[%s4262_s1 + $0x398] sm:$0xff]  }
  0x3e   :  { %2892 = vmatprep.subr.bf16.mxu1 %v3236_v2  ;;  %v3304_v2 = vld [vmem:[%s4262_s1 + $0x3d0] sm:$0xff]  }
  0x3f   :  { %2871 = vmatpush3.bf16.msra.mxu0 %v3235_v1  ;;  %v3303_v1 = vld [vmem:[%s4262_s1 + $0x310] sm:$0xff]  }
  0x40   :  { %2900 = vmatprep.subr.bf16.mxu0 %v3241_v6  ;;  %v3308_v6 = vld [vmem:[%s4262_s1 + $0x3c8] sm:$0xff]  }
  0x41   :  { %2893 = vmatpush3.bf16.msra.mxu1 %v3240_v5  ;;  %v3307_v5 = vld [vmem:[%s4262_s1 + $0x308] sm:$0xff]  }
  0x42   :  { %1902 = vmatmul.mubr.bf16.vlgmr.msra.gmra.mxu0 %v3237_v3  ;;  %2922 = vmatprep.subr.bf16.mxu1 %v3246_v10  ;;  %v3305_v3 = vld [vmem:[%s4262_s1 + $0x390] sm:$0xff]   ;;  %v3312_v10 = vld [vmem:[%s4262_s1 + $0x3c0] sm:$0xff]  }
  0x43   :  { %2901 = vmatpush3.bf16.msra.mxu0 %v3245_v9  ;;  %1983 = vmatprep.mubr.bf16.mxu0 %v3277_v40  ;;  %v3311_v9 = vld [vmem:[%s4262_s1 + $0x300] sm:$0xff]   ;;  %v3344_v40 = vld [vmem:[%s4262_s1 + $0x448] sm:$0xff]  }
  0x44   :  { %1943 = vmatmul.mubr.bf16.vlgmr.msra.gmra.mxu1 %v3242_v7  ;;  %2902 = vmatprep.subr.bf16.mxu0 %v3248_v12  ;;  %v3309_v7 = vld [vmem:[%s4262_s1 + $0x388] sm:$0xff]   ;;  %v3315_v12 = vld [vmem:[%s4261_s0 + $0x34] ss:$100 sps:$4 sm:$0xff]  }
  0x45   :  { %2923 = vmatpush3.bf16.msra.mxu1 %v3247_v11  ;;  %2024 = vmatprep.mubr.bf16.mxu1 %v3282_v44  ;;  %v3313_v11 = vld [vmem:[%s4261_s0 + $0x30] ss:$100 sps:$4 sm:$0xff]   ;;  %v3348_v44 = vld [vmem:[%s4262_s1 + $0x440] sm:$0xff]  }
  0x46   :  { %2924 = vmatprep.subr.bf16.mxu1 %v3250_v14  ;;  %v3317_v14 = vld [vmem:[%s4262_s1 + $0x478] sm:$0xff]  }
  0x47   :  { %2903 = vmatpush3.bf16.msra.mxu0 %v3249_v13  ;;  %v3316_v13 = vld [vmem:[%s4262_s1 + $0x380] sm:$0xff]  }
  0x48   :  { %2904 = vmatprep.subr.bf16.mxu0 %v3252_v16  ;;  %v3320_v16 = vld [vmem:[%s4261_s0 + $0x3c] ss:$100 sps:$4 sm:$0xff]  }
  0x49   :  { %2925 = vmatpush3.bf16.msra.mxu1 %v3251_v15  ;;  %v3318_v15 = vld [vmem:[%s4261_s0 + $0x38] ss:$100 sps:$4 sm:$0xff]  }
  0x4a   :  { %2926 = vmatprep.subr.bf16.mxu1 %v3254_v18  ;;  %v3322_v18 = vld [vmem:[%s4262_s1 + $0x4f8] sm:$0xff]  }
  0x4b   :  { %2905 = vmatpush3.bf16.msra.mxu0 %v3253_v17  ;;  %v3321_v17 = vld [vmem:[%s4262_s1 + $0x438] sm:$0xff]  }
  0x4c   :  { %2906 = vmatprep.subr.bf16.mxu0 %v3256_v20  ;;  %v3324_v20 = vld [vmem:[%s4262_s1 + $0x470] sm:$0xff]  }
  0x4d   :  { %2927 = vmatpush3.bf16.msra.mxu1 %v3255_v19  ;;  %v3323_v19 = vld [vmem:[%s4262_s1 + $0x4b8] sm:$0xff]  }
  0x4e   :  { %2928 = vmatprep.subr.bf16.mxu1 %v3258_v22  ;;  %v3326_v22 = vld [vmem:[%s4262_s1 + $0x4f0] sm:$0xff]  }
  0x4f   :  { %2907 = vmatpush3.bf16.msra.mxu0 %v3257_v21  ;;  %v3325_v21 = vld [vmem:[%s4262_s1 + $0x430] sm:$0xff]  }
  0x50   :  { %2908 = vmatprep.subr.bf16.mxu0 %v3260_v24  ;;  %v3328_v24 = vld [vmem:[%s4262_s1 + $0x468] sm:$0xff]  }
  0x51   :  { %2929 = vmatpush3.bf16.msra.mxu1 %v3259_v23  ;;  %v3327_v23 = vld [vmem:[%s4262_s1 + $0x4b0] sm:$0xff]  }
  0x52   :  { %2930 = vmatprep.subr.bf16.mxu1 %v3262_v26  ;;  %v3330_v26 = vld [vmem:[%s4262_s1 + $0x4e8] sm:$0xff]  }
  0x53   :  { %2909 = vmatpush3.bf16.msra.mxu0 %v3261_v25  ;;  %v3329_v25 = vld [vmem:[%s4262_s1 + $0x428] sm:$0xff]  }
  0x54   :  { %2910 = vmatprep.subr.bf16.mxu0 %v3264_v28  ;;  %v3332_v28 = vld [vmem:[%s4262_s1 + $0x460] sm:$0xff]  }
  0x55   :  { %2931 = vmatpush3.bf16.msra.mxu1 %v3263_v27  ;;  %v3331_v27 = vld [vmem:[%s4262_s1 + $0x4a8] sm:$0xff]  }
  0x56   :  { %2932 = vmatprep.subr.bf16.mxu1 %v3266_v30  ;;  %v3334_v30 = vld [vmem:[%s4262_s1 + $0x4e0] sm:$0xff]  }
  0x57   :  { %2911 = vmatpush3.bf16.msra.mxu0 %v3265_v29  ;;  %v3333_v29 = vld [vmem:[%s4262_s1 + $0x420] sm:$0xff]  }
  0x58   :  { %2912 = vmatprep.subr.bf16.mxu0 %v3268_v32  ;;  %v3336_v32 = vld [vmem:[%s4262_s1 + $0x458] sm:$0xff]  }
  0x59   :  { %2933 = vmatpush3.bf16.msra.mxu1 %v3267_v31  ;;  %v3335_v31 = vld [vmem:[%s4262_s1 + $0x4a0] sm:$0xff]  }
  0x5a   :  { %2934 = vmatprep.subr.bf16.mxu1 %v3270_v34  ;;  %v3338_v34 = vld [vmem:[%s4262_s1 + $0x4d8] sm:$0xff]  }
  0x5b   :  { %2913 = vmatpush3.bf16.msra.mxu0 %v3269_v33  ;;  %v3337_v33 = vld [vmem:[%s4262_s1 + $0x418] sm:$0xff]  }
  0x5c   :  { %2914 = vmatprep.subr.bf16.mxu0 %v3272_v36  ;;  %v3340_v36 = vld [vmem:[%s4262_s1 + $0x450] sm:$0xff]  }
  0x5d   :  { %2935 = vmatpush3.bf16.msra.mxu1 %v3271_v35  ;;  %v3339_v35 = vld [vmem:[%s4262_s1 + $0x498] sm:$0xff]  }
  0x5e   :  { %2936 = vmatprep.subr.bf16.mxu1 %v3274_v38  ;;  %v3342_v38 = vld [vmem:[%s4262_s1 + $0x4d0] sm:$0xff]  }
  0x5f   :  { %2915 = vmatpush3.bf16.msra.mxu0 %v3273_v37  ;;  %v3341_v37 = vld [vmem:[%s4262_s1 + $0x410] sm:$0xff]  }
  0x60   :  { %2944 = vmatprep.subr.bf16.mxu0 %v3279_v42  ;;  %v3346_v42 = vld [vmem:[%s4262_s1 + $0x4c8] sm:$0xff]  }
  0x61   :  { %2937 = vmatpush3.bf16.msra.mxu1 %v3278_v41  ;;  %v3345_v41 = vld [vmem:[%s4262_s1 + $0x408] sm:$0xff]  }
  0x62   :  { %1984 = vmatmul.mubr.bf16.vlgmr.msra.gmra.mxu0 %v3275_v39  ;;  %2966 = vmatprep.subr.bf16.mxu1 %v3284_v46  ;;  %v3343_v39 = vld [vmem:[%s4262_s1 + $0x490] sm:$0xff]   ;;  %v3350_v46 = vld [vmem:[%s4262_s1 + $0x4c0] sm:$0xff]  }
  0x63   :  { %2945 = vmatpush3.bf16.msra.mxu0 %v3283_v45  ;;  %2065 = vmatprep.mubr.bf16.mxu0 %v3315_v12  ;;  %v3349_v45 = vld [vmem:[%s4262_s1 + $0x400] sm:$0xff]   ;;  %v3382_v12 = vld [vmem:[%s4262_s1 + $0x548] sm:$0xff]  }
  0x64   :  { %2025 = vmatmul.mubr.bf16.vlgmr.msra.gmra.mxu1 %v3280_v43  ;;  %2946 = vmatprep.subr.bf16.mxu0 %v3286_v48  ;;  %v3347_v43 = vld [vmem:[%s4262_s1 + $0x488] sm:$0xff]  }
  0x65   :  { %2967 = vmatpush3.bf16.msra.mxu1 %v3285_v47  ;;  %2106 = vmatprep.mubr.bf16.mxu1 %v3320_v16  ;;  %v3351_v47 = vld [vmem:[%s4261_s0 + $0x40] ss:$100 sps:$4 sm:$0xff]  }
  0x66   :  { %2968 = vmatprep.subr.bf16.mxu1 %v3288_v50  ;;  %v3353_v48 = vld [vmem:[%s4261_s0 + $0x44] ss:$100 sps:$4 sm:$0xff]   ;;  %v3355_v50 = vld [vmem:[%s4262_s1 + $0x578] sm:$0xff]  }
  0x67   :  { %2947 = vmatpush3.bf16.msra.mxu0 %v3287_v49  ;;  %v3354_v49 = vld [vmem:[%s4262_s1 + $0x480] sm:$0xff]  }
  0x68   :  { %2948 = vmatprep.subr.bf16.mxu0 %v3290_v52  ;;  %v3358_v52 = vld [vmem:[%s4261_s0 + $0x4c] ss:$100 sps:$4 sm:$0xff]   ;;  %v3386_v16 = vld [vmem:[%s4262_s1 + $0x540] sm:$0xff]  }
  0x69   :  { %2969 = vmatpush3.bf16.msra.mxu1 %v3289_v51  ;;  %v3356_v51 = vld [vmem:[%s4261_s0 + $0x48] ss:$100 sps:$4 sm:$0xff]  }
  0x6a   :  { %2970 = vmatprep.subr.bf16.mxu1 %v3292_v54  ;;  %v3360_v54 = vld [vmem:[%s4262_s1 + $0x5f8] sm:$0xff]  }
  0x6b   :  { %2949 = vmatpush3.bf16.msra.mxu0 %v3291_v53  ;;  %v3359_v53 = vld [vmem:[%s4262_s1 + $0x538] sm:$0xff]  }
  0x6c   :  { %2950 = vmatprep.subr.bf16.mxu0 %v3294_v56  ;;  %v3362_v56 = vld [vmem:[%s4262_s1 + $0x570] sm:$0xff]  }
  0x6d   :  { %2971 = vmatpush3.bf16.msra.mxu1 %v3293_v55  ;;  %v3361_v55 = vld [vmem:[%s4262_s1 + $0x5b8] sm:$0xff]  }
  0x6e   :  { %2972 = vmatprep.subr.bf16.mxu1 %v3296_v58  ;;  %v3364_v58 = vld [vmem:[%s4262_s1 + $0x5f0] sm:$0xff]  }
  0x6f   :  { %2951 = vmatpush3.bf16.msra.mxu0 %v3295_v57  ;;  %v3363_v57 = vld [vmem:[%s4262_s1 + $0x530] sm:$0xff]  }
  0x70   :  { %2952 = vmatprep.subr.bf16.mxu0 %v3298_v60  ;;  %v3366_v60 = vld [vmem:[%s4262_s1 + $0x568] sm:$0xff]  }
  0x71   :  { %2973 = vmatpush3.bf16.msra.mxu1 %v3297_v59  ;;  %v3365_v59 = vld [vmem:[%s4262_s1 + $0x5b0] sm:$0xff]  }
  0x72   :  { %2974 = vmatprep.subr.bf16.mxu1 %v3300_v62  ;;  %v3368_v62 = vld [vmem:[%s4262_s1 + $0x5e8] sm:$0xff]  }
  0x73   :  { %2953 = vmatpush3.bf16.msra.mxu0 %v3299_v61  ;;  %v3367_v61 = vld [vmem:[%s4262_s1 + $0x528] sm:$0xff]  }
  0x74   :  { %2954 = vmatprep.subr.bf16.mxu0 %v3302_v0  ;;  %v3370_v0 = vld [vmem:[%s4262_s1 + $0x560] sm:$0xff]  }
  0x75   :  { %2975 = vmatpush3.bf16.msra.mxu1 %v3301_v63  ;;  %v3369_v63 = vld [vmem:[%s4262_s1 + $0x5a8] sm:$0xff]  }
  0x76   :  { %2976 = vmatprep.subr.bf16.mxu1 %v3304_v2  ;;  %v3372_v2 = vld [vmem:[%s4262_s1 + $0x5e0] sm:$0xff]  }
  0x77   :  { %2955 = vmatpush3.bf16.msra.mxu0 %v3303_v1  ;;  %v3371_v1 = vld [vmem:[%s4262_s1 + $0x520] sm:$0xff]  }
  0x78   :  { %2956 = vmatprep.subr.bf16.mxu0 %v3306_v4  ;;  %v3374_v4 = vld [vmem:[%s4262_s1 + $0x558] sm:$0xff]  }
  0x79   :  { %2977 = vmatpush3.bf16.msra.mxu1 %v3305_v3  ;;  %v3373_v3 = vld [vmem:[%s4262_s1 + $0x5a0] sm:$0xff]  }
  0x7a   :  { %2978 = vmatprep.subr.bf16.mxu1 %v3308_v6  ;;  %v3376_v6 = vld [vmem:[%s4262_s1 + $0x5d8] sm:$0xff]  }
  0x7b   :  { %2957 = vmatpush3.bf16.msra.mxu0 %v3307_v5  ;;  %v3375_v5 = vld [vmem:[%s4262_s1 + $0x518] sm:$0xff]  }
  0x7c   :  { %2958 = vmatprep.subr.bf16.mxu0 %v3310_v8  ;;  %v3378_v8 = vld [vmem:[%s4262_s1 + $0x550] sm:$0xff]  }
  0x7d   :  { %2979 = vmatpush3.bf16.msra.mxu1 %v3309_v7  ;;  %v3377_v7 = vld [vmem:[%s4262_s1 + $0x598] sm:$0xff]  }
  0x7e   :  { %2980 = vmatprep.subr.bf16.mxu1 %v3312_v10  ;;  %v3380_v10 = vld [vmem:[%s4262_s1 + $0x5d0] sm:$0xff]  }
  0x7f   :  { %2959 = vmatpush3.bf16.msra.mxu0 %v3311_v9  ;;  %v3379_v9 = vld [vmem:[%s4262_s1 + $0x510] sm:$0xff]  }
  0x80   :  { %2988 = vmatprep.subr.bf16.mxu0 %v3317_v14  ;;  %v3384_v14 = vld [vmem:[%s4262_s1 + $0x5c8] sm:$0xff]  }
  0x81   :  { %2981 = vmatpush3.bf16.msra.mxu1 %v3316_v13  ;;  %v3383_v13 = vld [vmem:[%s4262_s1 + $0x508] sm:$0xff]  }
  0x82   :  { %2066 = vmatmul.mubr.bf16.vlgmr.msra.gmra.mxu0 %v3313_v11  ;;  %3010 = vmatprep.subr.bf16.mxu1 %v3322_v18  ;;  %v3381_v11 = vld [vmem:[%s4262_s1 + $0x590] sm:$0xff]   ;;  %v3388_v18 = vld [vmem:[%s4262_s1 + $0x5c0] sm:$0xff]  }
  0x83   :  { %2989 = vmatpush3.bf16.msra.mxu0 %v3321_v17  ;;  %2147 = vmatprep.mubr.bf16.mxu0 %v3353_v48  ;;  %v3387_v17 = vld [vmem:[%s4262_s1 + $0x500] sm:$0xff]  }
  0x84   :  { %2107 = vmatmul.mubr.bf16.vlgmr.msra.gmra.mxu1 %v3318_v15  ;;  %2990 = vmatprep.subr.bf16.mxu0 %v3324_v20  ;;  %v3385_v15 = vld [vmem:[%s4262_s1 + $0x588] sm:$0xff]   ;;  %v3391_v20 = vld [vmem:[%s4261_s0 + $0x54] ss:$100 sps:$4 sm:$0xff]  }
  0x85   :  { %3011 = vmatpush3.bf16.msra.mxu1 %v3323_v19  ;;  %2188 = vmatprep.mubr.bf16.mxu1 %v3358_v52  ;;  %v3389_v19 = vld [vmem:[%s4261_s0 + $0x50] ss:$100 sps:$4 sm:$0xff]  }
  0x86   :  { %3012 = vmatprep.subr.bf16.mxu1 %v3326_v22  ;;  %v3451_v22 = vmov 0.0  }
  0x87   :  { %2991 = vmatpush3.bf16.msra.mxu0 %v3325_v21  ;;  %v3392_v21 = vld [vmem:[%s4262_s1 + $0x580] sm:$0xff]  }
  0x88   :  { %2992 = vmatprep.subr.bf16.mxu0 %v3328_v24  ;;  %v3395_v24 = vld [vmem:[%s4261_s0 + $0x5c] ss:$100 sps:$4 sm:$0xff]  }
  0x89   :  { %3013 = vmatpush3.bf16.msra.mxu1 %v3327_v23  ;;  %v3393_v23 = vld [vmem:[%s4261_s0 + $0x58] ss:$100 sps:$4 sm:$0xff]  }
  0x8a   :  { %3014 = vmatprep.subr.bf16.mxu1 %v3330_v26  ;;  %v3397_v26 = vld [vmem:[%s4262_s1 + $0x630] sm:$0xff]  }
  0x8b   :  { %2993 = vmatpush3.bf16.msra.mxu0 %v3329_v25  ;;  %v3396_v25 = vld [vmem:[%s4262_s1 + $0x638] sm:$0xff]  }
  0x8c   :  { %2994 = vmatprep.subr.bf16.mxu0 %v3332_v28  ;;  %v3399_v28 = vld [vmem:[%s4262_s1 + $0x620] sm:$0xff]  }
  0x8d   :  { %3015 = vmatpush3.bf16.msra.mxu1 %v3331_v27  ;;  %v3398_v27 = vld [vmem:[%s4262_s1 + $0x628] sm:$0xff]  }
  0x8e   :  { %3016 = vmatprep.subr.bf16.mxu1 %v3334_v30  ;;  %v3401_v30 = vld [vmem:[%s4262_s1 + $0x610] sm:$0xff]  }
  0x8f   :  { %2995 = vmatpush3.bf16.msra.mxu0 %v3333_v29  ;;  %v3400_v29 = vld [vmem:[%s4262_s1 + $0x618] sm:$0xff]  }
  0x90   :  { %2996 = vmatprep.subr.bf16.mxu0 %v3336_v32 }
  0x91   :  { %3017 = vmatpush3.bf16.msra.mxu1 %v3335_v31 }
  0x92   :  { %3018 = vmatprep.subr.bf16.mxu1 %v3338_v34 }
  0x93   :  { %2997 = vmatpush3.bf16.msra.mxu0 %v3337_v33 }
  0x94   :  { %2998 = vmatprep.subr.bf16.mxu0 %v3340_v36 }
  0x95   :  { %3019 = vmatpush3.bf16.msra.mxu1 %v3339_v35 }
  0x96   :  { %3020 = vmatprep.subr.bf16.mxu1 %v3342_v38 }
  0x97   :  { %2999 = vmatpush3.bf16.msra.mxu0 %v3341_v37 }
  0x98   :  { %3000 = vmatprep.subr.bf16.mxu0 %v3344_v40 }
  0x99   :  { %3021 = vmatpush3.bf16.msra.mxu1 %v3343_v39 }
  0x9a   :  { %3022 = vmatprep.subr.bf16.mxu1 %v3346_v42 }
  0x9b   :  { %3001 = vmatpush3.bf16.msra.mxu0 %v3345_v41 }
  0x9c   :  { %3002 = vmatprep.subr.bf16.mxu0 %v3348_v44 }
  0x9d   :  { %3023 = vmatpush3.bf16.msra.mxu1 %v3347_v43 }
  0x9e   :  { %3024 = vmatprep.subr.bf16.mxu1 %v3350_v46 }
  0x9f   :  { %3003 = vmatpush3.bf16.msra.mxu0 %v3349_v45 }
  0xa0   :  { %3032 = vmatprep.subr.bf16.mxu0 %v3355_v50 }
  0xa1   :  { %3025 = vmatpush3.bf16.msra.mxu1 %v3354_v49 }
  0xa2   :  { %2148 = vmatmul.mubr.bf16.vlgmr.msra.gmra.mxu0 %v3351_v47  ;;  %3054 = vmatprep.subr.bf16.mxu1 %v3360_v54 }
  0xa3   :  { %3033 = vmatpush3.bf16.msra.mxu0 %v3359_v53  ;;  %2229 = vmatprep.mubr.bf16.mxu0 %v3391_v20 }
  0xa4   :  { %2189 = vmatmul.mubr.bf16.vlgmr.msra.gmra.mxu1 %v3356_v51  ;;  %3034 = vmatprep.subr.bf16.mxu0 %v3362_v56 }
  0xa5   :  { %3055 = vmatpush3.bf16.msra.mxu1 %v3361_v55  ;;  %2270 = vmatprep.mubr.bf16.mxu1 %v3395_v24 }
  0xa6   :  { %3056 = vmatprep.subr.bf16.mxu1 %v3364_v58 }
  0xa7   :  { %3035 = vmatpush3.bf16.msra.mxu0 %v3363_v57 }
  0xa8   :  { %3036 = vmatprep.subr.bf16.mxu0 %v3366_v60 }
  0xa9   :  { %3057 = vmatpush3.bf16.msra.mxu1 %v3365_v59 }
  0xaa   :  { %3058 = vmatprep.subr.bf16.mxu1 %v3368_v62 }
  0xab   :  { %3037 = vmatpush3.bf16.msra.mxu0 %v3367_v61 }
  0xac   :  { %3038 = vmatprep.subr.bf16.mxu0 %v3370_v0 }
  0xad   :  { %3059 = vmatpush3.bf16.msra.mxu1 %v3369_v63 }
  0xae   :  { %3060 = vmatprep.subr.bf16.mxu1 %v3372_v2 }
  0xaf   :  { %3039 = vmatpush3.bf16.msra.mxu0 %v3371_v1 }
  0xb0   :  { %3040 = vmatprep.subr.bf16.mxu0 %v3374_v4 }
  0xb1   :  { %3061 = vmatpush3.bf16.msra.mxu1 %v3373_v3 }
  0xb2   :  { %3062 = vmatprep.subr.bf16.mxu1 %v3376_v6 }
  0xb3   :  { %3041 = vmatpush3.bf16.msra.mxu0 %v3375_v5 }
  0xb4   :  { %3042 = vmatprep.subr.bf16.mxu0 %v3378_v8 }
  0xb5   :  { %3063 = vmatpush3.bf16.msra.mxu1 %v3377_v7 }
  0xb6   :  { %3064 = vmatprep.subr.bf16.mxu1 %v3380_v10 }
  0xb7   :  { %3043 = vmatpush3.bf16.msra.mxu0 %v3379_v9 }
  0xb8   :  { %3044 = vmatprep.subr.bf16.mxu0 %v3382_v12 }
  0xb9   :  { %3065 = vmatpush3.bf16.msra.mxu1 %v3381_v11 }
  0xba   :  { %3066 = vmatprep.subr.bf16.mxu1 %v3384_v14 }
  0xbb   :  { %3045 = vmatpush3.bf16.msra.mxu0 %v3383_v13 }
  0xbc   :  { %3046 = vmatprep.subr.bf16.mxu0 %v3386_v16 }
  0xbd   :  { %3067 = vmatpush3.bf16.msra.mxu1 %v3385_v15 }
  0xbe   :  { %3068 = vmatprep.subr.bf16.mxu1 %v3388_v18 }
  0xbf   :  { %3047 = vmatpush3.bf16.msra.mxu0 %v3387_v17 }
  0xc0   :  { %3103 = vmatprep.subr.bf16.mxu0 %v3451_v22 }
  0xc1   :  { %3069 = vmatpush3.bf16.msra.mxu1 %v3392_v21 }
  0xc2   :  { %2230 = vmatmul.mubr.bf16.vlgmr.msra.gmra.mxu0 %v3389_v19  ;;  %3123 = vmatprep.subr.bf16.mxu1 %v3451_v22 }
  0xc3   :  { %3119 = vmatprep.mubr.msk.bf16.mxu0 %vm3452_vm0, %v3451_v22  ;;  %3104 = vmatpush3.bf16.msra.mxu0 %v3396_v25 }
  0xc4   :  { %2271 = vmatmul.mubr.bf16.vlgmr.msra.gmra.mxu1 %v3393_v23  ;;  %3105 = vmatprep.subr.bf16.mxu0 %v3451_v22 }
  0xc5   :  { %3139 = vmatprep.mubr.msk.bf16.mxu1 %vm3452_vm0, %v3451_v22 }
  0xc7   :  { %3106 = vmatpush3.bf16.msra.mxu0 %v3397_v26 }
  0xc8   :  { %3107 = vmatprep.subr.bf16.mxu0 %v3451_v22 }
  0xcb   :  { %3108 = vmatpush3.bf16.msra.mxu0 %v3398_v27 }
  0xcc   :  { %3109 = vmatprep.subr.bf16.mxu0 %v3451_v22 }
  0xcf   :  { %3110 = vmatpush3.bf16.msra.mxu0 %v3399_v28 }
  0xd0   :  { %3111 = vmatprep.subr.bf16.mxu0 %v3451_v22 }
  0xd3   :  { %3112 = vmatpush3.bf16.msra.mxu0 %v3400_v29 }
  0xd4   :  { %3113 = vmatprep.subr.bf16.mxu0 %v3451_v22 }
  0xd5   :  { %12 = vsyncpa [#allocation3], 0  ;;  %v3402_v31 = vld [vmem:[%s4262_s1 + $0x608] sm:$0xff]   ;;  %v3403_v32 = vld [vmem:[%s4262_s1 + $0x600] sm:$0xff]   ;;  %s3453_s22 = smov [#allocation2]  }
  0xd6   :  { %v3404_v33 = vld [vmem:[%s4261_s0 + $0x60] ss:$100 sps:$4 sm:$0xff]   ;;  %v3405_v34 = vld [vmem:[%s4264_s3 + $0x38] sm:$0xff]   ;;  %v3406_v35 = vld [vmem:[%s4264_s3 + $0x30] sm:$0xff]  }
  0xd7   :  { %3114 = vmatpush3.bf16.msra.mxu0 %v3401_v30  ;;  %3124 = vmatpush3.bf16.msra.mxu1 %v3405_v34  ;;  %v3407_v36 = vld [vmem:[%s4264_s3 + $0x28] sm:$0xff]   ;;  %v3408_v37 = vld [vmem:[%s4264_s3 + $0x20] sm:$0xff]   ;;  %v3409_v38 = vld [vmem:[%s4264_s3 + $0x18] sm:$0xff]  }
  0xd8   :  { %3115 = vmatprep.subr.bf16.mxu0 %v3451_v22  ;;  %3125 = vmatprep.subr.bf16.mxu1 %v3451_v22  ;;  %v3410_v39 = vld [vmem:[%s4264_s3 + $0x10] sm:$0xff]   ;;  %v3411_v40 = vld [vmem:[%s4264_s3 + $0x8] sm:$0xff]   ;;  %v3412_v41 = vld [vmem:[%s4264_s3] sm:$0xff]  }
  0xd9   :  { %v3413_v42 = vld [vmem:[%s4266_s5 + $0x38] sm:$0xff]   ;;  %v3414_v43 = vld [vmem:[%s4266_s5 + $0x30] sm:$0xff]   ;;  %v2568_v10 = vld [vmem:[%s4263_s2] ss:$0 sm:$0xff] }
  0xdb   :  { %3116 = vmatpush3.bf16.msra.mxu0 %v3402_v31  ;;  %3126 = vmatpush3.bf16.msra.mxu1 %v3406_v35 }
  0xdc   :  { %3117 = vmatprep.subr.bf16.mxu0 %v3451_v22  ;;  %3127 = vmatprep.subr.bf16.mxu1 %v3451_v22 }
  0xdf   :  { %3118 = vmatpush3.bf16.msra.mxu0 %v3403_v32  ;;  %3128 = vmatpush3.bf16.msra.mxu1 %v3407_v36 }
  0xe0   :  { %3143 = vmatprep.subr.bf16.mxu0 %v3451_v22  ;;  %3129 = vmatprep.subr.bf16.mxu1 %v3451_v22 }
  0xe2   :  { %3120 = vmatmul.mubr.bf16.vlgmr.msra.gmra.mxu0 %v3404_v33  ;;  %v2828_v44 = vpop.f32.mrf.mxu0 }
  0xe3   :  { %3159 = vmatprep.mubr.msk.bf16.mxu0 %vm3452_vm0, %v3451_v22  ;;  %3130 = vmatpush3.bf16.msra.mxu1 %v3408_v37 }
  0xe4   :  { %3131 = vmatprep.subr.bf16.mxu1 %v3451_v22  ;;  %3144 = vmatpush3.bf16.msra.mxu0 %v3413_v42  ;;  %v2829_v45 = vpop.f32.mrf.mxu0  ;;  %v2850_v46 = vpop.f32.mrf.mxu1 }
  0xe5   :  { %3145 = vmatprep.subr.bf16.mxu0 %v3451_v22  ;;  %v2830_v9 = vadd.f32 %v2829_v45, %v2828_v44 }
  0xe6   :  { %v2831_v47 = vpop.f32.mrf.mxu0  ;;  %v2851_v48 = vpop.f32.mrf.mxu1 }
  0xe7   :  { %3132 = vmatpush3.bf16.msra.mxu1 %v3409_v38  ;;  %v1822_v14 = vadd.f32 %v2830_v9, %v2568_v10  ;;  %v2852_v15 = vadd.f32 %v2851_v48, %v2850_v46 }
  0xe8   :  { %3133 = vmatprep.subr.bf16.mxu1 %v3451_v22  ;;  %3146 = vmatpush3.bf16.msra.mxu0 %v3414_v43  ;;  %v2832_v49 = vpop.f32.mrf.mxu0  ;;  %v2853_v50 = vpop.f32.mrf.mxu1 }
  0xe9   :  { %3147 = vmatprep.subr.bf16.mxu0 %v3451_v22  ;;  %v2833_v13 = vadd.f32 %v2832_v49, %v2831_v47  ;;  %v1863_v21 = vadd.f32 %v2852_v15, %v1822_v14 }
  0xea   :  { %v2854_v52 = vpop.f32.mrf.mxu1 }
  0xeb   :  { %3134 = vmatpush3.bf16.msra.mxu1 %v3410_v39  ;;  %v1825_v19 = vadd.f32 %v2833_v13, %v2568_v10  ;;  %v2855_v20 = vadd.f32 %v2854_v52, %v2853_v50 }
  0xec   :  { %3135 = vmatprep.subr.bf16.mxu1 %v3451_v22 }
  0xed   :  { %v1866_v28 = vadd.f32 %v2855_v20, %v1825_v19 }
  0xef   :  { %3136 = vmatpush3.bf16.msra.mxu1 %v3411_v40 }
  0xf0   :  { %3137 = vmatprep.subr.bf16.mxu1 %v3451_v22 }
  0xf3   :  { %3138 = vmatpush3.bf16.msra.mxu1 %v3412_v41 }
 0x102   :  { %v2872_v51 = vpop.f32.mrf.mxu0 }
 0x104   :  { %v2873_v53 = vpop.f32.mrf.mxu0  ;;  %v2894_v54 = vpop.f32.mrf.mxu1 }
 0x105   :  { %v2874_v17 = vadd.f32 %v2873_v53, %v2872_v51 }
 0x106   :  { %v2875_v55 = vpop.f32.mrf.mxu0  ;;  %v2895_v56 = vpop.f32.mrf.mxu1 }
 0x107   :  { %v1904_v26 = vadd.f32 %v2874_v17, %v1863_v21  ;;  %v2896_v27 = vadd.f32 %v2895_v56, %v2894_v54 }
 0x108   :  { %v2876_v57 = vpop.f32.mrf.mxu0  ;;  %v2897_v58 = vpop.f32.mrf.mxu1 }
 0x109   :  { %v2877_v25 = vadd.f32 %v2876_v57, %v2875_v55  ;;  %v1945_v34 = vadd.f32 %v2896_v27, %v1904_v26  ;;  %v3417_v26 = vld [vmem:[%s4266_s5 + $0x18] sm:$0xff]   ;;  %v3418_v27 = vld [vmem:[%s4266_s5 + $0x10] sm:$0xff]  }
 0x10a   :  { %v2898_v60 = vpop.f32.mrf.mxu1 }
 0x10b   :  { %v1907_v32 = vadd.f32 %v2877_v25, %v1866_v28  ;;  %v2899_v33 = vadd.f32 %v2898_v60, %v2897_v58  ;;  %v3416_v25 = vld [vmem:[%s4266_s5 + $0x20] sm:$0xff]   ;;  %v3419_v28 = vld [vmem:[%s4266_s5 + $0x8] sm:$0xff]  }
 0x10d   :  { %v1948_v40 = vadd.f32 %v2899_v33, %v1907_v32 }
 0x122   :  { %v2916_v59 = vpop.f32.mrf.mxu0 }
 0x124   :  { %v2917_v61 = vpop.f32.mrf.mxu0  ;;  %v2938_v62 = vpop.f32.mrf.mxu1 }
 0x125   :  { %v2918_v29 = vadd.f32 %v2917_v61, %v2916_v59 }
 0x126   :  { %v2919_v63 = vpop.f32.mrf.mxu0  ;;  %v2939_v0 = vpop.f32.mrf.mxu1 }
 0x127   :  { %v1986_v36 = vadd.f32 %v2918_v29, %v1945_v34  ;;  %v2940_v37 = vadd.f32 %v2939_v0, %v2938_v62  ;;  %v3420_v29 = vld [vmem:[%s4266_s5] sm:$0xff]  }
 0x128   :  { %v2920_v1 = vpop.f32.mrf.mxu0  ;;  %v2941_v2 = vpop.f32.mrf.mxu1 }
 0x129   :  { %v2921_v35 = vadd.f32 %v2920_v1, %v2919_v63  ;;  %v2027_v45 = vadd.f32 %v2940_v37, %v1986_v36 }
 0x12a   :  { %v2942_v4 = vpop.f32.mrf.mxu1 }
 0x12b   :  { %v1989_v43 = vadd.f32 %v2921_v35, %v1948_v40  ;;  %v2943_v44 = vadd.f32 %v2942_v4, %v2941_v2 }
 0x12d   :  { %v2030_v52 = vadd.f32 %v2943_v44, %v1989_v43 }
 0x142   :  { %v2960_v3 = vpop.f32.mrf.mxu0 }
 0x144   :  { %v2961_v5 = vpop.f32.mrf.mxu0  ;;  %v2982_v6 = vpop.f32.mrf.mxu1 }
 0x145   :  { %v2962_v41 = vadd.f32 %v2961_v5, %v2960_v3 }
 0x146   :  { %v2963_v7 = vpop.f32.mrf.mxu0  ;;  %v2983_v8 = vpop.f32.mrf.mxu1 }
 0x147   :  { %v2068_v48 = vadd.f32 %v2962_v41, %v2027_v45  ;;  %v2984_v49 = vadd.f32 %v2983_v8, %v2982_v6 }
 0x148   :  { %v2964_v11 = vpop.f32.mrf.mxu0  ;;  %v2985_v12 = vpop.f32.mrf.mxu1 }
 0x149   :  { %v2965_v47 = vadd.f32 %v2964_v11, %v2963_v7  ;;  %v2109_v56 = vadd.f32 %v2984_v49, %v2068_v48 }
 0x14a   :  { %v2986_v18 = vpop.f32.mrf.mxu1 }
 0x14b   :  { %v2071_v54 = vadd.f32 %v2965_v47, %v2030_v52  ;;  %v2987_v55 = vadd.f32 %v2986_v18, %v2985_v12 }
 0x14d   :  { %v2112_v62 = vadd.f32 %v2987_v55, %v2071_v54 }
 0x162   :  { %v3004_v16 = vpop.f32.mrf.mxu0 }
 0x164   :  { %v3005_v23 = vpop.f32.mrf.mxu0  ;;  %v3026_v24 = vpop.f32.mrf.mxu1 }
 0x165   :  { %v3006_v53 = vadd.f32 %v3005_v23, %v3004_v16 }
 0x166   :  { %v3007_v30 = vpop.f32.mrf.mxu0  ;;  %v3027_v31 = vpop.f32.mrf.mxu1 }
 0x167   :  { %v2150_v60 = vadd.f32 %v3006_v53, %v2109_v56  ;;  %v3028_v61 = vadd.f32 %v3027_v31, %v3026_v24  ;;  %v3415_v24 = vld [vmem:[%s4266_s5 + $0x28] sm:$0xff]  }
 0x168   :  { %v3008_v38 = vpop.f32.mrf.mxu0  ;;  %v3029_v39 = vpop.f32.mrf.mxu1  ;;  %3148 = vmatpush3.bf16.msra.mxu0 %v3415_v24 }
 0x169   :  { %v3009_v59 = vadd.f32 %v3008_v38, %v3007_v30  ;;  %v2191_v4 = vadd.f32 %v3028_v61, %v2150_v60  ;;  %3149 = vmatprep.subr.bf16.mxu0 %v3451_v22  ;;  %v2794_v30 = vld [vmem:[%s4265_s4] ss:$0 sm:$0xff]  ;;  %s2557_s4 = sshll.u32 %s3453_s22, 4  ;;  %s2558_s4 = int_to_ptr.vmem [resolvable:$true] %s2557_s4 }
 0x16a   :  { %v3030_v46 = vpop.f32.mrf.mxu1  ;;  %s3429_s23 = scalar_lea.vmem %s2558_s4, 256  ;;  %p3434_p1 = scmp.lt.s32.totalorder %s2558_s4, %s2558_s4 }
 0x16b   :  { %v2153_v2 = vadd.f32 %v3009_v59, %v2112_v62  ;;  %v3031_v3 = vadd.f32 %v3030_v46, %v3029_v39  ;;  %p3430_p0 = scmp.ne.s32.totalorder %s2558_s4, %s3429_s23  ;;  %p3435_p2 = scmp.lt.s32.totalorder %s3429_s23, %s3429_s23 }
 0x16c   :  { %3150 = vmatpush3.bf16.msra.mxu0 %v3416_v25 }
 0x16d   :  { %v2194_v9 = vadd.f32 %v3031_v3, %v2153_v2  ;;  %3151 = vmatprep.subr.bf16.mxu0 %v3451_v22  ;;  %p3436_p3 = por %p3435_p2, %p3434_p1 }
 0x16f   :  { %p3437_p4 = pnand %p3436_p3, %p3430_p0 }
 0x170   :  { %3152 = vmatpush3.bf16.msra.mxu0 %v3417_v26 }
 0x171   :  { %3153 = vmatprep.subr.bf16.mxu0 %v3451_v22 }
 0x174   :  { %3154 = vmatpush3.bf16.msra.mxu0 %v3418_v27 }
 0x175   :  { %3155 = vmatprep.subr.bf16.mxu0 %v3451_v22 }
 0x178   :  { %3156 = vmatpush3.bf16.msra.mxu0 %v3419_v28 }
 0x179   :  { %3157 = vmatprep.subr.bf16.mxu0 %v3451_v22  ;;  %v2803_v22 = vld [vmem:[%s4267_s6] ss:$0 sm:$0xff] }
 0x17c   :  { %3158 = vmatpush3.bf16.msra.mxu0 %v3420_v29 }
 0x182   :  { %v3048_v42 = vpop.f32.mrf.mxu0 }
 0x184   :  { %v3049_v50 = vpop.f32.mrf.mxu0  ;;  %v3070_v51 = vpop.f32.mrf.mxu1 }
 0x185   :  { %v3050_v63 = vadd.f32 %v3049_v50, %v3048_v42 }
 0x186   :  { %v3051_v57 = vpop.f32.mrf.mxu0  ;;  %v3071_v58 = vpop.f32.mrf.mxu1 }
 0x187   :  { %v2232_v6 = vadd.f32 %v3050_v63, %v2191_v4  ;;  %v3072_v7 = vadd.f32 %v3071_v58, %v3070_v51 }
 0x188   :  { %v3052_v0 = vpop.f32.mrf.mxu0  ;;  %v3073_v1 = vpop.f32.mrf.mxu1 }
 0x189   :  { %v3053_v5 = vadd.f32 %v3052_v0, %v3051_v57  ;;  %v2273_v12 = vadd.f32 %v3072_v7, %v2232_v6 }
 0x18a   :  { %v3074_v8 = vpop.f32.mrf.mxu1 }
 0x18b   :  { %v2235_v10 = vadd.f32 %v3053_v5, %v2194_v9  ;;  %v3075_v11 = vadd.f32 %v3074_v8, %v3073_v1 }
 0x18d   :  { %v2276_v16 = vadd.f32 %v3075_v11, %v2235_v10 }
 0x1a2   :  { %v2313_v13 = vpop.f32.mrf.mxu0 }
 0x1a3   :  { %v2314_v14 = vadd.f32 %v2313_v13, %v2273_v12 }
 0x1a4   :  { %v3121_v15 = vpop.f32.mrf.mxu0 }
 0x1a5   :  { %3421 = vtanh.f32 %v2314_v14 }
 0x1a6   :  { %v2316_v17 = vpop.f32.mrf.mxu0 }
 0x1a7   :  { %v2317_v18 = vadd.f32 %v2316_v17, %v2276_v16 }
 0x1a8   :  { %v3122_v19 = vpop.f32.mrf.mxu0 }
 0x1a9   :  { %3423 = vtanh.f32 %v2317_v18 }
 0x1b2   :  { %v3422_v20 = vpop.eup %3421 }
 0x1b6   :  { %v3424_v21 = vpop.eup %3423 }
 0x1b7   :  { %v2322_v23 = vpack.c.bf16 %v3424_v21, %v3422_v20 }
 0x1b9   :  { %3140 = vmatmul.mubr.bf16.vlgmr.msra.gmra.mxu1 %v2322_v23 }
 0x279   :  { %v2428_v31 = vpop.f32.mrf.mxu1 }
 0x27a   :  { %v2429_v32 = vadd.f32 %v2794_v30, %v2428_v31 }
 0x27b   :  { %v3141_v33 = vpop.f32.mrf.mxu1 }
 0x27c   :  { %3425 = vtanh.f32 %v2429_v32 }
 0x27d   :  { %v2431_v34 = vpop.f32.mrf.mxu1 }
 0x27e   :  { %v2432_v35 = vadd.f32 %v2794_v30, %v2431_v34 }
 0x27f   :  { %v3142_v36 = vpop.f32.mrf.mxu1 }
 0x280   :  { %3427 = vtanh.f32 %v2432_v35 }
 0x289   :  { %v3426_v37 = vpop.eup %3425 }
 0x28d   :  { %v3428_v38 = vpop.eup %3427 }
 0x28e   :  { %v2437_v39 = vpack.c.bf16 %v3428_v38, %v3426_v37 }
 0x290   :  { %3160 = vmatmul.mubr.bf16.vlgmr.msra.gmra.mxu0 %v2437_v39 }
 0x350   :  { %v2543_v40 = vpop.f32.mrf.mxu0 }
 0x351   :  { %v2544_v41 = vadd.f32 %v2803_v22, %v2543_v40 }
 0x352   :  { %v3161_v42 = vpop.f32.mrf.mxu0 }
 0x353   :  { %2550 = vst [vmem:[#allocation2] sm:$0xff] %v2544_v41 }
 0x354   :  { %v2546_v43 = vpop.f32.mrf.mxu0 }
 0x355   :  { %v2547_v44 = vadd.f32 %v2803_v22, %v2546_v43 }
 0x356   :  { %v3162_v45 = vpop.f32.mrf.mxu0 }
 0x357   :  { %2551 = vst [vmem:[#allocation2 + $0x8] sm:$0xff] %v2547_v44 }
 0x358   :  { %3440 = shalt.err (!%p3437_p4)
}
 0x359   :  { %s3454_s24 = smov 128   ;;  %s3455_s6 = smov 8  }
 0x35a   :  { %2563 = dma.vmem_to_hbm [thread:$0]  %s2558_s4, 256, %s4268_s7, [#allocation3], %s3454_s24, %s3454_s24, %s3455_s6  }
 0x35b   :  { %3449 = dma.done.wait [#allocation3], 256  }
 0x35c   :  { %3450 = vsyncadd [#allocation3], 4294967040 }
 0x35d   :  { %2567 = vsyncpa [#allocation3], 1 }

// kernel: lenet5_forward.2
= control target key start
LH: loop header
LB: loop body
LE: loop exit
PB: predicated region body
PF: predicated region fallthrough
CT: control target
= control target key end

     0   :  { %s14766_s24 = smov 0   ;;  %s18722_s0 = inlined_call_operand.vmem [shape: bf16[16,784,25], index: 0, kind: input, shape index: {}]   ;;  %s18723_s1 = inlined_call_operand.vmem [shape: bf16[25,128], index: 1, kind: input, shape index: {}]   ;;  %s18724_s2 = inlined_call_operand.vmem [shape: f32[1,128], index: 2, kind: input, shape index: {}]   ;;  %s18725_s3 = inlined_call_operand.vmem [shape: bf16[256,784], index: 3, kind: input, shape index: {}]   ;;  %s18726_s4 = inlined_call_operand.vmem [shape: bf16[25,128,128], index: 4, kind: input, shape index: {}]   ;;  %s18727_s5 = inlined_call_operand.vmem [shape: f32[1,128], index: 5, kind: input, shape index: {}]   ;;  %s18728_s6 = inlined_call_operand.vmem [shape: bf16[25,196], index: 6, kind: input, shape index: {}]   ;;  %s18729_s7 = inlined_call_operand.vmem [shape: bf16[16,25,128], index: 7, kind: output, shape index: {}]  }
   0x1 LB: > { %s10732_s25 = sadd.s32 4294967295, %s14716_s24   ;;  %p10736_p0 = scmp.ge.s32.totalorder %s14716_s24, 1  ;;  %s14716_s24 = sphi %s14766_s24, %s17_s24  }
   0x2   : > { %p239_p1 = scmp.lt.s32.totalorder %s14716_s24, 3 }
   0x4   : > { %p240_p2 = pnand %p10736_p0, %p239_p1 }
   0x5   : > { %s10737_s26 = sshll.u32 (!%p240_p2), %s10732_s25, 3  ;;  %s14784_s12 = smov (!%p240_p2), 0  }
   0x6   : > { %243 = sbr.rel (%p240_p2) target bundleno = 2229 (0x8b5), region = 48  ;;  %p274_p3 = scmp.lt.s32.totalorder (!%p240_p2), %s10737_s26, 15 }
   0xb   : > { %s19349_s26 = smov (!%p274_p3, %s10737_s26), 15 }
   0xc   : > { %s14021_s27 = smul.u32 392, %s19349_s26  ;;  %s11571_s28 = sshll.u32 %s19349_s26, 4 }
   0xd   : > { %s14777_s8 = scalar_lea.vmem %s18729_s7, %s11571_s28 }
   0xe   : > { %s14782_s11 = scalar_lea.vmem %s18722_s0, %s14021_s27 }
   0xf LB: >> { %vm810_vm0 = vcmask 1043456   ;;  %v14722_v0 = vmov 0.0   ;;  %v14042_v1 = vld [vmem:[%s18723_s1 + $0x8] sm:$0x1f]   ;;  %vm811_vm1 = vcmask 1044480   ;;  %v14723_v2 = vmov 65535   ;;  %s14720_s12 = sphi %s14784_s12, %s293_s12  }
  0x10   : >> { %12587 = vmatprep.subr.bf16.mxu0 %v14722_v0  ;;  %v812_v3 = vsel %vm810_vm0, 4294967295, %v14723_v2  ;;  %s11572_s15 = smul.u32 392, %s14720_s12  ;;  %vm14724_vm2 = vmmov 0   ;;  %v14043_v6 = vld [vmem:[%s18723_s1] sm:$0xff]   ;;  %vm662_vm3 = vcmask 203776   ;;  %vm2077_vm4 = vcmask 130048  }
  0x11   : >> { %v813_v4 = vsel %vm811_vm1, %v812_v3, 0  ;;  %12591 = vmatprep.mubr.msk.bf16.mxu0 %vm14724_vm2, %v14722_v0  ;;  %v14903_v32 = vld [vmem:[%s18724_s2] ss:$0 sm:$0xff]  ;;  %vm10577_vm5 = vcmask 556032   ;;  %vm10584_vm6 = vcmask 1041408   ;;  %s11577_s9 = sshll.u32 %s14720_s12, 4 }
  0x12   : >> { %v815_v5 = vand.u32 %v14042_v1, %v813_v4  ;;  %s14797_s16 = scalar_lea.vmem %s14782_s11, %s11572_s15  ;;  %s10655_s10 = scalar_lea.vmem %s14777_s8, %s11577_s9  ;;  %vm10659_vm7 = vcmask 1040384   ;;  %vm10660_vm8 = vsmask.f32 256 }
  0x13   : >> { %v14044_v7 = vld [vmem:[%s14797_s16] sm:$0xff]   ;;  %v14045_v8 = vld [vmem:[%s14797_s16 + $0x8] sm:$0xff]   ;;  %v14046_v9 = vld [vmem:[%s14797_s16 + $0x10] sm:$0xff]   ;;  %s293_s12 = sadd.s32 1, %s14720_s12  }
  0x14   : >> { %12588 = vmatpush3.bf16.msra.mxu0 %v815_v5  ;;  %v14047_v10 = vld [vmem:[%s14797_s16 + $0x18] sm:$0xff]   ;;  %v14048_v11 = vld [vmem:[%s14797_s16 + $0x20] sm:$0xff]   ;;  %v14049_v12 = vld [vmem:[%s14797_s16 + $0x28] sm:$0xff]   ;;  %p290_p4 = scmp.ge.s32.totalorder %s293_s12, 8  }
  0x15   : >> { %12589 = vmatprep.subr.bf16.mxu0 %v14722_v0  ;;  %v14050_v13 = vld [vmem:[%s14797_s16 + $0x30] sm:$0xff]   ;;  %v14051_v14 = vld [vmem:[%s14797_s16 + $0x38] sm:$0xff]   ;;  %v14052_v15 = vld [vmem:[%s14797_s16 + $0x40] sm:$0xff]  }
  0x16   : >> { %v14053_v16 = vld [vmem:[%s14797_s16 + $0x48] sm:$0xff]   ;;  %v14054_v17 = vld [vmem:[%s14797_s16 + $0x50] sm:$0xff]   ;;  %v14055_v18 = vld [vmem:[%s14797_s16 + $0x58] sm:$0xff]  }
  0x17   : >> { %v14056_v19 = vld [vmem:[%s14797_s16 + $0x60] sm:$0xff]   ;;  %v14057_v20 = vld [vmem:[%s14797_s16 + $0x68] sm:$0xff]   ;;  %v14058_v21 = vld [vmem:[%s14797_s16 + $0x70] sm:$0xff]  }
  0x18   : >> { %12590 = vmatpush3.bf16.msra.mxu0 %v14043_v6  ;;  %v14059_v22 = vld [vmem:[%s14797_s16 + $0x78] sm:$0xff]   ;;  %v14060_v23 = vld [vmem:[%s14797_s16 + $0x80] sm:$0xff]   ;;  %v14061_v24 = vld [vmem:[%s14797_s16 + $0x88] sm:$0xff]  }
  0x19   : >> { %v14062_v25 = vld [vmem:[%s14797_s16 + $0x90] sm:$0xff]   ;;  %v14063_v26 = vld [vmem:[%s14797_s16 + $0x98] sm:$0xff]   ;;  %v14064_v27 = vld [vmem:[%s14797_s16 + $0xa0] sm:$0xff]  }
  0x1a   : >> { %v14065_v28 = vld [vmem:[%s14797_s16 + $0xa8] sm:$0xff]   ;;  %v14066_v29 = vld [vmem:[%s14797_s16 + $0xb0] sm:$0xff]   ;;  %v14067_v30 = vld [vmem:[%s14797_s16 + $0xb8] sm:$0xff]  }
  0x1b   : >> { %12592 = vmatmul.mubr.msk.bf16.vlgmr.msra.gmra.mxu0 %vm662_vm3, %v14044_v7  ;;  %v14068_v31 = vld [vmem:[%s14797_s16 + $0xc0] sm:$0xff]   ;;  %v14069_v36 = vld [vmem:[%s14797_s16 + $0xc8] sm:$0xff]   ;;  %v14070_v43 = vld [vmem:[%s14797_s16 + $0xd0] sm:$0xff]  }
  0x1c   : >> { %12595 = vmatprep.mubr.msk.bf16.mxu0 %vm14724_vm2, %v14722_v0  ;;  %v14071_v50 = vld [vmem:[%s14797_s16 + $0xd8] sm:$0xff]   ;;  %v14072_v63 = vld [vmem:[%s14797_s16 + $0xe0] sm:$0xff]   ;;  %vm10661_vm9 = vmand %vm10659_vm7, %vm10660_vm8 }
  0x23   : >> { %12596 = vmatmul.mubr.msk.bf16.gmra.mxu0 %vm662_vm3, %v14045_v8 }
  0x24   : >> { %12599 = vmatprep.mubr.msk.bf16.mxu0 %vm14724_vm2, %v14722_v0 }
  0x2b   : >> { %12600 = vmatmul.mubr.msk.bf16.gmra.mxu0 %vm662_vm3, %v14046_v9 }
  0x2c   : >> { %12603 = vmatprep.mubr.msk.bf16.mxu0 %vm14724_vm2, %v14722_v0 }
  0x33   : >> { %12604 = vmatmul.mubr.msk.bf16.gmra.mxu0 %vm662_vm3, %v14047_v10  ;;  %v14073_v10 = vld [vmem:[%s14797_s16 + $0xe8] sm:$0xff]  }
  0x34   : >> { %12607 = vmatprep.mubr.msk.bf16.mxu0 %vm14724_vm2, %v14722_v0 }
  0x3b   : >> { %12608 = vmatmul.mubr.msk.bf16.gmra.mxu0 %vm662_vm3, %v14048_v11 }
  0x3c   : >> { %12611 = vmatprep.mubr.msk.bf16.mxu0 %vm14724_vm2, %v14722_v0 }
  0x43   : >> { %12612 = vmatmul.mubr.msk.bf16.gmra.mxu0 %vm662_vm3, %v14049_v12 }
  0x44   : >> { %12615 = vmatprep.mubr.msk.bf16.mxu0 %vm14724_vm2, %v14722_v0 }
  0x4b   : >> { %12616 = vmatmul.mubr.msk.bf16.gmra.mxu0 %vm662_vm3, %v14050_v13 }
  0x4c   : >> { %12619 = vmatprep.mubr.msk.bf16.mxu0 %vm14724_vm2, %v14722_v0 }
  0x53   : >> { %12620 = vmatmul.mubr.msk.bf16.gmra.mxu0 %vm662_vm3, %v14051_v14 }
  0x54   : >> { %12623 = vmatprep.mubr.msk.bf16.mxu0 %vm14724_vm2, %v14722_v0 }
  0x5b   : >> { %12624 = vmatmul.mubr.msk.bf16.gmra.mxu0 %vm662_vm3, %v14052_v15 }
  0x5c   : >> { %12627 = vmatprep.mubr.msk.bf16.mxu0 %vm14724_vm2, %v14722_v0 }
  0x63   : >> { %12628 = vmatmul.mubr.msk.bf16.gmra.mxu0 %vm662_vm3, %v14053_v16 }
  0x64   : >> { %12631 = vmatprep.mubr.msk.bf16.mxu0 %vm14724_vm2, %v14722_v0 }
  0x6b   : >> { %12632 = vmatmul.mubr.msk.bf16.gmra.mxu0 %vm662_vm3, %v14054_v17 }
  0x6c   : >> { %12635 = vmatprep.mubr.msk.bf16.mxu0 %vm14724_vm2, %v14722_v0 }
  0x73   : >> { %12636 = vmatmul.mubr.msk.bf16.gmra.mxu0 %vm662_vm3, %v14055_v18 }
  0x74   : >> { %12639 = vmatprep.mubr.msk.bf16.mxu0 %vm14724_vm2, %v14722_v0 }
  0x7b   : >> { %12640 = vmatmul.mubr.msk.bf16.gmra.mxu0 %vm662_vm3, %v14056_v19 }
  0x7c   : >> { %12643 = vmatprep.mubr.msk.bf16.mxu0 %vm14724_vm2, %v14722_v0 }
  0x83   : >> { %12644 = vmatmul.mubr.msk.bf16.gmra.mxu0 %vm662_vm3, %v14057_v20  ;;  %v14074_v20 = vld [vmem:[%s14797_s16 + $0xf0] sm:$0xff]  }
  0x84   : >> { %12647 = vmatprep.mubr.msk.bf16.mxu0 %vm14724_vm2, %v14722_v0 }
  0x8b   : >> { %12648 = vmatmul.mubr.msk.bf16.gmra.mxu0 %vm662_vm3, %v14058_v21  ;;  %v14092_v21 = vld [vmem:[%s18725_s3 + $0x4] ss:$28 sps:$4 sm:$0xff]  }
  0x8c   : >> { %12651 = vmatprep.mubr.msk.bf16.mxu0 %vm14724_vm2, %v14722_v0  ;;  %2158 = vmatprep.mubr.bf16.mxu1 %v14092_v21 }
  0x93   : >> { %12652 = vmatmul.mubr.msk.bf16.gmra.mxu0 %vm662_vm3, %v14059_v22 }
  0x94   : >> { %12655 = vmatprep.mubr.msk.bf16.mxu0 %vm14724_vm2, %v14722_v0 }
  0x9b   : >> { %12656 = vmatmul.mubr.msk.bf16.gmra.mxu0 %vm662_vm3, %v14060_v23 }
  0x9c   : >> { %12659 = vmatprep.mubr.msk.bf16.mxu0 %vm14724_vm2, %v14722_v0 }
  0xa3   : >> { %12660 = vmatmul.mubr.msk.bf16.gmra.mxu0 %vm662_vm3, %v14061_v24 }
  0xa4   : >> { %12663 = vmatprep.mubr.msk.bf16.mxu0 %vm14724_vm2, %v14722_v0 }
  0xab   : >> { %12664 = vmatmul.mubr.msk.bf16.gmra.mxu0 %vm662_vm3, %v14062_v25 }
  0xac   : >> { %12667 = vmatprep.mubr.msk.bf16.mxu0 %vm14724_vm2, %v14722_v0 }
  0xb3   : >> { %12668 = vmatmul.mubr.msk.bf16.gmra.mxu0 %vm662_vm3, %v14063_v26 }
  0xb4   : >> { %12671 = vmatprep.mubr.msk.bf16.mxu0 %vm14724_vm2, %v14722_v0 }
  0xbb   : >> { %12672 = vmatmul.mubr.msk.bf16.gmra.mxu0 %vm662_vm3, %v14064_v27 }
  0xbc   : >> { %12675 = vmatprep.mubr.msk.bf16.mxu0 %vm14724_vm2, %v14722_v0 }
  0xc3   : >> { %12676 = vmatmul.mubr.msk.bf16.gmra.mxu0 %vm662_vm3, %v14065_v28 }
  0xc4   : >> { %12679 = vmatprep.mubr.msk.bf16.mxu0 %vm14724_vm2, %v14722_v0 }
  0xcb   : >> { %12680 = vmatmul.mubr.msk.bf16.gmra.mxu0 %vm662_vm3, %v14066_v29 }
  0xcc   : >> { %12683 = vmatprep.mubr.msk.bf16.mxu0 %vm14724_vm2, %v14722_v0 }
  0xd3   : >> { %12684 = vmatmul.mubr.msk.bf16.gmra.mxu0 %vm662_vm3, %v14067_v30 }
  0xd4   : >> { %12687 = vmatprep.mubr.msk.bf16.mxu0 %vm14724_vm2, %v14722_v0 }
  0xdb   : >> { %v851_v33 = vpop.f32.mrf.mxu0  ;;  %12688 = vmatmul.mubr.msk.bf16.gmra.mxu0 %vm662_vm3, %v14068_v31  ;;  %v14075_v31 = vld [vmem:[%s14797_s16 + $0xf8] sm:$0xff]  }
  0xdc   : >> { %12691 = vmatprep.mubr.msk.bf16.mxu0 %vm14724_vm2, %v14722_v0  ;;  %v852_v34 = vadd.f32 %v14903_v32, %v851_v33 }
  0xdd   : >> { %v12593_v35 = vpop.f32.mrf.mxu0 }
  0xde   : >> { %14459 = vtanh.f32 %v852_v34 }
  0xdf   : >> { %v854_v37 = vpop.f32.mrf.mxu0 }
  0xe0   : >> { %v855_v38 = vadd.f32 %v14903_v32, %v854_v37 }
  0xe1   : >> { %v12594_v39 = vpop.f32.mrf.mxu0 }
  0xe2   : >> { %14461 = vtanh.f32 %v855_v38 }
  0xe3   : >> { %v859_v40 = vpop.f32.mrf.mxu0  ;;  %12692 = vmatmul.mubr.msk.bf16.gmra.mxu0 %vm662_vm3, %v14069_v36 }
  0xe4   : >> { %12695 = vmatprep.mubr.msk.bf16.mxu0 %vm14724_vm2, %v14722_v0  ;;  %v860_v41 = vadd.f32 %v14903_v32, %v859_v40 }
  0xe5   : >> { %v12597_v42 = vpop.f32.mrf.mxu0 }
  0xe6   : >> { %14463 = vtanh.f32 %v860_v41  ;;  %v14076_v42 = vld [vmem:[%s14797_s16 + $0x100] sm:$0xff]  }
  0xe7   : >> { %v862_v44 = vpop.f32.mrf.mxu0 }
  0xe8   : >> { %v863_v45 = vadd.f32 %v14903_v32, %v862_v44 }
  0xe9   : >> { %v12598_v46 = vpop.f32.mrf.mxu0 }
  0xea   : >> { %14465 = vtanh.f32 %v863_v45 }
  0xeb   : >> { %v867_v47 = vpop.f32.mrf.mxu0  ;;  %12696 = vmatmul.mubr.msk.bf16.gmra.mxu0 %vm662_vm3, %v14070_v43  ;;  %v14922_v51 = vpop.eup %14459 }
  0xec   : >> { %12699 = vmatprep.mubr.msk.bf16.mxu0 %vm14724_vm2, %v14722_v0  ;;  %v868_v48 = vadd.f32 %v14903_v32, %v867_v47 }
  0xed   : >> { %v12601_v49 = vpop.f32.mrf.mxu0 }
  0xee   : >> { %14467 = vtanh.f32 %v868_v48 }
  0xef   : >> { %v14924_v52 = vpop.eup %14461  ;;  %v870_v53 = vpop.f32.mrf.mxu0 }
  0xf0   : >> { %v871_v54 = vadd.f32 %v14903_v32, %v870_v53  ;;  %v1340_v55 = vpack.c.bf16 %v14924_v52, %v14922_v51 }
  0xf1   : >> { %v12602_v56 = vpop.f32.mrf.mxu0 }
  0xf2   : >> { %14469 = vtanh.f32 %v871_v54  ;;  %v14077_v54 = vld [vmem:[%s14797_s16 + $0x108] sm:$0xff]  }
  0xf3   : >> { %v875_v57 = vpop.f32.mrf.mxu0  ;;  %12700 = vmatmul.mubr.msk.bf16.gmra.mxu0 %vm662_vm3, %v14071_v50  ;;  %v14933_v60 = vpop.eup %14463 }
  0xf4   : >> { %12703 = vmatprep.mubr.msk.bf16.mxu0 %vm14724_vm2, %v14722_v0  ;;  %v876_v58 = vadd.f32 %v14903_v32, %v875_v57 }
  0xf5   : >> { %v12605_v59 = vpop.f32.mrf.mxu0 }
  0xf6   : >> { %14471 = vtanh.f32 %v876_v58 }
  0xf7   : >> { %v14935_v61 = vpop.eup %14465  ;;  %v878_v62 = vpop.f32.mrf.mxu0 }
  0xf8   : >> { %v879_v1 = vadd.f32 %v14903_v32, %v878_v62  ;;  %v1341_v2 = vpack.c.bf16 %v14935_v61, %v14933_v60  ;;  %v14093_v61 = vld [vmem:[%s14797_s16 + $0x170] sm:$0xff]  }
  0xf9   : >> { %v12606_v3 = vpop.f32.mrf.mxu0 }
  0xfa   : >> { %14473 = vtanh.f32 %v879_v1 }
  0xfb   : >> { %v883_v4 = vpop.f32.mrf.mxu0  ;;  %12704 = vmatmul.mubr.msk.bf16.gmra.mxu0 %vm662_vm3, %v14072_v63  ;;  %v14945_v7 = vpop.eup %14467 }
  0xfc   : >> { %12707 = vmatprep.mubr.msk.bf16.mxu0 %vm14724_vm2, %v14722_v0  ;;  %v884_v5 = vadd.f32 %v14903_v32, %v883_v4 }
  0xfd   : >> { %v12609_v6 = vpop.f32.mrf.mxu0 }
  0xfe   : >> { %14475 = vtanh.f32 %v884_v5  ;;  %v14078_v5 = vld [vmem:[%s14797_s16 + $0x110] sm:$0xff]  }
  0xff   : >> { %v14947_v8 = vpop.eup %14469  ;;  %v886_v9 = vpop.f32.mrf.mxu0 }
 0x100   : >> { %v887_v11 = vadd.f32 %v14903_v32, %v886_v9  ;;  %v1342_v12 = vpack.c.bf16 %v14947_v8, %v14945_v7 }
 0x101   : >> { %v12610_v13 = vpop.f32.mrf.mxu0 }
 0x102   : >> { %14477 = vtanh.f32 %v887_v11 }
 0x103   : >> { %v891_v14 = vpop.f32.mrf.mxu0  ;;  %12708 = vmatmul.mubr.msk.bf16.gmra.mxu0 %vm662_vm3, %v14073_v10  ;;  %v14957_v17 = vpop.eup %14471 }
 0x104   : >> { %12711 = vmatprep.mubr.msk.bf16.mxu0 %vm14724_vm2, %v14722_v0  ;;  %v892_v15 = vadd.f32 %v14903_v32, %v891_v14 }
 0x105   : >> { %v12613_v16 = vpop.f32.mrf.mxu0 }
 0x106   : >> { %14479 = vtanh.f32 %v892_v15 }
 0x107   : >> { %v14959_v18 = vpop.eup %14473  ;;  %v894_v19 = vpop.f32.mrf.mxu0 }
 0x108   : >> { %v895_v22 = vadd.f32 %v14903_v32, %v894_v19  ;;  %v1343_v23 = vpack.c.bf16 %v14959_v18, %v14957_v17  ;;  %v14079_v19 = vld [vmem:[%s14797_s16 + $0x118] sm:$0xff]  }
 0x109   : >> { %v12614_v24 = vpop.f32.mrf.mxu0 }
 0x10a   : >> { %14481 = vtanh.f32 %v895_v22 }
 0x10b   : >> { %v899_v25 = vpop.f32.mrf.mxu0  ;;  %12712 = vmatmul.mubr.msk.bf16.gmra.mxu0 %vm662_vm3, %v14074_v20  ;;  %v14972_v28 = vpop.eup %14475 }
 0x10c   : >> { %12715 = vmatprep.mubr.msk.bf16.mxu0 %vm14724_vm2, %v14722_v0  ;;  %v900_v26 = vadd.f32 %v14903_v32, %v899_v25 }
 0x10d   : >> { %v12617_v27 = vpop.f32.mrf.mxu0 }
 0x10e   : >> { %14483 = vtanh.f32 %v900_v26 }
 0x10f   : >> { %v14974_v29 = vpop.eup %14477  ;;  %v902_v30 = vpop.f32.mrf.mxu0 }
 0x110   : >> { %v903_v33 = vadd.f32 %v14903_v32, %v902_v30  ;;  %v1344_v34 = vpack.c.bf16 %v14974_v29, %v14972_v28  ;;  %v14080_v30 = vld [vmem:[%s14797_s16 + $0x120] sm:$0xff]  }
 0x111   : >> { %v12618_v35 = vpop.f32.mrf.mxu0 }
 0x112   : >> { %14485 = vtanh.f32 %v903_v33 }
 0x113   : >> { %v907_v36 = vpop.f32.mrf.mxu0  ;;  %12716 = vmatmul.mubr.msk.bf16.gmra.mxu0 %vm662_vm3, %v14075_v31  ;;  %v14984_v39 = vpop.eup %14479 }
 0x114   : >> { %12719 = vmatprep.mubr.msk.bf16.mxu0 %vm14724_vm2, %v14722_v0  ;;  %v908_v37 = vadd.f32 %v14903_v32, %v907_v36 }
 0x115   : >> { %v12621_v38 = vpop.f32.mrf.mxu0 }
 0x116   : >> { %14487 = vtanh.f32 %v908_v37  ;;  %v14081_v38 = vld [vmem:[%s14797_s16 + $0x128] sm:$0xff]  }
 0x117   : >> { %v14986_v40 = vpop.eup %14481  ;;  %v910_v41 = vpop.f32.mrf.mxu0 }
 0x118   : >> { %v911_v43 = vadd.f32 %v14903_v32, %v910_v41  ;;  %v1345_v44 = vpack.c.bf16 %v14986_v40, %v14984_v39  ;;  %v14088_v39 = vld [vmem:[%s14797_s16 + $0x160] sm:$0xff]  }
 0x119   : >> { %v12622_v45 = vpop.f32.mrf.mxu0 }
 0x11a   : >> { %14489 = vtanh.f32 %v911_v43 }
 0x11b   : >> { %v915_v46 = vpop.f32.mrf.mxu0  ;;  %12720 = vmatmul.mubr.msk.bf16.gmra.mxu0 %vm662_vm3, %v14076_v42  ;;  %v14996_v49 = vpop.eup %14483 }
 0x11c   : >> { %12723 = vmatprep.mubr.msk.bf16.mxu0 %vm14724_vm2, %v14722_v0  ;;  %v916_v47 = vadd.f32 %v14903_v32, %v915_v46  ;;  %v14082_v46 = vld [vmem:[%s14797_s16 + $0x130] sm:$0xff]  }
 0x11d   : >> { %v12625_v48 = vpop.f32.mrf.mxu0 }
 0x11e   : >> { %14491 = vtanh.f32 %v916_v47 }
 0x11f   : >> { %v14998_v50 = vpop.eup %14485  ;;  %v918_v53 = vpop.f32.mrf.mxu0 }
 0x120   : >> { %v919_v56 = vadd.f32 %v14903_v32, %v918_v53  ;;  %v1346_v57 = vpack.c.bf16 %v14998_v50, %v14996_v49 }
 0x121   : >> { %v12626_v58 = vpop.f32.mrf.mxu0 }
 0x122   : >> { %14493 = vtanh.f32 %v919_v56  ;;  %v14083_v56 = vld [vmem:[%s14797_s16 + $0x138] sm:$0xff]  }
 0x123   : >> { %v923_v59 = vpop.f32.mrf.mxu0  ;;  %12724 = vmatmul.mubr.msk.bf16.gmra.mxu0 %vm662_vm3, %v14077_v54  ;;  %v15008_v1 = vpop.eup %14487 }
 0x124   : >> { %12727 = vmatprep.mubr.msk.bf16.mxu0 %vm14724_vm2, %v14722_v0  ;;  %v924_v62 = vadd.f32 %v14903_v32, %v923_v59 }
 0x125   : >> { %v12629_v63 = vpop.f32.mrf.mxu0 }
 0x126   : >> { %14495 = vtanh.f32 %v924_v62 }
 0x127   : >> { %v15010_v3 = vpop.eup %14489  ;;  %v926_v4 = vpop.f32.mrf.mxu0 }
 0x128   : >> { %v927_v6 = vadd.f32 %v14903_v32, %v926_v4  ;;  %v1347_v9 = vpack.c.bf16 %v15010_v3, %v15008_v1  ;;  %v14087_v1 = vld [vmem:[%s14797_s16 + $0x158] sm:$0xff]  }
 0x129   : >> { %v12630_v10 = vpop.f32.mrf.mxu0 }
 0x12a   : >> { %14497 = vtanh.f32 %v927_v6  ;;  %v14084_v6 = vld [vmem:[%s14797_s16 + $0x140] sm:$0xff]  }
 0x12b   : >> { %v15016_v11 = vpop.f32.mrf.mxu0  ;;  %12728 = vmatmul.mubr.msk.bf16.gmra.mxu0 %vm662_vm3, %v14078_v5  ;;  %v15021_v14 = vpop.eup %14491 }
 0x12c   : >> { %12731 = vmatprep.mubr.msk.bf16.mxu0 %vm14724_vm2, %v14722_v0 }
 0x12d   : >> { %v12633_v13 = vpop.f32.mrf.mxu0 }
 0x12f   : >> { %v15023_v15 = vpop.eup %14493  ;;  %v15025_v16 = vpop.f32.mrf.mxu0 }
 0x130   : >> { %v1348_v20 = vpack.c.bf16 %v15023_v15, %v15021_v14 }
 0x131   : >> { %v12634_v21 = vpop.f32.mrf.mxu0 }
 0x133   : >> { %v15030_v22 = vpop.f32.mrf.mxu0  ;;  %12732 = vmatmul.mubr.msk.bf16.gmra.mxu0 %vm662_vm3, %v14079_v19  ;;  %v15035_v25 = vpop.eup %14495 }
 0x134   : >> { %12735 = vmatprep.mubr.msk.bf16.mxu0 %vm14724_vm2, %v14722_v0 }
 0x135   : >> { %v12637_v24 = vpop.f32.mrf.mxu0 }
 0x137   : >> { %v15037_v26 = vpop.eup %14497  ;;  %v942_v27 = vpop.f32.mrf.mxu0 }
 0x138   : >> { %v1349_v31 = vpack.c.bf16 %v15037_v26, %v15035_v25  ;;  %v14090_v25 = vld [vmem:[%s18725_s3] ss:$28 sps:$4 sm:$0xff]  }
 0x139   : >> { %v12638_v33 = vpop.f32.mrf.mxu0 }
 0x13b   : >> { %v947_v35 = vpop.f32.mrf.mxu0  ;;  %12736 = vmatmul.mubr.msk.bf16.gmra.mxu0 %vm662_vm3, %v14080_v30 }
 0x13c   : >> { %12739 = vmatprep.mubr.msk.bf16.mxu0 %vm14724_vm2, %v14722_v0 }
 0x13d   : >> { %v12641_v36 = vpop.f32.mrf.mxu0 }
 0x13f   : >> { %v950_v37 = vpop.f32.mrf.mxu0 }
 0x140   : >> { %v951_v24 = vadd.f32 %v14903_v32, %v950_v37 }
 0x141   : >> { %v12642_v41 = vpop.f32.mrf.mxu0 }
 0x143   : >> { %v955_v42 = vpop.f32.mrf.mxu0  ;;  %12740 = vmatmul.mubr.msk.bf16.gmra.mxu0 %vm662_vm3, %v14081_v38 }
 0x144   : >> { %12743 = vmatprep.mubr.msk.bf16.mxu0 %vm14724_vm2, %v14722_v0  ;;  %v956_v33 = vadd.f32 %v14903_v32, %v955_v42  ;;  %v943_v42 = vadd.f32 %v14903_v32, %v942_v27 }
 0x145   : >> { %v12645_v43 = vpop.f32.mrf.mxu0 }
 0x146   : >> { %v14085_v43 = vld [vmem:[%s14797_s16 + $0x148] sm:$0xff]  }
 0x147   : >> { %v958_v45 = vpop.f32.mrf.mxu0 }
 0x148   : >> { %v959_v21 = vadd.f32 %v14903_v32, %v958_v45  ;;  %v948_v45 = vadd.f32 %v14903_v32, %v947_v35 }
 0x149   : >> { %v12646_v47 = vpop.f32.mrf.mxu0 }
 0x14a   : >> { %v935_v47 = vadd.f32 %v14903_v32, %v15025_v16  ;;  %v14086_v16 = vld [vmem:[%s14797_s16 + $0x150] sm:$0xff]  }
 0x14b   : >> { %v963_v48 = vpop.f32.mrf.mxu0  ;;  %12744 = vmatmul.mubr.msk.bf16.gmra.mxu0 %vm662_vm3, %v14082_v46 }
 0x14c   : >> { %12747 = vmatprep.mubr.msk.bf16.mxu0 %vm14724_vm2, %v14722_v0  ;;  %v964_v10 = vadd.f32 %v14903_v32, %v963_v48 }
 0x14d   : >> { %v12649_v53 = vpop.f32.mrf.mxu0 }
 0x14e   : >> { %v940_v53 = vadd.f32 %v14903_v32, %v15030_v22 }
 0x14f   : >> { %v966_v54 = vpop.f32.mrf.mxu0 }
 0x150   : >> { %v967_v62 = vadd.f32 %v14903_v32, %v966_v54 }
 0x151   : >> { %v12650_v58 = vpop.f32.mrf.mxu0 }
 0x152   : >> { %14499 = vtanh.f32 %v967_v62  ;;  %v932_v62 = vadd.f32 %v14903_v32, %v15016_v11 }
 0x153   : >> { %v971_v59 = vpop.f32.mrf.mxu0  ;;  %12748 = vmatmul.mubr.msk.bf16.gmra.mxu0 %vm662_vm3, %v14083_v56 }
 0x154   : >> { %12751 = vmatprep.mubr.msk.bf16.mxu0 %vm14724_vm2, %v14722_v0  ;;  %v972_v63 = vadd.f32 %v14903_v32, %v971_v59 }
 0x155   : >> { %v12653_v4 = vpop.f32.mrf.mxu0 }
 0x156   : >> { %14501 = vtanh.f32 %v972_v63 }
 0x157   : >> { %v974_v5 = vpop.f32.mrf.mxu0 }
 0x158   : >> { %v975_v13 = vadd.f32 %v14903_v32, %v974_v5 }
 0x159   : >> { %v12654_v19 = vpop.f32.mrf.mxu0 }
 0x15a   : >> { %14503 = vtanh.f32 %v975_v13 }
 0x15b   : >> { %v979_v30 = vpop.f32.mrf.mxu0  ;;  %12752 = vmatmul.mubr.msk.bf16.gmra.mxu0 %vm662_vm3, %v14084_v6  ;;  %14505 = vtanh.f32 %v964_v10 }
 0x15c   : >> { %12755 = vmatprep.mubr.msk.bf16.mxu0 %vm14724_vm2, %v14722_v0  ;;  %v980_v36 = vadd.f32 %v14903_v32, %v979_v30  ;;  %14507 = vtanh.f32 %v959_v21 }
 0x15d   : >> { %v12657_v38 = vpop.f32.mrf.mxu0  ;;  %14509 = vtanh.f32 %v951_v24 }
 0x15e   : >> { %14511 = vtanh.f32 %v956_v33 }
 0x15f   : >> { %v982_v41 = vpop.f32.mrf.mxu0  ;;  %14513 = vtanh.f32 %v980_v36  ;;  %v14500_v35 = vpop.eup %14499 }
 0x160   : >> { %v983_v37 = vadd.f32 %v14903_v32, %v982_v41 }
 0x161   : >> { %v12658_v46 = vpop.f32.mrf.mxu0 }
 0x162   : >> { %14515 = vtanh.f32 %v983_v37 }
 0x163   : >> { %v987_v48 = vpop.f32.mrf.mxu0  ;;  %12756 = vmatmul.mubr.msk.bf16.gmra.mxu0 %vm662_vm3, %v14085_v43  ;;  %14517 = vtanh.f32 %v948_v45  ;;  %v14502_v27 = vpop.eup %14501 }
 0x164   : >> { %12759 = vmatprep.mubr.msk.bf16.mxu0 %vm14724_vm2, %v14722_v0  ;;  %v988_v54 = vadd.f32 %v14903_v32, %v987_v48  ;;  %14519 = vtanh.f32 %v943_v42 }
 0x165   : >> { %v12661_v56 = vpop.f32.mrf.mxu0  ;;  %14521 = vtanh.f32 %v935_v47 }
 0x166   : >> { %14523 = vtanh.f32 %v940_v53 }
 0x167   : >> { %v14504_v58 = vpop.eup %14503  ;;  %v990_v59 = vpop.f32.mrf.mxu0  ;;  %14525 = vtanh.f32 %v988_v54 }
 0x168   : >> { %v991_v22 = vadd.f32 %v14903_v32, %v990_v59  ;;  %v1355_v63 = vpack.c.bf16 %v14504_v58, %v14502_v27  ;;  %v14506_v4 = vpop.eup %14505 }
 0x169   : >> { %v12662_v5 = vpop.f32.mrf.mxu0  ;;  %v1354_v6 = vpack.c.bf16 %v14500_v35, %v14506_v4  ;;  %v14508_v10 = vpop.eup %14507 }
 0x16a   : >> { %14527 = vtanh.f32 %v991_v22  ;;  %11634 = vmatprep.subr.bf16.mxu1 %v1355_v63  ;;  %v14510_v11 = vpop.eup %14509  ;;  %v14096_v63 = vld [vmem:[%s18725_s3 + $0x38] ss:$28 sps:$4 sm:$0xff]  }
 0x16b   : >> { %v995_v13 = vpop.f32.mrf.mxu0  ;;  %12760 = vmatmul.mubr.msk.bf16.gmra.mxu0 %vm662_vm3, %v14086_v16  ;;  %11635 = vmatpush3.bf16.msra.mxu1 %v1347_v9  ;;  %14529 = vtanh.f32 %v932_v62  ;;  %v14512_v19 = vpop.eup %14511  ;;  %v14089_v62 = vld [vmem:[%s14797_s16 + $0x168] sm:$0xff]  }
 0x16c   : >> { %11636 = vmatprep.subr.bf16.mxu1 %v1354_v6  ;;  %12763 = vmatprep.mubr.msk.bf16.mxu0 %vm14724_vm2, %v14722_v0  ;;  %v996_v21 = vadd.f32 %v14903_v32, %v995_v13  ;;  %v15092_v30 = vpop.eup %14513  ;;  %v1353_v33 = vpack.c.bf16 %v14508_v10, %v14512_v19  ;;  %v14097_v6 = vld [vmem:[%s14797_s16 + $0x178] sm:$0xff]   ;;  %v14098_v10 = vld [vmem:[%s18725_s3 + $0x74] ss:$28 sps:$4 sm:$0xff]  }
 0x16d   : >> { %v12665_v24 = vpop.f32.mrf.mxu0 }
 0x16e   : >> { %14531 = vtanh.f32 %v996_v21 }
 0x16f   : >> { %v15094_v36 = vpop.eup %14515  ;;  %v998_v38 = vpop.f32.mrf.mxu0  ;;  %11637 = vmatpush3.bf16.msra.mxu1 %v1346_v57 }
 0x170   : >> { %v999_v3 = vadd.f32 %v14903_v32, %v998_v38  ;;  %11638 = vmatprep.subr.bf16.mxu1 %v1353_v33  ;;  %v1356_v9 = vpack.c.bf16 %v15094_v36, %v15092_v30  ;;  %v14518_v41 = vpop.eup %14517  ;;  %v14198_v30 = vld [vmem:[%s18725_s3 + $0x18] ss:$28 sps:$4 sm:$0xff]  }
 0x171   : >> { %v12666_v43 = vpop.f32.mrf.mxu0  ;;  %v1352_v45 = vpack.c.bf16 %v14510_v11, %v14518_v41  ;;  %v14520_v37 = vpop.eup %14519 }
 0x172   : >> { %14533 = vtanh.f32 %v999_v3  ;;  %v14522_v49 = vpop.eup %14521  ;;  %v14101_v43 = vld [vmem:[%s14797_s16 + $0x180] sm:$0xff]  }
 0x173   : >> { %v1003_v46 = vpop.f32.mrf.mxu0  ;;  %12764 = vmatmul.mubr.msk.bf16.gmra.mxu0 %vm662_vm3, %v14087_v1  ;;  %11639 = vmatpush3.bf16.msra.mxu1 %v1345_v44  ;;  %v14524_v50 = vpop.eup %14523  ;;  %v14100_v1 = vld [vmem:[%s18725_s3 + $0x70] ss:$28 sps:$4 sm:$0xff]  }
 0x174   : >> { %11640 = vmatprep.subr.bf16.mxu1 %v1352_v45  ;;  %12767 = vmatprep.mubr.msk.bf16.mxu0 %vm14724_vm2, %v14722_v0  ;;  %v1004_v57 = vadd.f32 %v14903_v32, %v1003_v46  ;;  %v15110_v47 = vpop.eup %14525  ;;  %v1351_v48 = vpack.c.bf16 %v14520_v37, %v14524_v50  ;;  %v14102_v45 = vld [vmem:[%s18725_s3 + $0xac] ss:$28 sps:$4 sm:$0xff]  }
 0x175   : >> { %v12669_v42 = vpop.f32.mrf.mxu0 }
 0x176   : >> { %14535 = vtanh.f32 %v1004_v57 }
 0x177   : >> { %v15112_v53 = vpop.eup %14527  ;;  %v1006_v35 = vpop.f32.mrf.mxu0  ;;  %11641 = vmatpush3.bf16.msra.mxu1 %v1344_v34 }
 0x178   : >> { %v1007_v40 = vadd.f32 %v14903_v32, %v1006_v35  ;;  %11642 = vmatprep.subr.bf16.mxu1 %v1351_v48  ;;  %v1357_v44 = vpack.c.bf16 %v15112_v53, %v15110_v47  ;;  %v14530_v54 = vpop.eup %14529  ;;  %v14104_v48 = vld [vmem:[%s18725_s3 + $0xa8] ss:$28 sps:$4 sm:$0xff]  }
 0x179   : >> { %v12670_v56 = vpop.f32.mrf.mxu0  ;;  %v1350_v27 = vpack.c.bf16 %v14522_v49, %v14530_v54  ;;  %v14144_v47 = vld [vmem:[%s18725_s3 + $0x44] ss:$28 sps:$4 sm:$0xff]  }
 0x17a   : >> { %14537 = vtanh.f32 %v1007_v40  ;;  %v14105_v40 = vld [vmem:[%s18725_s3 + $0xe4] ss:$28 sps:$4 sm:$0xff]  }
 0x17b   : >> { %v1011_v58 = vpop.f32.mrf.mxu0  ;;  %12768 = vmatmul.mubr.msk.bf16.gmra.mxu0 %vm662_vm3, %v14088_v39  ;;  %11643 = vmatpush3.bf16.msra.mxu1 %v1343_v23  ;;  %v15128_v34 = vpop.eup %14531 }
 0x17c   : >> { %11644 = vmatprep.subr.bf16.mxu1 %v1350_v27  ;;  %12771 = vmatprep.mubr.msk.bf16.mxu0 %vm14724_vm2, %v14722_v0  ;;  %v1012_v28 = vadd.f32 %v14903_v32, %v1011_v58 }
 0x17d   : >> { %v12673_v29 = vpop.f32.mrf.mxu0 }
 0x17e   : >> { %14539 = vtanh.f32 %v1012_v28 }
 0x17f   : >> { %v15130_v59 = vpop.eup %14533  ;;  %v1014_v16 = vpop.f32.mrf.mxu0  ;;  %11645 = vmatpush3.bf16.msra.mxu1 %v1342_v12 }
 0x180   : >> { %v1015_v17 = vadd.f32 %v14903_v32, %v1014_v16  ;;  %11646 = vmatprep.subr.bf16.mxu1 %v1349_v31  ;;  %v1358_v18 = vpack.c.bf16 %v15130_v59, %v15128_v34 }
 0x181   : >> { %v12674_v23 = vpop.f32.mrf.mxu0 }
 0x182   : >> { %14541 = vtanh.f32 %v1015_v17 }
 0x183   : >> { %v1019_v22 = vpop.f32.mrf.mxu0  ;;  %12772 = vmatmul.mubr.msk.bf16.gmra.mxu0 %vm662_vm3, %v14089_v62  ;;  %11647 = vmatpush3.bf16.msra.mxu1 %v1341_v2  ;;  %v15152_v12 = vpop.eup %14535  ;;  %v14094_v2 = vld [vmem:[%s18725_s3 + $0x3c] ss:$28 sps:$4 sm:$0xff]  }
 0x184   : >> { %11648 = vmatprep.subr.bf16.mxu1 %v1348_v20  ;;  %12775 = vmatprep.mubr.msk.bf16.mxu0 %vm14724_vm2, %v14722_v0  ;;  %v1020_v7 = vadd.f32 %v14903_v32, %v1019_v22  ;;  %v14107_v62 = vld [vmem:[%s18725_s3 + $0xe0] ss:$28 sps:$4 sm:$0xff]  }
 0x185   : >> { %v12677_v8 = vpop.f32.mrf.mxu0  ;;  %v14108_v22 = vld [vmem:[%s18725_s3 + $0x11c] ss:$28 sps:$4 sm:$0xff]  }
 0x186   : >> { %14543 = vtanh.f32 %v1020_v7 }
 0x187   : >> { %v15157_v26 = vpop.eup %14537  ;;  %v1022_v60 = vpop.f32.mrf.mxu0  ;;  %11649 = vmatpush3.bf16.msra.mxu1 %v1340_v55 }
 0x188   : >> { %v1023_v14 = vadd.f32 %v14903_v32, %v1022_v60  ;;  %v1359_v15 = vpack.c.bf16 %v15157_v26, %v15152_v12  ;;  %v14143_v12 = vld [vmem:[%s18725_s3 + $0xc] ss:$28 sps:$4 sm:$0xff]  }
 0x189   : >> { %v12678_v20 = vpop.f32.mrf.mxu0 }
 0x18a   : >> { %14545 = vtanh.f32 %v1023_v14  ;;  %2159 = vmatmul.mubr.bf16.vlgmr.msra.gmra.mxu1 %v14090_v25  ;;  %v14110_v14 = vld [vmem:[%s18725_s3 + $0x118] ss:$28 sps:$4 sm:$0xff]  }
 0x18b   : >> { %v1027_v31 = vpop.f32.mrf.mxu0  ;;  %12776 = vmatmul.mubr.msk.bf16.gmra.mxu0 %vm662_vm3, %v14093_v61  ;;  %2166 = vmatprep.mubr.bf16.mxu1 %v14094_v2  ;;  %v15173_v55 = vpop.eup %14539 }
 0x18c   : >> { %12779 = vmatprep.mubr.msk.bf16.mxu0 %vm14724_vm2, %v14722_v0  ;;  %v1028_v51 = vadd.f32 %v14903_v32, %v1027_v31 }
 0x18d   : >> { %v12681_v52 = vpop.f32.mrf.mxu0 }
 0x18e   : >> { %14547 = vtanh.f32 %v1028_v51  ;;  %v14111_v51 = vld [vmem:[%s18725_s3 + $0x154] ss:$28 sps:$4 sm:$0xff]  }
 0x18f   : >> { %v15178_v4 = vpop.eup %14541  ;;  %v1030_v5 = vpop.f32.mrf.mxu0 }
 0x190   : >> { %v1031_v13 = vadd.f32 %v14903_v32, %v1030_v5  ;;  %v1360_v11 = vpack.c.bf16 %v15178_v4, %v15173_v55 }
 0x191   : >> { %v12682_v19 = vpop.f32.mrf.mxu0 }
 0x192   : >> { %14549 = vtanh.f32 %v1031_v13  ;;  %2167 = vmatmul.mubr.bf16.gmra.mxu1 %v14096_v63  ;;  %v14113_v13 = vld [vmem:[%s18725_s3 + $0x150] ss:$28 sps:$4 sm:$0xff]  }
 0x193   : >> { %v1035_v21 = vpop.f32.mrf.mxu0  ;;  %12780 = vmatmul.mubr.msk.bf16.gmra.mxu0 %vm662_vm3, %v14097_v6  ;;  %2174 = vmatprep.mubr.bf16.mxu1 %v14098_v10  ;;  %v15191_v38 = vpop.eup %14543 }
 0x194   : >> { %12783 = vmatprep.mubr.msk.bf16.mxu0 %vm14724_vm2, %v14722_v0  ;;  %v1036_v24 = vadd.f32 %v14903_v32, %v1035_v21 }
 0x195   : >> { %v12685_v33 = vpop.f32.mrf.mxu0 }
 0x196   : >> { %14551 = vtanh.f32 %v1036_v24  ;;  %v14114_v24 = vld [vmem:[%s18725_s3 + $0x18c] ss:$28 sps:$4 sm:$0xff]  }
 0x197   : >> { %v15196_v3 = vpop.eup %14545  ;;  %v1038_v41 = vpop.f32.mrf.mxu0 }
 0x198   : >> { %v1039_v37 = vadd.f32 %v14903_v32, %v1038_v41  ;;  %v1361_v0 = vpack.c.bf16 %v15196_v3, %v15191_v38  ;;  %v14138_v38 = vld [vmem:[%s18725_s3 + $0x34c] ss:$28 sps:$4 sm:$0xff]  }
 0x199   : >> { %v12686_v46 = vpop.f32.mrf.mxu0 }
 0x19a   : >> { %14553 = vtanh.f32 %v1039_v37  ;;  %2175 = vmatmul.mubr.bf16.gmra.mxu1 %v14100_v1  ;;  %v14117_v46 = vld [vmem:[%s18725_s3 + $0x1c4] ss:$28 sps:$4 sm:$0xff]  }
 0x19b   : >> { %v1043_v49 = vpop.f32.mrf.mxu0  ;;  %12784 = vmatmul.mubr.msk.bf16.gmra.mxu0 %vm662_vm3, %v14101_v43  ;;  %2182 = vmatprep.mubr.bf16.mxu1 %v14102_v45  ;;  %v15207_v42 = vpop.eup %14547  ;;  %v14116_v45 = vld [vmem:[%s18725_s3 + $0x188] ss:$28 sps:$4 sm:$0xff]  }
 0x19c   : >> { %v1044_v50 = vadd.f32 %v14903_v32, %v1043_v49  ;;  %12789 = vmatprep.mubr.msk.bf16.mxu0 %vm2077_vm4, %v14198_v30 }
 0x19d   : >> { %v12689_v57 = vpop.f32.mrf.mxu0 }
 0x19e   : >> { %14555 = vtanh.f32 %v1044_v50 }
 0x19f   : >> { %v15212_v35 = vpop.eup %14549  ;;  %v1046_v39 = vpop.f32.mrf.mxu0 }
 0x1a0   : >> { %v1047_v54 = vadd.f32 %v14903_v32, %v1046_v39  ;;  %v1362_v56 = vpack.c.bf16 %v15212_v35, %v15207_v42 }
 0x1a1   : >> { %v12690_v27 = vpop.f32.mrf.mxu0 }
 0x1a2   : >> { %14557 = vtanh.f32 %v1047_v54  ;;  %2183 = vmatmul.mubr.bf16.gmra.mxu1 %v14104_v48  ;;  %v14119_v48 = vld [vmem:[%s18725_s3 + $0x1c0] ss:$28 sps:$4 sm:$0xff]  }
 0x1a3   : >> { %v1051_v58 = vpop.f32.mrf.mxu0  ;;  %2190 = vmatprep.mubr.bf16.mxu1 %v14105_v40  ;;  %v15221_v16 = vpop.eup %14551  ;;  %v14120_v40 = vld [vmem:[%s18725_s3 + $0x1fc] ss:$28 sps:$4 sm:$0xff]  }
 0x1a4   : >> { %v1052_v28 = vadd.f32 %v14903_v32, %v1051_v58 }
 0x1a5   : >> { %v12693_v29 = vpop.f32.mrf.mxu0 }
 0x1a6   : >> { %14559 = vtanh.f32 %v1052_v28  ;;  %v14122_v28 = vld [vmem:[%s18725_s3 + $0x1f8] ss:$28 sps:$4 sm:$0xff]  }
 0x1a7   : >> { %v15226_v17 = vpop.eup %14553  ;;  %v1054_v23 = vpop.f32.mrf.mxu0 }
 0x1a8   : >> { %v1055_v7 = vadd.f32 %v14903_v32, %v1054_v23  ;;  %v1363_v8 = vpack.c.bf16 %v15226_v17, %v15221_v16  ;;  %v14135_v16 = vld [vmem:[%s18725_s3 + $0x314] ss:$28 sps:$4 sm:$0xff]  }
 0x1a9   : >> { %v12694_v25 = vpop.f32.mrf.mxu0 }
 0x1aa   : >> { %14561 = vtanh.f32 %v1055_v7  ;;  %2191 = vmatmul.mubr.bf16.gmra.mxu1 %v14107_v62  ;;  %v14123_v62 = vld [vmem:[%s18725_s3 + $0x234] ss:$28 sps:$4 sm:$0xff]  }
 0x1ab   : >> { %v15234_v60 = vpop.f32.mrf.mxu0  ;;  %2198 = vmatprep.mubr.bf16.mxu1 %v14108_v22  ;;  %v15236_v2 = vpop.eup %14555 }
 0x1ad   : >> { %v12697_v61 = vpop.f32.mrf.mxu0 }
 0x1af   : >> { %v15241_v20 = vpop.eup %14557  ;;  %v15243_v31 = vpop.f32.mrf.mxu0 }
 0x1b0   : >> { %v1364_v52 = vpack.c.bf16 %v15241_v20, %v15236_v2 }
 0x1b1   : >> { %v12698_v63 = vpop.f32.mrf.mxu0 }
 0x1b2   : >> { %2199 = vmatmul.mubr.bf16.gmra.mxu1 %v14110_v14  ;;  %v14125_v14 = vld [vmem:[%s18725_s3 + $0x230] ss:$28 sps:$4 sm:$0xff]  }
 0x1b3   : >> { %v15250_v5 = vpop.f32.mrf.mxu0  ;;  %2206 = vmatprep.mubr.bf16.mxu1 %v14111_v51  ;;  %v15252_v10 = vpop.eup %14559  ;;  %v14126_v63 = vld [vmem:[%s18725_s3 + $0x26c] ss:$28 sps:$4 sm:$0xff]  }
 0x1b5   : >> { %v12701_v6 = vpop.f32.mrf.mxu0 }
 0x1b6   : >> { %v15295_v6 = vld [vmem:[%s18724_s2] ss:$0 sm:$0xff] }
 0x1b7   : >> { %v15257_v19 = vpop.eup %14561  ;;  %v15259_v21 = vpop.f32.mrf.mxu0 }
 0x1b8   : >> { %v1365_v33 = vpack.c.bf16 %v15257_v19, %v15252_v10  ;;  %v14141_v10 = vld [vmem:[%s18725_s3 + $0x8] ss:$28 sps:$4 sm:$0xff]  }
 0x1b9   : >> { %v12702_v1 = vpop.f32.mrf.mxu0 }
 0x1ba   : >> { %2207 = vmatmul.mubr.bf16.gmra.mxu1 %v14113_v13 }
 0x1bb   : >> { %v1075_v41 = vpop.f32.mrf.mxu0  ;;  %2214 = vmatprep.mubr.bf16.mxu1 %v14114_v24 }
 0x1bd   : >> { %v12705_v43 = vpop.f32.mrf.mxu0 }
 0x1bf   : >> { %v1078_v37 = vpop.f32.mrf.mxu0 }
 0x1c0   : >> { %v1079_v43 = vadd.f32 %v15295_v6, %v1078_v37  ;;  %v1076_v37 = vadd.f32 %v15295_v6, %v1075_v41 }
 0x1c1   : >> { %v12706_v49 = vpop.f32.mrf.mxu0 }
 0x1c2   : >> { %2215 = vmatmul.mubr.bf16.gmra.mxu1 %v14116_v45 }
 0x1c3   : >> { %v1083_v50 = vpop.f32.mrf.mxu0  ;;  %2222 = vmatprep.mubr.bf16.mxu1 %v14117_v46 }
 0x1c4   : >> { %v1084_v46 = vadd.f32 %v15295_v6, %v1083_v50 }
 0x1c5   : >> { %v12709_v57 = vpop.f32.mrf.mxu0 }
 0x1c7   : >> { %v1086_v39 = vpop.f32.mrf.mxu0 }
 0x1c8   : >> { %v1087_v1 = vadd.f32 %v15295_v6, %v1086_v39  ;;  %v14129_v39 = vld [vmem:[%s18725_s3 + $0x2a4] ss:$28 sps:$4 sm:$0xff]  }
 0x1c9   : >> { %v12710_v54 = vpop.f32.mrf.mxu0 }
 0x1ca   : >> { %2223 = vmatmul.mubr.bf16.gmra.mxu1 %v14119_v48  ;;  %v14128_v48 = vld [vmem:[%s18725_s3 + $0x268] ss:$28 sps:$4 sm:$0xff]  }
 0x1cb   : >> { %v1091_v27 = vpop.f32.mrf.mxu0  ;;  %2230 = vmatprep.mubr.bf16.mxu1 %v14120_v40 }
 0x1cc   : >> { %v1092_v13 = vadd.f32 %v15295_v6, %v1091_v27  ;;  %v1071_v27 = vadd.f32 %v15295_v6, %v15259_v21  ;;  %v14131_v21 = vld [vmem:[%s18725_s3 + $0x2a0] ss:$28 sps:$4 sm:$0xff]  }
 0x1cd   : >> { %v12713_v58 = vpop.f32.mrf.mxu0 }
 0x1ce   : >> { %v1063_v58 = vadd.f32 %v15295_v6, %v15243_v31  ;;  %v14132_v31 = vld [vmem:[%s18725_s3 + $0x2dc] ss:$28 sps:$4 sm:$0xff]  }
 0x1cf   : >> { %v1094_v29 = vpop.f32.mrf.mxu0 }
 0x1d0   : >> { %v1095_v7 = vadd.f32 %v14903_v32, %v1094_v29  ;;  %v1068_v29 = vadd.f32 %v15295_v6, %v15250_v5  ;;  %v1060_v5 = vadd.f32 %v15295_v6, %v15234_v60 }
 0x1d1   : >> { %v12714_v23 = vpop.f32.mrf.mxu0 }
 0x1d2   : >> { %2231 = vmatmul.mubr.bf16.gmra.mxu1 %v14122_v28  ;;  %14563 = vtanh.f32 %v1095_v7 }
 0x1d3   : >> { %v1099_v22 = vpop.f32.mrf.mxu0  ;;  %2238 = vmatprep.mubr.bf16.mxu1 %v14123_v62 }
 0x1d4   : >> { %v1100_v25 = vadd.f32 %v14903_v32, %v1099_v22 }
 0x1d5   : >> { %v12717_v61 = vpop.f32.mrf.mxu0 }
 0x1d6   : >> { %14565 = vtanh.f32 %v1100_v25 }
 0x1d7   : >> { %v1102_v51 = vpop.f32.mrf.mxu0 }
 0x1d8   : >> { %v1103_v32 = vadd.f32 %v15295_v6, %v1102_v51 }
 0x1d9   : >> { %v12718_v24 = vpop.f32.mrf.mxu0 }
 0x1da   : >> { %14567 = vtanh.f32 %v1103_v32  ;;  %2239 = vmatmul.mubr.bf16.gmra.mxu1 %v14125_v14 }
 0x1db   : >> { %v1107_v45 = vpop.f32.mrf.mxu0  ;;  %2246 = vmatprep.mubr.bf16.mxu1 %v14126_v63  ;;  %14569 = vtanh.f32 %v1092_v13 }
 0x1dc   : >> { %v1108_v49 = vadd.f32 %v15295_v6, %v1107_v45  ;;  %14571 = vtanh.f32 %v1087_v1 }
 0x1dd   : >> { %v12721_v57 = vpop.f32.mrf.mxu0  ;;  %14573 = vtanh.f32 %v1079_v43 }
 0x1de   : >> { %14575 = vtanh.f32 %v1084_v46  ;;  %v14134_v57 = vld [vmem:[%s18725_s3 + $0x2d8] ss:$28 sps:$4 sm:$0xff]  }
 0x1df   : >> { %v1110_v40 = vpop.f32.mrf.mxu0  ;;  %14577 = vtanh.f32 %v1108_v49  ;;  %v14564_v41 = vpop.eup %14563 }
 0x1e0   : >> { %v1111_v50 = vadd.f32 %v15295_v6, %v1110_v40 }
 0x1e1   : >> { %v12722_v54 = vpop.f32.mrf.mxu0 }
 0x1e2   : >> { %14579 = vtanh.f32 %v1111_v50  ;;  %2247 = vmatmul.mubr.bf16.gmra.mxu1 %v14128_v48 }
 0x1e3   : >> { %v1115_v28 = vpop.f32.mrf.mxu0  ;;  %2254 = vmatprep.mubr.bf16.mxu1 %v14129_v39  ;;  %14581 = vtanh.f32 %v1076_v37  ;;  %v14566_v22 = vpop.eup %14565 }
 0x1e4   : >> { %v1116_v62 = vadd.f32 %v15295_v6, %v1115_v28  ;;  %14583 = vtanh.f32 %v1071_v27 }
 0x1e5   : >> { %v12725_v23 = vpop.f32.mrf.mxu0  ;;  %14585 = vtanh.f32 %v1063_v58 }
 0x1e6   : >> { %14587 = vtanh.f32 %v1068_v29 }
 0x1e7   : >> { %v14568_v7 = vpop.eup %14567  ;;  %v1118_v25 = vpop.f32.mrf.mxu0  ;;  %14589 = vtanh.f32 %v1116_v62 }
 0x1e8   : >> { %v1119_v61 = vadd.f32 %v15295_v6, %v1118_v25  ;;  %v1371_v14 = vpack.c.bf16 %v14568_v7, %v14566_v22  ;;  %v14570_v51 = vpop.eup %14569 }
 0x1e9   : >> { %v12726_v63 = vpop.f32.mrf.mxu0  ;;  %v1370_v13 = vpack.c.bf16 %v14564_v41, %v14570_v51  ;;  %v14572_v32 = vpop.eup %14571  ;;  %v14137_v41 = vld [vmem:[%s18725_s3 + $0x310] ss:$28 sps:$4 sm:$0xff]  }
 0x1ea   : >> { %14591 = vtanh.f32 %v1119_v61  ;;  %2255 = vmatmul.mubr.bf16.gmra.mxu1 %v14131_v21  ;;  %11746 = vmatprep.subr.bf16.mxu1 %v1371_v14  ;;  %v14574_v1 = vpop.eup %14573  ;;  %v14146_v63 = vld [vmem:[%s18725_s3 + $0x40] ss:$28 sps:$4 sm:$0xff]  }
 0x1eb   : >> { %v1123_v24 = vpop.f32.mrf.mxu0  ;;  %11747 = vmatpush3.bf16.msra.mxu1 %v1363_v8  ;;  %2262 = vmatprep.mubr.bf16.mxu1 %v14132_v31  ;;  %14593 = vtanh.f32 %v1060_v5  ;;  %v14576_v60 = vpop.eup %14575  ;;  %v14140_v31 = vld [vmem:[%s18725_s3 + $0x348] ss:$28 sps:$4 sm:$0xff]  }
 0x1ec   : >> { %11748 = vmatprep.subr.bf16.mxu1 %v1370_v13  ;;  %v1124_v43 = vadd.f32 %v15295_v6, %v1123_v24  ;;  %v15331_v46 = vpop.eup %14577  ;;  %v1369_v49 = vpack.c.bf16 %v14572_v32, %v14576_v60  ;;  %v14147_v24 = vld [vmem:[%s18725_s3 + $0x7c] ss:$28 sps:$4 sm:$0xff]  }
 0x1ed   : >> { %v12729_v45 = vpop.f32.mrf.mxu0 }
 0x1ee   : >> { %14595 = vtanh.f32 %v1124_v43 }
 0x1ef   : >> { %v15336_v48 = vpop.eup %14579  ;;  %v1126_v40 = vpop.f32.mrf.mxu0  ;;  %11749 = vmatpush3.bf16.msra.mxu1 %v1362_v56 }
 0x1f0   : >> { %v1127_v17 = vadd.f32 %v15295_v6, %v1126_v40  ;;  %11750 = vmatprep.subr.bf16.mxu1 %v1369_v49  ;;  %v1372_v8 = vpack.c.bf16 %v15336_v48, %v15331_v46  ;;  %v14582_v39 = vpop.eup %14581  ;;  %v14227_v46 = vld [vmem:[%s18725_s3 + $0x1d8] ss:$28 sps:$4 sm:$0xff]  }
 0x1f1   : >> { %v12730_v37 = vpop.f32.mrf.mxu0  ;;  %v1368_v50 = vpack.c.bf16 %v14574_v1, %v14582_v39  ;;  %v14584_v54 = vpop.eup %14583 }
 0x1f2   : >> { %14597 = vtanh.f32 %v1127_v17  ;;  %2263 = vmatmul.mubr.bf16.gmra.mxu1 %v14134_v57  ;;  %v14586_v42 = vpop.eup %14585  ;;  %v14150_v37 = vld [vmem:[%s18725_s3 + $0xb4] ss:$28 sps:$4 sm:$0xff]  }
 0x1f3   : >> { %v1131_v27 = vpop.f32.mrf.mxu0  ;;  %11751 = vmatpush3.bf16.msra.mxu1 %v1361_v0  ;;  %2270 = vmatprep.mubr.bf16.mxu1 %v14135_v16  ;;  %v14588_v35 = vpop.eup %14587  ;;  %v14149_v16 = vld [vmem:[%s18725_s3 + $0x78] ss:$28 sps:$4 sm:$0xff]  }
 0x1f4   : >> { %11752 = vmatprep.subr.bf16.mxu1 %v1368_v50  ;;  %v1132_v56 = vadd.f32 %v15295_v6, %v1131_v27  ;;  %v15351_v28 = vpop.eup %14589  ;;  %v1367_v29 = vpack.c.bf16 %v14584_v54, %v14588_v35 }
 0x1f5   : >> { %v12733_v58 = vpop.f32.mrf.mxu0 }
 0x1f6   : >> { %14599 = vtanh.f32 %v1132_v56 }
 0x1f7   : >> { %v15356_v62 = vpop.eup %14591  ;;  %v1134_v23 = vpop.f32.mrf.mxu0  ;;  %11753 = vmatpush3.bf16.msra.mxu1 %v1360_v11 }
 0x1f8   : >> { %v1135_v3 = vadd.f32 %v15295_v6, %v1134_v23  ;;  %11754 = vmatprep.subr.bf16.mxu1 %v1367_v29  ;;  %v1373_v0 = vpack.c.bf16 %v15356_v62, %v15351_v28  ;;  %v14594_v22 = vpop.eup %14593  ;;  %v14152_v29 = vld [vmem:[%s18725_s3 + $0xb0] ss:$28 sps:$4 sm:$0xff]  }
 0x1f9   : >> { %v12734_v21 = vpop.f32.mrf.mxu0  ;;  %v1366_v7 = vpack.c.bf16 %v14586_v42, %v14594_v22  ;;  %v14194_v28 = vld [vmem:[%s18725_s3 + $0x4c] ss:$28 sps:$4 sm:$0xff]  }
 0x1fa   : >> { %14601 = vtanh.f32 %v1135_v3  ;;  %2271 = vmatmul.mubr.bf16.gmra.mxu1 %v14137_v41 }
 0x1fb   : >> { %v1139_v25 = vpop.f32.mrf.mxu0  ;;  %11755 = vmatpush3.bf16.msra.mxu1 %v1359_v15  ;;  %2278 = vmatprep.mubr.bf16.mxu1 %v14138_v38  ;;  %v15371_v11 = vpop.eup %14595  ;;  %v14153_v38 = vld [vmem:[%s18725_s3 + $0xec] ss:$28 sps:$4 sm:$0xff]  }
 0x1fc   : >> { %11756 = vmatprep.subr.bf16.mxu1 %v1366_v7  ;;  %v1140_v55 = vadd.f32 %v15295_v6, %v1139_v25 }
 0x1fd   : >> { %v12737_v4 = vpop.f32.mrf.mxu0 }
 0x1fe   : >> { %14603 = vtanh.f32 %v1140_v55 }
 0x1ff   : >> { %v15376_v5 = vpop.eup %14597  ;;  %v1142_v61 = vpop.f32.mrf.mxu0  ;;  %11757 = vmatpush3.bf16.msra.mxu1 %v1358_v18 }
 0x200   : >> { %v1143_v26 = vadd.f32 %v15295_v6, %v1142_v61  ;;  %11758 = vmatprep.subr.bf16.mxu1 %v1365_v33  ;;  %v1374_v15 = vpack.c.bf16 %v15376_v5, %v15371_v11  ;;  %v14212_v11 = vld [vmem:[%s18725_s3 + $0x130] ss:$28 sps:$4 sm:$0xff]   ;;  %v14219_v5 = vld [vmem:[%s18725_s3 + $0x168] ss:$28 sps:$4 sm:$0xff]  }
 0x201   : >> { %v12738_v14 = vpop.f32.mrf.mxu0 }
 0x202   : >> { %14605 = vtanh.f32 %v1143_v26  ;;  %2279 = vmatmul.mubr.bf16.gmra.mxu1 %v14140_v31  ;;  %v14155_v31 = vld [vmem:[%s18725_s3 + $0xe8] ss:$28 sps:$4 sm:$0xff]  }
 0x203   : >> { %v1147_v51 = vpop.f32.mrf.mxu0  ;;  %11759 = vmatpush3.bf16.msra.mxu1 %v1357_v44  ;;  %2319 = vmatprep.mubr.bf16.mxu1 %v14143_v12  ;;  %v15397_v18 = vpop.eup %14599  ;;  %v14156_v26 = vld [vmem:[%s18725_s3 + $0x124] ss:$28 sps:$4 sm:$0xff]  }
 0x204   : >> { %11760 = vmatprep.subr.bf16.mxu1 %v1364_v52  ;;  %v1148_v34 = vadd.f32 %v15295_v6, %v1147_v51 }
 0x205   : >> { %v12741_v59 = vpop.f32.mrf.mxu0 }
 0x206   : >> { %14607 = vtanh.f32 %v1148_v34 }
 0x207   : >> { %v15402_v19 = vpop.eup %14601  ;;  %v1150_v33 = vpop.f32.mrf.mxu0  ;;  %11761 = vmatpush3.bf16.msra.mxu1 %v1356_v9 }
 0x208   : >> { %v1151_v53 = vadd.f32 %v15295_v6, %v1150_v33  ;;  %v1375_v44 = vpack.c.bf16 %v15402_v19, %v15397_v18  ;;  %v14191_v18 = vld [vmem:[%s18725_s3 + $0x14] ss:$28 sps:$4 sm:$0xff]  }
 0x209   : >> { %v12742_v2 = vpop.f32.mrf.mxu0 }
 0x20a   : >> { %14609 = vtanh.f32 %v1151_v53  ;;  %2320 = vmatmul.mubr.bf16.vlgmr.msra.gmra.mxu1 %v14141_v10 }
 0x20b   : >> { %v1155_v20 = vpop.f32.mrf.mxu0  ;;  %2327 = vmatprep.mubr.bf16.mxu1 %v14144_v47  ;;  %v15418_v52 = vpop.eup %14603  ;;  %v14158_v47 = vld [vmem:[%s18725_s3 + $0x120] ss:$28 sps:$4 sm:$0xff]  }
 0x20c   : >> { %v1156_v36 = vadd.f32 %v15295_v6, %v1155_v20  ;;  %v14159_v20 = vld [vmem:[%s18725_s3 + $0x15c] ss:$28 sps:$4 sm:$0xff]  }
 0x20d   : >> { %v12745_v9 = vpop.f32.mrf.mxu0 }
 0x20e   : >> { %14611 = vtanh.f32 %v1156_v36 }
 0x20f   : >> { %v15423_v13 = vpop.eup %14605  ;;  %v1158_v32 = vpop.f32.mrf.mxu0 }
 0x210   : >> { %v1159_v1 = vadd.f32 %v15295_v6, %v1158_v32  ;;  %v1376_v60 = vpack.c.bf16 %v15423_v13, %v15418_v52  ;;  %v14211_v52 = vld [vmem:[%s18725_s3 + $0xf8] ss:$28 sps:$4 sm:$0xff]  }
 0x211   : >> { %v12746_v43 = vpop.f32.mrf.mxu0 }
 0x212   : >> { %14613 = vtanh.f32 %v1159_v1  ;;  %2328 = vmatmul.mubr.bf16.gmra.mxu1 %v14146_v63 }
 0x213   : >> { %v1163_v45 = vpop.f32.mrf.mxu0  ;;  %2335 = vmatprep.mubr.bf16.mxu1 %v14147_v24  ;;  %v15432_v40 = vpop.eup %14607  ;;  %v14161_v24 = vld [vmem:[%s18725_s3 + $0x158] ss:$28 sps:$4 sm:$0xff]  }
 0x214   : >> { %v1164_v49 = vadd.f32 %v15295_v6, %v1163_v45  ;;  %v14162_v45 = vld [vmem:[%s18725_s3 + $0x194] ss:$28 sps:$4 sm:$0xff]  }
 0x215   : >> { %v12749_v57 = vpop.f32.mrf.mxu0 }
 0x216   : >> { %14615 = vtanh.f32 %v1164_v49 }
 0x217   : >> { %v15437_v17 = vpop.eup %14609  ;;  %v1166_v39 = vpop.f32.mrf.mxu0 }
 0x218   : >> { %v1167_v50 = vadd.f32 %v15295_v6, %v1166_v39  ;;  %v1377_v54 = vpack.c.bf16 %v15437_v17, %v15432_v40  ;;  %v14188_v17 = vld [vmem:[%s18725_s3 + $0x354] ss:$28 sps:$4 sm:$0xff]  }
 0x219   : >> { %v12750_v27 = vpop.f32.mrf.mxu0 }
 0x21a   : >> { %14617 = vtanh.f32 %v1167_v50  ;;  %2336 = vmatmul.mubr.bf16.gmra.mxu1 %v14149_v16  ;;  %v14165_v27 = vld [vmem:[%s18725_s3 + $0x1cc] ss:$28 sps:$4 sm:$0xff]  }
 0x21b   : >> { %v1171_v42 = vpop.f32.mrf.mxu0  ;;  %2343 = vmatprep.mubr.bf16.mxu1 %v14150_v37  ;;  %v15446_v58 = vpop.eup %14611  ;;  %v14164_v37 = vld [vmem:[%s18725_s3 + $0x190] ss:$28 sps:$4 sm:$0xff]  }
 0x21c   : >> { %v1172_v35 = vadd.f32 %v15295_v6, %v1171_v42 }
 0x21d   : >> { %v12753_v56 = vpop.f32.mrf.mxu0 }
 0x21e   : >> { %14619 = vtanh.f32 %v1172_v35 }
 0x21f   : >> { %v15451_v41 = vpop.eup %14613  ;;  %v1174_v23 = vpop.f32.mrf.mxu0 }
 0x220   : >> { %v1175_v3 = vadd.f32 %v15295_v6, %v1174_v23  ;;  %v1378_v22 = vpack.c.bf16 %v15451_v41, %v15446_v58  ;;  %v14203_v41 = vld [vmem:[%s18725_s3 + $0x88] ss:$28 sps:$4 sm:$0xff]  }
 0x221   : >> { %v12754_v21 = vpop.f32.mrf.mxu0 }
 0x222   : >> { %14621 = vtanh.f32 %v1175_v3  ;;  %2344 = vmatmul.mubr.bf16.gmra.mxu1 %v14152_v29  ;;  %v14167_v29 = vld [vmem:[%s18725_s3 + $0x1c8] ss:$28 sps:$4 sm:$0xff]  }
 0x223   : >> { %v1179_v7 = vpop.f32.mrf.mxu0  ;;  %2351 = vmatprep.mubr.bf16.mxu1 %v14153_v38  ;;  %v15460_v4 = vpop.eup %14615  ;;  %v14168_v38 = vld [vmem:[%s18725_s3 + $0x204] ss:$28 sps:$4 sm:$0xff]  }
 0x224   : >> { %v1180_v25 = vadd.f32 %v15295_v6, %v1179_v7 }
 0x225   : >> { %v12757_v55 = vpop.f32.mrf.mxu0 }
 0x226   : >> { %14623 = vtanh.f32 %v1180_v25 }
 0x227   : >> { %v15465_v61 = vpop.eup %14617  ;;  %v1182_v12 = vpop.f32.mrf.mxu0 }
 0x228   : >> { %v1183_v14 = vadd.f32 %v15295_v6, %v1182_v12  ;;  %v1379_v51 = vpack.c.bf16 %v15465_v61, %v15460_v4 }
 0x229   : >> { %v12758_v34 = vpop.f32.mrf.mxu0 }
 0x22a   : >> { %14625 = vtanh.f32 %v1183_v14  ;;  %2352 = vmatmul.mubr.bf16.gmra.mxu1 %v14155_v31  ;;  %v14171_v34 = vld [vmem:[%s18725_s3 + $0x23c] ss:$28 sps:$4 sm:$0xff]  }
 0x22b   : >> { %v15473_v59 = vpop.f32.mrf.mxu0  ;;  %2359 = vmatprep.mubr.bf16.mxu1 %v14156_v26  ;;  %v15475_v33 = vpop.eup %14619  ;;  %v14170_v26 = vld [vmem:[%s18725_s3 + $0x200] ss:$28 sps:$4 sm:$0xff]  }
 0x22d   : >> { %v12761_v10 = vpop.f32.mrf.mxu0 }
 0x22f   : >> { %v15480_v53 = vpop.eup %14621  ;;  %v15482_v2 = vpop.f32.mrf.mxu0 }
 0x230   : >> { %v1380_v30 = vpack.c.bf16 %v15480_v53, %v15475_v33  ;;  %v14220_v53 = vld [vmem:[%s18725_s3 + $0x1a0] ss:$28 sps:$4 sm:$0xff]  }
 0x231   : >> { %v12762_v36 = vpop.f32.mrf.mxu0 }
 0x232   : >> { %2360 = vmatmul.mubr.bf16.gmra.mxu1 %v14158_v47 }
 0x233   : >> { %v15489_v9 = vpop.f32.mrf.mxu0  ;;  %2367 = vmatprep.mubr.bf16.mxu1 %v14159_v20  ;;  %v15491_v32 = vpop.eup %14623 }
 0x235   : >> { %v12765_v63 = vpop.f32.mrf.mxu0 }
 0x237   : >> { %v15496_v1 = vpop.eup %14625  ;;  %v15498_v43 = vpop.f32.mrf.mxu0 }
 0x238   : >> { %v1381_v49 = vpack.c.bf16 %v15496_v1, %v15491_v32 }
 0x239   : >> { %v12766_v57 = vpop.f32.mrf.mxu0 }
 0x23a   : >> { %2368 = vmatmul.mubr.bf16.gmra.mxu1 %v14161_v24 }
 0x23b   : >> { %v15505_v16 = vpop.f32.mrf.mxu0  ;;  %2375 = vmatprep.mubr.bf16.mxu1 %v14162_v45 }
 0x23d   : >> { %v12769_v39 = vpop.f32.mrf.mxu0 }
 0x23f   : >> { %v1206_v50 = vpop.f32.mrf.mxu0 }
 0x241   : >> { %v12770_v42 = vpop.f32.mrf.mxu0 }
 0x242   : >> { %2376 = vmatmul.mubr.bf16.gmra.mxu1 %v14164_v37  ;;  %v14173_v42 = vld [vmem:[%s18725_s3 + $0x238] ss:$28 sps:$4 sm:$0xff]  }
 0x243   : >> { %v1211_v35 = vpop.f32.mrf.mxu0  ;;  %2383 = vmatprep.mubr.bf16.mxu1 %v14165_v27 }
 0x245   : >> { %v12773_v56 = vpop.f32.mrf.mxu0 }
 0x247   : >> { %v1214_v23 = vpop.f32.mrf.mxu0 }
 0x249   : >> { %v12774_v3 = vpop.f32.mrf.mxu0 }
 0x24a   : >> { %v11650_v21 = vpop.f32.mrf.mxu1  ;;  %2384 = vmatmul.mubr.bf16.gmra.mxu1 %v14167_v29  ;;  %v14174_v29 = vld [vmem:[%s18725_s3 + $0x274] ss:$28 sps:$4 sm:$0xff]  }
 0x24b   : >> { %v1219_v7 = vpop.f32.mrf.mxu0  ;;  %2391 = vmatprep.mubr.bf16.mxu1 %v14168_v38 }
 0x24c   : >> { %v11651_v25 = vpop.f32.mrf.mxu1  ;;  %v1220_v38 = vadd.f32 %v15295_v6, %v1219_v7 }
 0x24d   : >> { %v15519_v55 = vadd.f32 %v11651_v25, %v11650_v21  ;;  %v12777_v31 = vpop.f32.mrf.mxu0 }
 0x24e   : >> { %v11653_v12 = vpop.f32.mrf.mxu1 }
 0x24f   : >> { %v1222_v14 = vpop.f32.mrf.mxu0 }
 0x250   : >> { %v11654_v10 = vpop.f32.mrf.mxu1  ;;  %v1223_v24 = vadd.f32 %v15295_v6, %v1222_v14  ;;  %v1212_v14 = vadd.f32 %v15295_v6, %v1211_v35  ;;  %v14179_v35 = vld [vmem:[%s18725_s3 + $0x2ac] ss:$28 sps:$4 sm:$0xff]  }
 0x251   : >> { %v15527_v47 = vadd.f32 %v11654_v10, %v11653_v12  ;;  %v12778_v20 = vpop.f32.mrf.mxu0  ;;  %v1215_v12 = vadd.f32 %v15295_v6, %v1214_v23  ;;  %v14176_v23 = vld [vmem:[%s18725_s3 + $0x270] ss:$28 sps:$4 sm:$0xff]  }
 0x252   : >> { %v11656_v36 = vpop.f32.mrf.mxu1  ;;  %2392 = vmatmul.mubr.bf16.gmra.mxu1 %v14170_v26  ;;  %14627 = vtanh.f32 %v1223_v24  ;;  %v1207_v20 = vadd.f32 %v15295_v6, %v1206_v50 }
 0x253   : >> { %v1227_v63 = vpop.f32.mrf.mxu0  ;;  %2399 = vmatprep.mubr.bf16.mxu1 %v14171_v34 }
 0x254   : >> { %v11657_v45 = vpop.f32.mrf.mxu1  ;;  %v1228_v57 = vadd.f32 %v15295_v6, %v1227_v63 }
 0x255   : >> { %v15531_v39 = vadd.f32 %v11657_v45, %v11656_v36  ;;  %v12781_v37 = vpop.f32.mrf.mxu0 }
 0x256   : >> { %v11659_v27 = vpop.f32.mrf.mxu1  ;;  %14629 = vtanh.f32 %v1228_v57  ;;  %v1204_v57 = vadd.f32 %v15295_v6, %v15505_v16 }
 0x257   : >> { %v1230_v56 = vpop.f32.mrf.mxu0 }
 0x258   : >> { %v1231_v3 = vadd.f32 %v15295_v6, %v1230_v56  ;;  %v11660_v21 = vpop.f32.mrf.mxu1  ;;  %v1199_v56 = vadd.f32 %v15295_v6, %v15498_v43  ;;  %v14177_v43 = vld [vmem:[%s18725_s3 + $0x2a8] ss:$28 sps:$4 sm:$0xff]  }
 0x259   : >> { %v15541_v25 = vadd.f32 %v11660_v21, %v11659_v27  ;;  %v12782_v31 = vpop.f32.mrf.mxu0 }
 0x25a   : >> { %14631 = vtanh.f32 %v1231_v3  ;;  %v11662_v26 = vpop.f32.mrf.mxu1  ;;  %2400 = vmatmul.mubr.bf16.gmra.mxu1 %v14173_v42 }
 0x25b   : >> { %v1235_v34 = vpop.f32.mrf.mxu0  ;;  %2407 = vmatprep.mubr.bf16.mxu1 %v14174_v29  ;;  %14633 = vtanh.f32 %v1220_v38  ;;  %v1196_v38 = vadd.f32 %v15295_v6, %v15489_v9  ;;  %v14182_v9 = vld [vmem:[%s18725_s3 + $0x2e4] ss:$28 sps:$4 sm:$0xff]  }
 0x25c   : >> { %v1236_v7 = vadd.f32 %v15295_v6, %v1235_v34  ;;  %v11663_v10 = vpop.f32.mrf.mxu1  ;;  %14635 = vtanh.f32 %v1215_v12  ;;  %v1191_v12 = vadd.f32 %v15295_v6, %v15482_v2  ;;  %v1188_v34 = vadd.f32 %v15295_v6, %v15473_v59 }
 0x25d   : >> { %v15547_v36 = vadd.f32 %v11663_v10, %v11662_v26  ;;  %v12785_v63 = vpop.f32.mrf.mxu0  ;;  %14637 = vtanh.f32 %v1212_v14 }
 0x25e   : >> { %v11665_v24 = vpop.f32.mrf.mxu1  ;;  %14639 = vtanh.f32 %v1236_v7 }
 0x25f   : >> { %v1238_v45 = vpop.f32.mrf.mxu0  ;;  %14641 = vtanh.f32 %v1207_v20  ;;  %v14628_v3 = vpop.eup %14627 }
 0x260   : >> { %v1239_v50 = vadd.f32 %v15295_v6, %v1238_v45  ;;  %v11666_v37 = vpop.f32.mrf.mxu1 }
 0x261   : >> { %v15558_v27 = vadd.f32 %v11666_v37, %v11665_v24  ;;  %v12786_v42 = vpop.f32.mrf.mxu0 }
 0x262   : >> { %14643 = vtanh.f32 %v1239_v50  ;;  %v11668_v29 = vpop.f32.mrf.mxu1  ;;  %2408 = vmatmul.mubr.bf16.gmra.mxu1 %v14176_v23  ;;  %v14180_v42 = vld [vmem:[%s18725_s3 + $0x2e0] ss:$28 sps:$4 sm:$0xff]  }
 0x263   : >> { %2415 = vmatprep.mubr.bf16.mxu1 %v14179_v35  ;;  %14645 = vtanh.f32 %v1204_v57  ;;  %v14630_v31 = vpop.eup %14629 }
 0x264   : >> { %v11669_v16 = vpop.f32.mrf.mxu1  ;;  %14647 = vtanh.f32 %v1199_v56 }
 0x265   : >> { %v15564_v21 = vadd.f32 %v11669_v16, %v11668_v29  ;;  %14649 = vtanh.f32 %v1196_v38 }
 0x266   : >> { %v11671_v26 = vpop.f32.mrf.mxu1  ;;  %14651 = vtanh.f32 %v1191_v12 }
 0x267   : >> { %v14632_v14 = vpop.eup %14631  ;;  %14653 = vtanh.f32 %v1188_v34 }
 0x268   : >> { %v11672_v7 = vpop.f32.mrf.mxu1  ;;  %v1387_v10 = vpack.c.bf16 %v14632_v14, %v14630_v31  ;;  %v14634_v20 = vpop.eup %14633  ;;  %v14199_v31 = vld [vmem:[%s18725_s3 + $0x50] ss:$28 sps:$4 sm:$0xff]  }
 0x269   : >> { %v15576_v63 = vadd.f32 %v11672_v7, %v11671_v26  ;;  %v1386_v24 = vpack.c.bf16 %v14628_v3, %v14634_v20  ;;  %v14636_v23 = vpop.eup %14635 }
 0x26a   : >> { %v11674_v2 = vpop.f32.mrf.mxu1  ;;  %2416 = vmatmul.mubr.bf16.gmra.mxu1 %v14177_v43  ;;  %11858 = vmatprep.subr.bf16.mxu1 %v1387_v10  ;;  %v14638_v45 = vpop.eup %14637 }
 0x26b   : >> { %11859 = vmatpush3.bf16.msra.mxu1 %v1379_v51  ;;  %2423 = vmatprep.mubr.bf16.mxu1 %v14182_v9  ;;  %v14640_v59 = vpop.eup %14639  ;;  %v1385_v37 = vpack.c.bf16 %v14636_v23, %v14638_v45  ;;  %v14185_v51 = vld [vmem:[%s18725_s3 + $0x31c] ss:$28 sps:$4 sm:$0xff]   ;;  %v14186_v23 = vld [vmem:[%s18725_s3 + $0x350] ss:$28 sps:$4 sm:$0xff]  }
 0x26c   : >> { %v11675_v6 = vpop.f32.mrf.mxu1  ;;  %11860 = vmatprep.subr.bf16.mxu1 %v1386_v24  ;;  %v14642_v57 = vpop.eup %14641  ;;  %v14183_v9 = vld [vmem:[%s18725_s3 + $0x318] ss:$28 sps:$4 sm:$0xff]  }
 0x26d   : >> { %v15581_v35 = vadd.f32 %v11675_v6, %v11674_v2  ;;  %v14204_v2 = vld [vmem:[%s18725_s3 + $0xc0] ss:$28 sps:$4 sm:$0xff]   ;;  %v14192_v6 = vld [vmem:[%s18725_s3 + $0x48] ss:$28 sps:$4 sm:$0xff]  }
 0x26e   : >> { %v11677_v50 = vpop.f32.mrf.mxu1 }
 0x26f   : >> { %v14644_v56 = vpop.eup %14643  ;;  %11861 = vmatpush3.bf16.msra.mxu1 %v1378_v22 }
 0x270   : >> { %v11678_v4 = vpop.f32.mrf.mxu1  ;;  %11862 = vmatprep.subr.bf16.mxu1 %v1385_v37  ;;  %v1388_v61 = vpack.c.bf16 %v14644_v56, %v14640_v59  ;;  %v14646_v29 = vpop.eup %14645  ;;  %v14197_v59 = vld [vmem:[%s18725_s3 + $0x84] ss:$28 sps:$4 sm:$0xff]  }
 0x271   : >> { %v15592_v38 = vadd.f32 %v11678_v4, %v11677_v50  ;;  %v1384_v3 = vpack.c.bf16 %v14642_v57, %v14646_v29  ;;  %v14648_v58 = vpop.eup %14647  ;;  %v14235_v56 = vld [vmem:[%s18725_s3 + $0x248] ss:$28 sps:$4 sm:$0xff]   ;;  %v14195_v29 = vld [vmem:[%s18725_s3 + $0x80] ss:$28 sps:$4 sm:$0xff]  }
 0x272   : >> { %v11680_v16 = vpop.f32.mrf.mxu1  ;;  %2424 = vmatmul.mubr.bf16.gmra.mxu1 %v14180_v42  ;;  %12787 = vmatprep.subr.bf16.mxu0 %v1388_v61  ;;  %v14650_v12 = vpop.eup %14649  ;;  %v14228_v42 = vld [vmem:[%s18725_s3 + $0x210] ss:$28 sps:$4 sm:$0xff]  }
 0x273   : >> { %11863 = vmatpush3.bf16.msra.mxu1 %v1377_v54  ;;  %12788 = vmatpush3.bf16.msra.mxu0 %v1388_v61  ;;  %v1383_v14 = vpack.c.bf16 %v14648_v58, %v14650_v12  ;;  %v14652_v40 = vpop.eup %14651 }
 0x274   : >> { %v11681_v22 = vpop.f32.mrf.mxu1  ;;  %11864 = vmatprep.subr.bf16.mxu1 %v1384_v3  ;;  %2431 = vmatprep.mubr.bf16.mxu1 %v14185_v51  ;;  %v14654_v34 = vpop.eup %14653 }
 0x275   : >> { %v15603_v26 = vadd.f32 %v11681_v22, %v11680_v16  ;;  %v1382_v20 = vpack.c.bf16 %v14652_v40, %v14654_v34  ;;  %v14202_v16 = vld [vmem:[%s18725_s3 + $0xbc] ss:$28 sps:$4 sm:$0xff]   ;;  %v14207_v40 = vld [vmem:[%s18725_s3 + $0xf4] ss:$28 sps:$4 sm:$0xff]  }
 0x276   : >> { %v11683_v43 = vpop.f32.mrf.mxu1  ;;  %12790 = vmatmul.mubr.msk.bf16.vlgmr.msra.gmra.mxu0 %vm2077_vm4, %v14199_v31  ;;  %v14243_v22 = vld [vmem:[%s18725_s3 + $0x2b8] ss:$28 sps:$4 sm:$0xff]  }
 0x277   : >> { %11865 = vmatpush3.bf16.msra.mxu1 %v1376_v60  ;;  %12793 = vmatprep.mubr.msk.bf16.mxu0 %vm2077_vm4, %v14203_v41  ;;  %v14236_v41 = vld [vmem:[%s18725_s3 + $0x280] ss:$28 sps:$4 sm:$0xff]  }
 0x278   : >> { %v11684_v54 = vpop.f32.mrf.mxu1  ;;  %11866 = vmatprep.subr.bf16.mxu1 %v1383_v14 }
 0x279   : >> { %v15616_v7 = vadd.f32 %v11684_v54, %v11683_v43 }
 0x27a   : >> { %v11686_v10 = vpop.f32.mrf.mxu1  ;;  %2432 = vmatmul.mubr.bf16.gmra.mxu1 %v14183_v9  ;;  %v14200_v9 = vld [vmem:[%s18725_s3 + $0xb8] ss:$28 sps:$4 sm:$0xff]  }
 0x27b   : >> { %11867 = vmatpush3.bf16.msra.mxu1 %v1375_v44  ;;  %2439 = vmatprep.mubr.bf16.mxu1 %v14188_v17 }
 0x27c   : >> { %v11687_v13 = vpop.f32.mrf.mxu1  ;;  %11868 = vmatprep.subr.bf16.mxu1 %v1382_v20  ;;  %v14251_v20 = vld [vmem:[%s18725_s3 + $0x328] ss:$28 sps:$4 sm:$0xff]  }
 0x27d   : >> { %v15627_v60 = vadd.f32 %v11687_v13, %v11686_v10  ;;  %v14244_v10 = vld [vmem:[%s18725_s3 + $0x2f0] ss:$28 sps:$4 sm:$0xff]  }
 0x27e   : >> { %v11689_v24 = vpop.f32.mrf.mxu1  ;;  %12794 = vmatmul.mubr.msk.bf16.gmra.mxu0 %vm2077_vm4, %v14204_v2 }
 0x27f   : >> { %11869 = vmatpush3.bf16.msra.mxu1 %v1374_v15  ;;  %12797 = vmatprep.mubr.msk.bf16.mxu0 %vm2077_vm4, %v14211_v52 }
 0x280   : >> { %v11690_v19 = vpop.f32.mrf.mxu1  ;;  %11870 = vmatprep.subr.bf16.mxu1 %v1381_v49  ;;  %v14189_v49 = vld [vmem:[%s18725_s3 + $0x10] ss:$28 sps:$4 sm:$0xff]  }
 0x281   : >> { %v15643_v44 = vadd.f32 %v11690_v19, %v11689_v24  ;;  %v14205_v24 = vld [vmem:[%s18725_s3 + $0xf0] ss:$28 sps:$4 sm:$0xff]  }
 0x282   : >> { %v11692_v45 = vpop.f32.mrf.mxu1  ;;  %2440 = vmatmul.mubr.bf16.gmra.mxu1 %v14186_v23  ;;  %v14210_v23 = vld [vmem:[%s18725_s3 + $0x12c] ss:$28 sps:$4 sm:$0xff]  }
 0x283   : >> { %11871 = vmatpush3.bf16.msra.mxu1 %v1373_v0  ;;  %2480 = vmatprep.mubr.bf16.mxu1 %v14191_v18 }
 0x284   : >> { %v11693_v15 = vpop.f32.mrf.mxu1  ;;  %11872 = vmatprep.subr.bf16.mxu1 %v1380_v30 }
 0x285   : >> { %v15657_v32 = vadd.f32 %v11693_v15, %v11692_v45 }
 0x286   : >> { %v11695_v1 = vpop.f32.mrf.mxu1  ;;  %12798 = vmatmul.mubr.msk.bf16.gmra.mxu0 %vm2077_vm4, %v14212_v11  ;;  %v14252_v11 = vld [vmem:[%s18725_s3 + $0x360] ss:$28 sps:$4 sm:$0xff]  }
 0x287   : >> { %11873 = vmatpush3.bf16.msra.mxu1 %v1372_v8  ;;  %12801 = vmatprep.mubr.msk.bf16.mxu0 %vm2077_vm4, %v14219_v5 }
 0x288   : >> { %v11696_v62 = vpop.f32.mrf.mxu1 }
 0x289   : >> { %v15670_v0 = vadd.f32 %v11696_v62, %v11695_v1 }
 0x28a   : >> { %v11698_v33 = vpop.f32.mrf.mxu1  ;;  %2481 = vmatmul.mubr.bf16.vlgmr.msra.gmra.mxu1 %v14189_v49  ;;  %v14208_v49 = vld [vmem:[%s18725_s3 + $0x128] ss:$28 sps:$4 sm:$0xff]  }
 0x28b   : >> { %2488 = vmatprep.mubr.bf16.mxu1 %v14194_v28  ;;  %v14215_v28 = vld [vmem:[%s18725_s3 + $0x164] ss:$28 sps:$4 sm:$0xff]  }
 0x28c   : >> { %v11699_v48 = vpop.f32.mrf.mxu1 }
 0x28d   : >> { %v15678_v8 = vadd.f32 %v11699_v48, %v11698_v33 }
 0x28e   : >> { %v11701_v30 = vpop.f32.mrf.mxu1  ;;  %12802 = vmatmul.mubr.msk.bf16.gmra.mxu0 %vm2077_vm4, %v14220_v53 }
 0x28f   : >> { %12805 = vmatprep.mubr.msk.bf16.mxu0 %vm2077_vm4, %v14227_v46 }
 0x290   : >> { %v11702_v57 = vpop.f32.mrf.mxu1 }
 0x291   : >> { %v15688_v50 = vadd.f32 %v11702_v57, %v11701_v30 }
 0x292   : >> { %v11704_v37 = vpop.f32.mrf.mxu1  ;;  %2489 = vmatmul.mubr.bf16.gmra.mxu1 %v14192_v6  ;;  %v14213_v6 = vld [vmem:[%s18725_s3 + $0x160] ss:$28 sps:$4 sm:$0xff]  }
 0x293   : >> { %2496 = vmatprep.mubr.bf16.mxu1 %v14197_v59  ;;  %v14218_v59 = vld [vmem:[%s18725_s3 + $0x19c] ss:$28 sps:$4 sm:$0xff]  }
 0x294   : >> { %v11705_v4 = vpop.f32.mrf.mxu1 }
 0x295   : >> { %v15696_v61 = vadd.f32 %v11705_v4, %v11704_v37 }
 0x296   : >> { %v11707_v51 = vpop.f32.mrf.mxu1  ;;  %12806 = vmatmul.mubr.msk.bf16.gmra.mxu0 %vm2077_vm4, %v14228_v42 }
 0x297   : >> { %12809 = vmatprep.mubr.msk.bf16.mxu0 %vm2077_vm4, %v14235_v56 }
 0x298   : >> { %v11708_v3 = vpop.f32.mrf.mxu1 }
 0x299   : >> { %v15706_v31 = vadd.f32 %v11708_v3, %v11707_v51  ;;  %v14253_v3 = vld [vmem:[%s18726_s4 + $0x38] sm:$0xff]  }
 0x29a   : >> { %v11710_v58 = vpop.f32.mrf.mxu1  ;;  %2497 = vmatmul.mubr.bf16.gmra.mxu1 %v14195_v29  ;;  %v14216_v29 = vld [vmem:[%s18725_s3 + $0x198] ss:$28 sps:$4 sm:$0xff]   ;;  %12821 = vmatprep.subr.bf16.mxu1 %v14253_v3 }
 0x29b   : >> { %2504 = vmatprep.mubr.bf16.mxu1 %v14202_v16  ;;  %v14223_v16 = vld [vmem:[%s18725_s3 + $0x1d4] ss:$28 sps:$4 sm:$0xff]   ;;  %12822 = vmatpush3.bf16.msra.mxu1 %v14253_v3 }
 0x29c   : >> { %v11711_v12 = vpop.f32.mrf.mxu1 }
 0x29d   : >> { %v15714_v43 = vadd.f32 %v11711_v12, %v11710_v58  ;;  %v14256_v58 = vld [vmem:[%s18726_s4 + $0x78] sm:$0xff]  }
 0x29e   : >> { %v11713_v14 = vpop.f32.mrf.mxu1  ;;  %12810 = vmatmul.mubr.msk.bf16.gmra.mxu0 %vm2077_vm4, %v14236_v41  ;;  %12869 = vmatprep.subr.bf16.mxu0 %v14256_v58 }
 0x29f   : >> { %12813 = vmatprep.mubr.msk.bf16.mxu0 %vm2077_vm4, %v14243_v22  ;;  %12870 = vmatpush3.bf16.msra.mxu0 %v14256_v58  ;;  %v14234_v58 = vld [vmem:[%s18725_s3 + $0x27c] ss:$28 sps:$4 sm:$0xff]  }
 0x2a0   : >> { %v11714_v17 = vpop.f32.mrf.mxu1 }
 0x2a1   : >> { %v15724_v54 = vadd.f32 %v11714_v17, %v11713_v14  ;;  %v14254_v14 = vld [vmem:[%s18726_s4 + $0x30] sm:$0xff]  }
 0x2a2   : >> { %v11716_v34 = vpop.f32.mrf.mxu1  ;;  %2505 = vmatmul.mubr.bf16.gmra.mxu1 %v14200_v9  ;;  %v14258_v9 = vld [vmem:[%s18726_s4 + $0x70] sm:$0xff]   ;;  %12823 = vmatprep.subr.bf16.mxu1 %v14254_v14 }
 0x2a3   : >> { %2512 = vmatprep.mubr.bf16.mxu1 %v14207_v40  ;;  %12871 = vmatprep.subr.bf16.mxu0 %v14258_v9 }
 0x2a4   : >> { %v11717_v2 = vpop.f32.mrf.mxu1  ;;  %12872 = vmatpush3.bf16.msra.mxu0 %v14258_v9  ;;  %12824 = vmatpush3.bf16.msra.mxu1 %v14254_v14 }
 0x2a5   : >> { %v15732_v52 = vadd.f32 %v11717_v2, %v11716_v34  ;;  %v14255_v2 = vld [vmem:[%s18726_s4 + $0x28] sm:$0xff]  }
 0x2a6   : >> { %v11719_v13 = vpop.f32.mrf.mxu1  ;;  %12814 = vmatmul.mubr.msk.bf16.gmra.mxu0 %vm2077_vm4, %v14244_v10  ;;  %v14221_v10 = vld [vmem:[%s18725_s3 + $0x1d0] ss:$28 sps:$4 sm:$0xff]   ;;  %12825 = vmatprep.subr.bf16.mxu1 %v14255_v2 }
 0x2a7   : >> { %12817 = vmatprep.mubr.msk.bf16.mxu0 %vm2077_vm4, %v14251_v20  ;;  %v14226_v20 = vld [vmem:[%s18725_s3 + $0x20c] ss:$28 sps:$4 sm:$0xff]  }
 0x2a8   : >> { %v11720_v18 = vpop.f32.mrf.mxu1  ;;  %12826 = vmatpush3.bf16.msra.mxu1 %v14255_v2 }
 0x2a9   : >> { %v15742_v19 = vadd.f32 %v11720_v18, %v11719_v13  ;;  %v14260_v13 = vld [vmem:[%s18726_s4 + $0x68] sm:$0xff]  }
 0x2aa   : >> { %v11722_v45 = vpop.f32.mrf.mxu1  ;;  %2513 = vmatmul.mubr.bf16.gmra.mxu1 %v14205_v24  ;;  %12873 = vmatprep.subr.bf16.mxu0 %v14260_v13 }
 0x2ab   : >> { %2520 = vmatprep.mubr.bf16.mxu1 %v14210_v23  ;;  %12874 = vmatpush3.bf16.msra.mxu0 %v14260_v13 }
 0x2ac   : >> { %v11723_v5 = vpop.f32.mrf.mxu1 }
 0x2ad   : >> { %v15747_v15 = vadd.f32 %v11723_v5, %v11722_v45  ;;  %v14257_v45 = vld [vmem:[%s18726_s4 + $0x20] sm:$0xff]  }
 0x2ae   : >> { %v11725_v1 = vpop.f32.mrf.mxu1  ;;  %12818 = vmatmul.mubr.msk.bf16.gmra.mxu0 %vm2077_vm4, %v14252_v11  ;;  %v14262_v11 = vld [vmem:[%s18726_s4 + $0x60] sm:$0xff]   ;;  %12827 = vmatprep.subr.bf16.mxu1 %v14257_v45 }
 0x2af   : >> { %12875 = vmatprep.subr.bf16.mxu0 %v14262_v11  ;;  %12828 = vmatpush3.bf16.msra.mxu1 %v14257_v45 }
 0x2b0   : >> { %v11726_v62 = vpop.f32.mrf.mxu1  ;;  %12876 = vmatpush3.bf16.msra.mxu0 %v14262_v11 }
 0x2b1   : >> { %v15756_v33 = vadd.f32 %v11726_v62, %v11725_v1 }
 0x2b2   : >> { %v11728_v53 = vpop.f32.mrf.mxu1  ;;  %2521 = vmatmul.mubr.bf16.gmra.mxu1 %v14208_v49 }
 0x2b3   : >> { %2528 = vmatprep.mubr.bf16.mxu1 %v14215_v28  ;;  %v14224_v28 = vld [vmem:[%s18725_s3 + $0x208] ss:$28 sps:$4 sm:$0xff]  }
 0x2b4   : >> { %v11729_v46 = vpop.f32.mrf.mxu1 }
 0x2b5   : >> { %v15758_v48 = vadd.f32 %v11729_v46, %v11728_v53  ;;  %v14231_v53 = vld [vmem:[%s18725_s3 + $0x244] ss:$28 sps:$4 sm:$0xff]   ;;  %v14259_v46 = vld [vmem:[%s18726_s4 + $0x18] sm:$0xff]  }
 0x2b6   : >> { %v11731_v30 = vpop.f32.mrf.mxu1  ;;  %12829 = vmatprep.subr.bf16.mxu1 %v14259_v46 }
 0x2b7   : >> { %12830 = vmatpush3.bf16.msra.mxu1 %v14259_v46 }
 0x2b8   : >> { %v11732_v57 = vpop.f32.mrf.mxu1 }
 0x2b9   : >> { %v15766_v37 = vadd.f32 %v11732_v57, %v11731_v30  ;;  %v14264_v30 = vld [vmem:[%s18726_s4 + $0x58] sm:$0xff]  }
 0x2ba   : >> { %v11734_v42 = vpop.f32.mrf.mxu1  ;;  %2529 = vmatmul.mubr.bf16.gmra.mxu1 %v14213_v6  ;;  %12877 = vmatprep.subr.bf16.mxu0 %v14264_v30 }
 0x2bb   : >> { %2536 = vmatprep.mubr.bf16.mxu1 %v14218_v59  ;;  %12878 = vmatpush3.bf16.msra.mxu0 %v14264_v30  ;;  %v14242_v30 = vld [vmem:[%s18725_s3 + $0x2ec] ss:$28 sps:$4 sm:$0xff]  }
 0x2bc   : >> { %v11735_v56 = vpop.f32.mrf.mxu1 }
 0x2bd   : >> { %v15768_v4 = vadd.f32 %v11735_v56, %v11734_v42  ;;  %v14261_v42 = vld [vmem:[%s18726_s4 + $0x10] sm:$0xff]  }
 0x2be   : >> { %v11737_v51 = vpop.f32.mrf.mxu1  ;;  %v14266_v56 = vld [vmem:[%s18726_s4 + $0x50] sm:$0xff]   ;;  %12831 = vmatprep.subr.bf16.mxu1 %v14261_v42 }
 0x2bf   : >> { %12879 = vmatprep.subr.bf16.mxu0 %v14266_v56  ;;  %12832 = vmatpush3.bf16.msra.mxu1 %v14261_v42 }
 0x2c0   : >> { %v11738_v41 = vpop.f32.mrf.mxu1  ;;  %12880 = vmatpush3.bf16.msra.mxu0 %v14266_v56 }
 0x2c1   : >> { %v15782_v22 = vadd.f32 %v11738_v41, %v11737_v51  ;;  %v14263_v41 = vld [vmem:[%s18726_s4 + $0x8] sm:$0xff]  }
 0x2c2   : >> { %v11740_v12 = vpop.f32.mrf.mxu1  ;;  %2537 = vmatmul.mubr.bf16.gmra.mxu1 %v14216_v29  ;;  %12833 = vmatprep.subr.bf16.mxu1 %v14263_v41 }
 0x2c3   : >> { %2544 = vmatprep.mubr.bf16.mxu1 %v14223_v16  ;;  %12834 = vmatpush3.bf16.msra.mxu1 %v14263_v41 }
 0x2c4   : >> { %v11741_v40 = vpop.f32.mrf.mxu1 }
 0x2c5   : >> { %v15790_v17 = vadd.f32 %v11741_v40, %v11740_v12  ;;  %v14267_v12 = vld [vmem:[%s18726_s4 + $0x48] sm:$0xff]  }
 0x2c6   : >> { %v11743_v34 = vpop.f32.mrf.mxu1  ;;  %12881 = vmatprep.subr.bf16.mxu0 %v14267_v12 }
 0x2c7   : >> { %12882 = vmatpush3.bf16.msra.mxu0 %v14267_v12 }
 0x2c8   : >> { %v11744_v24 = vpop.f32.mrf.mxu1 }
 0x2c9   : >> { %v15804_v23 = vadd.f32 %v11744_v24, %v11743_v34  ;;  %v14265_v34 = vld [vmem:[%s18726_s4] sm:$0xff]  }
 0x2ca   : >> { %v11762_v18 = vpop.f32.mrf.mxu1  ;;  %2545 = vmatmul.mubr.bf16.gmra.mxu1 %v14221_v10  ;;  %v14268_v10 = vld [vmem:[%s18726_s4 + $0x40] sm:$0xff]   ;;  %12835 = vmatprep.subr.bf16.mxu1 %v14265_v34 }
 0x2cb   : >> { %2552 = vmatprep.mubr.bf16.mxu1 %v14226_v20  ;;  %12883 = vmatprep.subr.bf16.mxu0 %v14268_v10 }
 0x2cc   : >> { %v11763_v5 = vpop.f32.mrf.mxu1  ;;  %12884 = vmatpush3.bf16.msra.mxu0 %v14268_v10  ;;  %12836 = vmatpush3.bf16.msra.mxu1 %v14265_v34  ;;  %v14250_v34 = vld [vmem:[%s18725_s3 + $0x35c] ss:$28 sps:$4 sm:$0xff]  }
 0x2cd   : >> { %v11764_v1 = vadd.f32 %v11763_v5, %v11762_v18  ;;  %v14239_v18 = vld [vmem:[%s18725_s3 + $0x2b4] ss:$28 sps:$4 sm:$0xff]  }
 0x2ce   : >> { %v11765_v49 = vpop.f32.mrf.mxu1 }
 0x2cf   : >> { %v15816_v62 = vadd.f32 %v11764_v1, %v15519_v55 }
 0x2d0   : >> { %v11766_v6 = vpop.f32.mrf.mxu1 }
 0x2d1   : >> { %v11767_v59 = vadd.f32 %v11766_v6, %v11765_v49 }
 0x2d2   : >> { %v11768_v57 = vpop.f32.mrf.mxu1  ;;  %2553 = vmatmul.mubr.bf16.gmra.mxu1 %v14224_v28 }
 0x2d3   : >> { %v15828_v55 = vadd.f32 %v11767_v59, %v15527_v47  ;;  %2560 = vmatprep.mubr.bf16.mxu1 %v14231_v53  ;;  %v14229_v47 = vld [vmem:[%s18725_s3 + $0x240] ss:$28 sps:$4 sm:$0xff]  }
 0x2d4   : >> { %v11769_v51 = vpop.f32.mrf.mxu1 }
 0x2d5   : >> { %v11770_v29 = vadd.f32 %v11769_v51, %v11768_v57 }
 0x2d6   : >> { %v11771_v16 = vpop.f32.mrf.mxu1 }
 0x2d7   : >> { %v15840_v3 = vadd.f32 %v11770_v29, %v15531_v39 }
 0x2d8   : >> { %v11772_v14 = vpop.f32.mrf.mxu1 }
 0x2d9   : >> { %v11773_v9 = vadd.f32 %v11772_v14, %v11771_v16  ;;  %v14247_v16 = vld [vmem:[%s18725_s3 + $0x324] ss:$28 sps:$4 sm:$0xff]  }
 0x2da   : >> { %v11774_v40 = vpop.f32.mrf.mxu1  ;;  %2561 = vmatmul.mubr.bf16.gmra.mxu1 %v14229_v47 }
 0x2db   : >> { %v15852_v39 = vadd.f32 %v11773_v9, %v15541_v25  ;;  %2568 = vmatprep.mubr.bf16.mxu1 %v14234_v58  ;;  %v14232_v25 = vld [vmem:[%s18725_s3 + $0x278] ss:$28 sps:$4 sm:$0xff]  }
 0x2dc   : >> { %v11775_v20 = vpop.f32.mrf.mxu1 }
 0x2dd   : >> { %v11776_v2 = vadd.f32 %v11775_v20, %v11774_v40 }
 0x2de   : >> { %v11777_v13 = vpop.f32.mrf.mxu1 }
 0x2df   : >> { %v15864_v24 = vadd.f32 %v11776_v2, %v15547_v36  ;;  %v14237_v36 = vld [vmem:[%s18725_s3 + $0x2b0] ss:$28 sps:$4 sm:$0xff]  }
 0x2e0   : >> { %v11778_v45 = vpop.f32.mrf.mxu1 }
 0x2e1   : >> { %v11779_v11 = vadd.f32 %v11778_v45, %v11777_v13 }
 0x2e2   : >> { %v11780_v5 = vpop.f32.mrf.mxu1  ;;  %2569 = vmatmul.mubr.bf16.gmra.mxu1 %v14232_v25 }
 0x2e3   : >> { %v15870_v1 = vadd.f32 %v11779_v11, %v15558_v27  ;;  %2576 = vmatprep.mubr.bf16.mxu1 %v14239_v18 }
 0x2e4   : >> { %v11781_v49 = vpop.f32.mrf.mxu1 }
 0x2e5   : >> { %v11782_v28 = vadd.f32 %v11781_v49, %v11780_v5 }
 0x2e6   : >> { %v11783_v53 = vpop.f32.mrf.mxu1 }
 0x2e7   : >> { %v15876_v46 = vadd.f32 %v11782_v28, %v15564_v21  ;;  %v14240_v21 = vld [vmem:[%s18725_s3 + $0x2e8] ss:$28 sps:$4 sm:$0xff]  }
 0x2e8   : >> { %v11784_v6 = vpop.f32.mrf.mxu1 }
 0x2e9   : >> { %v11785_v59 = vadd.f32 %v11784_v6, %v11783_v53 }
 0x2ea   : >> { %v11786_v57 = vpop.f32.mrf.mxu1  ;;  %2577 = vmatmul.mubr.bf16.gmra.mxu1 %v14237_v36 }
 0x2eb   : >> { %v15882_v27 = vadd.f32 %v11785_v59, %v15576_v63  ;;  %2584 = vmatprep.mubr.bf16.mxu1 %v14242_v30 }
 0x2ec   : >> { %v11787_v42 = vpop.f32.mrf.mxu1 }
 0x2ed   : >> { %v11788_v56 = vadd.f32 %v11787_v42, %v11786_v57 }
 0x2ee   : >> { %v11789_v51 = vpop.f32.mrf.mxu1 }
 0x2ef   : >> { %v15888_v29 = vadd.f32 %v11788_v56, %v15581_v35  ;;  %v14245_v35 = vld [vmem:[%s18725_s3 + $0x320] ss:$28 sps:$4 sm:$0xff]  }
 0x2f0   : >> { %v11790_v47 = vpop.f32.mrf.mxu1 }
 0x2f1   : >> { %v11791_v58 = vadd.f32 %v11790_v47, %v11789_v51 }
 0x2f2   : >> { %v11792_v41 = vpop.f32.mrf.mxu1  ;;  %2585 = vmatmul.mubr.bf16.gmra.mxu1 %v14240_v21 }
 0x2f3   : >> { %v15894_v63 = vadd.f32 %v11791_v58, %v15592_v38  ;;  %2592 = vmatprep.mubr.bf16.mxu1 %v14247_v16 }
 0x2f4   : >> { %v11793_v12 = vpop.f32.mrf.mxu1 }
 0x2f5   : >> { %v11794_v14 = vadd.f32 %v11793_v12, %v11792_v41 }
 0x2f6   : >> { %v11795_v9 = vpop.f32.mrf.mxu1 }
 0x2f7   : >> { %v15900_v40 = vadd.f32 %v11794_v14, %v15603_v26  ;;  %v14248_v26 = vld [vmem:[%s18725_s3 + $0x358] ss:$28 sps:$4 sm:$0xff]  }
 0x2f8   : >> { %v11796_v10 = vpop.f32.mrf.mxu1 }
 0x2f9   : >> { %v11797_v20 = vadd.f32 %v11796_v10, %v11795_v9 }
 0x2fa   : >> { %v11798_v2 = vpop.f32.mrf.mxu1  ;;  %2593 = vmatmul.mubr.bf16.gmra.mxu1 %v14245_v35 }
 0x2fb   : >> { %v15906_v38 = vadd.f32 %v11797_v20, %v15616_v7  ;;  %2600 = vmatprep.mubr.bf16.mxu1 %v14250_v34 }
 0x2fc   : >> { %v11799_v13 = vpop.f32.mrf.mxu1 }
 0x2fd   : >> { %v11800_v25 = vadd.f32 %v11799_v13, %v11798_v2 }
 0x2fe   : >> { %v11801_v18 = vpop.f32.mrf.mxu1 }
 0x2ff   : >> { %v15912_v45 = vadd.f32 %v11800_v25, %v15627_v60 }
 0x300   : >> { %v11802_v11 = vpop.f32.mrf.mxu1 }
 0x301   : >> { %v11803_v5 = vadd.f32 %v11802_v11, %v11801_v18 }
 0x302   : >> { %v11804_v49 = vpop.f32.mrf.mxu1  ;;  %2601 = vmatmul.mubr.bf16.gmra.mxu1 %v14248_v26 }
 0x303   : >> { %v15915_v28 = vadd.f32 %v11803_v5, %v15643_v44 }
 0x304   : >> { %v11805_v7 = vpop.f32.mrf.mxu1 }
 0x305   : >> { %v11806_v53 = vadd.f32 %v11805_v7, %v11804_v49 }
 0x306   : >> { %v11807_v36 = vpop.f32.mrf.mxu1 }
 0x307   : >> { %v15918_v30 = vadd.f32 %v11806_v53, %v15657_v32 }
 0x308   : >> { %v11808_v6 = vpop.f32.mrf.mxu1 }
 0x309   : >> { %v11809_v59 = vadd.f32 %v11808_v6, %v11807_v36 }
 0x30a   : >> { %v11810_v57 = vpop.f32.mrf.mxu1 }
 0x30b   : >> { %v15921_v42 = vadd.f32 %v11809_v59, %v15670_v0 }
 0x30c   : >> { %v11811_v60 = vpop.f32.mrf.mxu1 }
 0x30d   : >> { %v11812_v56 = vadd.f32 %v11811_v60, %v11810_v57 }
 0x30e   : >> { %v11813_v51 = vpop.f32.mrf.mxu1 }
 0x30f   : >> { %v15924_v21 = vadd.f32 %v11812_v56, %v15678_v8 }
 0x310   : >> { %v11814_v44 = vpop.f32.mrf.mxu1 }
 0x311   : >> { %v11815_v16 = vadd.f32 %v11814_v44, %v11813_v51 }
 0x312   : >> { %v11816_v47 = vpop.f32.mrf.mxu1 }
 0x313   : >> { %v15927_v58 = vadd.f32 %v11815_v16, %v15688_v50 }
 0x314   : >> { %v11817_v32 = vpop.f32.mrf.mxu1 }
 0x315   : >> { %v11818_v41 = vadd.f32 %v11817_v32, %v11816_v47 }
 0x316   : >> { %v11819_v12 = vpop.f32.mrf.mxu1 }
 0x317   : >> { %v15930_v14 = vadd.f32 %v11818_v41, %v15696_v61 }
 0x318   : >> { %v11820_v0 = vpop.f32.mrf.mxu1 }
 0x319   : >> { %v11821_v9 = vadd.f32 %v11820_v0, %v11819_v12 }
 0x31a   : >> { %v11822_v35 = vpop.f32.mrf.mxu1 }
 0x31b   : >> { %v15933_v34 = vadd.f32 %v11821_v9, %v15706_v31 }
 0x31c   : >> { %v11823_v8 = vpop.f32.mrf.mxu1 }
 0x31d   : >> { %v11824_v10 = vadd.f32 %v11823_v8, %v11822_v35 }
 0x31e   : >> { %v11825_v20 = vpop.f32.mrf.mxu1 }
 0x31f   : >> { %v15936_v2 = vadd.f32 %v11824_v10, %v15714_v43 }
 0x320   : >> { %v11826_v50 = vpop.f32.mrf.mxu1 }
 0x321   : >> { %v11827_v13 = vadd.f32 %v11826_v50, %v11825_v20 }
 0x322   : >> { %v11828_v25 = vpop.f32.mrf.mxu1 }
 0x323   : >> { %v15939_v18 = vadd.f32 %v11827_v13, %v15724_v54 }
 0x324   : >> { %v11829_v61 = vpop.f32.mrf.mxu1 }
 0x325   : >> { %v11830_v26 = vadd.f32 %v11829_v61, %v11828_v25 }
 0x326   : >> { %v11831_v11 = vpop.f32.mrf.mxu1 }
 0x327   : >> { %v15942_v5 = vadd.f32 %v11830_v26, %v15732_v52 }
 0x328   : >> { %v11832_v31 = vpop.f32.mrf.mxu1 }
 0x329   : >> { %v11833_v49 = vadd.f32 %v11832_v31, %v11831_v11 }
 0x32a   : >> { %v11834_v7 = vpop.f32.mrf.mxu1 }
 0x32b   : >> { %v15945_v53 = vadd.f32 %v11833_v49, %v15742_v19  ;;  %v15959_v19 = vld [vmem:[%s18726_s4 + $0xb8] sm:$0xff]  }
 0x32c   : >> { %v11835_v43 = vpop.f32.mrf.mxu1  ;;  %12917 = vmatprep.subr.bf16.mxu1 %v15959_v19 }
 0x32d   : >> { %v11836_v36 = vadd.f32 %v11835_v43, %v11834_v7 }
 0x32e   : >> { %v11837_v6 = vpop.f32.mrf.mxu1 }
 0x32f   : >> { %v15948_v59 = vadd.f32 %v11836_v36, %v15747_v15  ;;  %v15964_v15 = vld [vmem:[%s18726_s4 + $0xf8] sm:$0xff]  }
 0x330   : >> { %v11838_v54 = vpop.f32.mrf.mxu1  ;;  %12965 = vmatprep.subr.bf16.mxu0 %v15964_v15 }
 0x331   : >> { %v11839_v57 = vadd.f32 %v11838_v54, %v11837_v6 }
 0x332   : >> { %v11840_v60 = vpop.f32.mrf.mxu1 }
 0x333   : >> { %v15951_v56 = vadd.f32 %v11839_v57, %v15756_v33 }
 0x334   : >> { %v11841_v52 = vpop.f32.mrf.mxu1 }
 0x335   : >> { %v11842_v51 = vadd.f32 %v11841_v52, %v11840_v60 }
 0x336   : >> { %v11843_v44 = vpop.f32.mrf.mxu1  ;;  %v12791_v61 = vpop.f32.mrf.mxu0 }
 0x337   : >> { %v15954_v16 = vadd.f32 %v11842_v51, %v15758_v48 }
 0x338   : >> { %v11844_v47 = vpop.f32.mrf.mxu1  ;;  %v2643_v49 = vpop.f32.mrf.mxu0 }
 0x339   : >> { %v11845_v32 = vadd.f32 %v11844_v47, %v11843_v44 }
 0x33a   : >> { %v11846_v33 = vpop.f32.mrf.mxu1  ;;  %v12792_v6 = vpop.f32.mrf.mxu0 }
 0x33b   : >> { %v15969_v48 = vadd.f32 %v11845_v32, %v15766_v37 }
 0x33c   : >> { %v11847_v41 = vpop.f32.mrf.mxu1  ;;  %v2646_v52 = vpop.f32.mrf.mxu0 }
 0x33d   : >> { %v11848_v12 = vadd.f32 %v11847_v41, %v11846_v33 }
 0x33e   : >> { %v11849_v0 = vpop.f32.mrf.mxu1  ;;  %v12795_v41 = vpop.f32.mrf.mxu0 }
 0x33f   : >> { %v15972_v9 = vadd.f32 %v11848_v12, %v15768_v4 }
 0x340   : >> { %v11850_v35 = vpop.f32.mrf.mxu1 }
 0x341   : >> { %v11851_v8 = vadd.f32 %v11850_v35, %v11849_v0 }
 0x342   : >> { %v11852_v10 = vpop.f32.mrf.mxu1 }
 0x343   : >> { %v15975_v20 = vadd.f32 %v11851_v8, %v15782_v22  ;;  %v2659_v8 = vpop.f32.mrf.mxu0 }
 0x344   : >> { %v11853_v50 = vpop.f32.mrf.mxu1 }
 0x345   : >> { %v11854_v13 = vadd.f32 %v11853_v50, %v11852_v10 }
 0x346   : >> { %v11855_v25 = vpop.f32.mrf.mxu1 }
 0x347   : >> { %v15978_v26 = vadd.f32 %v11854_v13, %v15790_v17 }
 0x348   : >> { %v11856_v37 = vpop.f32.mrf.mxu1 }
 0x349   : >> { %v11857_v11 = vadd.f32 %v11856_v37, %v11855_v25 }
 0x34a   : >> { %v11874_v31 = vpop.f32.mrf.mxu1 }
 0x34b   : >> { %v15981_v4 = vadd.f32 %v11857_v11, %v15804_v23  ;;  %v12796_v11 = vpop.f32.mrf.mxu0 }
 0x34c   : >> { %v11875_v7 = vpop.f32.mrf.mxu1 }
 0x34d   : >> { %v11876_v43 = vadd.f32 %v11875_v7, %v11874_v31 }
 0x34e   : >> { %v11877_v36 = vpop.f32.mrf.mxu1 }
 0x34f   : >> { %v2483_v57 = vadd.f32 %v11876_v43, %v15816_v62 }
 0x350   : >> { %v11878_v22 = vpop.f32.mrf.mxu1 }
 0x351   : >> { %v11879_v54 = vadd.f32 %v11878_v22, %v11877_v36  ;;  %v2644_v47 = vadd.f32 %v2643_v49, %v2483_v57  ;;  %v14272_v49 = vld [vmem:[%s18726_s4 + $0xf0] sm:$0xff]   ;;  %v2662_v36 = vpop.f32.mrf.mxu0  ;;  %v14273_v22 = vld [vmem:[%s18726_s4 + $0xa8] sm:$0xff]  }
 0x352   : >> { %v11880_v60 = vpop.f32.mrf.mxu1 }
 0x353   : >> { %v2486_v17 = vadd.f32 %v11879_v54, %v15828_v55 }
 0x354   : >> { %v11881_v51 = vpop.f32.mrf.mxu1 }
 0x355   : >> { %v11882_v44 = vadd.f32 %v11881_v51, %v11880_v60  ;;  %v2647_v32 = vadd.f32 %v2646_v52, %v2486_v17  ;;  %v14276_v51 = vld [vmem:[%s18726_s4 + $0xe0] sm:$0xff]  }
 0x356   : >> { %v11883_v33 = vpop.f32.mrf.mxu1 }
 0x357   : >> { %v15985_v23 = vpack.c.bf16 %v2647_v32, %v2644_v47  ;;  %v2491_v35 = vadd.f32 %v11882_v44, %v15840_v3  ;;  %v14271_v3 = vld [vmem:[%s18726_s4 + $0xb0] sm:$0xff]  }
 0x358   : >> { %v11884_v12 = vpop.f32.mrf.mxu1 }
 0x359   : >> { %18767 = vst [vmem:[#allocation3_spill] sm:$0xff] %v15985_v23  ;;  %v11885_v0 = vadd.f32 %v11884_v12, %v11883_v33  ;;  %12837 = vmatprep.mubr.bf16.mxu1 %v15985_v23  ;;  %12885 = vmatprep.mubr.bf16.mxu0 %v15985_v23  ;;  %v2652_v13 = vadd.f32 %v12791_v61, %v2491_v35  ;;  %v14277_v35 = vld [vmem:[%s18726_s4 + $0x98] sm:$0xff]  }
 0x35a   : >> { %v11886_v62 = vpop.f32.mrf.mxu1 }
 0x35b   : >> { %v2494_v55 = vadd.f32 %v11885_v0, %v15852_v39 }
 0x35c   : >> { %v11887_v10 = vpop.f32.mrf.mxu1 }
 0x35d   : >> { %v11888_v50 = vadd.f32 %v11887_v10, %v11886_v62  ;;  %v2655_v25 = vadd.f32 %v12792_v6, %v2494_v55 }
 0x35e   : >> { %v11889_v37 = vpop.f32.mrf.mxu1 }
 0x35f   : >> { %v15991_v31 = vpack.c.bf16 %v2655_v25, %v2652_v13  ;;  %v2499_v39 = vadd.f32 %v11888_v50, %v15864_v24  ;;  %v14274_v24 = vld [vmem:[%s18726_s4 + $0xe8] sm:$0xff]  }
 0x360   : >> { %v11890_v7 = vpop.f32.mrf.mxu1 }
 0x361   : >> { %v11891_v43 = vadd.f32 %v11890_v7, %v11889_v37  ;;  %12838 = vmatmul.mubr.bf16.vlgmr.msra.gmra.mxu1 %v15991_v31  ;;  %12886 = vmatmul.mubr.bf16.vlgmr.msra.gmra.mxu0 %v15991_v31  ;;  %v2660_v60 = vadd.f32 %v2659_v8, %v2499_v39  ;;  %v14280_v37 = vld [vmem:[%s18726_s4 + $0xd0] sm:$0xff]   ;;  %v14281_v39 = vld [vmem:[%s18726_s4 + $0x88] sm:$0xff]  }
 0x362   : >> { %v11892_v61 = vpop.f32.mrf.mxu1  ;;  %12918 = vmatpush3.bf16.msra.mxu1 %v15959_v19  ;;  %12966 = vmatpush3.bf16.msra.mxu0 %v15964_v15  ;;  %v16011_v19 = vpop.f32.mrf.mxu0  ;;  %v14275_v15 = vld [vmem:[%s18726_s4 + $0xa0] sm:$0xff]  }
 0x363   : >> { %v2502_v6 = vadd.f32 %v11891_v43, %v15870_v1  ;;  %12919 = vmatprep.subr.bf16.mxu1 %v14271_v3  ;;  %12967 = vmatprep.subr.bf16.mxu0 %v14272_v49 }
 0x364   : >> { %v11893_v54 = vpop.f32.mrf.mxu1  ;;  %v2675_v12 = vpop.f32.mrf.mxu0 }
 0x365   : >> { %v11894_v57 = vadd.f32 %v11893_v54, %v11892_v61  ;;  %v2663_v52 = vadd.f32 %v2662_v36, %v2502_v6  ;;  %v14282_v61 = vld [vmem:[%s18726_s4 + $0xc8] sm:$0xff]  }
 0x366   : >> { %v11895_v17 = vpop.f32.mrf.mxu1  ;;  %12920 = vmatpush3.bf16.msra.mxu1 %v14271_v3  ;;  %12968 = vmatpush3.bf16.msra.mxu0 %v14272_v49  ;;  %v12800_v13 = vpop.f32.mrf.mxu0 }
 0x367   : >> { %v16013_v1 = vpack.c.bf16 %v2663_v52, %v2660_v60  ;;  %12921 = vmatprep.subr.bf16.mxu1 %v14273_v22  ;;  %12969 = vmatprep.subr.bf16.mxu0 %v14274_v24  ;;  %v2507_v32 = vadd.f32 %v11894_v57, %v15876_v46  ;;  %v14278_v46 = vld [vmem:[%s18726_s4 + $0xd8] sm:$0xff]   ;;  %v14284_v60 = vld [vmem:[%s18726_s4 + $0xc0] sm:$0xff]  }
 0x368   : >> { %v11896_v44 = vpop.f32.mrf.mxu1  ;;  %v2678_v7 = vpop.f32.mrf.mxu0 }
 0x369   : >> { %18768 = vst [vmem:[#allocation4_spill] sm:$0xff] %v16013_v1  ;;  %v11897_v47 = vadd.f32 %v11896_v44, %v11895_v17  ;;  %12841 = vmatprep.mubr.bf16.mxu1 %v16013_v1  ;;  %12889 = vmatprep.mubr.bf16.mxu0 %v16013_v1  ;;  %v2668_v8 = vadd.f32 %v12795_v41, %v2507_v32  ;;  %v16064_v32 = vld [vmem:[%s18726_s4 + $0x138] sm:$0xff]  }
 0x36a   : >> { %v11898_v33 = vpop.f32.mrf.mxu1  ;;  %12922 = vmatpush3.bf16.msra.mxu1 %v14273_v22  ;;  %12970 = vmatpush3.bf16.msra.mxu0 %v14274_v24  ;;  %v12803_v54 = vpop.f32.mrf.mxu0 }
 0x36b   : >> { %v2510_v0 = vadd.f32 %v11897_v47, %v15882_v27  ;;  %12923 = vmatprep.subr.bf16.mxu1 %v14275_v15  ;;  %12971 = vmatprep.subr.bf16.mxu0 %v14276_v51  ;;  %v14279_v27 = vld [vmem:[%s18726_s4 + $0x90] sm:$0xff]  }
 0x36c   : >> { %v11899_v62 = vpop.f32.mrf.mxu1  ;;  %v2691_v44 = vpop.f32.mrf.mxu0 }
 0x36d   : >> { %v11900_v55 = vadd.f32 %v11899_v62, %v11898_v33  ;;  %v2671_v10 = vadd.f32 %v12796_v11, %v2510_v0 }
 0x36e   : >> { %v11901_v50 = vpop.f32.mrf.mxu1  ;;  %12924 = vmatpush3.bf16.msra.mxu1 %v14275_v15  ;;  %12972 = vmatpush3.bf16.msra.mxu0 %v14276_v51  ;;  %v12804_v62 = vpop.f32.mrf.mxu0 }
 0x36f   : >> { %v16031_v25 = vpack.c.bf16 %v2671_v10, %v2668_v8  ;;  %12925 = vmatprep.subr.bf16.mxu1 %v14277_v35  ;;  %12973 = vmatprep.subr.bf16.mxu0 %v14278_v46  ;;  %v2515_v11 = vadd.f32 %v11900_v55, %v15888_v29 }
 0x370   : >> { %v11902_v3 = vpop.f32.mrf.mxu1 }
 0x371   : >> { %18769 = vst [vmem:[#allocation5_spill] sm:$0xff] %v16031_v25  ;;  %v11903_v41 = vadd.f32 %v11902_v3, %v11901_v50  ;;  %12842 = vmatmul.mubr.bf16.gmra.mxu1 %v16031_v25  ;;  %12890 = vmatmul.mubr.bf16.gmra.mxu0 %v16031_v25  ;;  %v2676_v6 = vadd.f32 %v2675_v12, %v2515_v11  ;;  %v2694_v50 = vpop.f32.mrf.mxu0 }
 0x372   : >> { %v11904_v49 = vpop.f32.mrf.mxu1  ;;  %12926 = vmatpush3.bf16.msra.mxu1 %v14277_v35  ;;  %12974 = vmatpush3.bf16.msra.mxu0 %v14278_v46 }
 0x373   : >> { %v2518_v43 = vadd.f32 %v11903_v41, %v15894_v63  ;;  %12927 = vmatprep.subr.bf16.mxu1 %v14279_v27  ;;  %12975 = vmatprep.subr.bf16.mxu0 %v14280_v37  ;;  %v14283_v63 = vld [vmem:[%s18726_s4 + $0x80] sm:$0xff]  }
 0x374   : >> { %v11905_v36 = vpop.f32.mrf.mxu1 }
 0x375   : >> { %v11906_v29 = vadd.f32 %v11905_v36, %v11904_v49  ;;  %v2679_v22 = vadd.f32 %v2678_v7, %v2518_v43  ;;  %v12807_v49 = vpop.f32.mrf.mxu0 }
 0x376   : >> { %v11907_v24 = vpop.f32.mrf.mxu1  ;;  %12928 = vmatpush3.bf16.msra.mxu1 %v14279_v27  ;;  %12976 = vmatpush3.bf16.msra.mxu0 %v14280_v37 }
 0x377   : >> { %v16049_v57 = vpack.c.bf16 %v2679_v22, %v2676_v6  ;;  %12929 = vmatprep.subr.bf16.mxu1 %v14281_v39  ;;  %12977 = vmatprep.subr.bf16.mxu0 %v14282_v61  ;;  %v2523_v15 = vadd.f32 %v11906_v29, %v15900_v40  ;;  %v16069_v40 = vld [vmem:[%s18726_s4 + $0x178] sm:$0xff]   ;;  %v2707_v36 = vpop.f32.mrf.mxu0 }
 0x378   : >> { %v11908_v52 = vpop.f32.mrf.mxu1 }
 0x379   : >> { %18770 = vst [vmem:[#allocation6_spill] sm:$0xff] %v16049_v57  ;;  %v11909_v17 = vadd.f32 %v11908_v52, %v11907_v24  ;;  %12845 = vmatprep.mubr.bf16.mxu1 %v16049_v57  ;;  %12893 = vmatprep.mubr.bf16.mxu0 %v16049_v57  ;;  %v2684_v12 = vadd.f32 %v16011_v19, %v2523_v15 }
 0x37a   : >> { %v11910_v51 = vpop.f32.mrf.mxu1  ;;  %12930 = vmatpush3.bf16.msra.mxu1 %v14281_v39  ;;  %12978 = vmatpush3.bf16.msra.mxu0 %v14282_v61 }
 0x37b   : >> { %v2526_v47 = vadd.f32 %v11909_v17, %v15906_v38  ;;  %12931 = vmatprep.subr.bf16.mxu1 %v14283_v63  ;;  %12979 = vmatprep.subr.bf16.mxu0 %v14284_v60 }
 0x37c   : >> { %v11911_v33 = vpop.f32.mrf.mxu1 }
 0x37d   : >> { %v11912_v0 = vadd.f32 %v11911_v33, %v11910_v51  ;;  %v2687_v35 = vadd.f32 %v12800_v13, %v2526_v47 }
 0x37e   : >> { %v11913_v46 = vpop.f32.mrf.mxu1  ;;  %12932 = vmatpush3.bf16.msra.mxu1 %v14283_v63  ;;  %12980 = vmatpush3.bf16.msra.mxu0 %v14284_v60  ;;  %v12808_v60 = vpop.f32.mrf.mxu0 }
 0x37f   : >> { %v16072_v38 = vpack.c.bf16 %v2687_v35, %v2684_v12  ;;  %13013 = vmatprep.subr.bf16.mxu1 %v16064_v32  ;;  %13061 = vmatprep.subr.bf16.mxu0 %v16069_v40  ;;  %v2531_v10 = vadd.f32 %v11912_v0, %v15912_v45 }
 0x380   : >> { %v11914_v8 = vpop.f32.mrf.mxu1 }
 0x381   : >> { %18771 = vst [vmem:[#allocation7_spill] sm:$0xff] %v16072_v38  ;;  %v11915_v55 = vadd.f32 %v11914_v8, %v11913_v46  ;;  %12846 = vmatmul.mubr.bf16.gmra.mxu1 %v16072_v38  ;;  %12894 = vmatmul.mubr.bf16.gmra.mxu0 %v16072_v38  ;;  %v2692_v3 = vadd.f32 %v2691_v44, %v2531_v10  ;;  %v2710_v44 = vpop.f32.mrf.mxu0 }
 0x382   : >> { %v11916_v19 = vpop.f32.mrf.mxu1 }
 0x383   : >> { %v2534_v13 = vadd.f32 %v11915_v55, %v15915_v28  ;;  %v12811_v35 = vpop.f32.mrf.mxu0 }
 0x384   : >> { %v11917_v27 = vpop.f32.mrf.mxu1 }
 0x385   : >> { %v11918_v37 = vadd.f32 %v11917_v27, %v11916_v19  ;;  %v2695_v41 = vadd.f32 %v2694_v50, %v2534_v13  ;;  %v2723_v10 = vpop.f32.mrf.mxu0 }
 0x386   : >> { %v11919_v11 = vpop.f32.mrf.mxu1 }
 0x387   : >> { %v16080_v7 = vpack.c.bf16 %v2695_v41, %v2692_v3  ;;  %v2539_v61 = vadd.f32 %v11918_v37, %v15918_v30  ;;  %v12812_v3 = vpop.f32.mrf.mxu0 }
 0x388   : >> { %v11920_v43 = vpop.f32.mrf.mxu1 }
 0x389   : >> { %18772 = vst [vmem:[#allocation8_spill] sm:$0xff] %v16080_v7  ;;  %v11921_v39 = vadd.f32 %v11920_v43, %v11919_v11  ;;  %12849 = vmatprep.mubr.bf16.mxu1 %v16080_v7  ;;  %12897 = vmatprep.mubr.bf16.mxu0 %v16080_v7  ;;  %v2700_v6 = vadd.f32 %v12803_v54, %v2539_v61  ;;  %v2726_v61 = vpop.f32.mrf.mxu0 }
 0x38a   : >> { %v11922_v45 = vpop.f32.mrf.mxu1 }
 0x38b   : >> { %v2542_v28 = vadd.f32 %v11921_v39, %v15921_v42 }
 0x38c   : >> { %v11923_v29 = vpop.f32.mrf.mxu1 }
 0x38d   : >> { %v11924_v22 = vadd.f32 %v11923_v29, %v11922_v45  ;;  %v2703_v24 = vadd.f32 %v12804_v62, %v2542_v28 }
 0x38e   : >> { %v11925_v63 = vpop.f32.mrf.mxu1 }
 0x38f   : >> { %v16086_v52 = vpack.c.bf16 %v2703_v24, %v2700_v6  ;;  %v2547_v30 = vadd.f32 %v11924_v22, %v15924_v21  ;;  %v12815_v6 = vpop.f32.mrf.mxu0 }
 0x390   : >> { %v11926_v17 = vpop.f32.mrf.mxu1 }
 0x391   : >> { %18773 = vst [vmem:[#allocation9_spill] sm:$0xff] %v16086_v52  ;;  %v11927_v15 = vadd.f32 %v11926_v17, %v11925_v63  ;;  %12850 = vmatmul.mubr.bf16.gmra.mxu1 %v16086_v52  ;;  %12898 = vmatmul.mubr.bf16.gmra.mxu0 %v16086_v52  ;;  %v2708_v33 = vadd.f32 %v2707_v36, %v2547_v30  ;;  %v2739_v17 = vpop.f32.mrf.mxu0 }
 0x392   : >> { %v11928_v51 = vpop.f32.mrf.mxu1 }
 0x393   : >> { %v2550_v42 = vadd.f32 %v11927_v15, %v15927_v58 }
 0x394   : >> { %v11929_v47 = vpop.f32.mrf.mxu1 }
 0x395   : >> { %v11930_v54 = vadd.f32 %v11929_v47, %v11928_v51  ;;  %v2711_v12 = vadd.f32 %v2710_v44, %v2550_v42  ;;  %v12816_v47 = vpop.f32.mrf.mxu0 }
 0x396   : >> { %v11931_v0 = vpop.f32.mrf.mxu1 }
 0x397   : >> { %v16092_v46 = vpack.c.bf16 %v2711_v12, %v2708_v33  ;;  %v2555_v55 = vadd.f32 %v11930_v54, %v15930_v14 }
 0x398   : >> { %v11932_v62 = vpop.f32.mrf.mxu1 }
 0x399   : >> { %18774 = vst [vmem:[#allocation10_spill] sm:$0xff] %v16092_v46  ;;  %v11933_v8 = vadd.f32 %v11932_v62, %v11931_v0  ;;  %12853 = vmatprep.mubr.bf16.mxu1 %v16092_v46  ;;  %12901 = vmatprep.mubr.bf16.mxu0 %v16092_v46  ;;  %v2716_v50 = vadd.f32 %v12807_v49, %v2555_v55  ;;  %v2742_v62 = vpop.f32.mrf.mxu0 }
 0x39a   : >> { %v11934_v21 = vpop.f32.mrf.mxu1 }
 0x39b   : >> { %v2558_v58 = vadd.f32 %v11933_v8, %v15933_v34 }
 0x39c   : >> { %v11935_v19 = vpop.f32.mrf.mxu1 }
 0x39d   : >> { %v11936_v13 = vadd.f32 %v11935_v19, %v11934_v21  ;;  %v2719_v27 = vadd.f32 %v12808_v60, %v2558_v58  ;;  %v12819_v58 = vpop.f32.mrf.mxu0 }
 0x39e   : >> { %v11937_v37 = vpop.f32.mrf.mxu1 }
 0x39f   : >> { %v16098_v41 = vpack.c.bf16 %v2719_v27, %v2716_v50  ;;  %v2563_v14 = vadd.f32 %v11936_v13, %v15936_v2 }
 0x3a0   : >> { %v11938_v11 = vpop.f32.mrf.mxu1 }
 0x3a1   : >> { %18775 = vst [vmem:[#allocation11_spill] sm:$0xff] %v16098_v41  ;;  %v11939_v43 = vadd.f32 %v11938_v11, %v11937_v37  ;;  %12854 = vmatmul.mubr.bf16.gmra.mxu1 %v16098_v41  ;;  %12902 = vmatmul.mubr.bf16.gmra.mxu0 %v16098_v41  ;;  %v2724_v36 = vadd.f32 %v2723_v10, %v2563_v14  ;;  %v2755_v37 = vpop.f32.mrf.mxu0 }
 0x3a2   : >> { %v11940_v39 = vpop.f32.mrf.mxu1 }
 0x3a3   : >> { %v2566_v34 = vadd.f32 %v11939_v43, %v15939_v18 }
 0x3a4   : >> { %v11941_v45 = vpop.f32.mrf.mxu1 }
 0x3a5   : >> { %v11942_v49 = vadd.f32 %v11941_v45, %v11940_v39  ;;  %v2727_v28 = vadd.f32 %v2726_v61, %v2566_v34  ;;  %v12820_v61 = vpop.f32.mrf.mxu0 }
 0x3a6   : >> { %v11943_v29 = vpop.f32.mrf.mxu1 }
 0x3a7   : >> { %v16104_v22 = vpack.c.bf16 %v2727_v28, %v2724_v36  ;;  %v2571_v60 = vadd.f32 %v11942_v49, %v15942_v5  ;;  %v2758_v28 = vpop.f32.mrf.mxu0 }
 0x3a8   : >> { %v11944_v24 = vpop.f32.mrf.mxu1 }
 0x3a9   : >> { %18776 = vst [vmem:[#allocation12_spill] sm:$0xff] %v16104_v22  ;;  %v11945_v63 = vadd.f32 %v11944_v24, %v11943_v29  ;;  %12857 = vmatprep.mubr.bf16.mxu1 %v16104_v22  ;;  %12905 = vmatprep.mubr.bf16.mxu0 %v16104_v22  ;;  %v2732_v30 = vadd.f32 %v12811_v35, %v2571_v60 }
 0x3aa   : >> { %v11946_v2 = vpop.f32.mrf.mxu1 }
 0x3ab   : >> { %v2574_v18 = vadd.f32 %v11945_v63, %v15945_v53 }
 0x3ac   : >> { %v11947_v15 = vpop.f32.mrf.mxu1 }
 0x3ad   : >> { %v11948_v51 = vadd.f32 %v11947_v15, %v11946_v2  ;;  %v2735_v44 = vadd.f32 %v12812_v3, %v2574_v18 }
 0x3ae   : >> { %v11949_v42 = vpop.f32.mrf.mxu1 }
 0x3af   : >> { %v16110_v54 = vpack.c.bf16 %v2735_v44, %v2732_v30  ;;  %v2579_v5 = vadd.f32 %v11948_v51, %v15948_v59  ;;  %v14289_v44 = vld [vmem:[%s18726_s4 + $0x128] sm:$0xff]  }
 0x3b0   : >> { %v11950_v33 = vpop.f32.mrf.mxu1 }
 0x3b1   : >> { %18777 = vst [vmem:[#allocation13_spill] sm:$0xff] %v16110_v54  ;;  %v11951_v12 = vadd.f32 %v11950_v33, %v11949_v42  ;;  %12858 = vmatmul.mubr.bf16.gmra.mxu1 %v16110_v54  ;;  %12906 = vmatmul.mubr.bf16.gmra.mxu0 %v16110_v54  ;;  %v2740_v55 = vadd.f32 %v2739_v17, %v2579_v5  ;;  %v14290_v42 = vld [vmem:[%s18726_s4 + $0x168] sm:$0xff]   ;;  %v14294_v33 = vld [vmem:[%s18726_s4 + $0x158] sm:$0xff]   ;;  %v14296_v5 = vld [vmem:[%s18726_s4 + $0x150] sm:$0xff]  }
 0x3b2   : >> { %v11952_v0 = vpop.f32.mrf.mxu1 }
 0x3b3   : >> { %v2582_v53 = vadd.f32 %v11951_v12, %v15951_v56  ;;  %v14295_v12 = vld [vmem:[%s18726_s4 + $0x110] sm:$0xff]  }
 0x3b4   : >> { %v11953_v8 = vpop.f32.mrf.mxu1 }
 0x3b5   : >> { %v11954_v35 = vadd.f32 %v11953_v8, %v11952_v0  ;;  %v2743_v21 = vadd.f32 %v2742_v62, %v2582_v53  ;;  %v14297_v0 = vld [vmem:[%s18726_s4 + $0x108] sm:$0xff]   ;;  %v14299_v53 = vld [vmem:[%s18726_s4 + $0x100] sm:$0xff]  }
 0x3b6   : >> { %v11955_v10 = vpop.f32.mrf.mxu1  ;;  %v14298_v62 = vld [vmem:[%s18726_s4 + $0x148] sm:$0xff]   ;;  %v14300_v8 = vld [vmem:[%s18726_s4 + $0x140] sm:$0xff]  }
 0x3b7   : >> { %v16116_v19 = vpack.c.bf16 %v2743_v21, %v2740_v55  ;;  %v2587_v27 = vadd.f32 %v11954_v35, %v15954_v16  ;;  %v14301_v35 = vld [vmem:[%s18726_s4 + $0x1b8] sm:$0xff]   ;;  %v14303_v21 = vld [vmem:[%s18726_s4 + $0x1b0] sm:$0xff]  }
 0x3b8   : >> { %v11956_v50 = vpop.f32.mrf.mxu1  ;;  %v14302_v55 = vld [vmem:[%s18726_s4 + $0x1f8] sm:$0xff]  }
 0x3b9   : >> { %18778 = vst [vmem:[#allocation14_spill] sm:$0xff] %v16116_v19  ;;  %v11957_v13 = vadd.f32 %v11956_v50, %v11955_v10  ;;  %12861 = vmatprep.mubr.bf16.mxu1 %v16116_v19  ;;  %12909 = vmatprep.mubr.bf16.mxu0 %v16116_v19  ;;  %v2748_v11 = vadd.f32 %v12815_v6, %v2587_v27  ;;  %v14304_v10 = vld [vmem:[%s18726_s4 + $0x1f0] sm:$0xff]   ;;  %v14306_v50 = vld [vmem:[%s18726_s4 + $0x1e8] sm:$0xff]   ;;  %v14308_v27 = vld [vmem:[%s18726_s4 + $0x1e0] sm:$0xff]  }
 0x3ba   : >> { %v11958_v59 = vpop.f32.mrf.mxu1 }
 0x3bb   : >> { %v2590_v56 = vadd.f32 %v11957_v13, %v15969_v48  ;;  %v14307_v13 = vld [vmem:[%s18726_s4 + $0x1a0] sm:$0xff]  }
 0x3bc   : >> { %v11959_v3 = vpop.f32.mrf.mxu1 }
 0x3bd   : >> { %v11960_v43 = vadd.f32 %v11959_v3, %v11958_v59  ;;  %v2751_v14 = vadd.f32 %v12816_v47, %v2590_v56  ;;  %v14293_v47 = vld [vmem:[%s18726_s4 + $0x118] sm:$0xff]  }
 0x3be   : >> { %v11961_v39 = vpop.f32.mrf.mxu1  ;;  %v14309_v56 = vld [vmem:[%s18726_s4 + $0x198] sm:$0xff]  }
 0x3bf   : >> { %v16122_v34 = vpack.c.bf16 %v2751_v14, %v2748_v11  ;;  %v2595_v16 = vadd.f32 %v11960_v43, %v15972_v9  ;;  %v14310_v3 = vld [vmem:[%s18726_s4 + $0x1d8] sm:$0xff]   ;;  %v14311_v14 = vld [vmem:[%s18726_s4 + $0x190] sm:$0xff]  }
 0x3c0   : >> { %v11962_v45 = vpop.f32.mrf.mxu1 }
 0x3c1   : >> { %18779 = vst [vmem:[#allocation15_spill] sm:$0xff] %v16122_v34  ;;  %v11963_v49 = vadd.f32 %v11962_v45, %v11961_v39  ;;  %12862 = vmatmul.mubr.bf16.gmra.mxu1 %v16122_v34  ;;  %12910 = vmatmul.mubr.bf16.gmra.mxu0 %v16122_v34  ;;  %v2756_v24 = vadd.f32 %v2755_v37, %v2595_v16  ;;  %v14312_v39 = vld [vmem:[%s18726_s4 + $0x1d0] sm:$0xff]   ;;  %v14314_v45 = vld [vmem:[%s18726_s4 + $0x1c8] sm:$0xff]   ;;  %v14315_v16 = vld [vmem:[%s18726_s4 + $0x180] sm:$0xff]  }
 0x3c2   : >> { %v11964_v36 = vpop.f32.mrf.mxu1 }
 0x3c3   : >> { %v2598_v48 = vadd.f32 %v11963_v49, %v15975_v20 }
 0x3c4   : >> { %v11965_v29 = vpop.f32.mrf.mxu1 }
 0x3c5   : >> { %v11966_v6 = vadd.f32 %v11965_v29, %v11964_v36  ;;  %v2759_v63 = vadd.f32 %v2758_v28, %v2598_v48  ;;  %v14316_v36 = vld [vmem:[%s18726_s4 + $0x1c0] sm:$0xff]  }
 0x3c6   : >> { %v11967_v60 = vpop.f32.mrf.mxu1 }
 0x3c7   : >> { %v16128_v2 = vpack.c.bf16 %v2759_v63, %v2756_v24  ;;  %v2603_v18 = vadd.f32 %v11966_v6, %v15978_v26  ;;  %v14287_v26 = vld [vmem:[%s18726_s4 + $0x130] sm:$0xff]   ;;  %v14317_v6 = vld [vmem:[%s18726_s4 + $0x238] sm:$0xff]  }
 0x3c8   : >> { %v11968_v17 = vpop.f32.mrf.mxu1  ;;  %v14318_v24 = vld [vmem:[%s18726_s4 + $0x278] sm:$0xff]  }
 0x3c9   : >> { %18780 = vst [vmem:[#allocation16_spill] sm:$0xff] %v16128_v2  ;;  %v11969_v15 = vadd.f32 %v11968_v17, %v11967_v60  ;;  %12865 = vmatprep.mubr.bf16.mxu1 %v16128_v2  ;;  %12913 = vmatprep.mubr.bf16.mxu0 %v16128_v2  ;;  %v2764_v30 = vadd.f32 %v12819_v58, %v2603_v18  ;;  %v14305_v58 = vld [vmem:[%s18726_s4 + $0x1a8] sm:$0xff]  }
 0x3cb   : >> { %v2606_v9 = vadd.f32 %v11969_v15, %v15981_v4  ;;  %v14288_v4 = vld [vmem:[%s18726_s4 + $0x170] sm:$0xff]  }
 0x3cd   : >> { %v2767_v51 = vadd.f32 %v12820_v61, %v2606_v9  ;;  %v14313_v61 = vld [vmem:[%s18726_s4 + $0x188] sm:$0xff]  }
 0x3cf   : >> { %v16134_v20 = vpack.c.bf16 %v2767_v51, %v2764_v30 }
 0x3d1   : >> { %18781 = vst [vmem:[#allocation17_spill] sm:$0xff] %v16134_v20  ;;  %12866 = vmatmul.mubr.bf16.gmra.mxu1 %v16134_v20  ;;  %12914 = vmatmul.mubr.bf16.gmra.mxu0 %v16134_v20 }
 0x3d2   : >> { %12933 = vmatprep.mubr.bf16.mxu1 %v15985_v23  ;;  %12981 = vmatprep.mubr.bf16.mxu0 %v15985_v23 }
 0x3d9   : >> { %12934 = vmatmul.mubr.bf16.vlgmr.msra.gmra.mxu1 %v15991_v31  ;;  %12982 = vmatmul.mubr.bf16.vlgmr.msra.gmra.mxu0 %v15991_v31 }
 0x3da   : >> { %12937 = vmatprep.mubr.bf16.mxu1 %v16013_v1  ;;  %12985 = vmatprep.mubr.bf16.mxu0 %v16013_v1 }
 0x3db   : >> { %13014 = vmatpush3.bf16.msra.mxu1 %v16064_v32  ;;  %13062 = vmatpush3.bf16.msra.mxu0 %v16069_v40  ;;  %v14291_v32 = vld [vmem:[%s18726_s4 + $0x120] sm:$0xff]  }
 0x3dc   : >> { %13015 = vmatprep.subr.bf16.mxu1 %v14287_v26  ;;  %13063 = vmatprep.subr.bf16.mxu0 %v14288_v4  ;;  %v14292_v40 = vld [vmem:[%s18726_s4 + $0x160] sm:$0xff]  }
 0x3df   : >> { %13016 = vmatpush3.bf16.msra.mxu1 %v14287_v26  ;;  %13064 = vmatpush3.bf16.msra.mxu0 %v14288_v4 }
 0x3e0   : >> { %13017 = vmatprep.subr.bf16.mxu1 %v14289_v44  ;;  %13065 = vmatprep.subr.bf16.mxu0 %v14290_v42 }
 0x3e1   : >> { %12938 = vmatmul.mubr.bf16.gmra.mxu1 %v16031_v25  ;;  %12986 = vmatmul.mubr.bf16.gmra.mxu0 %v16031_v25 }
 0x3e2   : >> { %12941 = vmatprep.mubr.bf16.mxu1 %v16049_v57  ;;  %12989 = vmatprep.mubr.bf16.mxu0 %v16049_v57 }
 0x3e3   : >> { %13018 = vmatpush3.bf16.msra.mxu1 %v14289_v44  ;;  %13066 = vmatpush3.bf16.msra.mxu0 %v14290_v42 }
 0x3e4   : >> { %13019 = vmatprep.subr.bf16.mxu1 %v14291_v32  ;;  %13067 = vmatprep.subr.bf16.mxu0 %v14292_v40 }
 0x3e7   : >> { %13020 = vmatpush3.bf16.msra.mxu1 %v14291_v32  ;;  %13068 = vmatpush3.bf16.msra.mxu0 %v14292_v40 }
 0x3e8   : >> { %13021 = vmatprep.subr.bf16.mxu1 %v14293_v47  ;;  %13069 = vmatprep.subr.bf16.mxu0 %v14294_v33 }
 0x3e9   : >> { %12942 = vmatmul.mubr.bf16.gmra.mxu1 %v16072_v38  ;;  %12990 = vmatmul.mubr.bf16.gmra.mxu0 %v16072_v38 }
 0x3ea   : >> { %12945 = vmatprep.mubr.bf16.mxu1 %v16080_v7  ;;  %12993 = vmatprep.mubr.bf16.mxu0 %v16080_v7 }
 0x3eb   : >> { %13022 = vmatpush3.bf16.msra.mxu1 %v14293_v47  ;;  %13070 = vmatpush3.bf16.msra.mxu0 %v14294_v33 }
 0x3ec   : >> { %13023 = vmatprep.subr.bf16.mxu1 %v14295_v12  ;;  %13071 = vmatprep.subr.bf16.mxu0 %v14296_v5 }
 0x3ef   : >> { %13024 = vmatpush3.bf16.msra.mxu1 %v14295_v12  ;;  %13072 = vmatpush3.bf16.msra.mxu0 %v14296_v5 }
 0x3f0   : >> { %13025 = vmatprep.subr.bf16.mxu1 %v14297_v0  ;;  %13073 = vmatprep.subr.bf16.mxu0 %v14298_v62 }
 0x3f1   : >> { %12946 = vmatmul.mubr.bf16.gmra.mxu1 %v16086_v52  ;;  %12994 = vmatmul.mubr.bf16.gmra.mxu0 %v16086_v52 }
 0x3f2   : >> { %12949 = vmatprep.mubr.bf16.mxu1 %v16092_v46  ;;  %12997 = vmatprep.mubr.bf16.mxu0 %v16092_v46 }
 0x3f3   : >> { %13026 = vmatpush3.bf16.msra.mxu1 %v14297_v0  ;;  %13074 = vmatpush3.bf16.msra.mxu0 %v14298_v62 }
 0x3f4   : >> { %13027 = vmatprep.subr.bf16.mxu1 %v14299_v53  ;;  %13075 = vmatprep.subr.bf16.mxu0 %v14300_v8 }
 0x3f7   : >> { %13028 = vmatpush3.bf16.msra.mxu1 %v14299_v53  ;;  %13076 = vmatpush3.bf16.msra.mxu0 %v14300_v8  ;;  %v14319_v8 = vld [vmem:[%s18726_s4 + $0x230] sm:$0xff]  }
 0x3f8   : >> { %13109 = vmatprep.subr.bf16.mxu1 %v14301_v35  ;;  %13157 = vmatprep.subr.bf16.mxu0 %v14302_v55 }
 0x3f9   : >> { %12950 = vmatmul.mubr.bf16.gmra.mxu1 %v16098_v41  ;;  %12998 = vmatmul.mubr.bf16.gmra.mxu0 %v16098_v41 }
 0x3fa   : >> { %12953 = vmatprep.mubr.bf16.mxu1 %v16104_v22  ;;  %13001 = vmatprep.mubr.bf16.mxu0 %v16104_v22 }
 0x401   : >> { %12954 = vmatmul.mubr.bf16.gmra.mxu1 %v16110_v54  ;;  %13002 = vmatmul.mubr.bf16.gmra.mxu0 %v16110_v54 }
 0x402   : >> { %12957 = vmatprep.mubr.bf16.mxu1 %v16116_v19  ;;  %13005 = vmatprep.mubr.bf16.mxu0 %v16116_v19 }
 0x409   : >> { %12958 = vmatmul.mubr.bf16.gmra.mxu1 %v16122_v34  ;;  %13006 = vmatmul.mubr.bf16.gmra.mxu0 %v16122_v34 }
 0x40a   : >> { %12961 = vmatprep.mubr.bf16.mxu1 %v16128_v2  ;;  %13009 = vmatprep.mubr.bf16.mxu0 %v16128_v2 }
 0x411   : >> { %12962 = vmatmul.mubr.bf16.gmra.mxu1 %v16134_v20  ;;  %13010 = vmatmul.mubr.bf16.gmra.mxu0 %v16134_v20 }
 0x412   : >> { %13029 = vmatprep.mubr.bf16.mxu1 %v15985_v23  ;;  %13077 = vmatprep.mubr.bf16.mxu0 %v15985_v23 }
 0x419   : >> { %13030 = vmatmul.mubr.bf16.vlgmr.msra.gmra.mxu1 %v15991_v31  ;;  %13078 = vmatmul.mubr.bf16.vlgmr.msra.gmra.mxu0 %v15991_v31 }
 0x41a   : >> { %13033 = vmatprep.mubr.bf16.mxu1 %v16013_v1  ;;  %13081 = vmatprep.mubr.bf16.mxu0 %v16013_v1 }
 0x41b   : >> { %13110 = vmatpush3.bf16.msra.mxu1 %v14301_v35  ;;  %13158 = vmatpush3.bf16.msra.mxu0 %v14302_v55  ;;  %v14320_v35 = vld [vmem:[%s18726_s4 + $0x270] sm:$0xff]  }
 0x41c   : >> { %13111 = vmatprep.subr.bf16.mxu1 %v14303_v21  ;;  %13159 = vmatprep.subr.bf16.mxu0 %v14304_v10 }
 0x41f   : >> { %13112 = vmatpush3.bf16.msra.mxu1 %v14303_v21  ;;  %13160 = vmatpush3.bf16.msra.mxu0 %v14304_v10  ;;  %v14321_v21 = vld [vmem:[%s18726_s4 + $0x228] sm:$0xff]  }
 0x420   : >> { %13113 = vmatprep.subr.bf16.mxu1 %v14305_v58  ;;  %13161 = vmatprep.subr.bf16.mxu0 %v14306_v50  ;;  %v14322_v10 = vld [vmem:[%s18726_s4 + $0x268] sm:$0xff]  }
 0x421   : >> { %13034 = vmatmul.mubr.bf16.gmra.mxu1 %v16031_v25  ;;  %13082 = vmatmul.mubr.bf16.gmra.mxu0 %v16031_v25  ;;  %v12887_v59 = vpop.f32.mrf.mxu0  ;;  %v16270_v49 = vpop.f32.mrf.mxu1 }
 0x422   : >> { %13037 = vmatprep.mubr.bf16.mxu1 %v16049_v57  ;;  %13085 = vmatprep.mubr.bf16.mxu0 %v16049_v57  ;;  %3321 = vst [vmem:[#allocation2 + $0x10] sm:$0xff] %v12887_v59 }
 0x423   : >> { %v3192_v37 = vpop.f32.mrf.mxu0  ;;  %13114 = vmatpush3.bf16.msra.mxu1 %v14305_v58  ;;  %13162 = vmatpush3.bf16.msra.mxu0 %v14306_v50  ;;  %v16278_v28 = vpop.f32.mrf.mxu1  ;;  %v14323_v50 = vld [vmem:[%s18726_s4 + $0x220] sm:$0xff]  }
 0x424   : >> { %3319 = vst [vmem:[#allocation2] sm:$0xff] %v3192_v37  ;;  %13115 = vmatprep.subr.bf16.mxu1 %v14307_v13  ;;  %13163 = vmatprep.subr.bf16.mxu0 %v14308_v27 }
 0x425   : >> { %v12888_v11 = vpop.f32.mrf.mxu0  ;;  %v16290_v63 = vpop.f32.mrf.mxu1 }
 0x426   : >> { %3322 = vst [vmem:[#allocation2 + $0x18] sm:$0xff] %v12888_v11 }
 0x427   : >> { %v3195_v43 = vpop.f32.mrf.mxu0  ;;  %13116 = vmatpush3.bf16.msra.mxu1 %v14307_v13  ;;  %13164 = vmatpush3.bf16.msra.mxu0 %v14308_v27  ;;  %v16292_v18 = vpop.f32.mrf.mxu1  ;;  %v14324_v13 = vld [vmem:[%s18726_s4 + $0x260] sm:$0xff]  }
 0x428   : >> { %3320 = vst [vmem:[#allocation2 + $0x8] sm:$0xff] %v3195_v43  ;;  %13117 = vmatprep.subr.bf16.mxu1 %v14309_v56  ;;  %13165 = vmatprep.subr.bf16.mxu0 %v14310_v3  ;;  %18782 = vst [vmem:[#allocation18_spill] sm:$0xff] %v16292_v18 }
 0x429   : >> { %13038 = vmatmul.mubr.bf16.gmra.mxu1 %v16072_v38  ;;  %13086 = vmatmul.mubr.bf16.gmra.mxu0 %v16072_v38 }
 0x42a   : >> { %13041 = vmatprep.mubr.bf16.mxu1 %v16080_v7  ;;  %13089 = vmatprep.mubr.bf16.mxu0 %v16080_v7 }
 0x42b   : >> { %13118 = vmatpush3.bf16.msra.mxu1 %v14309_v56  ;;  %13166 = vmatpush3.bf16.msra.mxu0 %v14310_v3  ;;  %v14325_v56 = vld [vmem:[%s18726_s4 + $0x218] sm:$0xff]  }
 0x42c   : >> { %13119 = vmatprep.subr.bf16.mxu1 %v14311_v14  ;;  %13167 = vmatprep.subr.bf16.mxu0 %v14312_v39  ;;  %v14326_v3 = vld [vmem:[%s18726_s4 + $0x258] sm:$0xff]  }
 0x42f   : >> { %13120 = vmatpush3.bf16.msra.mxu1 %v14311_v14  ;;  %13168 = vmatpush3.bf16.msra.mxu0 %v14312_v39  ;;  %v14327_v39 = vld [vmem:[%s18726_s4 + $0x210] sm:$0xff]  }
 0x430   : >> { %13121 = vmatprep.subr.bf16.mxu1 %v14313_v61  ;;  %13169 = vmatprep.subr.bf16.mxu0 %v14314_v45 }
 0x431   : >> { %13042 = vmatmul.mubr.bf16.gmra.mxu1 %v16086_v52  ;;  %13090 = vmatmul.mubr.bf16.gmra.mxu0 %v16086_v52  ;;  %v12891_v48 = vpop.f32.mrf.mxu0  ;;  %v16298_v15 = vpop.f32.mrf.mxu1 }
 0x432   : >> { %13045 = vmatprep.mubr.bf16.mxu1 %v16092_v46  ;;  %13093 = vmatprep.mubr.bf16.mxu0 %v16092_v46  ;;  %3325 = vst [vmem:[#allocation2 + $0x30] sm:$0xff] %v12891_v48 }
 0x433   : >> { %v3208_v29 = vpop.f32.mrf.mxu0  ;;  %13122 = vmatpush3.bf16.msra.mxu1 %v14313_v61  ;;  %13170 = vmatpush3.bf16.msra.mxu0 %v14314_v45  ;;  %v16300_v9 = vpop.f32.mrf.mxu1  ;;  %v14328_v61 = vld [vmem:[%s18726_s4 + $0x250] sm:$0xff]  }
 0x434   : >> { %3323 = vst [vmem:[#allocation2 + $0x20] sm:$0xff] %v3208_v29  ;;  %13123 = vmatprep.subr.bf16.mxu1 %v14315_v16  ;;  %13171 = vmatprep.subr.bf16.mxu0 %v14316_v36  ;;  %v14331_v29 = vld [vmem:[%s18726_s4 + $0x200] sm:$0xff]  }
 0x435   : >> { %v12892_v60 = vpop.f32.mrf.mxu0  ;;  %v16306_v51 = vpop.f32.mrf.mxu1 }
 0x436   : >> { %3326 = vst [vmem:[#allocation2 + $0x38] sm:$0xff] %v12892_v60 }
 0x437   : >> { %v3211_v17 = vpop.f32.mrf.mxu0  ;;  %13124 = vmatpush3.bf16.msra.mxu1 %v14315_v16  ;;  %13172 = vmatpush3.bf16.msra.mxu0 %v14316_v36  ;;  %v16308_v44 = vpop.f32.mrf.mxu1  ;;  %v14329_v16 = vld [vmem:[%s18726_s4 + $0x208] sm:$0xff]  }
 0x438   : >> { %3324 = vst [vmem:[#allocation2 + $0x28] sm:$0xff] %v3211_v17  ;;  %13205 = vmatprep.subr.bf16.mxu1 %v14317_v6  ;;  %13253 = vmatprep.subr.bf16.mxu0 %v14318_v24  ;;  %18783 = vst [vmem:[#allocation19_spill] sm:$0xff] %v16308_v44  ;;  %v14330_v36 = vld [vmem:[%s18726_s4 + $0x248] sm:$0xff]  }
 0x439   : >> { %13046 = vmatmul.mubr.bf16.gmra.mxu1 %v16098_v41  ;;  %13094 = vmatmul.mubr.bf16.gmra.mxu0 %v16098_v41 }
 0x43a   : >> { %13049 = vmatprep.mubr.bf16.mxu1 %v16104_v22  ;;  %13097 = vmatprep.mubr.bf16.mxu0 %v16104_v22 }
 0x441   : >> { %13050 = vmatmul.mubr.bf16.gmra.mxu1 %v16110_v54  ;;  %13098 = vmatmul.mubr.bf16.gmra.mxu0 %v16110_v54  ;;  %v12895_v30 = vpop.f32.mrf.mxu0  ;;  %v16310_v32 = vpop.f32.mrf.mxu1 }
 0x442   : >> { %13053 = vmatprep.mubr.bf16.mxu1 %v16116_v19  ;;  %13101 = vmatprep.mubr.bf16.mxu0 %v16116_v19  ;;  %3329 = vst [vmem:[#allocation2 + $0x50] sm:$0xff] %v12895_v30 }
 0x443   : >> { %v3224_v26 = vpop.f32.mrf.mxu0  ;;  %v16316_v40 = vpop.f32.mrf.mxu1 }
 0x444   : >> { %3327 = vst [vmem:[#allocation2 + $0x40] sm:$0xff] %v3224_v26  ;;  %v14333_v26 = vld [vmem:[%s18726_s4 + $0x2b8] sm:$0xff]  }
 0x445   : >> { %v12896_v4 = vpop.f32.mrf.mxu0  ;;  %v16318_v47 = vpop.f32.mrf.mxu1 }
 0x446   : >> { %3330 = vst [vmem:[#allocation2 + $0x58] sm:$0xff] %v12896_v4  ;;  %18784 = vst [vmem:[#allocation20_spill] sm:$0xff] %v16318_v47  ;;  %v14334_v4 = vld [vmem:[%s18726_s4 + $0x2f8] sm:$0xff]  }
 0x447   : >> { %v3227_v42 = vpop.f32.mrf.mxu0  ;;  %v16324_v5 = vpop.f32.mrf.mxu1 }
 0x448   : >> { %3328 = vst [vmem:[#allocation2 + $0x48] sm:$0xff] %v3227_v42 }
 0x449   : >> { %13054 = vmatmul.mubr.bf16.gmra.mxu1 %v16122_v34  ;;  %13102 = vmatmul.mubr.bf16.gmra.mxu0 %v16122_v34 }
 0x44a   : >> { %13057 = vmatprep.mubr.bf16.mxu1 %v16128_v2  ;;  %13105 = vmatprep.mubr.bf16.mxu0 %v16128_v2 }
 0x44d   : >> { %v16498_v18 = vld [vmem:[#allocation2 + $0x51] sm:$0xff] }
 0x451   : >> { %13058 = vmatmul.mubr.bf16.gmra.mxu1 %v16134_v20  ;;  %13106 = vmatmul.mubr.bf16.gmra.mxu0 %v16134_v20  ;;  %v12899_v33 = vpop.f32.mrf.mxu0  ;;  %v16326_v62 = vpop.f32.mrf.mxu1 }
 0x452   : >> { %13125 = vmatprep.mubr.bf16.mxu1 %v15985_v23  ;;  %13173 = vmatprep.mubr.bf16.mxu0 %v15985_v23  ;;  %3333 = vst [vmem:[#allocation2 + $0x70] sm:$0xff] %v12899_v33  ;;  %18785 = vst [vmem:[#allocation21_spill] sm:$0xff] %v16326_v62 }
 0x453   : >> { %v3240_v12 = vpop.f32.mrf.mxu0  ;;  %v16338_v55 = vpop.f32.mrf.mxu1 }
 0x454   : >> { %3331 = vst [vmem:[#allocation2 + $0x60] sm:$0xff] %v3240_v12  ;;  %18786 = vst [vmem:[#allocation22_spill] sm:$0xff] %v16338_v55 }
 0x455   : >> { %v12900_v0 = vpop.f32.mrf.mxu0  ;;  %v16346_v58 = vpop.f32.mrf.mxu1 }
 0x456   : >> { %3334 = vst [vmem:[#allocation2 + $0x78] sm:$0xff] %v12900_v0  ;;  %18787 = vst [vmem:[#allocation23_spill] sm:$0xff] %v16346_v58 }
 0x457   : >> { %v3243_v53 = vpop.f32.mrf.mxu0  ;;  %v16358_v59 = vpop.f32.mrf.mxu1 }
 0x458   : >> { %3332 = vst [vmem:[#allocation2 + $0x68] sm:$0xff] %v3243_v53  ;;  %18788 = vst [vmem:[#allocation24_spill] sm:$0xff] %v16358_v59 }
 0x459   : >> { %13126 = vmatmul.mubr.bf16.vlgmr.msra.gmra.mxu1 %v15991_v31  ;;  %13174 = vmatmul.mubr.bf16.vlgmr.msra.gmra.mxu0 %v15991_v31 }
 0x45a   : >> { %13129 = vmatprep.mubr.bf16.mxu1 %v16013_v1  ;;  %13177 = vmatprep.mubr.bf16.mxu0 %v16013_v1 }
 0x45b   : >> { %13206 = vmatpush3.bf16.msra.mxu1 %v14317_v6  ;;  %13254 = vmatpush3.bf16.msra.mxu0 %v14318_v24  ;;  %v14332_v6 = vld [vmem:[%s18726_s4 + $0x240] sm:$0xff]  }
 0x45c   : >> { %13207 = vmatprep.subr.bf16.mxu1 %v14319_v8  ;;  %13255 = vmatprep.subr.bf16.mxu0 %v14320_v35 }
 0x45f   : >> { %13208 = vmatpush3.bf16.msra.mxu1 %v14319_v8  ;;  %13256 = vmatpush3.bf16.msra.mxu0 %v14320_v35 }
 0x460   : >> { %13209 = vmatprep.subr.bf16.mxu1 %v14321_v21  ;;  %13257 = vmatprep.subr.bf16.mxu0 %v14322_v10 }
 0x461   : >> { %13130 = vmatmul.mubr.bf16.gmra.mxu1 %v16031_v25  ;;  %13178 = vmatmul.mubr.bf16.gmra.mxu0 %v16031_v25  ;;  %v12903_v27 = vpop.f32.mrf.mxu0  ;;  %v16366_v11 = vpop.f32.mrf.mxu1 }
 0x462   : >> { %13133 = vmatprep.mubr.bf16.mxu1 %v16049_v57  ;;  %13181 = vmatprep.mubr.bf16.mxu0 %v16049_v57  ;;  %3337 = vst [vmem:[#allocation2 + $0x90] sm:$0xff] %v12903_v27  ;;  %18789 = vst [vmem:[#allocation25_spill] sm:$0xff] %v16366_v11  ;;  %v16538_v11 = vld [vmem:[#allocation2 + $0x69] sm:$0xff] }
 0x463   : >> { %v3256_v37 = vpop.f32.mrf.mxu0  ;;  %13210 = vmatpush3.bf16.msra.mxu1 %v14321_v21  ;;  %13258 = vmatpush3.bf16.msra.mxu0 %v14322_v10  ;;  %v16374_v45 = vpop.f32.mrf.mxu1  ;;  %18804 = vst [vmem:[#allocation40_spill] sm:$0xff] %v16538_v11 }
 0x464   : >> { %3335 = vst [vmem:[#allocation2 + $0x80] sm:$0xff] %v3256_v37  ;;  %13211 = vmatprep.subr.bf16.mxu1 %v14323_v50  ;;  %13259 = vmatprep.subr.bf16.mxu0 %v14324_v13  ;;  %18790 = vst [vmem:[#allocation26_spill] sm:$0xff] %v16374_v45  ;;  %v16557_v45 = vld [vmem:[%s18726_s4 + $0x378] sm:$0xff]  }
 0x465   : >> { %v12904_v43 = vpop.f32.mrf.mxu0  ;;  %v16386_v48 = vpop.f32.mrf.mxu1 }
 0x466   : >> { %3338 = vst [vmem:[#allocation2 + $0x98] sm:$0xff] %v12904_v43  ;;  %18791 = vst [vmem:[#allocation27_spill] sm:$0xff] %v16386_v48 }
 0x467   : >> { %v3259_v14 = vpop.f32.mrf.mxu0  ;;  %13212 = vmatpush3.bf16.msra.mxu1 %v14323_v50  ;;  %13260 = vmatpush3.bf16.msra.mxu0 %v14324_v13  ;;  %v16396_v24 = vpop.f32.mrf.mxu1 }
 0x468   : >> { %3336 = vst [vmem:[#allocation2 + $0x88] sm:$0xff] %v3259_v14  ;;  %13213 = vmatprep.subr.bf16.mxu1 %v14325_v56  ;;  %13261 = vmatprep.subr.bf16.mxu0 %v14326_v3  ;;  %18792 = vst [vmem:[#allocation28_spill] sm:$0xff] %v16396_v24 }
 0x469   : >> { %13134 = vmatmul.mubr.bf16.gmra.mxu1 %v16072_v38  ;;  %13182 = vmatmul.mubr.bf16.gmra.mxu0 %v16072_v38 }
 0x46a   : >> { %13137 = vmatprep.mubr.bf16.mxu1 %v16080_v7  ;;  %13185 = vmatprep.mubr.bf16.mxu0 %v16080_v7 }
 0x46b   : >> { %13214 = vmatpush3.bf16.msra.mxu1 %v14325_v56  ;;  %13262 = vmatpush3.bf16.msra.mxu0 %v14326_v3  ;;  %v16559_v58 = vld [vmem:[#allocation2 + $0x79] sm:$0xff] }
 0x46c   : >> { %13215 = vmatprep.subr.bf16.mxu1 %v14327_v39  ;;  %13263 = vmatprep.subr.bf16.mxu0 %v14328_v61  ;;  %18807 = vst [vmem:[#allocation43_spill] sm:$0xff] %v16559_v58 }
 0x46f   : >> { %13216 = vmatpush3.bf16.msra.mxu1 %v14327_v39  ;;  %13264 = vmatpush3.bf16.msra.mxu0 %v14328_v61  ;;  %v16572_v58 = vld [vmem:[#allocation2 + $0x89] sm:$0xff] }
 0x470   : >> { %13217 = vmatprep.subr.bf16.mxu1 %v14329_v16  ;;  %13265 = vmatprep.subr.bf16.mxu0 %v14330_v36  ;;  %18812 = vst [vmem:[#allocation48_spill] sm:$0xff] %v16572_v58 }
 0x471   : >> { %13138 = vmatmul.mubr.bf16.gmra.mxu1 %v16086_v52  ;;  %13186 = vmatmul.mubr.bf16.gmra.mxu0 %v16086_v52  ;;  %v12907_v60 = vpop.f32.mrf.mxu0  ;;  %v16400_v17 = vpop.f32.mrf.mxu1 }
 0x472   : >> { %13141 = vmatprep.mubr.bf16.mxu1 %v16092_v46  ;;  %13189 = vmatprep.mubr.bf16.mxu0 %v16092_v46  ;;  %3341 = vst [vmem:[#allocation2 + $0xb0] sm:$0xff] %v12907_v60  ;;  %18793 = vst [vmem:[#allocation29_spill] sm:$0xff] %v16400_v17  ;;  %v14336_v60 = vld [vmem:[%s18726_s4 + $0x2f0] sm:$0xff]  }
 0x473   : >> { %v3272_v30 = vpop.f32.mrf.mxu0  ;;  %13218 = vmatpush3.bf16.msra.mxu1 %v14329_v16  ;;  %13266 = vmatpush3.bf16.msra.mxu0 %v14330_v36  ;;  %v16408_v33 = vpop.f32.mrf.mxu1 }
 0x474   : >> { %3339 = vst [vmem:[#allocation2 + $0xa0] sm:$0xff] %v3272_v30  ;;  %13219 = vmatprep.subr.bf16.mxu1 %v14331_v29  ;;  %13267 = vmatprep.subr.bf16.mxu0 %v14332_v6  ;;  %18794 = vst [vmem:[#allocation30_spill] sm:$0xff] %v16408_v33  ;;  %v16438_v30 = vld [vmem:[#allocation2 + $0x11] sm:$0xff] }
 0x475   : >> { %v12908_v42 = vpop.f32.mrf.mxu0  ;;  %v16414_v0 = vpop.f32.mrf.mxu1 }
 0x476   : >> { %3342 = vst [vmem:[#allocation2 + $0xb8] sm:$0xff] %v12908_v42  ;;  %18795 = vst [vmem:[#allocation31_spill] sm:$0xff] %v16414_v0  ;;  %v16440_v42 = vld [vmem:[#allocation2 + $0x9] sm:$0xff]  ;;  %v16519_v0 = vld [vmem:[#allocation2 + $0x59] sm:$0xff] }
 0x477   : >> { %v3275_v12 = vpop.f32.mrf.mxu0  ;;  %13220 = vmatpush3.bf16.msra.mxu1 %v14331_v29  ;;  %13268 = vmatpush3.bf16.msra.mxu0 %v14332_v6  ;;  %v16416_v53 = vpop.f32.mrf.mxu1  ;;  %v14335_v6 = vld [vmem:[%s18726_s4 + $0x2b0] sm:$0xff]   ;;  %18798 = vst [vmem:[#allocation34_spill] sm:$0xff] %v16440_v42  ;;  %18801 = vst [vmem:[#allocation37_spill] sm:$0xff] %v16519_v0 }
 0x478   : >> { %3340 = vst [vmem:[#allocation2 + $0xa8] sm:$0xff] %v3275_v12  ;;  %13301 = vmatprep.subr.bf16.mxu1 %v14333_v26  ;;  %13349 = vmatprep.subr.bf16.mxu0 %v14334_v4  ;;  %18796 = vst [vmem:[#allocation32_spill] sm:$0xff] %v16416_v53  ;;  %v14344_v42 = vld [vmem:[%s18726_s4 + $0x2d0] sm:$0xff]   ;;  %v14348_v53 = vld [vmem:[%s18726_s4 + $0x2c0] sm:$0xff]  }
 0x479   : >> { %13142 = vmatmul.mubr.bf16.gmra.mxu1 %v16098_v41  ;;  %13190 = vmatmul.mubr.bf16.gmra.mxu0 %v16098_v41 }
 0x47a   : >> { %13145 = vmatprep.mubr.bf16.mxu1 %v16104_v22  ;;  %13193 = vmatprep.mubr.bf16.mxu0 %v16104_v22 }
 0x481   : >> { %13146 = vmatmul.mubr.bf16.gmra.mxu1 %v16110_v54  ;;  %13194 = vmatmul.mubr.bf16.gmra.mxu0 %v16110_v54  ;;  %v12863_v8 = vpop.f32.mrf.mxu1  ;;  %v12911_v35 = vpop.f32.mrf.mxu0 }
 0x482   : >> { %13149 = vmatprep.mubr.bf16.mxu1 %v16116_v19  ;;  %13197 = vmatprep.mubr.bf16.mxu0 %v16116_v19  ;;  %v16446_v35 = vld [vmem:[#allocation2 + $0x1] sm:$0xff] }
 0x483   : >> { %v2980_v21 = vpop.f32.mrf.mxu1  ;;  %v3288_v10 = vpop.f32.mrf.mxu0 }
 0x484   : >> { %3035 = vst [vmem:[#allocation2 + $0xc0] sm:$0xff] %v2980_v21 }
 0x485   : >> { %v12864_v50 = vpop.f32.mrf.mxu1  ;;  %v12912_v13 = vpop.f32.mrf.mxu0 }
 0x486   : >> { %v14337_v50 = vld [vmem:[%s18726_s4 + $0x2a8] sm:$0xff]  }
 0x487   : >> { %v2983_v27 = vpop.f32.mrf.mxu1  ;;  %v3291_v37 = vpop.f32.mrf.mxu0  ;;  %v14338_v13 = vld [vmem:[%s18726_s4 + $0x2e8] sm:$0xff]  }
 0x488   : >> { %v16454_v27 = vld [vmem:[#allocation2 + $0x19] sm:$0xff] }
 0x489   : >> { %13150 = vmatmul.mubr.bf16.gmra.mxu1 %v16122_v34  ;;  %13198 = vmatmul.mubr.bf16.gmra.mxu0 %v16122_v34 }
 0x48a   : >> { %13153 = vmatprep.mubr.bf16.mxu1 %v16128_v2  ;;  %13201 = vmatprep.mubr.bf16.mxu0 %v16128_v2 }
 0x48b   : >> { %v16426_v56 = vld [vmem:[#allocation2 + $0xc0] sm:$0xf] }
 0x48c   : >> { %18797 = vst [vmem:[#allocation33_spill] sm:$0xff] %v16426_v56  ;;  %3343 = vst [vmem:[#allocation2 + $0xc0] sm:$0xff] %v3288_v10  ;;  %v14346_v56 = vld [vmem:[%s18726_s4 + $0x2c8] sm:$0xff]  }
 0x491   : >> { %v12867_v3 = vpop.f32.mrf.mxu1  ;;  %v12915_v43 = vpop.f32.mrf.mxu0  ;;  %13154 = vmatmul.mubr.bf16.gmra.mxu1 %v16134_v20  ;;  %13202 = vmatmul.mubr.bf16.gmra.mxu0 %v16134_v20 }
 0x492   : >> { %13221 = vmatprep.mubr.bf16.mxu1 %v15985_v23  ;;  %13269 = vmatprep.mubr.bf16.mxu0 %v15985_v23 }
 0x493   : >> { %v2996_v14 = vpop.f32.mrf.mxu1  ;;  %v3304_v39 = vpop.f32.mrf.mxu0 }
 0x494   : >> { %v14340_v14 = vld [vmem:[%s18726_s4 + $0x2e0] sm:$0xff]   ;;  %v16464_v39 = vld [vmem:[#allocation2 + $0x31] sm:$0xff] }
 0x495   : >> { %v12868_v61 = vpop.f32.mrf.mxu1  ;;  %v12916_v16 = vpop.f32.mrf.mxu0 }
 0x496   : >> { %v16466_v61 = vld [vmem:[#allocation2 + $0x29] sm:$0xff] }
 0x497   : >> { %v2999_v36 = vpop.f32.mrf.mxu1  ;;  %v3307_v29 = vpop.f32.mrf.mxu0  ;;  %18799 = vst [vmem:[#allocation35_spill] sm:$0xff] %v16466_v61 }
 0x498   : >> { %v16474_v29 = vld [vmem:[#allocation2 + $0x21] sm:$0xff] }
 0x499   : >> { %v12935_v12 = vpop.f32.mrf.mxu1  ;;  %v12983_v8 = vpop.f32.mrf.mxu0  ;;  %13222 = vmatmul.mubr.bf16.vlgmr.msra.gmra.mxu1 %v15991_v31  ;;  %13270 = vmatmul.mubr.bf16.vlgmr.msra.gmra.mxu0 %v15991_v31 }
 0x49a   : >> { %3629 = vst [vmem:[#allocation2 + $0x10] sm:$0xff] %v12935_v12  ;;  %13225 = vmatprep.mubr.bf16.mxu1 %v16013_v1  ;;  %13273 = vmatprep.mubr.bf16.mxu0 %v16013_v1  ;;  %v14341_v12 = vld [vmem:[%s18726_s4 + $0x298] sm:$0xff]  }
 0x49b   : >> { %v3500_v21 = vpop.f32.mrf.mxu1  ;;  %v3808_v10 = vpop.f32.mrf.mxu0  ;;  %13302 = vmatpush3.bf16.msra.mxu1 %v14333_v26  ;;  %13350 = vmatpush3.bf16.msra.mxu0 %v14334_v4  ;;  %v14339_v4 = vld [vmem:[%s18726_s4 + $0x2a0] sm:$0xff]  }
 0x49c   : >> { %3627 = vst [vmem:[#allocation2] sm:$0xff] %v3500_v21  ;;  %13303 = vmatprep.subr.bf16.mxu1 %v14335_v6  ;;  %13351 = vmatprep.subr.bf16.mxu0 %v14336_v60  ;;  %v14342_v21 = vld [vmem:[%s18726_s4 + $0x2d8] sm:$0xff]  }
 0x49d   : >> { %v12936_v37 = vpop.f32.mrf.mxu1  ;;  %v16456_v3 = vpop.f32.mrf.mxu0 }
 0x49e   : >> { %3630 = vst [vmem:[#allocation2 + $0x18] sm:$0xff] %v12936_v37  ;;  %v16482_v37 = vld [vmem:[#allocation2 + $0x39] sm:$0xff] }
 0x49f   : >> { %v3503_v43 = vpop.f32.mrf.mxu1  ;;  %v3811_v26 = vpop.f32.mrf.mxu0  ;;  %13304 = vmatpush3.bf16.msra.mxu1 %v14335_v6  ;;  %13352 = vmatpush3.bf16.msra.mxu0 %v14336_v60 }
 0x4a0   : >> { %3628 = vst [vmem:[#allocation2 + $0x8] sm:$0xff] %v3503_v43  ;;  %13305 = vmatprep.subr.bf16.mxu1 %v14337_v50  ;;  %13353 = vmatprep.subr.bf16.mxu0 %v14338_v13 }
 0x4a1   : >> { %v12939_v16 = vpop.f32.mrf.mxu1  ;;  %v16468_v36 = vpop.f32.mrf.mxu0  ;;  %13226 = vmatmul.mubr.bf16.gmra.mxu1 %v16031_v25  ;;  %13274 = vmatmul.mubr.bf16.gmra.mxu0 %v16031_v25 }
 0x4a2   : >> { %3633 = vst [vmem:[#allocation2 + $0x30] sm:$0xff] %v12939_v16  ;;  %13229 = vmatprep.mubr.bf16.mxu1 %v16049_v57  ;;  %13277 = vmatprep.mubr.bf16.mxu0 %v16049_v57 }
 0x4a3   : >> { %v3516_v6 = vpop.f32.mrf.mxu1  ;;  %v3824_v60 = vpop.f32.mrf.mxu0  ;;  %13306 = vmatpush3.bf16.msra.mxu1 %v14337_v50  ;;  %13354 = vmatpush3.bf16.msra.mxu0 %v14338_v13 }
 0x4a4   : >> { %3631 = vst [vmem:[#allocation2 + $0x20] sm:$0xff] %v3516_v6  ;;  %13307 = vmatprep.subr.bf16.mxu1 %v14339_v4  ;;  %13355 = vmatprep.subr.bf16.mxu0 %v14340_v14 }
 0x4a5   : >> { %v12940_v43 = vpop.f32.mrf.mxu1  ;;  %v16484_v16 = vpop.f32.mrf.mxu0  ;;  %v16486_v61 = vld [vmem:[#allocation2 + $0x12] sm:$0xff] }
 0x4a6   : >> { %3634 = vst [vmem:[#allocation2 + $0x38] sm:$0xff] %v12940_v43  ;;  %v14343_v43 = vld [vmem:[%s18726_s4 + $0x290] sm:$0xff]  }
 0x4a7   : >> { %v16488_v50 = vld [vmem:[#allocation2 + $0x2] sm:$0xff]  ;;  %v16490_v13 = vld [vmem:[#allocation2 + $0xa] sm:$0xff]  ;;  %v3519_v6 = vpop.f32.mrf.mxu1  ;;  %v3827_v44 = vpop.f32.mrf.mxu0  ;;  %13308 = vmatpush3.bf16.msra.mxu1 %v14339_v4  ;;  %13356 = vmatpush3.bf16.msra.mxu0 %v14340_v14 }
 0x4a8   : >> { %18800 = vst [vmem:[#allocation36_spill] sm:$0xff] %v16490_v13  ;;  %3935 = vst [vmem:[#allocation2] sm:$0xff] %v3808_v10  ;;  %13309 = vmatprep.subr.bf16.mxu1 %v14341_v12  ;;  %13357 = vmatprep.subr.bf16.mxu0 %v14342_v21  ;;  %v16500_v13 = vld [vmem:[#allocation2 + $0x49] sm:$0xff] }
 0x4a9   : >> { %3937 = vst [vmem:[#allocation2 + $0x10] sm:$0xff] %v12983_v8  ;;  %3936 = vst [vmem:[#allocation2 + $0x8] sm:$0xff] %v3811_v26  ;;  %v12943_v4 = vpop.f32.mrf.mxu1  ;;  %v16502_v14 = vpop.f32.mrf.mxu0  ;;  %13230 = vmatmul.mubr.bf16.gmra.mxu1 %v16072_v38  ;;  %13278 = vmatmul.mubr.bf16.gmra.mxu0 %v16072_v38  ;;  %v16508_v8 = vld [vmem:[#allocation2 + $0x41] sm:$0xff] }
 0x4aa   : >> { %3632 = vst [vmem:[#allocation2 + $0x28] sm:$0xff] %v3519_v6  ;;  %3637 = vst [vmem:[#allocation2 + $0x50] sm:$0xff] %v12943_v4  ;;  %13233 = vmatprep.mubr.bf16.mxu1 %v16080_v7  ;;  %13281 = vmatprep.mubr.bf16.mxu0 %v16080_v7  ;;  %v14345_v4 = vld [vmem:[%s18726_s4 + $0x288] sm:$0xff]  }
 0x4ab   : >> { %v16510_v10 = vld [vmem:[#allocation2 + $0x1a] sm:$0xff]  ;;  %v3532_v26 = vpop.f32.mrf.mxu1  ;;  %v3840_v6 = vpop.f32.mrf.mxu0  ;;  %13310 = vmatpush3.bf16.msra.mxu1 %v14341_v12  ;;  %13358 = vmatpush3.bf16.msra.mxu0 %v14342_v21 }
 0x4ac   : >> { %3938 = vst [vmem:[#allocation2 + $0x18] sm:$0xff] %v16456_v3  ;;  %3635 = vst [vmem:[#allocation2 + $0x40] sm:$0xff] %v3532_v26  ;;  %13311 = vmatprep.subr.bf16.mxu1 %v14343_v43  ;;  %13359 = vmatprep.subr.bf16.mxu0 %v14344_v42 }
 0x4ad   : >> { %v12944_v17 = vpop.f32.mrf.mxu1  ;;  %v16521_v33 = vpop.f32.mrf.mxu0  ;;  %v16523_v12 = vld [vmem:[#allocation2 + $0x32] sm:$0xff] }
 0x4ae   : >> { %3638 = vst [vmem:[#allocation2 + $0x58] sm:$0xff] %v12944_v17  ;;  %v14347_v17 = vld [vmem:[%s18726_s4 + $0x280] sm:$0xff]  }
 0x4af   : >> { %v3535_v26 = vpop.f32.mrf.mxu1  ;;  %v3843_v48 = vpop.f32.mrf.mxu0  ;;  %13312 = vmatpush3.bf16.msra.mxu1 %v14343_v43  ;;  %13360 = vmatpush3.bf16.msra.mxu0 %v14344_v42 }
 0x4b0   : >> { %3636 = vst [vmem:[#allocation2 + $0x48] sm:$0xff] %v3535_v26  ;;  %13313 = vmatprep.subr.bf16.mxu1 %v14345_v4  ;;  %13361 = vmatprep.subr.bf16.mxu0 %v14346_v56 }
 0x4b1   : >> { %v16525_v3 = vld [vmem:[#allocation2 + $0x22] sm:$0xff]  ;;  %v16527_v21 = vld [vmem:[#allocation2 + $0x2a] sm:$0xff]  ;;  %v12947_v42 = vpop.f32.mrf.mxu1  ;;  %13234 = vmatmul.mubr.bf16.gmra.mxu1 %v16086_v52  ;;  %13282 = vmatmul.mubr.bf16.gmra.mxu0 %v16086_v52 }
 0x4b2   : >> { %18802 = vst [vmem:[#allocation38_spill] sm:$0xff] %v16527_v21  ;;  %3939 = vst [vmem:[#allocation2 + $0x20] sm:$0xff] %v3824_v60  ;;  %v16536_v21 = vld [vmem:[#allocation2 + $0x71] sm:$0xff]  ;;  %v12995_v60 = vpop.f32.mrf.mxu0  ;;  %13237 = vmatprep.mubr.bf16.mxu1 %v16092_v46  ;;  %13285 = vmatprep.mubr.bf16.mxu0 %v16092_v46 }
 0x4b3   : >> { %3941 = vst [vmem:[#allocation2 + $0x30] sm:$0xff] %v16468_v36  ;;  %3940 = vst [vmem:[#allocation2 + $0x28] sm:$0xff] %v3827_v44  ;;  %v16544_v44 = vld [vmem:[#allocation2 + $0x61] sm:$0xff]  ;;  %v3548_v43 = vpop.f32.mrf.mxu1  ;;  %13314 = vmatpush3.bf16.msra.mxu1 %v14345_v4  ;;  %13362 = vmatpush3.bf16.msra.mxu0 %v14346_v56 }
 0x4b4   : >> { %18803 = vst [vmem:[#allocation39_spill] sm:$0xff] %v16536_v21  ;;  %3641 = vst [vmem:[#allocation2 + $0x70] sm:$0xff] %v12947_v42  ;;  %v16546_v36 = vld [vmem:[#allocation2 + $0x3a] sm:$0xff]  ;;  %v3856_v26 = vpop.f32.mrf.mxu0  ;;  %13315 = vmatprep.subr.bf16.mxu1 %v14347_v17  ;;  %13363 = vmatprep.subr.bf16.mxu0 %v14348_v53 }
 0x4b5   : >> { %18805 = vst [vmem:[#allocation41_spill] sm:$0xff] %v16544_v44  ;;  %18806 = vst [vmem:[#allocation42_spill] sm:$0xff] %v16546_v36  ;;  %v16552_v42 = vld [vmem:[%s18726_s4 + $0x338] sm:$0xff]   ;;  %v12948_v24 = vpop.f32.mrf.mxu1 }
 0x4b6   : >> { %3942 = vst [vmem:[#allocation2 + $0x38] sm:$0xff] %v16484_v16  ;;  %3639 = vst [vmem:[#allocation2 + $0x60] sm:$0xff] %v3548_v43  ;;  %v12996_v4 = vpop.f32.mrf.mxu0  ;;  %v16561_v56 = vld [vmem:[#allocation2 + $0x52] sm:$0xff] }
 0x4b7   : >> { %3642 = vst [vmem:[#allocation2 + $0x78] sm:$0xff] %v12948_v24  ;;  %18808 = vst [vmem:[#allocation44_spill] sm:$0xff] %v16561_v56  ;;  %v16563_v16 = vld [vmem:[#allocation2 + $0x42] sm:$0xff]  ;;  %v16565_v43 = vld [vmem:[#allocation2 + $0x4a] sm:$0xff]  ;;  %v3551_v44 = vpop.f32.mrf.mxu1  ;;  %13316 = vmatpush3.bf16.msra.mxu1 %v14347_v17  ;;  %13364 = vmatpush3.bf16.msra.mxu0 %v14348_v53 }
 0x4b8   : >> { %18809 = vst [vmem:[#allocation45_spill] sm:$0xff] %v16563_v16  ;;  %18810 = vst [vmem:[#allocation46_spill] sm:$0xff] %v16565_v43  ;;  %v3859_v55 = vpop.f32.mrf.mxu0  ;;  %13397 = vmatprep.subr.bf16.mxu1 %v16552_v42  ;;  %13445 = vmatprep.subr.bf16.mxu0 %v16557_v45  ;;  %v16570_v24 = vld [vmem:[#allocation2 + $0x91] sm:$0xff]  ;;  %v16583_v17 = vld [vmem:[#allocation2 + $0x99] sm:$0xff] }
 0x4b9   : >> { %3943 = vst [vmem:[#allocation2 + $0x40] sm:$0xff] %v3840_v6  ;;  %3945 = vst [vmem:[#allocation2 + $0x50] sm:$0xff] %v16502_v14  ;;  %v12951_v56 = vpop.f32.mrf.mxu1  ;;  %13238 = vmatmul.mubr.bf16.gmra.mxu1 %v16098_v41  ;;  %13286 = vmatmul.mubr.bf16.gmra.mxu0 %v16098_v41 }
 0x4ba   : >> { %3944 = vst [vmem:[#allocation2 + $0x48] sm:$0xff] %v3843_v48  ;;  %3640 = vst [vmem:[#allocation2 + $0x68] sm:$0xff] %v3551_v44  ;;  %v12999_v11 = vpop.f32.mrf.mxu0  ;;  %13241 = vmatprep.mubr.bf16.mxu1 %v16104_v22  ;;  %13289 = vmatprep.mubr.bf16.mxu0 %v16104_v22  ;;  %v16578_v48 = vld [vmem:[#allocation2 + $0x81] sm:$0xff] }
 0x4bb   : >> { %18811 = vst [vmem:[#allocation47_spill] sm:$0xff] %v16570_v24  ;;  %3645 = vst [vmem:[#allocation2 + $0x90] sm:$0xff] %v12951_v56  ;;  %v3564_v14 = vpop.f32.mrf.mxu1 }
 0x4bc   : >> { %18813 = vst [vmem:[#allocation49_spill] sm:$0xff] %v16578_v48  ;;  %v3872_v6 = vpop.f32.mrf.mxu0  ;;  %3643 = vst [vmem:[#allocation2 + $0x80] sm:$0xff] %v3564_v14  ;;  %v16591_v48 = vld [vmem:[#allocation2 + $0xb1] sm:$0xff] }
 0x4bd   : >> { %v16580_v53 = vld [vmem:[#allocation2 + $0x5a] sm:$0xff]  ;;  %18815 = vst [vmem:[#allocation51_spill] sm:$0xff] %v16583_v17  ;;  %v12952_v44 = vpop.f32.mrf.mxu1  ;;  %18819 = vst [vmem:[#allocation55_spill] sm:$0xff] %v16591_v48 }
 0x4be   : >> { %18814 = vst [vmem:[#allocation50_spill] sm:$0xff] %v16580_v53  ;;  %3946 = vst [vmem:[#allocation2 + $0x58] sm:$0xff] %v16521_v33  ;;  %v13000_v24 = vpop.f32.mrf.mxu0  ;;  %v16585_v59 = vld [vmem:[#allocation2 + $0x72] sm:$0xff]  ;;  %v16593_v53 = vld [vmem:[#allocation2 + $0xa9] sm:$0xff] }
 0x4bf   : >> { %3646 = vst [vmem:[#allocation2 + $0x98] sm:$0xff] %v12952_v44  ;;  %v3567_v58 = vpop.f32.mrf.mxu1  ;;  %18816 = vst [vmem:[#allocation52_spill] sm:$0xff] %v16585_v59  ;;  %v16599_v44 = vld [vmem:[#allocation2 + $0xa1] sm:$0xff] }
 0x4c0   : >> { %v3875_v56 = vpop.f32.mrf.mxu0  ;;  %3644 = vst [vmem:[#allocation2 + $0x88] sm:$0xff] %v3567_v58  ;;  %18820 = vst [vmem:[#allocation56_spill] sm:$0xff] %v16593_v53 }
 0x4c1   : >> { %v16587_v16 = vld [vmem:[#allocation2 + $0x62] sm:$0xff]  ;;  %v16589_v36 = vld [vmem:[#allocation2 + $0x6a] sm:$0xff]  ;;  %v12955_v33 = vpop.f32.mrf.mxu1  ;;  %13242 = vmatmul.mubr.bf16.gmra.mxu1 %v16110_v54  ;;  %13290 = vmatmul.mubr.bf16.gmra.mxu0 %v16110_v54  ;;  %18821 = vst [vmem:[#allocation57_spill] sm:$0xff] %v16599_v44 }
 0x4c2   : >> { %18817 = vst [vmem:[#allocation53_spill] sm:$0xff] %v16587_v16  ;;  %18818 = vst [vmem:[#allocation54_spill] sm:$0xff] %v16589_v36  ;;  %v13003_v14 = vpop.f32.mrf.mxu0  ;;  %13245 = vmatprep.mubr.bf16.mxu1 %v16116_v19  ;;  %13293 = vmatprep.mubr.bf16.mxu0 %v16116_v19  ;;  %v16699_v62 = vld [vmem:[#allocation2 + $0x4b] sm:$0xff] }
 0x4c3   : >> { %3947 = vst [vmem:[#allocation2 + $0x60] sm:$0xff] %v3856_v26  ;;  %3949 = vst [vmem:[#allocation2 + $0x70] sm:$0xff] %v12995_v60  ;;  %v16601_v58 = vld [vmem:[#allocation2 + $0x7a] sm:$0xff]  ;;  %v3580_v48 = vpop.f32.mrf.mxu1 }
 0x4c4   : >> { %3948 = vst [vmem:[#allocation2 + $0x68] sm:$0xff] %v3859_v55  ;;  %3649 = vst [vmem:[#allocation2 + $0xb0] sm:$0xff] %v12955_v33  ;;  %v3888_v17 = vpop.f32.mrf.mxu0  ;;  %v16603_v55 = vld [vmem:[#allocation2 + $0xb9] sm:$0xff] }
 0x4c5   : >> { %18822 = vst [vmem:[#allocation58_spill] sm:$0xff] %v16601_v58  ;;  %3950 = vst [vmem:[#allocation2 + $0x78] sm:$0xff] %v12996_v4  ;;  %v12956_v60 = vpop.f32.mrf.mxu1 }
 0x4c6   : >> { %3647 = vst [vmem:[#allocation2 + $0xa0] sm:$0xff] %v3580_v48  ;;  %18823 = vst [vmem:[#allocation59_spill] sm:$0xff] %v16603_v55  ;;  %v13004_v26 = vpop.f32.mrf.mxu0  ;;  %v16605_v53 = vld [vmem:[#allocation2 + $0x92] sm:$0xff]  ;;  %v16615_v48 = vld [vmem:[#allocation2 + $0xc1] sm:$0xf] }
 0x4c7   : >> { %3650 = vst [vmem:[#allocation2 + $0xb8] sm:$0xff] %v12956_v60  ;;  %18824 = vst [vmem:[#allocation60_spill] sm:$0xff] %v16605_v53  ;;  %v16607_v33 = vld [vmem:[#allocation2 + $0x82] sm:$0xff]  ;;  %v16609_v59 = vld [vmem:[#allocation2 + $0x8a] sm:$0xff]  ;;  %v3583_v16 = vpop.f32.mrf.mxu1 }
 0x4c8   : >> { %18825 = vst [vmem:[#allocation61_spill] sm:$0xff] %v16607_v33  ;;  %18826 = vst [vmem:[#allocation62_spill] sm:$0xff] %v16609_v59  ;;  %v3891_v36 = vpop.f32.mrf.mxu0 }
 0x4c9   : >> { %3951 = vst [vmem:[#allocation2 + $0x80] sm:$0xff] %v3872_v6  ;;  %3953 = vst [vmem:[#allocation2 + $0x90] sm:$0xff] %v12999_v11  ;;  %v12959_v44 = vpop.f32.mrf.mxu1  ;;  %13246 = vmatmul.mubr.bf16.gmra.mxu1 %v16122_v34  ;;  %13294 = vmatmul.mubr.bf16.gmra.mxu0 %v16122_v34 }
 0x4ca   : >> { %3952 = vst [vmem:[#allocation2 + $0x88] sm:$0xff] %v3875_v56  ;;  %3648 = vst [vmem:[#allocation2 + $0xa8] sm:$0xff] %v3583_v16  ;;  %v13007_v4 = vpop.f32.mrf.mxu0  ;;  %13249 = vmatprep.mubr.bf16.mxu1 %v16128_v2  ;;  %13297 = vmatprep.mubr.bf16.mxu0 %v16128_v2 }
 0x4cb   : >> { %18827 = vst [vmem:[#allocation63_spill] sm:$0xff] %v16615_v48  ;;  %v3596_v55 = vpop.f32.mrf.mxu1  ;;  %18839 = vst [vmem:[#allocation75_spill] sm:$0xff] %v16699_v62  ;;  %v16719_v62 = vld [vmem:[#allocation2 + $0x5b] sm:$0xff] }
 0x4cc   : >> { %v3904_v53 = vpop.f32.mrf.mxu0  ;;  %3651 = vst [vmem:[#allocation2 + $0xc0] sm:$0xff] %v3596_v55  ;;  %18842 = vst [vmem:[#allocation78_spill] sm:$0xff] %v16719_v62  ;;  %v14364_v62 = vld [vmem:[%s18726_s4 + $0x340] sm:$0xff]  }
 0x4cd   : >> { %v16617_v60 = vld [vmem:[#allocation2 + $0x9a] sm:$0xff]  ;;  %v12960_v11 = vpop.f32.mrf.mxu1 }
 0x4ce   : >> { %18828 = vst [vmem:[#allocation64_spill] sm:$0xff] %v16617_v60  ;;  %3954 = vst [vmem:[#allocation2 + $0x98] sm:$0xff] %v13000_v24  ;;  %v13008_v16 = vpop.f32.mrf.mxu0  ;;  %v16619_v44 = vld [vmem:[#allocation2 + $0xb2] sm:$0xff]  ;;  %v16683_v60 = vld [vmem:[#allocation2 + $0x3b] sm:$0xff] }
 0x4cf   : >> { %v3599_v6 = vpop.f32.mrf.mxu1  ;;  %18829 = vst [vmem:[#allocation65_spill] sm:$0xff] %v16619_v44  ;;  %v16667_v44 = vld [vmem:[#allocation2 + $0x33] sm:$0xff]  ;;  %18837 = vst [vmem:[#allocation73_spill] sm:$0xff] %v16683_v60 }
 0x4d0   : >> { %v3907_v56 = vpop.f32.mrf.mxu0  ;;  %v14352_v6 = vld [vmem:[%s18726_s4 + $0x370] sm:$0xff]   ;;  %18836 = vst [vmem:[#allocation72_spill] sm:$0xff] %v16667_v44 }
 0x4d1   : >> { %v16621_v4 = vld [vmem:[#allocation2 + $0xa2] sm:$0xff]  ;;  %v16623_v33 = vld [vmem:[#allocation2 + $0xaa] sm:$0xff]  ;;  %v12963_v48 = vpop.f32.mrf.mxu1  ;;  %13250 = vmatmul.mubr.bf16.gmra.mxu1 %v16134_v20  ;;  %13298 = vmatmul.mubr.bf16.gmra.mxu0 %v16134_v20 }
 0x4d2   : >> { %18830 = vst [vmem:[#allocation66_spill] sm:$0xff] %v16621_v4  ;;  %18831 = vst [vmem:[#allocation67_spill] sm:$0xff] %v16623_v33  ;;  %v13011_v58 = vpop.f32.mrf.mxu0  ;;  %13317 = vmatprep.mubr.bf16.mxu1 %v15985_v23  ;;  %13365 = vmatprep.mubr.bf16.mxu0 %v15985_v23  ;;  %v14351_v48 = vld [vmem:[%s18726_s4 + $0x330] sm:$0xff]  }
 0x4d3   : >> { %3955 = vst [vmem:[#allocation2 + $0xa0] sm:$0xff] %v3888_v17  ;;  %3957 = vst [vmem:[#allocation2 + $0xb0] sm:$0xff] %v13003_v14  ;;  %v16629_v24 = vld [vmem:[#allocation2 + $0xba] sm:$0xff]  ;;  %v16631_v55 = vld [vmem:[#allocation2 + $0xc2] sm:$0xf]  ;;  %v3612_v11 = vpop.f32.mrf.mxu1 }
 0x4d4   : >> { %3956 = vst [vmem:[#allocation2 + $0xa8] sm:$0xff] %v3891_v36  ;;  %18832 = vst [vmem:[#allocation68_spill] sm:$0xff] %v16629_v24  ;;  %v3920_v16 = vpop.f32.mrf.mxu0  ;;  %v16639_v56 = vld [vmem:[#allocation2 + $0xb] sm:$0xff]  ;;  %v16641_v24 = vld [vmem:[#allocation2 + $0x13] sm:$0xff] }
 0x4d5   : >> { %18833 = vst [vmem:[#allocation69_spill] sm:$0xff] %v16631_v55  ;;  %3958 = vst [vmem:[#allocation2 + $0xb8] sm:$0xff] %v13004_v26  ;;  %v12964_v17 = vpop.f32.mrf.mxu1  ;;  %v16665_v55 = vld [vmem:[#allocation2 + $0x2b] sm:$0xff] }
 0x4d6   : >> { %3959 = vst [vmem:[#allocation2 + $0xc0] sm:$0xff] %v3904_v53  ;;  %v13012_v36 = vpop.f32.mrf.mxu0  ;;  %18834 = vst [vmem:[#allocation70_spill] sm:$0xff] %v16639_v56  ;;  %v16647_v53 = vld [vmem:[#allocation2 + $0x3] sm:$0xff]  ;;  %v14359_v60 = vld [vmem:[%s18726_s4 + $0x310] sm:$0xff]  }
 0x4d7   : >> { %v3615_v14 = vpop.f32.mrf.mxu1  ;;  %v14353_v36 = vld [vmem:[%s18726_s4 + $0x328] sm:$0xff]   ;;  %18835 = vst [vmem:[#allocation71_spill] sm:$0xff] %v16665_v55  ;;  %v14357_v55 = vld [vmem:[%s18726_s4 + $0x318] sm:$0xff]  }
 0x4d8   : >> { %v3923_v58 = vpop.f32.mrf.mxu0  ;;  %v14354_v14 = vld [vmem:[%s18726_s4 + $0x368] sm:$0xff]  }
 0x4d9   : >> { %v13031_v11 = vpop.f32.mrf.mxu1  ;;  %13318 = vmatmul.mubr.bf16.vlgmr.msra.gmra.mxu1 %v15991_v31  ;;  %13366 = vmatmul.mubr.bf16.vlgmr.msra.gmra.mxu0 %v15991_v31  ;;  %v16657_v58 = vld [vmem:[#allocation2 + $0x1b] sm:$0xff] }
 0x4da   : >> { %v13079_v16 = vpop.f32.mrf.mxu0  ;;  %4245 = vst [vmem:[#allocation2 + $0x10] sm:$0xff] %v13031_v11  ;;  %13321 = vmatprep.mubr.bf16.mxu1 %v16013_v1  ;;  %13369 = vmatprep.mubr.bf16.mxu0 %v16013_v1 }
 0x4db   : >> { %v4116_v26 = vpop.f32.mrf.mxu1  ;;  %13398 = vmatpush3.bf16.msra.mxu1 %v16552_v42  ;;  %13446 = vmatpush3.bf16.msra.mxu0 %v16557_v45  ;;  %v14355_v45 = vld [vmem:[%s18726_s4 + $0x320] sm:$0xff]  }
 0x4dc   : >> { %v4424_v17 = vpop.f32.mrf.mxu0  ;;  %4243 = vst [vmem:[#allocation2] sm:$0xff] %v4116_v26  ;;  %13399 = vmatprep.subr.bf16.mxu1 %v14351_v48  ;;  %13447 = vmatprep.subr.bf16.mxu0 %v14352_v6  ;;  %v14356_v26 = vld [vmem:[%s18726_s4 + $0x360] sm:$0xff]  }
 0x4dd   : >> { %v13032_v11 = vpop.f32.mrf.mxu1 }
 0x4de   : >> { %v13080_v56 = vpop.f32.mrf.mxu0  ;;  %4246 = vst [vmem:[#allocation2 + $0x18] sm:$0xff] %v13032_v11 }
 0x4df   : >> { %v4119_v17 = vpop.f32.mrf.mxu1  ;;  %13400 = vmatpush3.bf16.msra.mxu1 %v14351_v48  ;;  %13448 = vmatpush3.bf16.msra.mxu0 %v14352_v6  ;;  %v16675_v48 = vld [vmem:[#allocation2 + $0x23] sm:$0xff] }
 0x4e0   : >> { %v4427_v42 = vpop.f32.mrf.mxu0  ;;  %4244 = vst [vmem:[#allocation2 + $0x8] sm:$0xff] %v4119_v17  ;;  %13401 = vmatprep.subr.bf16.mxu1 %v14353_v36  ;;  %13449 = vmatprep.subr.bf16.mxu0 %v14354_v14 }
 0x4e1   : >> { %v13035_v11 = vpop.f32.mrf.mxu1  ;;  %13322 = vmatmul.mubr.bf16.gmra.mxu1 %v16031_v25  ;;  %13370 = vmatmul.mubr.bf16.gmra.mxu0 %v16031_v25 }
 0x4e2   : >> { %v16669_v4 = vpop.f32.mrf.mxu0  ;;  %4249 = vst [vmem:[#allocation2 + $0x30] sm:$0xff] %v13035_v11  ;;  %13325 = vmatprep.mubr.bf16.mxu1 %v16049_v57  ;;  %13373 = vmatprep.mubr.bf16.mxu0 %v16049_v57  ;;  %v14358_v11 = vld [vmem:[%s18726_s4 + $0x358] sm:$0xff]  }
 0x4e3   : >> { %v4132_v6 = vpop.f32.mrf.mxu1  ;;  %13402 = vmatpush3.bf16.msra.mxu1 %v14353_v36  ;;  %13450 = vmatpush3.bf16.msra.mxu0 %v14354_v14 }
 0x4e4   : >> { %v4440_v17 = vpop.f32.mrf.mxu0  ;;  %4247 = vst [vmem:[#allocation2 + $0x20] sm:$0xff] %v4132_v6  ;;  %13403 = vmatprep.subr.bf16.mxu1 %v14355_v45  ;;  %13451 = vmatprep.subr.bf16.mxu0 %v14356_v26 }
 0x4e5   : >> { %v13036_v33 = vpop.f32.mrf.mxu1  ;;  %v16687_v44 = vld [vmem:[#allocation2 + $0x14] sm:$0xff] }
 0x4e6   : >> { %v16685_v59 = vpop.f32.mrf.mxu0  ;;  %4250 = vst [vmem:[#allocation2 + $0x38] sm:$0xff] %v13036_v33  ;;  %v14360_v33 = vld [vmem:[%s18726_s4 + $0x350] sm:$0xff]  }
 0x4e7   : >> { %v16689_v36 = vld [vmem:[#allocation2 + $0x4] sm:$0xff]  ;;  %v16691_v14 = vld [vmem:[#allocation2 + $0xc] sm:$0xff]  ;;  %v4135_v6 = vpop.f32.mrf.mxu1  ;;  %13404 = vmatpush3.bf16.msra.mxu1 %v14355_v45  ;;  %13452 = vmatpush3.bf16.msra.mxu0 %v14356_v26 }
 0x4e8   : >> { %18838 = vst [vmem:[#allocation74_spill] sm:$0xff] %v16691_v14  ;;  %v4443_v43 = vpop.f32.mrf.mxu0  ;;  %4553 = vst [vmem:[#allocation2 + $0x10] sm:$0xff] %v13079_v16  ;;  %13405 = vmatprep.subr.bf16.mxu1 %v14357_v55  ;;  %13453 = vmatprep.subr.bf16.mxu0 %v14358_v11  ;;  %v16701_v14 = vld [vmem:[#allocation2 + $0x53] sm:$0xff]  ;;  %v16709_v16 = vld [vmem:[#allocation2 + $0x43] sm:$0xff] }
 0x4e9   : >> { %4552 = vst [vmem:[#allocation2 + $0x8] sm:$0xff] %v4427_v42  ;;  %4248 = vst [vmem:[#allocation2 + $0x28] sm:$0xff] %v4135_v6  ;;  %v13039_v21 = vpop.f32.mrf.mxu1  ;;  %13326 = vmatmul.mubr.bf16.gmra.mxu1 %v16072_v38  ;;  %13374 = vmatmul.mubr.bf16.gmra.mxu0 %v16072_v38 }
 0x4ea   : >> { %18840 = vst [vmem:[#allocation76_spill] sm:$0xff] %v16701_v14  ;;  %v16703_v45 = vpop.f32.mrf.mxu0  ;;  %4253 = vst [vmem:[#allocation2 + $0x50] sm:$0xff] %v13039_v21  ;;  %13329 = vmatprep.mubr.bf16.mxu1 %v16080_v7  ;;  %13377 = vmatprep.mubr.bf16.mxu0 %v16080_v7  ;;  %v14361_v21 = vld [vmem:[%s18726_s4 + $0x308] sm:$0xff]  }
 0x4eb   : >> { %18841 = vst [vmem:[#allocation77_spill] sm:$0xff] %v16709_v16  ;;  %v16711_v42 = vld [vmem:[#allocation2 + $0x1c] sm:$0xff]  ;;  %v4148_v26 = vpop.f32.mrf.mxu1  ;;  %13406 = vmatpush3.bf16.msra.mxu1 %v14357_v55  ;;  %13454 = vmatpush3.bf16.msra.mxu0 %v14358_v11  ;;  %v14362_v14 = vld [vmem:[%s18726_s4 + $0x348] sm:$0xff]  }
 0x4ec   : >> { %v4456_v6 = vpop.f32.mrf.mxu0  ;;  %4554 = vst [vmem:[#allocation2 + $0x18] sm:$0xff] %v13080_v56  ;;  %4251 = vst [vmem:[#allocation2 + $0x40] sm:$0xff] %v4148_v26  ;;  %13407 = vmatprep.subr.bf16.mxu1 %v14359_v60  ;;  %13455 = vmatprep.subr.bf16.mxu0 %v14360_v33 }
 0x4ed   : >> { %v13040_v16 = vpop.f32.mrf.mxu1  ;;  %v16723_v55 = vld [vmem:[#allocation2 + $0x34] sm:$0xff] }
 0x4ee   : >> { %v16721_v47 = vpop.f32.mrf.mxu0  ;;  %4254 = vst [vmem:[#allocation2 + $0x58] sm:$0xff] %v13040_v16  ;;  %18843 = vst [vmem:[#allocation79_spill] sm:$0xff] %v16723_v55  ;;  %v14363_v16 = vld [vmem:[%s18726_s4 + $0x300] sm:$0xff]   ;;  %v16738_v55 = vld [vmem:[#allocation2 + $0x73] sm:$0xff] }
 0x4ef   : >> { %v4151_v26 = vpop.f32.mrf.mxu1  ;;  %13408 = vmatpush3.bf16.msra.mxu1 %v14359_v60  ;;  %13456 = vmatpush3.bf16.msra.mxu0 %v14360_v33  ;;  %18846 = vst [vmem:[#allocation82_spill] sm:$0xff] %v16738_v55  ;;  %v16757_v55 = vld [vmem:[%s18726_s4 + $0x3f8] sm:$0xff]  }
 0x4f0   : >> { %v16725_v56 = vld [vmem:[#allocation2 + $0x24] sm:$0xff]  ;;  %v16727_v11 = vld [vmem:[#allocation2 + $0x2c] sm:$0xff]  ;;  %v4459_v0 = vpop.f32.mrf.mxu0  ;;  %4252 = vst [vmem:[#allocation2 + $0x48] sm:$0xff] %v4151_v26  ;;  %13409 = vmatprep.subr.bf16.mxu1 %v14361_v21  ;;  %13457 = vmatprep.subr.bf16.mxu0 %v14362_v14 }
 0x4f1   : >> { %18844 = vst [vmem:[#allocation80_spill] sm:$0xff] %v16727_v11  ;;  %4555 = vst [vmem:[#allocation2 + $0x20] sm:$0xff] %v4440_v17  ;;  %v16736_v11 = vld [vmem:[#allocation2 + $0x6b] sm:$0xff]  ;;  %v13043_v60 = vpop.f32.mrf.mxu1  ;;  %13330 = vmatmul.mubr.bf16.gmra.mxu1 %v16086_v52  ;;  %13378 = vmatmul.mubr.bf16.gmra.mxu0 %v16086_v52  ;;  %v16771_v52 = vld [vmem:[#allocation2 + $0x93] sm:$0xff] }
 0x4f2   : >> { %4557 = vst [vmem:[#allocation2 + $0x30] sm:$0xff] %v16669_v4  ;;  %4556 = vst [vmem:[#allocation2 + $0x28] sm:$0xff] %v4443_v43  ;;  %v13091_v17 = vpop.f32.mrf.mxu0  ;;  %13333 = vmatprep.mubr.bf16.mxu1 %v16092_v46  ;;  %13381 = vmatprep.mubr.bf16.mxu0 %v16092_v46  ;;  %v16744_v43 = vld [vmem:[#allocation2 + $0x63] sm:$0xff] }
 0x4f3   : >> { %18845 = vst [vmem:[#allocation81_spill] sm:$0xff] %v16736_v11  ;;  %4257 = vst [vmem:[#allocation2 + $0x70] sm:$0xff] %v13043_v60  ;;  %v16746_v4 = vld [vmem:[#allocation2 + $0x3c] sm:$0xff]  ;;  %v4164_v33 = vpop.f32.mrf.mxu1  ;;  %13410 = vmatpush3.bf16.msra.mxu1 %v14361_v21  ;;  %13458 = vmatpush3.bf16.msra.mxu0 %v14362_v14 }
 0x4f4   : >> { %18847 = vst [vmem:[#allocation83_spill] sm:$0xff] %v16744_v43  ;;  %18848 = vst [vmem:[#allocation84_spill] sm:$0xff] %v16746_v4  ;;  %v4472_v26 = vpop.f32.mrf.mxu0  ;;  %13411 = vmatprep.subr.bf16.mxu1 %v14363_v16  ;;  %13459 = vmatprep.subr.bf16.mxu0 %v14364_v62  ;;  %v16752_v60 = vld [vmem:[%s18726_s4 + $0x3b8] sm:$0xff]  }
 0x4f5   : >> { %4558 = vst [vmem:[#allocation2 + $0x38] sm:$0xff] %v16685_v59  ;;  %4255 = vst [vmem:[#allocation2 + $0x60] sm:$0xff] %v4164_v33  ;;  %v16759_v43 = vld [vmem:[#allocation2 + $0x7b] sm:$0xff]  ;;  %v13044_v11 = vpop.f32.mrf.mxu1 }
 0x4f6   : >> { %18849 = vst [vmem:[#allocation85_spill] sm:$0xff] %v16759_v43  ;;  %v13092_v21 = vpop.f32.mrf.mxu0  ;;  %4258 = vst [vmem:[#allocation2 + $0x78] sm:$0xff] %v13044_v11  ;;  %v16763_v4 = vld [vmem:[#allocation2 + $0x54] sm:$0xff]  ;;  %v16769_v43 = vld [vmem:[#allocation2 + $0x8b] sm:$0xff] }
 0x4f7   : >> { %v16761_v14 = vld [vmem:[#allocation2 + $0x44] sm:$0xff]  ;;  %v4167_v59 = vpop.f32.mrf.mxu1  ;;  %13412 = vmatpush3.bf16.msra.mxu1 %v14363_v16  ;;  %13460 = vmatpush3.bf16.msra.mxu0 %v14364_v62  ;;  %18850 = vst [vmem:[#allocation86_spill] sm:$0xff] %v16763_v4  ;;  %v16765_v46 = vld [vmem:[#allocation2 + $0x4c] sm:$0xff]  ;;  %18851 = vst [vmem:[#allocation87_spill] sm:$0xff] %v16769_v43 }
 0x4f8   : >> { %v4475_v33 = vpop.f32.mrf.mxu0  ;;  %4559 = vst [vmem:[#allocation2 + $0x40] sm:$0xff] %v4456_v6  ;;  %4256 = vst [vmem:[#allocation2 + $0x68] sm:$0xff] %v4167_v59  ;;  %13493 = vmatprep.subr.bf16.mxu1 %v16752_v60  ;;  %13541 = vmatprep.subr.bf16.mxu0 %v16757_v55  ;;  %v16778_v62 = vld [vmem:[#allocation2 + $0x83] sm:$0xff] }
 0x4f9   : >> { %18852 = vst [vmem:[#allocation88_spill] sm:$0xff] %v16771_v52  ;;  %4561 = vst [vmem:[#allocation2 + $0x50] sm:$0xff] %v16703_v45  ;;  %v13047_v11 = vpop.f32.mrf.mxu1  ;;  %13334 = vmatmul.mubr.bf16.gmra.mxu1 %v16098_v41  ;;  %13382 = vmatmul.mubr.bf16.gmra.mxu0 %v16098_v41 }
 0x4fa   : >> { %4560 = vst [vmem:[#allocation2 + $0x48] sm:$0xff] %v4459_v0  ;;  %v13095_v16 = vpop.f32.mrf.mxu0  ;;  %4261 = vst [vmem:[#allocation2 + $0x90] sm:$0xff] %v13047_v11  ;;  %13337 = vmatprep.mubr.bf16.mxu1 %v16104_v22  ;;  %13385 = vmatprep.mubr.bf16.mxu0 %v16104_v22  ;;  %v16783_v0 = vld [vmem:[#allocation2 + $0x9b] sm:$0xff] }
 0x4fb   : >> { %18853 = vst [vmem:[#allocation89_spill] sm:$0xff] %v16778_v62  ;;  %v4180_v59 = vpop.f32.mrf.mxu1  ;;  %18855 = vst [vmem:[#allocation91_spill] sm:$0xff] %v16783_v0 }
 0x4fc   : >> { %v16780_v6 = vld [vmem:[#allocation2 + $0x5c] sm:$0xff]  ;;  %v4488_v52 = vpop.f32.mrf.mxu0  ;;  %4259 = vst [vmem:[#allocation2 + $0x80] sm:$0xff] %v4180_v59 }
 0x4fd   : >> { %18854 = vst [vmem:[#allocation90_spill] sm:$0xff] %v16780_v6  ;;  %4562 = vst [vmem:[#allocation2 + $0x58] sm:$0xff] %v16721_v47  ;;  %v13048_v45 = vpop.f32.mrf.mxu1  ;;  %v16785_v41 = vld [vmem:[#allocation2 + $0x74] sm:$0xff]  ;;  %v16791_v6 = vld [vmem:[#allocation2 + $0xab] sm:$0xff] }
 0x4fe   : >> { %v13096_v43 = vpop.f32.mrf.mxu0  ;;  %4262 = vst [vmem:[#allocation2 + $0x98] sm:$0xff] %v13048_v45  ;;  %18856 = vst [vmem:[#allocation92_spill] sm:$0xff] %v16785_v41  ;;  %v16793_v47 = vld [vmem:[#allocation2 + $0xb3] sm:$0xff]  ;;  %v16799_v45 = vld [vmem:[#allocation2 + $0xa3] sm:$0xff] }
 0x4ff   : >> { %v16787_v11 = vld [vmem:[#allocation2 + $0x64] sm:$0xff]  ;;  %v16789_v4 = vld [vmem:[#allocation2 + $0x6c] sm:$0xff]  ;;  %v4183_v22 = vpop.f32.mrf.mxu1  ;;  %18858 = vst [vmem:[#allocation94_spill] sm:$0xff] %v16791_v6  ;;  %18859 = vst [vmem:[#allocation95_spill] sm:$0xff] %v16793_v47 }
 0x500   : >> { %18857 = vst [vmem:[#allocation93_spill] sm:$0xff] %v16787_v11  ;;  %v4491_v62 = vpop.f32.mrf.mxu0  ;;  %4563 = vst [vmem:[#allocation2 + $0x60] sm:$0xff] %v4472_v26 }
 0x501   : >> { %4565 = vst [vmem:[#allocation2 + $0x70] sm:$0xff] %v13091_v17  ;;  %4564 = vst [vmem:[#allocation2 + $0x68] sm:$0xff] %v4475_v33  ;;  %v13051_v59 = vpop.f32.mrf.mxu1  ;;  %13338 = vmatmul.mubr.bf16.gmra.mxu1 %v16110_v54  ;;  %13386 = vmatmul.mubr.bf16.gmra.mxu0 %v16110_v54  ;;  %v16803_v33 = vld [vmem:[#allocation2 + $0xbb] sm:$0xff] }
 0x502   : >> { %4260 = vst [vmem:[#allocation2 + $0x88] sm:$0xff] %v4183_v22  ;;  %v13099_v0 = vpop.f32.mrf.mxu0  ;;  %4265 = vst [vmem:[#allocation2 + $0xb0] sm:$0xff] %v13051_v59  ;;  %13341 = vmatprep.mubr.bf16.mxu1 %v16116_v19  ;;  %13389 = vmatprep.mubr.bf16.mxu0 %v16116_v19 }
 0x503   : >> { %18860 = vst [vmem:[#allocation96_spill] sm:$0xff] %v16799_v45  ;;  %v16801_v17 = vld [vmem:[#allocation2 + $0x7c] sm:$0xff]  ;;  %v4196_v22 = vpop.f32.mrf.mxu1  ;;  %18861 = vst [vmem:[#allocation97_spill] sm:$0xff] %v16803_v33 }
 0x504   : >> { %v4504_v26 = vpop.f32.mrf.mxu0  ;;  %4566 = vst [vmem:[#allocation2 + $0x78] sm:$0xff] %v13092_v21  ;;  %4263 = vst [vmem:[#allocation2 + $0xa0] sm:$0xff] %v4196_v22 }
 0x505   : >> { %v13052_v47 = vpop.f32.mrf.mxu1  ;;  %v16805_v59 = vld [vmem:[#allocation2 + $0x94] sm:$0xff] }
 0x506   : >> { %v13100_v6 = vpop.f32.mrf.mxu0  ;;  %4266 = vst [vmem:[#allocation2 + $0xb8] sm:$0xff] %v13052_v47  ;;  %18862 = vst [vmem:[#allocation98_spill] sm:$0xff] %v16805_v59  ;;  %v16815_v47 = vld [vmem:[#allocation2 + $0xc3] sm:$0xf] }
 0x507   : >> { %v4199_v41 = vpop.f32.mrf.mxu1  ;;  %18863 = vst [vmem:[#allocation99_spill] sm:$0xff] %v16815_v47 }
 0x508   : >> { %v4507_v54 = vpop.f32.mrf.mxu0  ;;  %4264 = vst [vmem:[#allocation2 + $0xa8] sm:$0xff] %v4199_v41 }
 0x509   : >> { %v16807_v11 = vld [vmem:[#allocation2 + $0x84] sm:$0xff]  ;;  %v16809_v19 = vld [vmem:[#allocation2 + $0x8c] sm:$0xff]  ;;  %v13055_v45 = vpop.f32.mrf.mxu1  ;;  %13342 = vmatmul.mubr.bf16.gmra.mxu1 %v16122_v34  ;;  %13390 = vmatmul.mubr.bf16.gmra.mxu0 %v16122_v34 }
 0x50a   : >> { %4567 = vst [vmem:[#allocation2 + $0x80] sm:$0xff] %v4488_v52  ;;  %4569 = vst [vmem:[#allocation2 + $0x90] sm:$0xff] %v13095_v16  ;;  %v13103_v21 = vpop.f32.mrf.mxu0  ;;  %13345 = vmatprep.mubr.bf16.mxu1 %v16128_v2  ;;  %13393 = vmatprep.mubr.bf16.mxu0 %v16128_v2 }
 0x50b   : >> { %4568 = vst [vmem:[#allocation2 + $0x88] sm:$0xff] %v4491_v62  ;;  %4577 = vst [vmem:[#allocation2 + $0xd0] sm:$0xff] %v13103_v21  ;;  %v16817_v22 = vld [vmem:[#allocation2 + $0x9c] sm:$0xff]  ;;  %v4212_v33 = vpop.f32.mrf.mxu1 }
 0x50c   : >> { %18864 = vst [vmem:[#allocation100_spill] sm:$0xff] %v16817_v22  ;;  %v4520_v41 = vpop.f32.mrf.mxu0  ;;  %4570 = vst [vmem:[#allocation2 + $0x98] sm:$0xff] %v13096_v43 }
 0x50d   : >> { %4267 = vst [vmem:[#allocation2 + $0xc0] sm:$0xff] %v4212_v33  ;;  %v13056_v52 = vpop.f32.mrf.mxu1  ;;  %v16819_v62 = vld [vmem:[#allocation2 + $0xb4] sm:$0xff] }
 0x50e   : >> { %v13104_v16 = vpop.f32.mrf.mxu0 }
 0x50f   : >> { %v16821_v45 = vld [vmem:[#allocation2 + $0xa4] sm:$0xff]  ;;  %v16823_v34 = vld [vmem:[#allocation2 + $0xac] sm:$0xff]  ;;  %v4215_v21 = vpop.f32.mrf.mxu1 }
 0x510   : >> { %v4523_v59 = vpop.f32.mrf.mxu0  ;;  %4571 = vst [vmem:[#allocation2 + $0xa0] sm:$0xff] %v4504_v26  ;;  %4573 = vst [vmem:[#allocation2 + $0xb0] sm:$0xff] %v13099_v0  ;;  %v4583_v21 = vld [vmem:[#allocation2 + $0xe] sm:$0xff] }
 0x511   : >> { %4572 = vst [vmem:[#allocation2 + $0xa8] sm:$0xff] %v4507_v54  ;;  %4576 = vst [vmem:[#allocation2 + $0xc8] sm:$0xff] %v4523_v59  ;;  %v13059_v47 = vpop.f32.mrf.mxu1  ;;  %13346 = vmatmul.mubr.bf16.gmra.mxu1 %v16134_v20  ;;  %13394 = vmatmul.mubr.bf16.gmra.mxu0 %v16134_v20 }
 0x512   : >> { %v13107_v22 = vpop.f32.mrf.mxu0  ;;  %13413 = vmatprep.mubr.bf16.mxu1 %v15985_v23  ;;  %13461 = vmatprep.mubr.bf16.mxu0 %v15985_v23  ;;  %v14367_v47 = vld [vmem:[%s18726_s4 + $0x3b0] sm:$0xff]  }
 0x513   : >> { %v4228_v52 = vpop.f32.mrf.mxu1  ;;  %v14368_v22 = vld [vmem:[%s18726_s4 + $0x3f0] sm:$0xff]  }
 0x514   : >> { %v16829_v43 = vld [vmem:[#allocation2 + $0xbc] sm:$0xff]  ;;  %v16831_v33 = vld [vmem:[#allocation2 + $0xc4] sm:$0xf]  ;;  %v4536_v16 = vpop.f32.mrf.mxu0 }
 0x515   : >> { %18865 = vst [vmem:[#allocation101_spill] sm:$0xff] %v16829_v43  ;;  %18866 = vst [vmem:[#allocation102_spill] sm:$0xff] %v16831_v33  ;;  %v13060_v54 = vpop.f32.mrf.mxu1  ;;  %v16839_v43 = vld [vmem:[#allocation2 + $0x16] sm:$0xff]  ;;  %v14369_v16 = vld [vmem:[%s18726_s4 + $0x3a8] sm:$0xff]  }
 0x516   : >> { %4574 = vst [vmem:[#allocation2 + $0xb8] sm:$0xff] %v13100_v6  ;;  %4575 = vst [vmem:[#allocation2 + $0xc0] sm:$0xff] %v4520_v41  ;;  %v13108_v0 = vpop.f32.mrf.mxu0  ;;  %v16855_v54 = vld [vmem:[#allocation2 + $0x1e] sm:$0xff] }
 0x517   : >> { %v4231_v26 = vpop.f32.mrf.mxu1  ;;  %18867 = vst [vmem:[#allocation103_spill] sm:$0xff] %v16839_v43 }
 0x518   : >> { %v4539_v59 = vpop.f32.mrf.mxu0 }
 0x519   : >> { %v13127_v33 = vpop.f32.mrf.mxu1  ;;  %13414 = vmatmul.mubr.bf16.vlgmr.msra.gmra.mxu1 %v15991_v31  ;;  %13462 = vmatmul.mubr.bf16.vlgmr.msra.gmra.mxu0 %v15991_v31 }
 0x51a   : >> { %v16841_v52 = vpop.f32.mrf.mxu0  ;;  %4861 = vst [vmem:[#allocation2 + $0x10] sm:$0xff] %v13127_v33  ;;  %13417 = vmatprep.mubr.bf16.mxu1 %v16013_v1  ;;  %13465 = vmatprep.mubr.bf16.mxu0 %v16013_v1  ;;  %v14370_v33 = vld [vmem:[%s18726_s4 + $0x3e8] sm:$0xff]  }
 0x51b   : >> { %v4732_v6 = vpop.f32.mrf.mxu1  ;;  %13494 = vmatpush3.bf16.msra.mxu1 %v16752_v60  ;;  %13542 = vmatpush3.bf16.msra.mxu0 %v16757_v55  ;;  %v3376_v60 = vadd.f32 %v16446_v35, %v16278_v28  ;;  %v16870_v28 = vld [vmem:[#allocation2 + $0x36] sm:$0xff] }
 0x51c   : >> { %v5040_v41 = vpop.f32.mrf.mxu0  ;;  %13495 = vmatprep.subr.bf16.mxu1 %v14367_v47  ;;  %13543 = vmatprep.subr.bf16.mxu0 %v14368_v22  ;;  %v14371_v6 = vld [vmem:[%s18726_s4 + $0x3a0] sm:$0xff]   ;;  %18869 = vst [vmem:[#allocation105_spill] sm:$0xff] %v16870_v28  ;;  %v3379_v28 = vadd.f32 %v16290_v63, %v16454_v27  ;;  %v14376_v63 = vld [vmem:[%s18726_s4 + $0x3d0] sm:$0xff]  }
 0x51d   : >> { %v13128_v0 = vpop.f32.mrf.mxu1  ;;  %v14372_v41 = vld [vmem:[%s18726_s4 + $0x3e0] sm:$0xff]  }
 0x51e   : >> { %v16857_v26 = vpop.f32.mrf.mxu0  ;;  %4862 = vst [vmem:[#allocation2 + $0x18] sm:$0xff] %v13128_v0  ;;  %v3684_v0 = vadd.f32 %v16488_v50, %v3376_v60  ;;  %v16881_v60 = vld [vmem:[#allocation2 + $0x26] sm:$0xff]  ;;  %v3687_v27 = vadd.f32 %v16510_v10, %v3379_v28 }
 0x51f   : >> { %18868 = vst [vmem:[#allocation104_spill] sm:$0xff] %v16857_v26  ;;  %v4735_v55 = vpop.f32.mrf.mxu1  ;;  %13496 = vmatpush3.bf16.msra.mxu1 %v14367_v47  ;;  %13544 = vmatpush3.bf16.msra.mxu0 %v14368_v22  ;;  %v16868_v26 = vld [vmem:[#allocation2 + $0x2e] sm:$0xff]  ;;  %v3378_v22 = vadd.f32 %v16270_v49, %v16438_v30  ;;  %v14374_v49 = vld [vmem:[%s18726_s4 + $0x3d8] sm:$0xff]  }
 0x520   : >> { %v5043_v59 = vpop.f32.mrf.mxu0  ;;  %4860 = vst [vmem:[#allocation2 + $0x8] sm:$0xff] %v4735_v55  ;;  %13497 = vmatprep.subr.bf16.mxu1 %v14369_v16  ;;  %13545 = vmatprep.subr.bf16.mxu0 %v14370_v33  ;;  %v3992_v50 = vadd.f32 %v16647_v53, %v3684_v0  ;;  %v3380_v0 = vadd.f32 %v16474_v29, %v16300_v9  ;;  %v14375_v29 = vld [vmem:[%s18726_s4 + $0x390] sm:$0xff]  }
 0x521   : >> { %v13131_v35 = vpop.f32.mrf.mxu1  ;;  %13418 = vmatmul.mubr.bf16.gmra.mxu1 %v16031_v25  ;;  %13466 = vmatmul.mubr.bf16.gmra.mxu0 %v16031_v25  ;;  %v3686_v30 = vadd.f32 %v16486_v61, %v3378_v22 }
 0x522   : >> { %v16872_v47 = vpop.f32.mrf.mxu0  ;;  %4865 = vst [vmem:[#allocation2 + $0x30] sm:$0xff] %v13131_v35  ;;  %13421 = vmatprep.mubr.bf16.mxu1 %v16049_v57  ;;  %13469 = vmatprep.mubr.bf16.mxu0 %v16049_v57  ;;  %v14373_v35 = vld [vmem:[%s18726_s4 + $0x398] sm:$0xff]   ;;  %v4300_v53 = vadd.f32 %v16689_v36, %v3992_v50  ;;  %v3688_v9 = vadd.f32 %v16525_v3, %v3380_v0  ;;  %v16917_v3 = vld [vmem:[#allocation2 + $0x4e] sm:$0xff] }
 0x523   : >> { %v4748_v55 = vpop.f32.mrf.mxu1  ;;  %13498 = vmatpush3.bf16.msra.mxu1 %v14369_v16  ;;  %13546 = vmatpush3.bf16.msra.mxu0 %v14370_v33  ;;  %v16895_v16 = vld [vmem:[#allocation2 + $0x3e] sm:$0xff]  ;;  %v3994_v43 = vadd.f32 %v16641_v24, %v3686_v30 }
 0x524   : >> { %v16883_v59 = vpop.f32.mrf.mxu0  ;;  %4863 = vst [vmem:[#allocation2 + $0x20] sm:$0xff] %v4748_v55  ;;  %13499 = vmatprep.subr.bf16.mxu1 %v14371_v6  ;;  %13547 = vmatprep.subr.bf16.mxu0 %v14372_v41  ;;  %v4608_v57 = vadd.f32 %v4583_v21, %v4300_v53  ;;  %v3382_v21 = vadd.f32 %v16298_v15, %v16464_v39  ;;  %v18875_v53 = vld [vmem:[#allocation46_spill] sm:$0xff] }
 0x525   : >> { %v13132_v33 = vpop.f32.mrf.mxu1  ;;  %v4302_v24 = vadd.f32 %v16687_v44, %v3994_v43  ;;  %v3996_v10 = vadd.f32 %v16675_v48, %v3688_v9  ;;  %v3385_v39 = vadd.f32 %v16500_v13, %v16324_v5  ;;  %v16938_v44 = vld [vmem:[#allocation2 + $0x46] sm:$0xff] }
 0x526   : >> { %v16897_v55 = vpop.f32.mrf.mxu0  ;;  %4866 = vst [vmem:[#allocation2 + $0x38] sm:$0xff] %v13132_v33  ;;  %v16959_v33 = vld [vmem:[#allocation2 + $0x5e] sm:$0xff] }
 0x527   : >> { %v4891_v25 = vld [vmem:[#allocation2 + $0xf] sm:$0xff]  ;;  %v4751_v1 = vpop.f32.mrf.mxu1  ;;  %13500 = vmatpush3.bf16.msra.mxu1 %v14371_v6  ;;  %13548 = vmatpush3.bf16.msra.mxu0 %v14372_v41  ;;  %v4304_v5 = vadd.f32 %v16725_v56, %v3996_v10  ;;  %v3693_v0 = vadd.f32 %v18875_v53, %v3385_v39 }
 0x528   : >> { %v16902_v61 = vpop.f32.mrf.mxu0  ;;  %4864 = vst [vmem:[#allocation2 + $0x28] sm:$0xff] %v4751_v1  ;;  %13501 = vmatprep.subr.bf16.mxu1 %v14373_v35  ;;  %13549 = vmatprep.subr.bf16.mxu0 %v14374_v49  ;;  %v4916_v36 = vadd.f32 %v4891_v25, %v4608_v57  ;;  %v3383_v1 = vadd.f32 %v16306_v51, %v16482_v37  ;;  %v16919_v6 = vld [vmem:[#allocation2 + $0x56] sm:$0xff]  ;;  %v18876_v56 = vld [vmem:[#allocation72_spill] sm:$0xff] }
 0x529   : >> { %v13135_v41 = vpop.f32.mrf.mxu1  ;;  %13422 = vmatmul.mubr.bf16.gmra.mxu1 %v16072_v38  ;;  %13470 = vmatmul.mubr.bf16.gmra.mxu0 %v16072_v38  ;;  %v3995_v25 = vadd.f32 %v16657_v58, %v3687_v27  ;;  %v4610_v57 = vadd.f32 %v16855_v54, %v4302_v24  ;;  %v3386_v51 = vadd.f32 %v16310_v32, %v16498_v18  ;;  %v14377_v18 = vld [vmem:[%s18726_s4 + $0x388] sm:$0xff]  }
 0x52a   : >> { %v16921_v22 = vpop.f32.mrf.mxu0  ;;  %4869 = vst [vmem:[#allocation2 + $0x50] sm:$0xff] %v13135_v41  ;;  %13425 = vmatprep.mubr.bf16.mxu1 %v16080_v7  ;;  %13473 = vmatprep.mubr.bf16.mxu0 %v16080_v7  ;;  %v16931_v15 = vadd.f32 %v16841_v52, %v4916_v36  ;;  %v3690_v37 = vadd.f32 %v16523_v12, %v3382_v21  ;;  %v14378_v32 = vld [vmem:[%s18726_s4 + $0x3c8] sm:$0xff]   ;;  %v18871_v52 = vld [vmem:[#allocation37_spill] sm:$0xff]  ;;  %v18877_v36 = vld [vmem:[#allocation42_spill] sm:$0xff] }
 0x52b   : >> { %v4893_v48 = vld [vmem:[#allocation2 + $0x1f] sm:$0xff]  ;;  %v4764_v43 = vpop.f32.mrf.mxu1  ;;  %13502 = vmatpush3.bf16.msra.mxu1 %v14373_v35  ;;  %13550 = vmatpush3.bf16.msra.mxu0 %v14374_v49  ;;  %v4303_v13 = vadd.f32 %v16711_v42, %v3995_v25  ;;  %v3384_v58 = vadd.f32 %v16508_v8, %v16316_v40  ;;  %v18872_v54 = vld [vmem:[#allocation20_spill] sm:$0xff]  ;;  %v18874_v49 = vld [vmem:[#allocation21_spill] sm:$0xff]  ;;  %v4612_v24 = vadd.f32 %v16868_v26, %v4304_v5 }
 0x52c   : >> { %18870 = vst [vmem:[#allocation106_spill] sm:$0xff] %v16931_v15  ;;  %v16940_v28 = vpop.f32.mrf.mxu0  ;;  %4867 = vst [vmem:[#allocation2 + $0x40] sm:$0xff] %v4764_v43  ;;  %13503 = vmatprep.subr.bf16.mxu1 %v14375_v29  ;;  %13551 = vmatprep.subr.bf16.mxu0 %v14376_v63  ;;  %v4918_v12 = vadd.f32 %v4893_v48, %v4610_v57  ;;  %v3387_v50 = vadd.f32 %v18872_v54, %v18871_v52  ;;  %v18873_v35 = vld [vmem:[#allocation39_spill] sm:$0xff]  ;;  %v18878_v41 = vld [vmem:[#allocation45_spill] sm:$0xff] }
 0x52d   : >> { %v16956_v30 = vadd.f32 %v18874_v49, %v18873_v35  ;;  %v13136_v9 = vpop.f32.mrf.mxu1  ;;  %v3998_v42 = vadd.f32 %v18876_v56, %v3690_v37  ;;  %v4611_v40 = vadd.f32 %v16881_v60, %v4303_v13  ;;  %v3691_v21 = vadd.f32 %v18877_v36, %v3383_v1  ;;  %v18879_v25 = vld [vmem:[#allocation75_spill] sm:$0xff]  ;;  %v18881_v13 = vld [vmem:[#allocation77_spill] sm:$0xff]  ;;  %v18884_v56 = vld [vmem:[#allocation10_spill] sm:$0xff] }
 0x52e   : >> { %v16961_v27 = vpop.f32.mrf.mxu0  ;;  %4870 = vst [vmem:[#allocation2 + $0x58] sm:$0xff] %v13136_v9  ;;  %v16967_v8 = vadd.f32 %v16883_v59, %v4918_v12  ;;  %v3692_v10 = vadd.f32 %v18878_v41, %v3384_v58  ;;  %v4001_v57 = vadd.f32 %v18879_v25, %v3693_v0  ;;  %v18880_v37 = vld [vmem:[#allocation79_spill] sm:$0xff]  ;;  %v18882_v58 = vld [vmem:[#allocation73_spill] sm:$0xff] }
 0x52f   : >> { %v4894_v39 = vld [vmem:[#allocation2 + $0x27] sm:$0xff]  ;;  %v4895_v48 = vld [vmem:[#allocation2 + $0x2f] sm:$0xff]  ;;  %v4767_v43 = vpop.f32.mrf.mxu1  ;;  %13504 = vmatpush3.bf16.msra.mxu1 %v14375_v29  ;;  %13552 = vmatpush3.bf16.msra.mxu0 %v14376_v63  ;;  %v4306_v26 = vadd.f32 %v18880_v37, %v3998_v42  ;;  %v3999_v29 = vadd.f32 %v18882_v58, %v3691_v21  ;;  %v17019_v37 = vld [vmem:[%s18726_s4 + $0x478] sm:$0xff]  }
 0x530   : >> { %v16972_v52 = vpop.f32.mrf.mxu0  ;;  %4868 = vst [vmem:[#allocation2 + $0x48] sm:$0xff] %v4767_v43  ;;  %13505 = vmatprep.subr.bf16.mxu1 %v14377_v18  ;;  %13553 = vmatprep.subr.bf16.mxu0 %v14378_v32  ;;  %v14379_v60 = vld [vmem:[%s18726_s4 + $0x380] sm:$0xff]   ;;  %v4920_v1 = vadd.f32 %v4895_v48, %v4612_v24  ;;  %v4919_v5 = vadd.f32 %v4894_v39, %v4611_v40  ;;  %v16984_v54 = vld [vmem:[#allocation2 + $0x6e] sm:$0xff]  ;;  %v16986_v35 = vld [vmem:[#allocation2 + $0x76] sm:$0xff] }
 0x531   : >> { %v14380_v59 = vld [vmem:[%s18726_s4 + $0x3c0] sm:$0xff]   ;;  %v4000_v12 = vadd.f32 %v18881_v13, %v3692_v10  ;;  %v4309_v63 = vadd.f32 %v16765_v46, %v4001_v57  ;;  %v13139_v49 = vpop.f32.mrf.mxu1  ;;  %v18883_v0 = vld [vmem:[#allocation9_spill] sm:$0xff]  ;;  %v4614_v9 = vadd.f32 %v16895_v16, %v4306_v26  ;;  %v18885_v24 = vld [vmem:[#allocation24_spill] sm:$0xff] }
 0x532   : >> { %v16988_v53 = vpop.f32.mrf.mxu0  ;;  %13426 = vmatmul.mubr.bf16.gmra.mxu1 %v18883_v0  ;;  %13474 = vmatmul.mubr.bf16.gmra.mxu0 %v18883_v0  ;;  %4873 = vst [vmem:[#allocation2 + $0x70] sm:$0xff] %v13139_v49  ;;  %v16996_v46 = vadd.f32 %v16872_v47, %v4920_v1  ;;  %v16999_v42 = vadd.f32 %v16902_v61, %v4919_v5  ;;  %v18886_v40 = vld [vmem:[#allocation40_spill] sm:$0xff]  ;;  %v18893_v13 = vld [vmem:[#allocation54_spill] sm:$0xff] }
 0x533   : >> { %13429 = vmatprep.mubr.bf16.mxu1 %v18884_v56  ;;  %13477 = vmatprep.mubr.bf16.mxu0 %v18884_v56  ;;  %v3389_v36 = vadd.f32 %v18886_v40, %v18885_v24  ;;  %v18887_v21 = vld [vmem:[#allocation44_spill] sm:$0xff]  ;;  %v4897_v16 = vld [vmem:[#allocation2 + $0x3f] sm:$0xff]  ;;  %v4780_v39 = vpop.f32.mrf.mxu1  ;;  %v4308_v47 = vadd.f32 %v16761_v14, %v4000_v12  ;;  %v4617_v61 = vadd.f32 %v16919_v6, %v4309_v63 }
 0x534   : >> { %v3694_v41 = vadd.f32 %v18887_v21, %v3386_v51  ;;  %v18888_v10 = vld [vmem:[#allocation84_spill] sm:$0xff]  ;;  %v17007_v48 = vpop.f32.mrf.mxu0  ;;  %13506 = vmatpush3.bf16.msra.mxu1 %v14377_v18  ;;  %13554 = vmatpush3.bf16.msra.mxu0 %v14378_v32  ;;  %v4922_v43 = vadd.f32 %v4897_v16, %v4614_v9  ;;  %v17014_v51 = vld [vmem:[%s18726_s4 + $0x438] sm:$0xff]   ;;  %v18890_v32 = vld [vmem:[#allocation41_spill] sm:$0xff] }
 0x535   : >> { %v4307_v25 = vadd.f32 %v18888_v10, %v3999_v29  ;;  %v17005_v57 = vld [vmem:[#allocation2 + $0x66] sm:$0xff]  ;;  %13507 = vmatprep.subr.bf16.mxu1 %v14379_v60  ;;  %13555 = vmatprep.subr.bf16.mxu0 %v14380_v59  ;;  %v18889_v18 = vld [vmem:[#allocation22_spill] sm:$0xff]  ;;  %v3697_v12 = vadd.f32 %v18893_v13, %v3389_v36  ;;  %v13140_v63 = vpop.f32.mrf.mxu1  ;;  %v4616_v24 = vadd.f32 %v16917_v3, %v4308_v47 }
 0x536   : >> { %4871 = vst [vmem:[#allocation2 + $0x60] sm:$0xff] %v4780_v39  ;;  %v3388_v26 = vadd.f32 %v18890_v32, %v18889_v18  ;;  %v18891_v14 = vld [vmem:[#allocation50_spill] sm:$0xff]  ;;  %v18892_v6 = vld [vmem:[#allocation76_spill] sm:$0xff]  ;;  %v17028_v49 = vpop.f32.mrf.mxu0  ;;  %v17033_v21 = vadd.f32 %v16940_v28, %v4922_v43 }
 0x537   : >> { %v3695_v1 = vadd.f32 %v18891_v14, %v3387_v50  ;;  %v4002_v5 = vadd.f32 %v18892_v6, %v3694_v41  ;;  %v17026_v58 = vld [vmem:[#allocation2 + $0x7e] sm:$0xff]  ;;  %v4615_v9 = vadd.f32 %v16938_v44, %v4307_v25  ;;  %v18894_v50 = vld [vmem:[#allocation53_spill] sm:$0xff]  ;;  %v4898_v18 = vld [vmem:[#allocation2 + $0x47] sm:$0xff]  ;;  %v4783_v14 = vpop.f32.mrf.mxu1 }
 0x538   : >> { %v4900_v29 = vld [vmem:[#allocation2 + $0x57] sm:$0xff]  ;;  %4874 = vst [vmem:[#allocation2 + $0x78] sm:$0xff] %v13140_v63  ;;  %v3696_v10 = vadd.f32 %v18894_v50, %v3388_v26  ;;  %v4899_v32 = vld [vmem:[#allocation2 + $0x4f] sm:$0xff]  ;;  %v17038_v6 = vpop.f32.mrf.mxu0  ;;  %13508 = vmatpush3.bf16.msra.mxu1 %v14379_v60  ;;  %13556 = vmatpush3.bf16.msra.mxu0 %v14380_v59  ;;  %4872 = vst [vmem:[#allocation2 + $0x68] sm:$0xff] %v4783_v14 }
 0x539   : >> { %v4925_v40 = vadd.f32 %v4900_v29, %v4617_v61  ;;  %v18895_v41 = vld [vmem:[#allocation81_spill] sm:$0xff]  ;;  %v18896_v36 = vld [vmem:[#allocation86_spill] sm:$0xff]  ;;  %v4923_v44 = vadd.f32 %v4898_v18, %v4615_v9  ;;  %v4924_v3 = vadd.f32 %v4899_v32, %v4616_v24  ;;  %13589 = vmatprep.subr.bf16.mxu1 %v17014_v51  ;;  %13637 = vmatprep.subr.bf16.mxu0 %v17019_v37  ;;  %v18898_v25 = vld [vmem:[#allocation83_spill] sm:$0xff]  ;;  %v13143_v59 = vpop.f32.mrf.mxu1 }
 0x53a   : >> { %v4005_v16 = vadd.f32 %v18895_v41, %v3697_v12  ;;  %v4310_v39 = vadd.f32 %v18896_v36, %v4002_v5  ;;  %v4004_v47 = vadd.f32 %v18898_v25, %v3696_v10  ;;  %v18899_v61 = vld [vmem:[#allocation78_spill] sm:$0xff]  ;;  %v17048_v5 = vld [vmem:[#allocation2 + $0x8e] sm:$0xff]  ;;  %v17052_v13 = vpop.f32.mrf.mxu0  ;;  %v18900_v12 = vld [vmem:[#allocation11_spill] sm:$0xff] }
 0x53b   : >> { %v17043_v28 = vadd.f32 %v16961_v27, %v4925_v40  ;;  %v4003_v43 = vadd.f32 %v18899_v61, %v3695_v1  ;;  %v17050_v60 = vld [vmem:[#allocation2 + $0x96] sm:$0xff]  ;;  %13430 = vmatmul.mubr.bf16.gmra.mxu1 %v18900_v12  ;;  %13478 = vmatmul.mubr.bf16.gmra.mxu0 %v18900_v12  ;;  %v18901_v29 = vld [vmem:[#allocation12_spill] sm:$0xff]  ;;  %v17063_v1 = vadd.f32 %v16972_v52, %v4923_v44  ;;  %v4796_v41 = vpop.f32.mrf.mxu1  ;;  %v18908_v14 = vld [vmem:[#allocation43_spill] sm:$0xff] }
 0x53c   : >> { %v4313_v26 = vadd.f32 %v16789_v4, %v4005_v16  ;;  %v4618_v27 = vadd.f32 %v16959_v33, %v4310_v39  ;;  %4877 = vst [vmem:[#allocation2 + $0x90] sm:$0xff] %v13143_v59  ;;  %13433 = vmatprep.mubr.bf16.mxu1 %v18901_v29  ;;  %13481 = vmatprep.mubr.bf16.mxu0 %v18901_v29  ;;  %v18903_v63 = vld [vmem:[#allocation28_spill] sm:$0xff]  ;;  %v17071_v16 = vpop.f32.mrf.mxu0  ;;  %v18906_v36 = vld [vmem:[#allocation90_spill] sm:$0xff]  ;;  %v18907_v18 = vld [vmem:[#allocation93_spill] sm:$0xff] }
 0x53d   : >> { %18897 = vst [vmem:[#allocation37_spill] sm:$0xff] %v17043_v28  ;;  %v17060_v4 = vadd.f32 %v16921_v22, %v4924_v3  ;;  %18902 = vst [vmem:[#allocation20_spill] sm:$0xff] %v17063_v1  ;;  %v18904_v9 = vld [vmem:[#allocation48_spill] sm:$0xff]  ;;  %v4901_v33 = vld [vmem:[#allocation2 + $0x5f] sm:$0xff]  ;;  %v4311_v39 = vadd.f32 %v18906_v36, %v4003_v43  ;;  %v4312_v22 = vadd.f32 %v18907_v18, %v4004_v47  ;;  %v13144_v43 = vpop.f32.mrf.mxu1 }
 0x53e   : >> { %v3393_v24 = vadd.f32 %v18904_v9, %v18903_v63  ;;  %v18905_v40 = vld [vmem:[#allocation52_spill] sm:$0xff]  ;;  %v4621_v32 = vadd.f32 %v16986_v35, %v4313_v26  ;;  %v4926_v52 = vadd.f32 %v4901_v33, %v4618_v27  ;;  %v18909_v44 = vld [vmem:[#allocation23_spill] sm:$0xff]  ;;  %v18910_v25 = vld [vmem:[#allocation26_spill] sm:$0xff]  ;;  %v17084_v36 = vpop.f32.mrf.mxu0 }
 0x53f   : >> { %v3698_v50 = vadd.f32 %v18905_v40, %v16956_v30  ;;  %v17069_v10 = vld [vmem:[#allocation2 + $0x86] sm:$0xff]  ;;  %v3391_v3 = vadd.f32 %v18909_v44, %v18908_v14  ;;  %v18911_v61 = vld [vmem:[#allocation49_spill] sm:$0xff]  ;;  %v18912_v59 = vld [vmem:[#allocation82_spill] sm:$0xff]  ;;  %v4619_v35 = vadd.f32 %v17005_v57, %v4311_v39  ;;  %v4620_v47 = vadd.f32 %v16984_v54, %v4312_v22  ;;  %v4799_v28 = vpop.f32.mrf.mxu1 }
 0x540   : >> { %4875 = vst [vmem:[#allocation2 + $0x80] sm:$0xff] %v4796_v41  ;;  %v3392_v30 = vadd.f32 %v18911_v61, %v18910_v25  ;;  %v18913_v9 = vld [vmem:[#allocation62_spill] sm:$0xff]  ;;  %v17089_v27 = vadd.f32 %v17007_v48, %v4926_v52  ;;  %v18915_v33 = vld [vmem:[#allocation47_spill] sm:$0xff]  ;;  %v18916_v41 = vld [vmem:[#allocation25_spill] sm:$0xff]  ;;  %v17096_v57 = vpop.f32.mrf.mxu0 }
 0x541   : >> { %v4006_v63 = vadd.f32 %v18912_v59, %v3698_v50  ;;  %v3701_v40 = vadd.f32 %v18913_v9, %v3393_v24  ;;  %v17082_v15 = vld [vmem:[#allocation2 + $0x9e] sm:$0xff]  ;;  %v3394_v50 = vadd.f32 %v18916_v41, %v18915_v33  ;;  %v18918_v14 = vld [vmem:[#allocation61_spill] sm:$0xff]  ;;  %v4902_v59 = vld [vmem:[#allocation2 + $0x67] sm:$0xff]  ;;  %4876 = vst [vmem:[#allocation2 + $0x88] sm:$0xff] %v4799_v28  ;;  %v13147_v41 = vpop.f32.mrf.mxu1 }
 0x542   : >> { %v4904_v1 = vld [vmem:[#allocation2 + $0x77] sm:$0xff]  ;;  %4878 = vst [vmem:[#allocation2 + $0x98] sm:$0xff] %v13144_v43  ;;  %18914 = vst [vmem:[#allocation39_spill] sm:$0xff] %v17089_v27  ;;  %v3700_v44 = vadd.f32 %v18918_v14, %v3392_v30  ;;  %v18919_v25 = vld [vmem:[#allocation87_spill] sm:$0xff]  ;;  %v4927_v39 = vadd.f32 %v4902_v59, %v4619_v35 }
 0x543   : >> { %v4929_v26 = vadd.f32 %v4904_v1, %v4621_v32  ;;  %v18917_v18 = vld [vmem:[#allocation58_spill] sm:$0xff]  ;;  %v4009_v61 = vadd.f32 %v18919_v25, %v3701_v40  ;;  %v4903_v9 = vld [vmem:[#allocation2 + $0x6f] sm:$0xff]  ;;  %v17125_v25 = vld [vmem:[#allocation2 + $0xa6] sm:$0xff] }
 0x544   : >> { %v3699_v24 = vadd.f32 %v18917_v18, %v3391_v3  ;;  %v18920_v54 = vld [vmem:[#allocation92_spill] sm:$0xff]  ;;  %v4928_v22 = vadd.f32 %v4903_v9, %v4620_v47  ;;  %v18922_v32 = vld [vmem:[#allocation89_spill] sm:$0xff]  ;;  %v17109_v18 = vpop.f32.mrf.mxu0  ;;  %v18925_v28 = vld [vmem:[#allocation14_spill] sm:$0xff]  ;;  %v17120_v35 = vadd.f32 %v17038_v6, %v4927_v39 }
 0x545   : >> { %v4314_v1 = vadd.f32 %v18920_v54, %v4006_v63  ;;  %v17100_v48 = vadd.f32 %v17028_v49, %v4929_v26  ;;  %v4008_v52 = vadd.f32 %v18922_v32, %v3700_v44  ;;  %v18923_v3 = vld [vmem:[#allocation85_spill] sm:$0xff]  ;;  %v4317_v30 = vadd.f32 %v16809_v19, %v4009_v61  ;;  %v18927_v47 = vld [vmem:[#allocation32_spill] sm:$0xff]  ;;  %v18930_v6 = vld [vmem:[#allocation51_spill] sm:$0xff] }
 0x546   : >> { %v4007_v43 = vadd.f32 %v18923_v3, %v3699_v24  ;;  %v17105_v40 = vld [vmem:[#allocation2 + $0xae] sm:$0xff]  ;;  %v17107_v33 = vld [vmem:[#allocation2 + $0xb6] sm:$0xff]  ;;  %v17117_v19 = vadd.f32 %v16988_v53, %v4928_v22  ;;  %18926 = vst [vmem:[#allocation46_spill] sm:$0xff] %v17120_v35  ;;  %v17127_v59 = vpop.f32.mrf.mxu0  ;;  %v18931_v39 = vld [vmem:[#allocation27_spill] sm:$0xff] }
 0x547   : >> { %18921 = vst [vmem:[#allocation21_spill] sm:$0xff] %v17100_v48  ;;  %v18924_v63 = vld [vmem:[#allocation13_spill] sm:$0xff]  ;;  %v4622_v49 = vadd.f32 %v17026_v58, %v4314_v1  ;;  %4881 = vst [vmem:[#allocation2 + $0xb0] sm:$0xff] %v13147_v41  ;;  %v18928_v26 = vld [vmem:[#allocation56_spill] sm:$0xff]  ;;  %v4812_v58 = vpop.f32.mrf.mxu1  ;;  %v4316_v54 = vadd.f32 %v16807_v11, %v4008_v52  ;;  %v4625_v53 = vadd.f32 %v17050_v60, %v4317_v30 }
 0x548   : >> { %13434 = vmatmul.mubr.bf16.gmra.mxu1 %v18924_v63  ;;  %13482 = vmatmul.mubr.bf16.gmra.mxu0 %v18924_v63  ;;  %v3397_v24 = vadd.f32 %v18928_v26, %v18927_v47  ;;  %v18929_v14 = vld [vmem:[#allocation60_spill] sm:$0xff]  ;;  %v4905_v61 = vld [vmem:[#allocation2 + $0x7f] sm:$0xff]  ;;  %v4315_v9 = vadd.f32 %v16801_v17, %v4007_v43  ;;  %4879 = vst [vmem:[#allocation2 + $0xa0] sm:$0xff] %v4812_v58  ;;  %v18933_v3 = vld [vmem:[#allocation57_spill] sm:$0xff]  ;;  %v13196_v43 = vpop.f32.mrf.mxu0 }
 0x549   : >> { %13437 = vmatprep.mubr.bf16.mxu1 %v18925_v28  ;;  %13485 = vmatprep.mubr.bf16.mxu0 %v18925_v28  ;;  %v3702_v44 = vadd.f32 %v18929_v14, %v3394_v50  ;;  %v4930_v1 = vadd.f32 %v4905_v61, %v4622_v49  ;;  %v3395_v22 = vadd.f32 %v18931_v39, %v18930_v6  ;;  %v18932_v32 = vld [vmem:[#allocation30_spill] sm:$0xff]  ;;  %v18934_v41 = vld [vmem:[#allocation88_spill] sm:$0xff]  ;;  %v18935_v26 = vld [vmem:[#allocation67_spill] sm:$0xff]  ;;  %v13148_v17 = vpop.f32.mrf.mxu1 }
 0x54a   : >> { %v3396_v50 = vadd.f32 %v18933_v3, %v18932_v32  ;;  %v3705_v14 = vadd.f32 %v18935_v26, %v3397_v24  ;;  %v17138_v35 = vld [vmem:[#allocation2 + $0xbe] sm:$0xff]  ;;  %v4623_v11 = vadd.f32 %v17069_v10, %v4315_v9  ;;  %v4624_v60 = vadd.f32 %v17048_v5, %v4316_v54  ;;  %v18938_v61 = vld [vmem:[#allocation29_spill] sm:$0xff]  ;;  %v5123_v10 = vpop.f32.mrf.mxu0 }
 0x54b   : >> { %v4010_v47 = vadd.f32 %v18934_v41, %v3702_v44  ;;  %v4908_v48 = vld [vmem:[#allocation2 + $0x97] sm:$0xff]  ;;  %4882 = vst [vmem:[#allocation2 + $0xb8] sm:$0xff] %v13148_v17  ;;  %v17143_v30 = vadd.f32 %v17071_v16, %v4930_v1  ;;  %v18937_v49 = vld [vmem:[#allocation55_spill] sm:$0xff]  ;;  %v18939_v44 = vld [vmem:[#allocation64_spill] sm:$0xff]  ;;  %v4815_v27 = vpop.f32.mrf.mxu1 }
 0x54c   : >> { %v4933_v52 = vadd.f32 %v4908_v48, %v4625_v53  ;;  %v3398_v58 = vadd.f32 %v18938_v61, %v18937_v49  ;;  %v3703_v6 = vadd.f32 %v18939_v44, %v3395_v22  ;;  %v18940_v24 = vld [vmem:[#allocation66_spill] sm:$0xff]  ;;  %v4906_v41 = vld [vmem:[#allocation2 + $0x87] sm:$0xff]  ;;  %v4907_v26 = vld [vmem:[#allocation2 + $0x8f] sm:$0xff]  ;;  %4880 = vst [vmem:[#allocation2 + $0xa8] sm:$0xff] %v4815_v27  ;;  %v17159_v61 = vpop.f32.mrf.mxu0 }
 0x54d   : >> { %18936 = vst [vmem:[#allocation72_spill] sm:$0xff] %v17143_v30  ;;  %v3704_v39 = vadd.f32 %v18940_v24, %v3396_v50  ;;  %v18941_v32 = vld [vmem:[#allocation94_spill] sm:$0xff]  ;;  %v4931_v48 = vadd.f32 %v4906_v41, %v4623_v11  ;;  %v4932_v54 = vadd.f32 %v4907_v26, %v4624_v60  ;;  %v18944_v53 = vld [vmem:[#allocation96_spill] sm:$0xff]  ;;  %v18945_v17 = vld [vmem:[#allocation91_spill] sm:$0xff] }
 0x54e   : >> { %v4013_v3 = vadd.f32 %v18941_v32, %v3705_v14  ;;  %v18942_v9 = vld [vmem:[#allocation98_spill] sm:$0xff]  ;;  %v17152_v16 = vadd.f32 %v17084_v36, %v4933_v52  ;;  %v4011_v22 = vadd.f32 %v18945_v17, %v3703_v6  ;;  %v17157_v49 = vld [vmem:[#allocation2 + $0xce] sm:$0xf]  ;;  %v13151_v14 = vpop.f32.mrf.mxu1  ;;  %v18946_v44 = vld [vmem:[#allocation15_spill] sm:$0xff]  ;;  %v5136_v24 = vpop.f32.mrf.mxu0 }
 0x54f   : >> { %v4318_v5 = vadd.f32 %v18942_v9, %v4010_v47  ;;  %v4012_v1 = vadd.f32 %v18944_v53, %v3704_v39  ;;  %4885 = vst [vmem:[#allocation2 + $0xd0] sm:$0xff] %v13151_v14  ;;  %v17167_v36 = vadd.f32 %v17096_v57, %v4931_v48  ;;  %v18949_v47 = vld [vmem:[#allocation65_spill] sm:$0xff]  ;;  %v4606_v60 = vld [vmem:[#allocation2 + $0xc6] sm:$0xff] }
 0x550   : >> { %18943 = vst [vmem:[#allocation42_spill] sm:$0xff] %v17152_v16  ;;  %v4321_v50 = vadd.f32 %v16823_v34, %v4013_v3  ;;  %13438 = vmatmul.mubr.bf16.gmra.mxu1 %v18946_v44  ;;  %13486 = vmatmul.mubr.bf16.gmra.mxu0 %v18946_v44  ;;  %v17170_v34 = vadd.f32 %v17052_v13, %v4932_v54  ;;  %v4909_v52 = vld [vmem:[#allocation2 + $0x9f] sm:$0xff]  ;;  %v4828_v6 = vpop.f32.mrf.mxu1  ;;  %v18950_v39 = vld [vmem:[#allocation100_spill] sm:$0xff] }
 0x551   : >> { %v4626_v27 = vadd.f32 %v17082_v15, %v4318_v5  ;;  %13441 = vmatprep.mubr.bf16.mxu1 %v16128_v2  ;;  %13489 = vmatprep.mubr.bf16.mxu0 %v16128_v2  ;;  %18947 = vst [vmem:[#allocation45_spill] sm:$0xff] %v17167_v36  ;;  %v3706_v11 = vadd.f32 %v18949_v47, %v3398_v58  ;;  %4883 = vst [vmem:[#allocation2 + $0xc0] sm:$0xff] %v4828_v6  ;;  %v18951_v26 = vld [vmem:[#allocation59_spill] sm:$0xff]  ;;  %v13200_v58 = vpop.f32.mrf.mxu0 }
 0x552   : >> { %18948 = vst [vmem:[#allocation75_spill] sm:$0xff] %v17170_v34  ;;  %v4319_v32 = vadd.f32 %v18950_v39, %v4011_v22  ;;  %v4320_v15 = vadd.f32 %v16821_v45, %v4012_v1  ;;  %v4629_v3 = vadd.f32 %v17107_v33, %v4321_v50  ;;  %v18952_v57 = vld [vmem:[#allocation31_spill] sm:$0xff]  ;;  %v4912_v48 = vld [vmem:[#allocation2 + $0xb7] sm:$0xff]  ;;  %v13152_v54 = vpop.f32.mrf.mxu1  ;;  %v18955_v45 = vld [vmem:[#allocation68_spill] sm:$0xff] }
 0x553   : >> { %v4934_v41 = vadd.f32 %v4909_v52, %v4626_v27  ;;  %v3399_v9 = vadd.f32 %v18952_v57, %v18951_v26  ;;  %v18953_v5 = vld [vmem:[#allocation95_spill] sm:$0xff]  ;;  %v4911_v50 = vld [vmem:[#allocation2 + $0xaf] sm:$0xff]  ;;  %v5139_v47 = vpop.f32.mrf.mxu0 }
 0x554   : >> { %v4014_v13 = vadd.f32 %v18953_v5, %v3706_v11  ;;  %v4627_v53 = vadd.f32 %v17125_v25, %v4319_v32  ;;  %v4628_v17 = vadd.f32 %v17105_v40, %v4320_v15  ;;  %v4937_v14 = vadd.f32 %v4912_v48, %v4629_v3  ;;  %v4910_v1 = vld [vmem:[#allocation2 + $0xa7] sm:$0xff]  ;;  %v4831_v27 = vpop.f32.mrf.mxu1  ;;  %v18957_v25 = vld [vmem:[#allocation97_spill] sm:$0xff] }
 0x555   : >> { %v17182_v22 = vadd.f32 %v17127_v59, %v4934_v41  ;;  %v3707_v33 = vadd.f32 %v18955_v45, %v3399_v9  ;;  %4884 = vst [vmem:[#allocation2 + $0xc8] sm:$0xff] %v4831_v27  ;;  %v13203_v15 = vpop.f32.mrf.mxu0  ;;  %v18960_v57 = vld [vmem:[#allocation33_spill] sm:$0xff]  ;;  %v18961_v9 = vld [vmem:[#allocation63_spill] sm:$0xff] }
 0x556   : >> { %v4322_v52 = vadd.f32 %v16819_v62, %v4014_v13  ;;  %v4935_v11 = vadd.f32 %v4910_v1, %v4627_v53  ;;  %v4936_v6 = vadd.f32 %v4911_v50, %v4628_v17  ;;  %v17186_v39 = vadd.f32 %v13196_v43, %v4937_v14  ;;  %v13155_v40 = vpop.f32.mrf.mxu1  ;;  %v18962_v13 = vld [vmem:[#allocation101_spill] sm:$0xff] }
 0x557   : >> { %18954 = vst [vmem:[#allocation79_spill] sm:$0xff] %v17182_v22  ;;  %v4015_v32 = vadd.f32 %v18957_v25, %v3707_v33  ;;  %v5152_v26 = vpop.f32.mrf.mxu0  ;;  %v3400_v5 = vadd.f32 %v18961_v9, %v18960_v57  ;;  %v18963_v17 = vld [vmem:[#allocation69_spill] sm:$0xff] }
 0x558   : >> { %18956 = vst [vmem:[#allocation77_spill] sm:$0xff] %v17186_v39  ;;  %13442 = vmatmul.mubr.bf16.gmra.mxu1 %v16134_v20  ;;  %13490 = vmatmul.mubr.bf16.gmra.mxu0 %v16134_v20  ;;  %v4630_v59 = vadd.f32 %v17138_v35, %v4322_v52  ;;  %v17195_v62 = vadd.f32 %v17109_v18, %v4936_v6  ;;  %v4913_v43 = vld [vmem:[#allocation2 + $0xbf] sm:$0xff]  ;;  %v4844_v41 = vpop.f32.mrf.mxu1  ;;  %v14383_v27 = vld [vmem:[%s18726_s4 + $0x430] sm:$0xff]   ;;  %v14386_v26 = vld [vmem:[%s18726_s4 + $0x468] sm:$0xff]  }
 0x559   : >> { %13509 = vmatprep.mubr.bf16.mxu1 %v15985_v23  ;;  %13557 = vmatprep.mubr.bf16.mxu0 %v15985_v23  ;;  %v17197_v3 = vadd.f32 %v5123_v10, %v4935_v11  ;;  %v4323_v48 = vadd.f32 %v18962_v13, %v4015_v32  ;;  %v13204_v35 = vpop.f32.mrf.mxu0  ;;  %v3708_v14 = vadd.f32 %v18963_v17, %v3400_v5  ;;  %v14384_v52 = vld [vmem:[%s18726_s4 + $0x470] sm:$0xff]   ;;  %v18967_v32 = vld [vmem:[#allocation102_spill] sm:$0xff]  ;;  %v14385_v41 = vld [vmem:[%s18726_s4 + $0x428] sm:$0xff]  }
 0x55a   : >> { %18958 = vst [vmem:[#allocation73_spill] sm:$0xff] %v17195_v62  ;;  %v4938_v54 = vadd.f32 %v4913_v43, %v4630_v59  ;;  %v13156_v58 = vpop.f32.mrf.mxu1  ;;  %v17213_v6 = vld [vmem:[#allocation2 + $0x17] sm:$0xff] }
 0x55b   : >> { %18959 = vst [vmem:[#allocation24_spill] sm:$0xff] %v17197_v3  ;;  %v4631_v53 = vadd.f32 %v4606_v60, %v4323_v48  ;;  %v5155_v1 = vpop.f32.mrf.mxu0  ;;  %v18965_v60 = vld [vmem:[#allocation99_spill] sm:$0xff]  ;;  %v17239_v58 = vld [vmem:[#allocation2 + $0x37] sm:$0xff] }
 0x55c   : >> { %v17203_v45 = vadd.f32 %v5136_v24, %v4938_v54  ;;  %v4914_v18 = vld [vmem:[#allocation2 + $0xc7] sm:$0xff]  ;;  %v4915_v33 = vld [vmem:[#allocation2 + $0xcf] sm:$0xf]  ;;  %v4847_v10 = vpop.f32.mrf.mxu1  ;;  %v4016_v11 = vadd.f32 %v18965_v60, %v3708_v14  ;;  %v18971_v14 = vld [vmem:[#allocation6_spill] sm:$0xff] }
 0x55d   : >> { %v4939_v50 = vadd.f32 %v4914_v18, %v4631_v53  ;;  %5193 = vst [vmem:[#allocation2 + $0xd0] sm:$0xff] %v17159_v61  ;;  %v13271_v25 = vpop.f32.mrf.mxu0  ;;  %v18966_v61 = vld [vmem:[#allocation4_spill] sm:$0xff]  ;;  %v14387_v48 = vld [vmem:[%s18726_s4 + $0x420] sm:$0xff]   ;;  %v18970_v17 = vld [vmem:[#allocation5_spill] sm:$0xff] }
 0x55e   : >> { %18964 = vst [vmem:[#allocation40_spill] sm:$0xff] %v17203_v45  ;;  %v13223_v24 = vpop.f32.mrf.mxu1  ;;  %v4324_v40 = vadd.f32 %v18967_v32, %v4016_v11  ;;  %v14388_v54 = vld [vmem:[%s18726_s4 + $0x460] sm:$0xff]   ;;  %v14389_v10 = vld [vmem:[%s18726_s4 + $0x418] sm:$0xff]   ;;  %v14392_v32 = vld [vmem:[%s18726_s4 + $0x450] sm:$0xff]  }
 0x55f   : >> { %5477 = vst [vmem:[#allocation2 + $0x10] sm:$0xff] %v13223_v24  ;;  %v17220_v15 = vadd.f32 %v5139_v47, %v4939_v50  ;;  %v5656_v43 = vpop.f32.mrf.mxu0  ;;  %v14390_v1 = vld [vmem:[%s18726_s4 + $0x458] sm:$0xff]   ;;  %v14391_v24 = vld [vmem:[%s18726_s4 + $0x410] sm:$0xff]  }
 0x560   : >> { %13510 = vmatmul.mubr.bf16.vlgmr.msra.gmra.mxu1 %v15991_v31  ;;  %13558 = vmatmul.mubr.bf16.vlgmr.msra.gmra.mxu0 %v15991_v31  ;;  %v5348_v59 = vpop.f32.mrf.mxu1  ;;  %v4632_v57 = vadd.f32 %v17157_v49, %v4324_v40 }
 0x561   : >> { %13513 = vmatprep.mubr.bf16.mxu1 %v18966_v61  ;;  %13561 = vmatprep.mubr.bf16.mxu0 %v18966_v61  ;;  %18968 = vst [vmem:[#allocation44_spill] sm:$0xff] %v17220_v15  ;;  %v13272_v9 = vpop.f32.mrf.mxu0 }
 0x562   : >> { %13590 = vmatpush3.bf16.msra.mxu1 %v17014_v51  ;;  %13638 = vmatpush3.bf16.msra.mxu0 %v17019_v37  ;;  %v13224_v47 = vpop.f32.mrf.mxu1  ;;  %v4940_v5 = vadd.f32 %v4915_v33, %v4632_v57  ;;  %v14394_v57 = vld [vmem:[%s18726_s4 + $0x448] sm:$0xff]  }
 0x563   : >> { %13591 = vmatprep.subr.bf16.mxu1 %v14383_v27  ;;  %13639 = vmatprep.subr.bf16.mxu0 %v14384_v52  ;;  %5478 = vst [vmem:[#allocation2 + $0x18] sm:$0xff] %v13224_v47  ;;  %v5659_v51 = vpop.f32.mrf.mxu0 }
 0x564   : >> { %v5351_v13 = vpop.f32.mrf.mxu1  ;;  %v5223_v37 = vld [vmem:[#allocation2 + $0xd0] sm:$0xf] }
 0x565   : >> { %v17237_v49 = vadd.f32 %v5223_v37, %v4940_v5  ;;  %v13275_v53 = vpop.f32.mrf.mxu0 }
 0x566   : >> { %13592 = vmatpush3.bf16.msra.mxu1 %v14383_v27  ;;  %13640 = vmatpush3.bf16.msra.mxu0 %v14384_v52  ;;  %v13227_v35 = vpop.f32.mrf.mxu1 }
 0x567   : >> { %13593 = vmatprep.subr.bf16.mxu1 %v14385_v41  ;;  %13641 = vmatprep.subr.bf16.mxu0 %v14386_v26  ;;  %18969 = vst [vmem:[#allocation84_spill] sm:$0xff] %v17237_v49  ;;  %5481 = vst [vmem:[#allocation2 + $0x30] sm:$0xff] %v13227_v35  ;;  %v5672_v33 = vpop.f32.mrf.mxu0  ;;  %v14396_v35 = vld [vmem:[%s18726_s4 + $0x440] sm:$0xff]  }
 0x568   : >> { %13514 = vmatmul.mubr.bf16.gmra.mxu1 %v18970_v17  ;;  %13562 = vmatmul.mubr.bf16.gmra.mxu0 %v18970_v17  ;;  %v5364_v18 = vpop.f32.mrf.mxu1 }
 0x569   : >> { %13517 = vmatprep.mubr.bf16.mxu1 %v18971_v14  ;;  %13565 = vmatprep.mubr.bf16.mxu0 %v18971_v14  ;;  %5479 = vst [vmem:[#allocation2 + $0x20] sm:$0xff] %v5364_v18  ;;  %v13276_v52 = vpop.f32.mrf.mxu0 }
 0x56a   : >> { %13594 = vmatpush3.bf16.msra.mxu1 %v14385_v41  ;;  %13642 = vmatpush3.bf16.msra.mxu0 %v14386_v26  ;;  %v17251_v50 = vld [vmem:[#allocation2 + $0x11] sm:$0xff]  ;;  %v13228_v27 = vpop.f32.mrf.mxu1  ;;  %v14393_v26 = vld [vmem:[%s18726_s4 + $0x408] sm:$0xff]  }
 0x56b   : >> { %13595 = vmatprep.subr.bf16.mxu1 %v14387_v48  ;;  %13643 = vmatprep.subr.bf16.mxu0 %v14388_v54  ;;  %18972 = vst [vmem:[#allocation22_spill] sm:$0xff] %v17251_v50  ;;  %5785 = vst [vmem:[#allocation2 + $0x10] sm:$0xff] %v13271_v25  ;;  %v5675_v11 = vpop.f32.mrf.mxu0 }
 0x56c   : >> { %5482 = vst [vmem:[#allocation2 + $0x38] sm:$0xff] %v13228_v27  ;;  %v5367_v60 = vpop.f32.mrf.mxu1  ;;  %v17294_v27 = vld [vmem:[%s18726_s4 + $0x4b8] sm:$0xff]  }
 0x56d   : >> { %5480 = vst [vmem:[#allocation2 + $0x28] sm:$0xff] %v5367_v60  ;;  %v17259_v59 = vpop.f32.mrf.mxu0  ;;  %v17299_v60 = vld [vmem:[%s18726_s4 + $0x4f8] sm:$0xff]  }
 0x56e   : >> { %13596 = vmatpush3.bf16.msra.mxu1 %v14387_v48  ;;  %13644 = vmatpush3.bf16.msra.mxu0 %v14388_v54  ;;  %v13231_v40 = vpop.f32.mrf.mxu1  ;;  %v14395_v54 = vld [vmem:[%s18726_s4 + $0x400] sm:$0xff]  }
 0x56f   : >> { %13597 = vmatprep.subr.bf16.mxu1 %v14389_v10  ;;  %13645 = vmatprep.subr.bf16.mxu0 %v14390_v1  ;;  %5485 = vst [vmem:[#allocation2 + $0x50] sm:$0xff] %v13231_v40  ;;  %v5688_v41 = vpop.f32.mrf.mxu0 }
 0x570   : >> { %13518 = vmatmul.mubr.bf16.gmra.mxu1 %v16072_v38  ;;  %13566 = vmatmul.mubr.bf16.gmra.mxu0 %v16072_v38  ;;  %v17265_v25 = vld [vmem:[#allocation2 + $0x19] sm:$0xff]  ;;  %v5380_v43 = vpop.f32.mrf.mxu1 }
 0x571   : >> { %13521 = vmatprep.mubr.bf16.mxu1 %v16080_v7  ;;  %13569 = vmatprep.mubr.bf16.mxu0 %v16080_v7  ;;  %5786 = vst [vmem:[#allocation2 + $0x18] sm:$0xff] %v13272_v9  ;;  %5483 = vst [vmem:[#allocation2 + $0x40] sm:$0xff] %v5380_v43  ;;  %v13280_v5 = vpop.f32.mrf.mxu0 }
 0x572   : >> { %13598 = vmatpush3.bf16.msra.mxu1 %v14389_v10  ;;  %13646 = vmatpush3.bf16.msra.mxu0 %v14390_v1  ;;  %v13232_v47 = vpop.f32.mrf.mxu1 }
 0x573   : >> { %13599 = vmatprep.subr.bf16.mxu1 %v14391_v24  ;;  %13647 = vmatprep.subr.bf16.mxu0 %v14392_v32  ;;  %5486 = vst [vmem:[#allocation2 + $0x58] sm:$0xff] %v13232_v47  ;;  %v17273_v13 = vld [vmem:[#allocation2 + $0x31] sm:$0xff]  ;;  %v5691_v48 = vpop.f32.mrf.mxu0 }
 0x574   : >> { %v17275_v51 = vld [vmem:[#allocation2 + $0x21] sm:$0xff]  ;;  %v17277_v37 = vld [vmem:[#allocation2 + $0x29] sm:$0xff]  ;;  %v5383_v9 = vpop.f32.mrf.mxu1 }
 0x575   : >> { %5787 = vst [vmem:[#allocation2 + $0x20] sm:$0xff] %v5672_v33  ;;  %5789 = vst [vmem:[#allocation2 + $0x30] sm:$0xff] %v13275_v53  ;;  %v13283_v10 = vpop.f32.mrf.mxu0 }
 0x576   : >> { %13600 = vmatpush3.bf16.msra.mxu1 %v14391_v24  ;;  %13648 = vmatpush3.bf16.msra.mxu0 %v14392_v32  ;;  %5788 = vst [vmem:[#allocation2 + $0x28] sm:$0xff] %v5675_v11  ;;  %5484 = vst [vmem:[#allocation2 + $0x48] sm:$0xff] %v5383_v9  ;;  %v13235_v18 = vpop.f32.mrf.mxu1 }
 0x577   : >> { %13601 = vmatprep.subr.bf16.mxu1 %v14393_v26  ;;  %13649 = vmatprep.subr.bf16.mxu0 %v14394_v57  ;;  %5489 = vst [vmem:[#allocation2 + $0x70] sm:$0xff] %v13235_v18  ;;  %v5704_v1 = vpop.f32.mrf.mxu0 }
 0x578   : >> { %13522 = vmatmul.mubr.bf16.gmra.mxu1 %v18883_v0  ;;  %13570 = vmatmul.mubr.bf16.gmra.mxu0 %v18883_v0  ;;  %v17289_v53 = vld [vmem:[#allocation2 + $0x39] sm:$0xff]  ;;  %v5396_v33 = vpop.f32.mrf.mxu1 }
 0x579   : >> { %13525 = vmatprep.mubr.bf16.mxu1 %v18884_v56  ;;  %13573 = vmatprep.mubr.bf16.mxu0 %v18884_v56  ;;  %5790 = vst [vmem:[#allocation2 + $0x38] sm:$0xff] %v13276_v52  ;;  %5487 = vst [vmem:[#allocation2 + $0x60] sm:$0xff] %v5396_v33  ;;  %v13284_v24 = vpop.f32.mrf.mxu0 }
 0x57a   : >> { %13602 = vmatpush3.bf16.msra.mxu1 %v14393_v26  ;;  %13650 = vmatpush3.bf16.msra.mxu0 %v14394_v57  ;;  %v13236_v11 = vpop.f32.mrf.mxu1  ;;  %v17301_v52 = vld [vmem:[#allocation2 + $0x51] sm:$0xff] }
 0x57b   : >> { %13603 = vmatprep.subr.bf16.mxu1 %v14395_v54  ;;  %13651 = vmatprep.subr.bf16.mxu0 %v14396_v35  ;;  %5490 = vst [vmem:[#allocation2 + $0x78] sm:$0xff] %v13236_v11  ;;  %v5707_v40 = vpop.f32.mrf.mxu0 }
 0x57c   : >> { %v5399_v32 = vpop.f32.mrf.mxu1 }
 0x57d   : >> { %v17303_v43 = vld [vmem:[#allocation2 + $0x41] sm:$0xff]  ;;  %v17305_v26 = vld [vmem:[#allocation2 + $0x49] sm:$0xff]  ;;  %5488 = vst [vmem:[#allocation2 + $0x68] sm:$0xff] %v5399_v32  ;;  %v13287_v47 = vpop.f32.mrf.mxu0 }
 0x57e   : >> { %13604 = vmatpush3.bf16.msra.mxu1 %v14395_v54  ;;  %13652 = vmatpush3.bf16.msra.mxu0 %v14396_v35  ;;  %5791 = vst [vmem:[#allocation2 + $0x40] sm:$0xff] %v5688_v41  ;;  %5793 = vst [vmem:[#allocation2 + $0x50] sm:$0xff] %v17259_v59  ;;  %v13239_v57 = vpop.f32.mrf.mxu1 }
 0x57f   : >> { %13685 = vmatprep.subr.bf16.mxu1 %v17294_v27  ;;  %13733 = vmatprep.subr.bf16.mxu0 %v17299_v60  ;;  %5792 = vst [vmem:[#allocation2 + $0x48] sm:$0xff] %v5691_v48  ;;  %5493 = vst [vmem:[#allocation2 + $0x90] sm:$0xff] %v13239_v57  ;;  %v5720_v35 = vpop.f32.mrf.mxu0 }
 0x580   : >> { %13526 = vmatmul.mubr.bf16.gmra.mxu1 %v18900_v12  ;;  %13574 = vmatmul.mubr.bf16.gmra.mxu0 %v18900_v12  ;;  %v17314_v9 = vld [vmem:[#allocation2 + $0x59] sm:$0xff]  ;;  %v5412_v54 = vpop.f32.mrf.mxu1 }
 0x581   : >> { %13529 = vmatprep.mubr.bf16.mxu1 %v18901_v29  ;;  %13577 = vmatprep.mubr.bf16.mxu0 %v18901_v29  ;;  %5794 = vst [vmem:[#allocation2 + $0x58] sm:$0xff] %v13280_v5  ;;  %5491 = vst [vmem:[#allocation2 + $0x80] sm:$0xff] %v5412_v54  ;;  %v13288_v59 = vpop.f32.mrf.mxu0 }
 0x582   : >> { %v13240_v41 = vpop.f32.mrf.mxu1  ;;  %v17316_v48 = vld [vmem:[#allocation2 + $0x71] sm:$0xff] }
 0x583   : >> { %5494 = vst [vmem:[#allocation2 + $0x98] sm:$0xff] %v13240_v41  ;;  %v5723_v32 = vpop.f32.mrf.mxu0 }
 0x584   : >> { %v17318_v18 = vld [vmem:[#allocation2 + $0x61] sm:$0xff]  ;;  %v17320_v33 = vld [vmem:[#allocation2 + $0x69] sm:$0xff]  ;;  %v5415_v11 = vpop.f32.mrf.mxu1 }
 0x585   : >> { %18973 = vst [vmem:[#allocation41_spill] sm:$0xff] %v17318_v18  ;;  %18974 = vst [vmem:[#allocation50_spill] sm:$0xff] %v17320_v33  ;;  %v13291_v50 = vpop.f32.mrf.mxu0 }
 0x586   : >> { %5795 = vst [vmem:[#allocation2 + $0x60] sm:$0xff] %v5704_v1  ;;  %5797 = vst [vmem:[#allocation2 + $0x70] sm:$0xff] %v13283_v10  ;;  %v13243_v57 = vpop.f32.mrf.mxu1 }
 0x587   : >> { %5796 = vst [vmem:[#allocation2 + $0x68] sm:$0xff] %v5707_v40  ;;  %5492 = vst [vmem:[#allocation2 + $0x88] sm:$0xff] %v5415_v11  ;;  %v5736_v41 = vpop.f32.mrf.mxu0 }
 0x588   : >> { %13530 = vmatmul.mubr.bf16.gmra.mxu1 %v18924_v63  ;;  %13578 = vmatmul.mubr.bf16.gmra.mxu0 %v18924_v63  ;;  %5497 = vst [vmem:[#allocation2 + $0xb0] sm:$0xff] %v13243_v57  ;;  %v17326_v5 = vld [vmem:[#allocation2 + $0x79] sm:$0xff]  ;;  %v5428_v54 = vpop.f32.mrf.mxu1 }
 0x589   : >> { %13533 = vmatprep.mubr.bf16.mxu1 %v18925_v28  ;;  %13581 = vmatprep.mubr.bf16.mxu0 %v18925_v28  ;;  %18975 = vst [vmem:[#allocation76_spill] sm:$0xff] %v17326_v5  ;;  %5798 = vst [vmem:[#allocation2 + $0x78] sm:$0xff] %v13284_v24  ;;  %v13292_v1 = vpop.f32.mrf.mxu0  ;;  %v17414_v34 = vld [vmem:[#allocation2 + $0x52] sm:$0xff] }
 0x58a   : >> { %5495 = vst [vmem:[#allocation2 + $0xa0] sm:$0xff] %v5428_v54  ;;  %v13244_v10 = vpop.f32.mrf.mxu1  ;;  %v17328_v49 = vld [vmem:[#allocation2 + $0x91] sm:$0xff]  ;;  %18990 = vst [vmem:[#allocation49_spill] sm:$0xff] %v17414_v34 }
 0x58b   : >> { %5498 = vst [vmem:[#allocation2 + $0xb8] sm:$0xff] %v13244_v10  ;;  %v5739_v11 = vpop.f32.mrf.mxu0  ;;  %18976 = vst [vmem:[#allocation54_spill] sm:$0xff] %v17328_v49  ;;  %v17412_v49 = vld [vmem:[#allocation2 + $0x4a] sm:$0xff] }
 0x58c   : >> { %v5431_v40 = vpop.f32.mrf.mxu1  ;;  %18989 = vst [vmem:[#allocation26_spill] sm:$0xff] %v17412_v49 }
 0x58d   : >> { %5496 = vst [vmem:[#allocation2 + $0xa8] sm:$0xff] %v5431_v40  ;;  %v13295_v15 = vpop.f32.mrf.mxu0  ;;  %v17432_v36 = vld [vmem:[#allocation2 + $0x5a] sm:$0xff] }
 0x58e   : >> { %v17330_v39 = vld [vmem:[#allocation2 + $0x81] sm:$0xff]  ;;  %v17332_v57 = vld [vmem:[#allocation2 + $0x89] sm:$0xff]  ;;  %v13247_v62 = vpop.f32.mrf.mxu1  ;;  %18992 = vst [vmem:[#allocation62_spill] sm:$0xff] %v17432_v36 }
 0x58f   : >> { %18977 = vst [vmem:[#allocation53_spill] sm:$0xff] %v17330_v39  ;;  %18978 = vst [vmem:[#allocation81_spill] sm:$0xff] %v17332_v57  ;;  %v5752_v10 = vpop.f32.mrf.mxu0  ;;  %v14410_v57 = vld [vmem:[%s18726_s4 + $0x4c8] sm:$0xff]   ;;  %v14412_v36 = vld [vmem:[%s18726_s4 + $0x4c0] sm:$0xff]  }
 0x590   : >> { %5799 = vst [vmem:[#allocation2 + $0x80] sm:$0xff] %v5720_v35  ;;  %5801 = vst [vmem:[#allocation2 + $0x90] sm:$0xff] %v13287_v47  ;;  %13534 = vmatmul.mubr.bf16.gmra.mxu1 %v18946_v44  ;;  %13582 = vmatmul.mubr.bf16.gmra.mxu0 %v18946_v44  ;;  %v5444_v54 = vpop.f32.mrf.mxu1  ;;  %v17448_v34 = vld [vmem:[#allocation2 + $0x6a] sm:$0xff] }
 0x591   : >> { %5800 = vst [vmem:[#allocation2 + $0x88] sm:$0xff] %v5723_v32  ;;  %5501 = vst [vmem:[#allocation2 + $0xd0] sm:$0xff] %v13247_v62  ;;  %13537 = vmatprep.mubr.bf16.mxu1 %v16128_v2  ;;  %13585 = vmatprep.mubr.bf16.mxu0 %v16128_v2  ;;  %v17338_v24 = vld [vmem:[#allocation2 + $0x99] sm:$0xff]  ;;  %v13296_v47 = vpop.f32.mrf.mxu0 }
 0x592   : >> { %18979 = vst [vmem:[#allocation86_spill] sm:$0xff] %v17338_v24  ;;  %5802 = vst [vmem:[#allocation2 + $0x98] sm:$0xff] %v13288_v59  ;;  %v13248_v35 = vpop.f32.mrf.mxu1  ;;  %v17340_v32 = vld [vmem:[#allocation2 + $0xb1] sm:$0xff] }
 0x593   : >> { %5499 = vst [vmem:[#allocation2 + $0xc0] sm:$0xff] %v5444_v54  ;;  %18980 = vst [vmem:[#allocation83_spill] sm:$0xff] %v17340_v32  ;;  %v5755_v62 = vpop.f32.mrf.mxu0 }
 0x594   : >> { %v17342_v40 = vld [vmem:[#allocation2 + $0xa1] sm:$0xff]  ;;  %v17344_v45 = vld [vmem:[#allocation2 + $0xa9] sm:$0xff]  ;;  %v5447_v16 = vpop.f32.mrf.mxu1  ;;  %18993 = vst [vmem:[#allocation47_spill] sm:$0xff] %v17448_v34 }
 0x595   : >> { %18981 = vst [vmem:[#allocation78_spill] sm:$0xff] %v17342_v40  ;;  %18982 = vst [vmem:[#allocation28_spill] sm:$0xff] %v17344_v45  ;;  %v13299_v24 = vpop.f32.mrf.mxu0 }
 0x596   : >> { %5803 = vst [vmem:[#allocation2 + $0xa0] sm:$0xff] %v5736_v41  ;;  %5805 = vst [vmem:[#allocation2 + $0xb0] sm:$0xff] %v13291_v50  ;;  %v13251_v3 = vpop.f32.mrf.mxu1 }
 0x597   : >> { %5804 = vst [vmem:[#allocation2 + $0xa8] sm:$0xff] %v5739_v11  ;;  %5500 = vst [vmem:[#allocation2 + $0xc8] sm:$0xff] %v5447_v16  ;;  %v5768_v35 = vpop.f32.mrf.mxu0  ;;  %v14399_v16 = vld [vmem:[%s18726_s4 + $0x4b0] sm:$0xff]   ;;  %v17471_v34 = vld [vmem:[#allocation2 + $0x7a] sm:$0xff] }
 0x598   : >> { %13538 = vmatmul.mubr.bf16.gmra.mxu1 %v16134_v20  ;;  %13586 = vmatmul.mubr.bf16.gmra.mxu0 %v16134_v20  ;;  %v5460_v54 = vpop.f32.mrf.mxu1  ;;  %v14400_v3 = vld [vmem:[%s18726_s4 + $0x4f0] sm:$0xff]   ;;  %18997 = vst [vmem:[#allocation87_spill] sm:$0xff] %v17471_v34 }
 0x599   : >> { %13605 = vmatprep.mubr.bf16.mxu1 %v15985_v23  ;;  %13653 = vmatprep.mubr.bf16.mxu0 %v15985_v23  ;;  %v13300_v41 = vpop.f32.mrf.mxu0  ;;  %v17358_v24 = vld [vmem:[#allocation2 + $0xd1] sm:$0xf] }
 0x59a   : >> { %v17350_v59 = vld [vmem:[#allocation2 + $0xb9] sm:$0xff]  ;;  %v13252_v47 = vpop.f32.mrf.mxu1  ;;  %18984 = vst [vmem:[#allocation52_spill] sm:$0xff] %v17358_v24  ;;  %v17481_v34 = vld [vmem:[#allocation2 + $0x8a] sm:$0xff] }
 0x59b   : >> { %18983 = vst [vmem:[#allocation48_spill] sm:$0xff] %v17350_v59  ;;  %5806 = vst [vmem:[#allocation2 + $0xb8] sm:$0xff] %v13292_v1  ;;  %v5771_v11 = vpop.f32.mrf.mxu0  ;;  %v17378_v41 = vld [vmem:[#allocation2 + $0x12] sm:$0xff]  ;;  %v17402_v24 = vld [vmem:[#allocation2 + $0x3a] sm:$0xff] }
 0x59c   : >> { %v5463_v50 = vpop.f32.mrf.mxu1  ;;  %18987 = vst [vmem:[#allocation43_spill] sm:$0xff] %v17378_v41  ;;  %18988 = vst [vmem:[#allocation23_spill] sm:$0xff] %v17402_v24  ;;  %v17450_v24 = vld [vmem:[#allocation2 + $0x72] sm:$0xff] }
 0x59d   : >> { %v13367_v54 = vpop.f32.mrf.mxu0  ;;  %18994 = vst [vmem:[#allocation25_spill] sm:$0xff] %v17450_v24  ;;  %v17469_v24 = vld [vmem:[%s18726_s4 + $0x578] sm:$0xff]   ;;  %19000 = vst [vmem:[#allocation85_spill] sm:$0xff] %v17481_v34 }
 0x59e   : >> { %v17360_v32 = vld [vmem:[#allocation2 + $0xc1] sm:$0xff]  ;;  %v17362_v59 = vld [vmem:[#allocation2 + $0xc9] sm:$0xff]  ;;  %v13319_v1 = vpop.f32.mrf.mxu1 }
 0x59f   : >> { %18985 = vst [vmem:[#allocation90_spill] sm:$0xff] %v17360_v32  ;;  %18986 = vst [vmem:[#allocation93_spill] sm:$0xff] %v17362_v59  ;;  %v6272_v47 = vpop.f32.mrf.mxu0  ;;  %v14404_v54 = vld [vmem:[%s18726_s4 + $0x4e0] sm:$0xff]  }
 0x5a0   : >> { %5807 = vst [vmem:[#allocation2 + $0xc0] sm:$0xff] %v5752_v10  ;;  %5809 = vst [vmem:[#allocation2 + $0xd0] sm:$0xff] %v13295_v15  ;;  %13606 = vmatmul.mubr.bf16.vlgmr.msra.gmra.mxu1 %v15991_v31  ;;  %13654 = vmatmul.mubr.bf16.vlgmr.msra.gmra.mxu0 %v15991_v31  ;;  %v5964_v35 = vpop.f32.mrf.mxu1  ;;  %v14401_v15 = vld [vmem:[%s18726_s4 + $0x4a8] sm:$0xff]   ;;  %v17388_v47 = vld [vmem:[#allocation2 + $0x32] sm:$0xff] }
 0x5a1   : >> { %5808 = vst [vmem:[#allocation2 + $0xc8] sm:$0xff] %v5755_v62  ;;  %13609 = vmatprep.mubr.bf16.mxu1 %v18966_v61  ;;  %13657 = vmatprep.mubr.bf16.mxu0 %v18966_v61  ;;  %v14402_v10 = vld [vmem:[%s18726_s4 + $0x4e8] sm:$0xff]   ;;  %v17376_v62 = vld [vmem:[#allocation2 + $0x1a] sm:$0xff]  ;;  %v13368_v11 = vpop.f32.mrf.mxu0 }
 0x5a2   : >> { %13686 = vmatpush3.bf16.msra.mxu1 %v17294_v27  ;;  %13734 = vmatpush3.bf16.msra.mxu0 %v17299_v60  ;;  %v13320_v50 = vpop.f32.mrf.mxu1  ;;  %v14403_v60 = vld [vmem:[%s18726_s4 + $0x4a0] sm:$0xff]   ;;  %v17386_v35 = vld [vmem:[#allocation2 + $0x2a] sm:$0xff] }
 0x5a3   : >> { %13687 = vmatprep.subr.bf16.mxu1 %v14399_v16  ;;  %13735 = vmatprep.subr.bf16.mxu0 %v14400_v3  ;;  %6094 = vst [vmem:[#allocation2 + $0x18] sm:$0xff] %v13320_v50  ;;  %v6275_v1 = vpop.f32.mrf.mxu0 }
 0x5a4   : >> { %v5967_v27 = vpop.f32.mrf.mxu1  ;;  %v14405_v1 = vld [vmem:[%s18726_s4 + $0x498] sm:$0xff]  }
 0x5a5   : >> { %v13371_v50 = vpop.f32.mrf.mxu0 }
 0x5a6   : >> { %13688 = vmatpush3.bf16.msra.mxu1 %v14399_v16  ;;  %13736 = vmatpush3.bf16.msra.mxu0 %v14400_v3  ;;  %v13323_v41 = vpop.f32.mrf.mxu1  ;;  %v17394_v16 = vld [vmem:[#allocation2 + $0x22] sm:$0xff] }
 0x5a7   : >> { %13689 = vmatprep.subr.bf16.mxu1 %v14401_v15  ;;  %13737 = vmatprep.subr.bf16.mxu0 %v14402_v10  ;;  %6097 = vst [vmem:[#allocation2 + $0x30] sm:$0xff] %v13323_v41  ;;  %v6288_v27 = vpop.f32.mrf.mxu0  ;;  %v14406_v41 = vld [vmem:[%s18726_s4 + $0x4d8] sm:$0xff]  }
 0x5a8   : >> { %13610 = vmatmul.mubr.bf16.gmra.mxu1 %v18970_v17  ;;  %13658 = vmatmul.mubr.bf16.gmra.mxu0 %v18970_v17  ;;  %v5980_v3 = vpop.f32.mrf.mxu1 }
 0x5a9   : >> { %13613 = vmatprep.mubr.bf16.mxu1 %v18971_v14  ;;  %13661 = vmatprep.mubr.bf16.mxu0 %v18971_v14  ;;  %6095 = vst [vmem:[#allocation2 + $0x20] sm:$0xff] %v5980_v3  ;;  %v17404_v32 = vpop.f32.mrf.mxu0  ;;  %v14408_v3 = vld [vmem:[%s18726_s4 + $0x4d0] sm:$0xff]  }
 0x5aa   : >> { %13690 = vmatpush3.bf16.msra.mxu1 %v14401_v15  ;;  %13738 = vmatpush3.bf16.msra.mxu0 %v14402_v10  ;;  %v13324_v59 = vpop.f32.mrf.mxu1  ;;  %v14407_v10 = vld [vmem:[%s18726_s4 + $0x490] sm:$0xff]  }
 0x5ab   : >> { %13691 = vmatprep.subr.bf16.mxu1 %v14403_v60  ;;  %13739 = vmatprep.subr.bf16.mxu0 %v14404_v54  ;;  %6098 = vst [vmem:[#allocation2 + $0x38] sm:$0xff] %v13324_v59  ;;  %v6291_v15 = vpop.f32.mrf.mxu0 }
 0x5ac   : >> { %v5983_v45 = vpop.f32.mrf.mxu1 }
 0x5ad   : >> { %6096 = vst [vmem:[#allocation2 + $0x28] sm:$0xff] %v5983_v45  ;;  %v17416_v40 = vpop.f32.mrf.mxu0  ;;  %v17422_v45 = vld [vmem:[#allocation2 + $0x42] sm:$0xff] }
 0x5ae   : >> { %13692 = vmatpush3.bf16.msra.mxu1 %v14403_v60  ;;  %13740 = vmatpush3.bf16.msra.mxu0 %v14404_v54  ;;  %v13327_v59 = vpop.f32.mrf.mxu1 }
 0x5af   : >> { %13693 = vmatprep.subr.bf16.mxu1 %v14405_v1  ;;  %13741 = vmatprep.subr.bf16.mxu0 %v14406_v41  ;;  %6101 = vst [vmem:[#allocation2 + $0x50] sm:$0xff] %v13327_v59  ;;  %v6304_v22 = vpop.f32.mrf.mxu0  ;;  %v14409_v59 = vld [vmem:[%s18726_s4 + $0x488] sm:$0xff]  }
 0x5b0   : >> { %13614 = vmatmul.mubr.bf16.gmra.mxu1 %v16072_v38  ;;  %13662 = vmatmul.mubr.bf16.gmra.mxu0 %v16072_v38  ;;  %v17424_v60 = vld [vmem:[#allocation2 + $0x1c] sm:$0xff]  ;;  %v5996_v54 = vpop.f32.mrf.mxu1 }
 0x5b1   : >> { %13617 = vmatprep.mubr.bf16.mxu1 %v16080_v7  ;;  %13665 = vmatprep.mubr.bf16.mxu0 %v16080_v7  ;;  %18991 = vst [vmem:[#allocation82_spill] sm:$0xff] %v17424_v60  ;;  %6402 = vst [vmem:[#allocation2 + $0x18] sm:$0xff] %v13368_v11  ;;  %v17434_v60 = vpop.f32.mrf.mxu0 }
 0x5b2   : >> { %13694 = vmatpush3.bf16.msra.mxu1 %v14405_v1  ;;  %13742 = vmatpush3.bf16.msra.mxu0 %v14406_v41  ;;  %6099 = vst [vmem:[#allocation2 + $0x40] sm:$0xff] %v5996_v54  ;;  %v13328_v39 = vpop.f32.mrf.mxu1  ;;  %v17436_v1 = vld [vmem:[#allocation2 + $0x34] sm:$0xff] }
 0x5b3   : >> { %13695 = vmatprep.subr.bf16.mxu1 %v14407_v10  ;;  %13743 = vmatprep.subr.bf16.mxu0 %v14408_v3  ;;  %6102 = vst [vmem:[#allocation2 + $0x58] sm:$0xff] %v13328_v39  ;;  %v6307_v30 = vpop.f32.mrf.mxu0  ;;  %v14411_v39 = vld [vmem:[%s18726_s4 + $0x480] sm:$0xff]  }
 0x5b4   : >> { %v17438_v11 = vld [vmem:[#allocation2 + $0x24] sm:$0xff]  ;;  %v17440_v41 = vld [vmem:[#allocation2 + $0x2c] sm:$0xff]  ;;  %v5999_v54 = vpop.f32.mrf.mxu1 }
 0x5b5   : >> { %6403 = vst [vmem:[#allocation2 + $0x20] sm:$0xff] %v6288_v27  ;;  %6405 = vst [vmem:[#allocation2 + $0x30] sm:$0xff] %v13371_v50  ;;  %v17456_v50 = vld [vmem:[#allocation2 + $0x62] sm:$0xff] }
 0x5b6   : >> { %13696 = vmatpush3.bf16.msra.mxu1 %v14407_v10  ;;  %13744 = vmatpush3.bf16.msra.mxu0 %v14408_v3  ;;  %6404 = vst [vmem:[#allocation2 + $0x28] sm:$0xff] %v6291_v15  ;;  %6100 = vst [vmem:[#allocation2 + $0x48] sm:$0xff] %v5999_v54  ;;  %v13331_v10 = vpop.f32.mrf.mxu1  ;;  %v13379_v3 = vpop.f32.mrf.mxu0 }
 0x5b7   : >> { %13697 = vmatprep.subr.bf16.mxu1 %v14409_v59  ;;  %13745 = vmatprep.subr.bf16.mxu0 %v14410_v57  ;;  %6105 = vst [vmem:[#allocation2 + $0x70] sm:$0xff] %v13331_v10  ;;  %18995 = vst [vmem:[#allocation58_spill] sm:$0xff] %v17456_v50  ;;  %v17464_v10 = vld [vmem:[%s18726_s4 + $0x538] sm:$0xff]  }
 0x5b8   : >> { %13618 = vmatmul.mubr.bf16.gmra.mxu1 %v18883_v0  ;;  %13666 = vmatmul.mubr.bf16.gmra.mxu0 %v18883_v0  ;;  %v6012_v15 = vpop.f32.mrf.mxu1  ;;  %v6320_v54 = vpop.f32.mrf.mxu0 }
 0x5b9   : >> { %13621 = vmatprep.mubr.bf16.mxu1 %v18884_v56  ;;  %13669 = vmatprep.mubr.bf16.mxu0 %v18884_v56  ;;  %v17458_v27 = vld [vmem:[#allocation2 + $0x3c] sm:$0xff]  ;;  %6103 = vst [vmem:[#allocation2 + $0x60] sm:$0xff] %v6012_v15 }
 0x5ba   : >> { %18996 = vst [vmem:[#allocation61_spill] sm:$0xff] %v17458_v27  ;;  %13698 = vmatpush3.bf16.msra.mxu1 %v14409_v59  ;;  %13746 = vmatpush3.bf16.msra.mxu0 %v14410_v57  ;;  %6406 = vst [vmem:[#allocation2 + $0x38] sm:$0xff] %v17404_v32  ;;  %v13332_v50 = vpop.f32.mrf.mxu1  ;;  %v13380_v59 = vpop.f32.mrf.mxu0  ;;  %v17475_v33 = vld [vmem:[#allocation2 + $0x54] sm:$0xff] }
 0x5bb   : >> { %13699 = vmatprep.subr.bf16.mxu1 %v14411_v39  ;;  %13747 = vmatprep.subr.bf16.mxu0 %v14412_v36  ;;  %6106 = vst [vmem:[#allocation2 + $0x78] sm:$0xff] %v13332_v50  ;;  %18999 = vst [vmem:[#allocation89_spill] sm:$0xff] %v17475_v33  ;;  %v17483_v27 = vld [vmem:[#allocation2 + $0x92] sm:$0xff] }
 0x5bc   : >> { %v6015_v32 = vpop.f32.mrf.mxu1  ;;  %v6323_v15 = vpop.f32.mrf.mxu0  ;;  %19001 = vst [vmem:[#allocation32_spill] sm:$0xff] %v17483_v27 }
 0x5bd   : >> { %v17473_v57 = vld [vmem:[#allocation2 + $0x44] sm:$0xff]  ;;  %v17477_v5 = vld [vmem:[#allocation2 + $0x4c] sm:$0xff]  ;;  %6104 = vst [vmem:[#allocation2 + $0x68] sm:$0xff] %v6015_v32 }
 0x5be   : >> { %18998 = vst [vmem:[#allocation92_spill] sm:$0xff] %v17473_v57  ;;  %13700 = vmatpush3.bf16.msra.mxu1 %v14411_v39  ;;  %13748 = vmatpush3.bf16.msra.mxu0 %v14412_v36  ;;  %6407 = vst [vmem:[#allocation2 + $0x40] sm:$0xff] %v6304_v22  ;;  %v13335_v50 = vpop.f32.mrf.mxu1  ;;  %v13383_v39 = vpop.f32.mrf.mxu0  ;;  %v17490_v36 = vld [vmem:[#allocation2 + $0x82] sm:$0xff] }
 0x5bf   : >> { %13781 = vmatprep.subr.bf16.mxu1 %v17464_v10  ;;  %13829 = vmatprep.subr.bf16.mxu0 %v17469_v24  ;;  %6409 = vst [vmem:[#allocation2 + $0x50] sm:$0xff] %v17416_v40  ;;  %6408 = vst [vmem:[#allocation2 + $0x48] sm:$0xff] %v6307_v30  ;;  %v17495_v30 = vld [vmem:[#allocation2 + $0x9a] sm:$0xff] }
 0x5c0   : >> { %13622 = vmatmul.mubr.bf16.gmra.mxu1 %v18900_v12  ;;  %13670 = vmatmul.mubr.bf16.gmra.mxu0 %v18900_v12  ;;  %6109 = vst [vmem:[#allocation2 + $0x90] sm:$0xff] %v13335_v50  ;;  %19002 = vst [vmem:[#allocation56_spill] sm:$0xff] %v17490_v36  ;;  %v17492_v22 = vld [vmem:[#allocation2 + $0x5c] sm:$0xff]  ;;  %v6028_v32 = vpop.f32.mrf.mxu1  ;;  %v6336_v27 = vpop.f32.mrf.mxu0 }
 0x5c1   : >> { %13625 = vmatprep.mubr.bf16.mxu1 %v18901_v29  ;;  %13673 = vmatprep.mubr.bf16.mxu0 %v18901_v29  ;;  %19003 = vst [vmem:[#allocation60_spill] sm:$0xff] %v17492_v22  ;;  %6410 = vst [vmem:[#allocation2 + $0x58] sm:$0xff] %v17434_v60  ;;  %v17503_v22 = vld [vmem:[#allocation2 + $0xaa] sm:$0xff]  ;;  %v17505_v60 = vld [vmem:[#allocation2 + $0xb2] sm:$0xff] }
 0x5c2   : >> { %6107 = vst [vmem:[#allocation2 + $0x80] sm:$0xff] %v6028_v32  ;;  %19004 = vst [vmem:[#allocation51_spill] sm:$0xff] %v17495_v30  ;;  %v13336_v40 = vpop.f32.mrf.mxu1  ;;  %v13384_v34 = vpop.f32.mrf.mxu0  ;;  %v17497_v57 = vld [vmem:[#allocation2 + $0x74] sm:$0xff] }
 0x5c3   : >> { %6110 = vst [vmem:[#allocation2 + $0x98] sm:$0xff] %v13336_v40  ;;  %19005 = vst [vmem:[#allocation27_spill] sm:$0xff] %v17497_v57  ;;  %v17511_v40 = vld [vmem:[#allocation2 + $0xa2] sm:$0xff] }
 0x5c4   : >> { %v17499_v50 = vld [vmem:[#allocation2 + $0x64] sm:$0xff]  ;;  %v17501_v33 = vld [vmem:[#allocation2 + $0x6c] sm:$0xff]  ;;  %v6031_v49 = vpop.f32.mrf.mxu1  ;;  %v6339_v36 = vpop.f32.mrf.mxu0  ;;  %19008 = vst [vmem:[#allocation88_spill] sm:$0xff] %v17503_v22  ;;  %19009 = vst [vmem:[#allocation67_spill] sm:$0xff] %v17505_v60 }
 0x5c5   : >> { %19006 = vst [vmem:[#allocation30_spill] sm:$0xff] %v17499_v50  ;;  %19007 = vst [vmem:[#allocation57_spill] sm:$0xff] %v17501_v33 }
 0x5c6   : >> { %6411 = vst [vmem:[#allocation2 + $0x60] sm:$0xff] %v6320_v54  ;;  %6413 = vst [vmem:[#allocation2 + $0x70] sm:$0xff] %v13379_v3  ;;  %v13339_v32 = vpop.f32.mrf.mxu1  ;;  %v13387_v30 = vpop.f32.mrf.mxu0 }
 0x5c7   : >> { %6412 = vst [vmem:[#allocation2 + $0x68] sm:$0xff] %v6323_v15  ;;  %6108 = vst [vmem:[#allocation2 + $0x88] sm:$0xff] %v6031_v49  ;;  %v17515_v15 = vld [vmem:[#allocation2 + $0xba] sm:$0xff] }
 0x5c8   : >> { %13626 = vmatmul.mubr.bf16.gmra.mxu1 %v18924_v63  ;;  %13674 = vmatmul.mubr.bf16.gmra.mxu0 %v18924_v63  ;;  %6113 = vst [vmem:[#allocation2 + $0xb0] sm:$0xff] %v13339_v32  ;;  %19010 = vst [vmem:[#allocation55_spill] sm:$0xff] %v17511_v40  ;;  %v6044_v49 = vpop.f32.mrf.mxu1  ;;  %v6352_v54 = vpop.f32.mrf.mxu0  ;;  %v17523_v40 = vld [vmem:[#allocation2 + $0xca] sm:$0xff] }
 0x5c9   : >> { %13629 = vmatprep.mubr.bf16.mxu1 %v18925_v28  ;;  %13677 = vmatprep.mubr.bf16.mxu0 %v18925_v28  ;;  %v17513_v3 = vld [vmem:[#allocation2 + $0x7c] sm:$0xff]  ;;  %6111 = vst [vmem:[#allocation2 + $0xa0] sm:$0xff] %v6044_v49  ;;  %19012 = vst [vmem:[#allocation64_spill] sm:$0xff] %v17515_v15 }
 0x5ca   : >> { %19011 = vst [vmem:[#allocation29_spill] sm:$0xff] %v17513_v3  ;;  %6414 = vst [vmem:[#allocation2 + $0x78] sm:$0xff] %v13380_v59  ;;  %v13340_v60 = vpop.f32.mrf.mxu1  ;;  %v13388_v22 = vpop.f32.mrf.mxu0  ;;  %v17517_v32 = vld [vmem:[#allocation2 + $0x94] sm:$0xff] }
 0x5cb   : >> { %6114 = vst [vmem:[#allocation2 + $0xb8] sm:$0xff] %v13340_v60  ;;  %19013 = vst [vmem:[#allocation66_spill] sm:$0xff] %v17517_v32  ;;  %v17525_v3 = vld [vmem:[#allocation2 + $0xd2] sm:$0xf]  ;;  %v17531_v60 = vld [vmem:[#allocation2 + $0xc2] sm:$0xff] }
 0x5cc   : >> { %v6047_v50 = vpop.f32.mrf.mxu1  ;;  %v6355_v57 = vpop.f32.mrf.mxu0  ;;  %19016 = vst [vmem:[#allocation96_spill] sm:$0xff] %v17523_v40  ;;  %19017 = vst [vmem:[#allocation91_spill] sm:$0xff] %v17525_v3 }
 0x5cd   : >> { %6112 = vst [vmem:[#allocation2 + $0xa8] sm:$0xff] %v6047_v50  ;;  %19018 = vst [vmem:[#allocation65_spill] sm:$0xff] %v17531_v60 }
 0x5ce   : >> { %v17519_v33 = vld [vmem:[#allocation2 + $0x84] sm:$0xff]  ;;  %v17521_v18 = vld [vmem:[#allocation2 + $0x8c] sm:$0xff]  ;;  %v13343_v59 = vpop.f32.mrf.mxu1  ;;  %v13391_v49 = vpop.f32.mrf.mxu0 }
 0x5cf   : >> { %19014 = vst [vmem:[#allocation94_spill] sm:$0xff] %v17519_v33  ;;  %19015 = vst [vmem:[#allocation98_spill] sm:$0xff] %v17521_v18 }
 0x5d0   : >> { %6415 = vst [vmem:[#allocation2 + $0x80] sm:$0xff] %v6336_v27  ;;  %6417 = vst [vmem:[#allocation2 + $0x90] sm:$0xff] %v13383_v39  ;;  %13630 = vmatmul.mubr.bf16.gmra.mxu1 %v18946_v44  ;;  %13678 = vmatmul.mubr.bf16.gmra.mxu0 %v18946_v44  ;;  %v17533_v50 = vld [vmem:[#allocation2 + $0x9c] sm:$0xff]  ;;  %v6060_v15 = vpop.f32.mrf.mxu1  ;;  %v6368_v3 = vpop.f32.mrf.mxu0 }
 0x5d1   : >> { %6416 = vst [vmem:[#allocation2 + $0x88] sm:$0xff] %v6339_v36  ;;  %6117 = vst [vmem:[#allocation2 + $0xd0] sm:$0xff] %v13343_v59  ;;  %13633 = vmatprep.mubr.bf16.mxu1 %v16128_v2  ;;  %13681 = vmatprep.mubr.bf16.mxu0 %v16128_v2 }
 0x5d2   : >> { %19019 = vst [vmem:[#allocation100_spill] sm:$0xff] %v17533_v50  ;;  %6418 = vst [vmem:[#allocation2 + $0x98] sm:$0xff] %v13384_v34  ;;  %v13344_v27 = vpop.f32.mrf.mxu1  ;;  %v13392_v39 = vpop.f32.mrf.mxu0  ;;  %v17535_v36 = vld [vmem:[#allocation2 + $0xb4] sm:$0xff] }
 0x5d3   : >> { %6115 = vst [vmem:[#allocation2 + $0xc0] sm:$0xff] %v6060_v15  ;;  %6118 = vst [vmem:[#allocation2 + $0xd8] sm:$0xff] %v13344_v27 }
 0x5d4   : >> { %19020 = vst [vmem:[#allocation59_spill] sm:$0xff] %v17535_v36  ;;  %v17537_v40 = vld [vmem:[#allocation2 + $0xa4] sm:$0xff]  ;;  %v17539_v59 = vld [vmem:[#allocation2 + $0xac] sm:$0xff]  ;;  %v6063_v33 = vpop.f32.mrf.mxu1  ;;  %v6371_v32 = vpop.f32.mrf.mxu0 }
 0x5d5   : >> { %19021 = vst [vmem:[#allocation31_spill] sm:$0xff] %v17537_v40  ;;  %19022 = vst [vmem:[#allocation95_spill] sm:$0xff] %v17539_v59  ;;  %v17609_v59 = vld [vmem:[#allocation2 + $0x55] sm:$0xff] }
 0x5d6   : >> { %6419 = vst [vmem:[#allocation2 + $0xa0] sm:$0xff] %v6352_v54  ;;  %6421 = vst [vmem:[#allocation2 + $0xb0] sm:$0xff] %v13387_v30  ;;  %v13347_v60 = vpop.f32.mrf.mxu1  ;;  %v13395_v50 = vpop.f32.mrf.mxu0 }
 0x5d7   : >> { %6420 = vst [vmem:[#allocation2 + $0xa8] sm:$0xff] %v6355_v57  ;;  %6116 = vst [vmem:[#allocation2 + $0xc8] sm:$0xff] %v6063_v33 }
 0x5d8   : >> { %13634 = vmatmul.mubr.bf16.gmra.mxu1 %v16134_v20  ;;  %13682 = vmatmul.mubr.bf16.gmra.mxu0 %v16134_v20  ;;  %v6076_v15 = vpop.f32.mrf.mxu1  ;;  %v6384_v27 = vpop.f32.mrf.mxu0  ;;  %19031 = vst [vmem:[#allocation102_spill] sm:$0xff] %v17609_v59 }
 0x5d9   : >> { %13701 = vmatprep.mubr.bf16.mxu1 %v15985_v23  ;;  %13749 = vmatprep.mubr.bf16.mxu0 %v15985_v23  ;;  %6427 = vst [vmem:[#allocation2 + $0xe0] sm:$0xff] %v6384_v27  ;;  %v14415_v15 = vld [vmem:[%s18726_s4 + $0x530] sm:$0xff]  }
 0x5da   : >> { %v17545_v34 = vld [vmem:[#allocation2 + $0xbc] sm:$0xff]  ;;  %v17547_v54 = vld [vmem:[#allocation2 + $0xd4] sm:$0xff]  ;;  %v13348_v33 = vpop.f32.mrf.mxu1  ;;  %v13396_v30 = vpop.f32.mrf.mxu0 }
 0x5db   : >> { %19023 = vst [vmem:[#allocation68_spill] sm:$0xff] %v17545_v34  ;;  %6422 = vst [vmem:[#allocation2 + $0xb8] sm:$0xff] %v13388_v22  ;;  %v17549_v57 = vld [vmem:[#allocation2 + $0xdc] sm:$0xf]  ;;  %v14416_v22 = vld [vmem:[%s18726_s4 + $0x570] sm:$0xff]  }
 0x5dc   : >> { %19024 = vst [vmem:[#allocation97_spill] sm:$0xff] %v17547_v54  ;;  %19025 = vst [vmem:[#allocation33_spill] sm:$0xff] %v17549_v57  ;;  %v6079_v50 = vpop.f32.mrf.mxu1  ;;  %v6387_v40 = vpop.f32.mrf.mxu0  ;;  %v17597_v57 = vld [vmem:[#allocation2 + $0x3d] sm:$0xff] }
 0x5dd   : >> { %6426 = vst [vmem:[#allocation2 + $0xd8] sm:$0xff] %v13392_v39  ;;  %v17573_v39 = vld [vmem:[#allocation2 + $0x1d] sm:$0xff]  ;;  %19029 = vst [vmem:[#allocation99_spill] sm:$0xff] %v17597_v57 }
 0x5de   : >> { %v17551_v60 = vld [vmem:[#allocation2 + $0xc4] sm:$0xff]  ;;  %v17553_v36 = vld [vmem:[#allocation2 + $0xcc] sm:$0xff]  ;;  %v13415_v27 = vpop.f32.mrf.mxu1  ;;  %v13463_v33 = vpop.f32.mrf.mxu0  ;;  %19028 = vst [vmem:[#allocation69_spill] sm:$0xff] %v17573_v39 }
 0x5df   : >> { %19026 = vst [vmem:[#allocation63_spill] sm:$0xff] %v17551_v60  ;;  %19027 = vst [vmem:[#allocation101_spill] sm:$0xff] %v17553_v36  ;;  %v17607_v36 = vld [vmem:[#allocation2 + $0x4d] sm:$0xff] }
 0x5e0   : >> { %6423 = vst [vmem:[#allocation2 + $0xc0] sm:$0xff] %v6368_v3  ;;  %6425 = vst [vmem:[#allocation2 + $0xd0] sm:$0xff] %v13391_v49  ;;  %13702 = vmatmul.mubr.bf16.vlgmr.msra.gmra.mxu1 %v15991_v31  ;;  %13750 = vmatmul.mubr.bf16.vlgmr.msra.gmra.mxu0 %v15991_v31  ;;  %v6580_v40 = vpop.f32.mrf.mxu1  ;;  %v6888_v3 = vpop.f32.mrf.mxu0  ;;  %v14418_v49 = vld [vmem:[%s18726_s4 + $0x568] sm:$0xff]  }
 0x5e1   : >> { %6424 = vst [vmem:[#allocation2 + $0xc8] sm:$0xff] %v6371_v32  ;;  %13705 = vmatprep.mubr.bf16.mxu1 %v18966_v61  ;;  %13753 = vmatprep.mubr.bf16.mxu0 %v18966_v61  ;;  %v14417_v32 = vld [vmem:[%s18726_s4 + $0x528] sm:$0xff]   ;;  %v17583_v3 = vld [vmem:[#allocation2 + $0x35] sm:$0xff]  ;;  %19030 = vst [vmem:[#allocation4_spill] sm:$0xff] %v17607_v36 }
 0x5e2   : >> { %13782 = vmatpush3.bf16.msra.mxu1 %v17464_v10  ;;  %13830 = vmatpush3.bf16.msra.mxu0 %v17469_v24  ;;  %v13416_v30 = vpop.f32.mrf.mxu1  ;;  %v13464_v50 = vpop.f32.mrf.mxu0  ;;  %v14419_v24 = vld [vmem:[%s18726_s4 + $0x520] sm:$0xff]   ;;  %v17581_v40 = vld [vmem:[#allocation2 + $0x2d] sm:$0xff]  ;;  %v17645_v36 = vld [vmem:[#allocation2 + $0x75] sm:$0xff] }
 0x5e3   : >> { %13783 = vmatprep.subr.bf16.mxu1 %v14415_v15  ;;  %13831 = vmatprep.subr.bf16.mxu0 %v14416_v22  ;;  %6710 = vst [vmem:[#allocation2 + $0x18] sm:$0xff] %v13416_v30  ;;  %v14420_v10 = vld [vmem:[%s18726_s4 + $0x560] sm:$0xff]   ;;  %19038 = vst [vmem:[#allocation111_spill] sm:$0xff] %v17645_v36 }
 0x5e4   : >> { %v6583_v27 = vpop.f32.mrf.mxu1  ;;  %v6891_v33 = vpop.f32.mrf.mxu0 }
 0x5e5   : >> { %v14421_v33 = vld [vmem:[%s18726_s4 + $0x518] sm:$0xff]  }
 0x5e6   : >> { %13784 = vmatpush3.bf16.msra.mxu1 %v14415_v15  ;;  %13832 = vmatpush3.bf16.msra.mxu0 %v14416_v22  ;;  %v13419_v39 = vpop.f32.mrf.mxu1  ;;  %v13467_v30 = vpop.f32.mrf.mxu0  ;;  %v17589_v15 = vld [vmem:[#allocation2 + $0x25] sm:$0xff] }
 0x5e7   : >> { %13785 = vmatprep.subr.bf16.mxu1 %v14417_v32  ;;  %13833 = vmatprep.subr.bf16.mxu0 %v14418_v49  ;;  %6713 = vst [vmem:[#allocation2 + $0x30] sm:$0xff] %v13419_v39  ;;  %v14422_v39 = vld [vmem:[%s18726_s4 + $0x558] sm:$0xff]  }
 0x5e8   : >> { %13706 = vmatmul.mubr.bf16.gmra.mxu1 %v18970_v17  ;;  %13754 = vmatmul.mubr.bf16.gmra.mxu0 %v18970_v17  ;;  %v6596_v22 = vpop.f32.mrf.mxu1  ;;  %v6904_v27 = vpop.f32.mrf.mxu0 }
 0x5e9   : >> { %13709 = vmatprep.mubr.bf16.mxu1 %v18971_v14  ;;  %13757 = vmatprep.mubr.bf16.mxu0 %v18971_v14  ;;  %6711 = vst [vmem:[#allocation2 + $0x20] sm:$0xff] %v6596_v22  ;;  %v14424_v22 = vld [vmem:[%s18726_s4 + $0x550] sm:$0xff]  }
 0x5ea   : >> { %13786 = vmatpush3.bf16.msra.mxu1 %v14417_v32  ;;  %13834 = vmatpush3.bf16.msra.mxu0 %v14418_v49  ;;  %v13420_v60 = vpop.f32.mrf.mxu1  ;;  %v17599_v54 = vpop.f32.mrf.mxu0  ;;  %v14423_v49 = vld [vmem:[%s18726_s4 + $0x510] sm:$0xff]  }
 0x5eb   : >> { %13787 = vmatprep.subr.bf16.mxu1 %v14419_v24  ;;  %13835 = vmatprep.subr.bf16.mxu0 %v14420_v10  ;;  %6714 = vst [vmem:[#allocation2 + $0x38] sm:$0xff] %v13420_v60 }
 0x5ec   : >> { %v6599_v34 = vpop.f32.mrf.mxu1  ;;  %v6907_v32 = vpop.f32.mrf.mxu0 }
 0x5ed   : >> { %6712 = vst [vmem:[#allocation2 + $0x28] sm:$0xff] %v6599_v34  ;;  %v17617_v34 = vld [vmem:[#allocation2 + $0x45] sm:$0xff] }
 0x5ee   : >> { %13788 = vmatpush3.bf16.msra.mxu1 %v14419_v24  ;;  %13836 = vmatpush3.bf16.msra.mxu0 %v14420_v10  ;;  %v13423_v60 = vpop.f32.mrf.mxu1  ;;  %v17611_v18 = vpop.f32.mrf.mxu0  ;;  %19032 = vst [vmem:[#allocation5_spill] sm:$0xff] %v17617_v34 }
 0x5ef   : >> { %13789 = vmatprep.subr.bf16.mxu1 %v14421_v33  ;;  %13837 = vmatprep.subr.bf16.mxu0 %v14422_v39  ;;  %6717 = vst [vmem:[#allocation2 + $0x50] sm:$0xff] %v13423_v60  ;;  %v14425_v60 = vld [vmem:[%s18726_s4 + $0x508] sm:$0xff]  }
 0x5f0   : >> { %13710 = vmatmul.mubr.bf16.gmra.mxu1 %v16072_v38  ;;  %13758 = vmatmul.mubr.bf16.gmra.mxu0 %v16072_v38  ;;  %v17619_v24 = vld [vmem:[#allocation2 + $0x1e] sm:$0xff]  ;;  %v6612_v10 = vpop.f32.mrf.mxu1  ;;  %v6920_v57 = vpop.f32.mrf.mxu0 }
 0x5f1   : >> { %13713 = vmatprep.mubr.bf16.mxu1 %v16080_v7  ;;  %13761 = vmatprep.mubr.bf16.mxu0 %v16080_v7  ;;  %19033 = vst [vmem:[#allocation6_spill] sm:$0xff] %v17619_v24  ;;  %7018 = vst [vmem:[#allocation2 + $0x18] sm:$0xff] %v13464_v50  ;;  %v14426_v7 = vld [vmem:[%s18726_s4 + $0x548] sm:$0xff]   ;;  %v17627_v38 = vld [vmem:[#allocation2 + $0x5d] sm:$0xff] }
 0x5f2   : >> { %13790 = vmatpush3.bf16.msra.mxu1 %v14421_v33  ;;  %13838 = vmatpush3.bf16.msra.mxu0 %v14422_v39  ;;  %6715 = vst [vmem:[#allocation2 + $0x40] sm:$0xff] %v6612_v10  ;;  %19034 = vst [vmem:[#allocation107_spill] sm:$0xff] %v17627_v38  ;;  %v13424_v34 = vpop.f32.mrf.mxu1  ;;  %v17629_v24 = vpop.f32.mrf.mxu0  ;;  %v17631_v33 = vld [vmem:[#allocation2 + $0x36] sm:$0xff]  ;;  %v14428_v38 = vld [vmem:[%s18726_s4 + $0x540] sm:$0xff]  }
 0x5f3   : >> { %13791 = vmatprep.subr.bf16.mxu1 %v14423_v49  ;;  %13839 = vmatprep.subr.bf16.mxu0 %v14424_v22  ;;  %6718 = vst [vmem:[#allocation2 + $0x58] sm:$0xff] %v13424_v34  ;;  %19035 = vst [vmem:[#allocation108_spill] sm:$0xff] %v17631_v33  ;;  %v14427_v34 = vld [vmem:[%s18726_s4 + $0x500] sm:$0xff]  }
 0x5f4   : >> { %v17633_v50 = vld [vmem:[#allocation2 + $0x26] sm:$0xff]  ;;  %v17635_v39 = vld [vmem:[#allocation2 + $0x2e] sm:$0xff]  ;;  %v6615_v10 = vpop.f32.mrf.mxu1  ;;  %v6923_v59 = vpop.f32.mrf.mxu0 }
 0x5f5   : >> { %19036 = vst [vmem:[#allocation109_spill] sm:$0xff] %v17633_v50  ;;  %7019 = vst [vmem:[#allocation2 + $0x20] sm:$0xff] %v6904_v27  ;;  %v17643_v50 = vld [vmem:[#allocation2 + $0x6d] sm:$0xff] }
 0x5f6   : >> { %13792 = vmatpush3.bf16.msra.mxu1 %v14423_v49  ;;  %13840 = vmatpush3.bf16.msra.mxu0 %v14424_v22  ;;  %7021 = vst [vmem:[#allocation2 + $0x30] sm:$0xff] %v13467_v30  ;;  %7020 = vst [vmem:[#allocation2 + $0x28] sm:$0xff] %v6907_v32  ;;  %v13427_v49 = vpop.f32.mrf.mxu1  ;;  %v13475_v22 = vpop.f32.mrf.mxu0  ;;  %v17651_v30 = vld [vmem:[#allocation2 + $0x65] sm:$0xff] }
 0x5f7   : >> { %6716 = vst [vmem:[#allocation2 + $0x48] sm:$0xff] %v6615_v10  ;;  %13793 = vmatprep.subr.bf16.mxu1 %v14425_v60  ;;  %13841 = vmatprep.subr.bf16.mxu0 %v14426_v7  ;;  %19037 = vst [vmem:[#allocation110_spill] sm:$0xff] %v17643_v50 }
 0x5f8   : >> { %13714 = vmatmul.mubr.bf16.gmra.mxu1 %v18883_v0  ;;  %13762 = vmatmul.mubr.bf16.gmra.mxu0 %v18883_v0  ;;  %6721 = vst [vmem:[#allocation2 + $0x70] sm:$0xff] %v13427_v49  ;;  %19039 = vst [vmem:[#allocation112_spill] sm:$0xff] %v17651_v30  ;;  %v6628_v32 = vpop.f32.mrf.mxu1  ;;  %v6936_v10 = vpop.f32.mrf.mxu0  ;;  %v17659_v49 = vld [vmem:[%s18726_s4 + $0x5b8] sm:$0xff]  }
 0x5f9   : >> { %13717 = vmatprep.mubr.bf16.mxu1 %v18884_v56  ;;  %13765 = vmatprep.mubr.bf16.mxu0 %v18884_v56  ;;  %v17653_v27 = vld [vmem:[#allocation2 + $0x3e] sm:$0xff]  ;;  %6719 = vst [vmem:[#allocation2 + $0x60] sm:$0xff] %v6628_v32 }
 0x5fa   : >> { %19040 = vst [vmem:[#allocation113_spill] sm:$0xff] %v17653_v27  ;;  %13794 = vmatpush3.bf16.msra.mxu1 %v14425_v60  ;;  %13842 = vmatpush3.bf16.msra.mxu0 %v14426_v7  ;;  %7022 = vst [vmem:[#allocation2 + $0x38] sm:$0xff] %v17599_v54  ;;  %v17664_v56 = vld [vmem:[%s18726_s4 + $0x5f8] sm:$0xff]   ;;  %v13428_v0 = vpop.f32.mrf.mxu1  ;;  %v13476_v60 = vpop.f32.mrf.mxu0 }
 0x5fb   : >> { %13795 = vmatprep.subr.bf16.mxu1 %v14427_v34  ;;  %13843 = vmatprep.subr.bf16.mxu0 %v14428_v38  ;;  %v17666_v30 = vld [vmem:[#allocation2 + $0x7d] sm:$0xff] }
 0x5fc   : >> { %19041 = vst [vmem:[#allocation114_spill] sm:$0xff] %v17666_v30  ;;  %6722 = vst [vmem:[#allocation2 + $0x78] sm:$0xff] %v13428_v0  ;;  %v6631_v54 = vpop.f32.mrf.mxu1  ;;  %v6939_v32 = vpop.f32.mrf.mxu0  ;;  %v17670_v36 = vld [vmem:[#allocation2 + $0x56] sm:$0xff]  ;;  %v17676_v30 = vld [vmem:[#allocation2 + $0x8d] sm:$0xff] }
 0x5fd   : >> { %19043 = vst [vmem:[#allocation116_spill] sm:$0xff] %v17670_v36  ;;  %6720 = vst [vmem:[#allocation2 + $0x68] sm:$0xff] %v6631_v54  ;;  %v17679_v0 = vld [vmem:[#allocation2 + $0x95] sm:$0xff] }
 0x5fe   : >> { %v17668_v7 = vld [vmem:[#allocation2 + $0x46] sm:$0xff]  ;;  %13796 = vmatpush3.bf16.msra.mxu1 %v14427_v34  ;;  %13844 = vmatpush3.bf16.msra.mxu0 %v14428_v38  ;;  %v17672_v50 = vld [vmem:[#allocation2 + $0x4e] sm:$0xff]  ;;  %19045 = vst [vmem:[#allocation118_spill] sm:$0xff] %v17676_v30  ;;  %19046 = vst [vmem:[#allocation119_spill] sm:$0xff] %v17679_v0  ;;  %v13479_v34 = vpop.f32.mrf.mxu0 }
 0x5ff   : >> { %19042 = vst [vmem:[#allocation115_spill] sm:$0xff] %v17668_v7  ;;  %19044 = vst [vmem:[#allocation117_spill] sm:$0xff] %v17672_v50  ;;  %13877 = vmatprep.subr.bf16.mxu1 %v17659_v49  ;;  %13925 = vmatprep.subr.bf16.mxu0 %v17664_v56  ;;  %v13431_v7 = vpop.f32.mrf.mxu1  ;;  %v17685_v38 = vld [vmem:[#allocation2 + $0x85] sm:$0xff]  ;;  %v19071_v27 = vld [vmem:[#allocation38_spill] sm:$0xff] }
 0x600   : >> { %7023 = vst [vmem:[#allocation2 + $0x40] sm:$0xff] %v6920_v57  ;;  %7025 = vst [vmem:[#allocation2 + $0x50] sm:$0xff] %v17611_v18  ;;  %13718 = vmatmul.mubr.bf16.gmra.mxu1 %v18900_v12  ;;  %13766 = vmatmul.mubr.bf16.gmra.mxu0 %v18900_v12  ;;  %v17687_v57 = vld [vmem:[#allocation2 + $0x5e] sm:$0xff]  ;;  %v6952_v18 = vpop.f32.mrf.mxu0 }
 0x601   : >> { %7024 = vst [vmem:[#allocation2 + $0x48] sm:$0xff] %v6923_v59  ;;  %6725 = vst [vmem:[#allocation2 + $0x90] sm:$0xff] %v13431_v7  ;;  %13721 = vmatprep.mubr.bf16.mxu1 %v18901_v29  ;;  %13769 = vmatprep.mubr.bf16.mxu0 %v18901_v29  ;;  %v6644_v54 = vpop.f32.mrf.mxu1  ;;  %v17690_v59 = vld [vmem:[#allocation2 + $0x9d] sm:$0xff] }
 0x602   : >> { %19047 = vst [vmem:[#allocation120_spill] sm:$0xff] %v17685_v38  ;;  %19048 = vst [vmem:[#allocation121_spill] sm:$0xff] %v17687_v57  ;;  %v13480_v30 = vpop.f32.mrf.mxu0  ;;  %v17698_v57 = vld [vmem:[#allocation2 + $0xad] sm:$0xff]  ;;  %v19072_v50 = vld [vmem:[#allocation70_spill] sm:$0xff] }
 0x603   : >> { %7026 = vst [vmem:[#allocation2 + $0x58] sm:$0xff] %v17629_v24  ;;  %6723 = vst [vmem:[#allocation2 + $0x80] sm:$0xff] %v6644_v54  ;;  %v13432_v0 = vpop.f32.mrf.mxu1  ;;  %v17692_v12 = vld [vmem:[#allocation2 + $0x76] sm:$0xff] }
 0x604   : >> { %19049 = vst [vmem:[#allocation122_spill] sm:$0xff] %v17690_v59  ;;  %6726 = vst [vmem:[#allocation2 + $0x98] sm:$0xff] %v13432_v0  ;;  %v17694_v7 = vld [vmem:[#allocation2 + $0x66] sm:$0xff]  ;;  %v17696_v36 = vld [vmem:[#allocation2 + $0x6e] sm:$0xff]  ;;  %v6955_v38 = vpop.f32.mrf.mxu0 }
 0x605   : >> { %19050 = vst [vmem:[#allocation123_spill] sm:$0xff] %v17692_v12  ;;  %19051 = vst [vmem:[#allocation124_spill] sm:$0xff] %v17694_v7  ;;  %v6647_v29 = vpop.f32.mrf.mxu1  ;;  %v17700_v24 = vld [vmem:[#allocation2 + $0xb5] sm:$0xff]  ;;  %v17706_v0 = vld [vmem:[#allocation2 + $0xa5] sm:$0xff] }
 0x606   : >> { %19052 = vst [vmem:[#allocation125_spill] sm:$0xff] %v17696_v36  ;;  %7027 = vst [vmem:[#allocation2 + $0x60] sm:$0xff] %v6936_v10  ;;  %v19070_v36 = vld [vmem:[#allocation36_spill] sm:$0xff] }
 0x607   : >> { %7029 = vst [vmem:[#allocation2 + $0x70] sm:$0xff] %v13475_v22  ;;  %7028 = vst [vmem:[#allocation2 + $0x68] sm:$0xff] %v6939_v32  ;;  %v17710_v32 = vld [vmem:[#allocation2 + $0xbd] sm:$0xff] }
 0x608   : >> { %6724 = vst [vmem:[#allocation2 + $0x88] sm:$0xff] %v6647_v29  ;;  %19053 = vst [vmem:[#allocation126_spill] sm:$0xff] %v17698_v57  ;;  %v13435_v54 = vpop.f32.mrf.mxu1  ;;  %v13483_v59 = vpop.f32.mrf.mxu0  ;;  %13722 = vmatmul.mubr.bf16.gmra.mxu1 %v18924_v63  ;;  %13770 = vmatmul.mubr.bf16.gmra.mxu0 %v18924_v63 }
 0x609   : >> { %19054 = vst [vmem:[#allocation127_spill] sm:$0xff] %v17700_v24  ;;  %6729 = vst [vmem:[#allocation2 + $0xb0] sm:$0xff] %v13435_v54  ;;  %13725 = vmatprep.mubr.bf16.mxu1 %v18925_v28  ;;  %13773 = vmatprep.mubr.bf16.mxu0 %v18925_v28 }
 0x60a   : >> { %19055 = vst [vmem:[#allocation128_spill] sm:$0xff] %v17706_v0  ;;  %v17708_v22 = vld [vmem:[#allocation2 + $0x7e] sm:$0xff]  ;;  %v6660_v29 = vpop.f32.mrf.mxu1  ;;  %v6968_v10 = vpop.f32.mrf.mxu0  ;;  %19057 = vst [vmem:[#allocation130_spill] sm:$0xff] %v17710_v32  ;;  %v17718_v0 = vld [vmem:[#allocation2 + $0xcd] sm:$0xff] }
 0x60b   : >> { %19056 = vst [vmem:[#allocation129_spill] sm:$0xff] %v17708_v22  ;;  %7030 = vst [vmem:[#allocation2 + $0x78] sm:$0xff] %v13476_v60  ;;  %v17712_v54 = vld [vmem:[#allocation2 + $0x96] sm:$0xff] }
 0x60c   : >> { %6727 = vst [vmem:[#allocation2 + $0xa0] sm:$0xff] %v6660_v29  ;;  %v13436_v24 = vpop.f32.mrf.mxu1  ;;  %v13484_v57 = vpop.f32.mrf.mxu0  ;;  %19058 = vst [vmem:[#allocation131_spill] sm:$0xff] %v17712_v54  ;;  %v17720_v60 = vld [vmem:[#allocation2 + $0xd5] sm:$0xff]  ;;  %v19068_v54 = vld [vmem:[#allocation35_spill] sm:$0xff] }
 0x60d   : >> { %6730 = vst [vmem:[#allocation2 + $0xb8] sm:$0xff] %v13436_v24  ;;  %19061 = vst [vmem:[#allocation134_spill] sm:$0xff] %v17718_v0  ;;  %v19063_v24 = vld [vmem:[#allocation18_spill] sm:$0xff]  ;;  %v17728_v0 = vld [vmem:[#allocation2 + $0xc5] sm:$0xff] }
 0x60e   : >> { %v6663_v7 = vpop.f32.mrf.mxu1  ;;  %v6971_v63 = vpop.f32.mrf.mxu0  ;;  %19062 = vst [vmem:[#allocation135_spill] sm:$0xff] %v17720_v60  ;;  %19065 = vst [vmem:[#allocation18_spill] sm:$0xff] %v17728_v0  ;;  %v19067_v60 = vld [vmem:[#allocation19_spill] sm:$0xff] }
 0x60f   : >> { %v17714_v12 = vld [vmem:[#allocation2 + $0x86] sm:$0xff]  ;;  %v17716_v28 = vld [vmem:[#allocation2 + $0x8e] sm:$0xff]  ;;  %6728 = vst [vmem:[#allocation2 + $0xa8] sm:$0xff] %v6663_v7  ;;  %v19064_v7 = vld [vmem:[#allocation34_spill] sm:$0xff]  ;;  %v3381_v22 = vadd.f32 %v19068_v54, %v19067_v60 }
 0x610   : >> { %19059 = vst [vmem:[#allocation132_spill] sm:$0xff] %v17714_v12  ;;  %19060 = vst [vmem:[#allocation133_spill] sm:$0xff] %v17716_v28  ;;  %v13439_v29 = vpop.f32.mrf.mxu1  ;;  %v13487_v32 = vpop.f32.mrf.mxu0  ;;  %13726 = vmatmul.mubr.bf16.gmra.mxu1 %v18946_v44  ;;  %13774 = vmatmul.mubr.bf16.gmra.mxu0 %v18946_v44  ;;  %v3377_v12 = vadd.f32 %v19064_v7, %v19063_v24  ;;  %v17734_v44 = vld [vmem:[#allocation2 + $0xdd] sm:$0xf] }
 0x611   : >> { %7031 = vst [vmem:[#allocation2 + $0x80] sm:$0xff] %v6952_v18  ;;  %7033 = vst [vmem:[#allocation2 + $0x90] sm:$0xff] %v13479_v34  ;;  %13729 = vmatprep.mubr.bf16.mxu1 %v16128_v2  ;;  %13777 = vmatprep.mubr.bf16.mxu0 %v16128_v2  ;;  %v3689_v24 = vadd.f32 %v19071_v27, %v3381_v22  ;;  %v19073_v54 = vld [vmem:[#allocation71_spill] sm:$0xff]  ;;  %v19074_v27 = vld [vmem:[#allocation74_spill] sm:$0xff] }
 0x612   : >> { %7032 = vst [vmem:[#allocation2 + $0x88] sm:$0xff] %v6955_v38  ;;  %6733 = vst [vmem:[#allocation2 + $0xd0] sm:$0xff] %v13439_v29  ;;  %v6676_v38 = vpop.f32.mrf.mxu1  ;;  %v6984_v18 = vpop.f32.mrf.mxu0  ;;  %v3685_v2 = vadd.f32 %v19070_v36, %v3377_v12 }
 0x613   : >> { %v17730_v34 = vld [vmem:[#allocation2 + $0x9e] sm:$0xff]  ;;  %6731 = vst [vmem:[#allocation2 + $0xc0] sm:$0xff] %v6676_v38  ;;  %19069 = vst [vmem:[#allocation19_spill] sm:$0xff] %v17734_v44  ;;  %v3997_v60 = vadd.f32 %v19073_v54, %v3689_v24 }
 0x614   : >> { %19066 = vst [vmem:[#allocation34_spill] sm:$0xff] %v17730_v34  ;;  %7034 = vst [vmem:[#allocation2 + $0x98] sm:$0xff] %v13480_v30  ;;  %v13440_v29 = vpop.f32.mrf.mxu1  ;;  %v13488_v28 = vpop.f32.mrf.mxu0  ;;  %v17738_v7 = vld [vmem:[#allocation2 + $0xb6] sm:$0xff]  ;;  %v3993_v33 = vadd.f32 %v19072_v50, %v3685_v2 }
 0x615   : >> { %6734 = vst [vmem:[#allocation2 + $0xd8] sm:$0xff] %v13440_v29 }
 0x616   : >> { %v17740_v0 = vld [vmem:[#allocation2 + $0xa6] sm:$0xff]  ;;  %v17742_v34 = vld [vmem:[#allocation2 + $0xae] sm:$0xff]  ;;  %v6679_v30 = vpop.f32.mrf.mxu1  ;;  %v6987_v38 = vpop.f32.mrf.mxu0  ;;  %v4301_v22 = vadd.f32 %v19074_v27, %v3993_v33  ;;  %v5534_v27 = vadd.f32 %v17275_v51, %v16967_v8 }
 0x617   : >> { %7035 = vst [vmem:[#allocation2 + $0xa0] sm:$0xff] %v6968_v10  ;;  %7037 = vst [vmem:[#allocation2 + $0xb0] sm:$0xff] %v13483_v59  ;;  %v19076_v10 = vld [vmem:[#allocation103_spill] sm:$0xff] }
 0x618   : >> { %7036 = vst [vmem:[#allocation2 + $0xa8] sm:$0xff] %v6971_v63  ;;  %6732 = vst [vmem:[#allocation2 + $0xc8] sm:$0xff] %v6679_v30  ;;  %v13443_v12 = vpop.f32.mrf.mxu1  ;;  %v13491_v36 = vpop.f32.mrf.mxu0  ;;  %13730 = vmatmul.mubr.bf16.gmra.mxu1 %v16134_v20  ;;  %13778 = vmatmul.mubr.bf16.gmra.mxu0 %v16134_v20  ;;  %v19075_v63 = vld [vmem:[#allocation80_spill] sm:$0xff]  ;;  %v4609_v24 = vadd.f32 %v19076_v10, %v4301_v22  ;;  %v5842_v8 = vadd.f32 %v17394_v16, %v5534_v27 }
 0x619   : >> { %13797 = vmatprep.mubr.bf16.mxu1 %v15985_v23  ;;  %13845 = vmatprep.mubr.bf16.mxu0 %v15985_v23  ;;  %v4305_v59 = vadd.f32 %v19075_v63, %v3997_v60  ;;  %v19077_v12 = vld [vmem:[#allocation105_spill] sm:$0xff] }
 0x61a   : >> { %v17751_v29 = vld [vmem:[#allocation2 + $0xbe] sm:$0xff]  ;;  %v6692_v2 = vpop.f32.mrf.mxu1  ;;  %v7000_v50 = vpop.f32.mrf.mxu0  ;;  %v4917_v33 = vadd.f32 %v17213_v6, %v4609_v24  ;;  %v14431_v60 = vld [vmem:[%s18726_s4 + $0x5b0] sm:$0xff]   ;;  %v6150_v63 = vadd.f32 %v17440_v41, %v5842_v8  ;;  %v7048_v8 = vld [vmem:[#allocation2 + $0x27] sm:$0xff] }
 0x61b   : >> { %7038 = vst [vmem:[#allocation2 + $0xb8] sm:$0xff] %v13484_v57  ;;  %6735 = vst [vmem:[#allocation2 + $0xe0] sm:$0xff] %v6692_v2  ;;  %v4613_v36 = vadd.f32 %v19077_v12, %v4305_v59  ;;  %v14432_v6 = vld [vmem:[%s18726_s4 + $0x5f0] sm:$0xff]  }
 0x61c   : >> { %v13444_v30 = vpop.f32.mrf.mxu1  ;;  %v13492_v54 = vpop.f32.mrf.mxu0  ;;  %v17765_v22 = vld [vmem:[#allocation2 + $0xd6] sm:$0xff] }
 0x61d   : >> { %v4921_v57 = vadd.f32 %v17239_v58, %v4613_v36  ;;  %v19078_v58 = vld [vmem:[#allocation104_spill] sm:$0xff]  ;;  %v17801_v30 = vadd.f32 %v17301_v52, %v17060_v4  ;;  %v5538_v54 = vadd.f32 %v17303_v43, %v17033_v21  ;;  %v14435_v21 = vld [vmem:[%s18726_s4 + $0x5a0] sm:$0xff]  }
 0x61e   : >> { %v6695_v23 = vpop.f32.mrf.mxu1  ;;  %v7003_v20 = vpop.f32.mrf.mxu0  ;;  %v5225_v51 = vadd.f32 %v19078_v58, %v4917_v33  ;;  %v14436_v52 = vld [vmem:[%s18726_s4 + $0x5e0] sm:$0xff]   ;;  %v19084_v58 = vld [vmem:[#allocation26_spill] sm:$0xff] }
 0x61f   : >> { %v17759_v44 = vld [vmem:[#allocation2 + $0xc6] sm:$0xff]  ;;  %v17767_v2 = vld [vmem:[#allocation2 + $0xce] sm:$0xff]  ;;  %v5229_v59 = vadd.f32 %v16897_v55, %v4921_v57  ;;  %v5846_v43 = vadd.f32 %v17422_v45, %v5538_v54  ;;  %v19090_v54 = vld [vmem:[#allocation46_spill] sm:$0xff] }
 0x620   : >> { %7039 = vst [vmem:[#allocation2 + $0xc0] sm:$0xff] %v6984_v18  ;;  %7041 = vst [vmem:[#allocation2 + $0xd0] sm:$0xff] %v13487_v32  ;;  %v13511_v23 = vpop.f32.mrf.mxu1  ;;  %v13559_v20 = vpop.f32.mrf.mxu0  ;;  %13798 = vmatmul.mubr.bf16.vlgmr.msra.gmra.mxu1 %v15991_v31  ;;  %13846 = vmatmul.mubr.bf16.vlgmr.msra.gmra.mxu0 %v15991_v31  ;;  %v5535_v18 = vadd.f32 %v17277_v37, %v16999_v42  ;;  %v5533_v10 = vadd.f32 %v17265_v25, %v5225_v51  ;;  %v14433_v42 = vld [vmem:[%s18726_s4 + $0x5a8] sm:$0xff]  }
 0x621   : >> { %7040 = vst [vmem:[#allocation2 + $0xc8] sm:$0xff] %v6987_v38  ;;  %13801 = vmatprep.mubr.bf16.mxu1 %v18966_v61  ;;  %13849 = vmatprep.mubr.bf16.mxu0 %v18966_v61  ;;  %v14434_v37 = vld [vmem:[%s18726_s4 + $0x5e8] sm:$0xff]   ;;  %v5537_v25 = vadd.f32 %v17289_v53, %v5229_v59  ;;  %v6154_v45 = vadd.f32 %v17477_v5, %v5846_v43  ;;  %v17836_v23 = vld [vmem:[#allocation2 + $0x1f] sm:$0xff] }
 0x622   : >> { %v17781_v16 = vld [vmem:[#allocation2 + $0xde] sm:$0xf]  ;;  %v7196_v32 = vpop.f32.mrf.mxu1  ;;  %v7504_v38 = vpop.f32.mrf.mxu0  ;;  %13878 = vmatpush3.bf16.msra.mxu1 %v17659_v49  ;;  %13926 = vmatpush3.bf16.msra.mxu0 %v17664_v56  ;;  %v5843_v41 = vadd.f32 %v17386_v35, %v5535_v18  ;;  %v6458_v56 = vadd.f32 %v17581_v40, %v6150_v63  ;;  %v7049_v49 = vld [vmem:[#allocation2 + $0x2f] sm:$0xff] }
 0x623   : >> { %7042 = vst [vmem:[#allocation2 + $0xd8] sm:$0xff] %v13488_v28  ;;  %7043 = vst [vmem:[#allocation2 + $0xe0] sm:$0xff] %v7000_v50  ;;  %13879 = vmatprep.subr.bf16.mxu1 %v14431_v60  ;;  %13927 = vmatprep.subr.bf16.mxu0 %v14432_v6  ;;  %v5536_v28 = vadd.f32 %v17273_v13, %v16996_v46  ;;  %v5841_v50 = vadd.f32 %v17376_v62, %v5533_v10  ;;  %v19079_v46 = vld [vmem:[#allocation37_spill] sm:$0xff]  ;;  %v19080_v53 = vld [vmem:[#allocation20_spill] sm:$0xff] }
 0x624   : >> { %v13512_v55 = vpop.f32.mrf.mxu1  ;;  %v13560_v24 = vpop.f32.mrf.mxu0  ;;  %v6151_v35 = vadd.f32 %v17436_v1, %v5843_v41  ;;  %v6766_v40 = vadd.f32 %v17635_v39, %v6458_v56  ;;  %v17809_v13 = vadd.f32 %v17314_v9, %v19079_v46  ;;  %v5539_v62 = vadd.f32 %v17305_v26, %v19080_v53  ;;  %v7050_v39 = vld [vmem:[#allocation2 + $0x37] sm:$0xff]  ;;  %v19086_v38 = vld [vmem:[#allocation4_spill] sm:$0xff]  ;;  %v7051_v56 = vld [vmem:[#allocation2 + $0x3f] sm:$0xff] }
 0x625   : >> { %v6149_v4 = vadd.f32 %v17438_v11, %v5841_v50  ;;  %v17826_v11 = vadd.f32 %v17316_v48, %v17117_v19  ;;  %v5844_v27 = vadd.f32 %v17388_v47, %v5536_v28  ;;  %v19082_v47 = vld [vmem:[#allocation39_spill] sm:$0xff]  ;;  %v19085_v18 = vld [vmem:[#allocation61_spill] sm:$0xff]  ;;  %v14437_v5 = vld [vmem:[%s18726_s4 + $0x598] sm:$0xff]   ;;  %v6462_v59 = vadd.f32 %v19086_v38, %v6154_v45 }
 0x626   : >> { %v7199_v12 = vpop.f32.mrf.mxu1  ;;  %v7507_v36 = vpop.f32.mrf.mxu0  ;;  %13880 = vmatpush3.bf16.msra.mxu1 %v14431_v60  ;;  %13928 = vmatpush3.bf16.msra.mxu0 %v14432_v6  ;;  %v6459_v9 = vadd.f32 %v17583_v3, %v6151_v35  ;;  %v7074_v1 = vadd.f32 %v7049_v49, %v6766_v40  ;;  %v19081_v3 = vld [vmem:[#allocation108_spill] sm:$0xff]  ;;  %v5847_v51 = vadd.f32 %v19084_v58, %v5539_v62  ;;  %v14438_v32 = vld [vmem:[%s18726_s4 + $0x5d8] sm:$0xff]   ;;  %v19088_v24 = vld [vmem:[#allocation21_spill] sm:$0xff] }
 0x627   : >> { %13881 = vmatprep.subr.bf16.mxu1 %v14433_v42  ;;  %13929 = vmatprep.subr.bf16.mxu0 %v14434_v37  ;;  %v6457_v60 = vadd.f32 %v17589_v15, %v6149_v4  ;;  %v19083_v15 = vld [vmem:[#allocation41_spill] sm:$0xff]  ;;  %v6152_v63 = vadd.f32 %v19085_v18, %v5844_v27  ;;  %v19089_v28 = vld [vmem:[#allocation76_spill] sm:$0xff]  ;;  %v19091_v35 = vld [vmem:[#allocation50_spill] sm:$0xff] }
 0x628   : >> { %v13515_v33 = vpop.f32.mrf.mxu1  ;;  %v13563_v26 = vpop.f32.mrf.mxu0  ;;  %13802 = vmatmul.mubr.bf16.gmra.mxu1 %v18970_v17  ;;  %13850 = vmatmul.mubr.bf16.gmra.mxu0 %v18970_v17  ;;  %v6767_v57 = vadd.f32 %v19081_v3, %v6459_v9  ;;  %v5542_v20 = vadd.f32 %v19083_v15, %v19082_v47  ;;  %v7053_v41 = vld [vmem:[#allocation2 + $0x4f] sm:$0xff]  ;;  %v17852_v50 = vadd.f32 %v19089_v28, %v19088_v24  ;;  %v19093_v46 = vld [vmem:[#allocation23_spill] sm:$0xff]  ;;  %v19096_v27 = vld [vmem:[#allocation58_spill] sm:$0xff] }
 0x629   : >> { %7637 = vst [vmem:[#allocation2 + $0x30] sm:$0xff] %v13563_v26  ;;  %13805 = vmatprep.mubr.bf16.mxu1 %v18971_v14  ;;  %13853 = vmatprep.mubr.bf16.mxu0 %v18971_v14  ;;  %v17834_v6 = vadd.f32 %v13515_v33, %v7074_v1  ;;  %v5543_v40 = vadd.f32 %v19091_v35, %v19090_v54  ;;  %v19092_v12 = vld [vmem:[#allocation89_spill] sm:$0xff]  ;;  %v19095_v43 = vld [vmem:[#allocation99_spill] sm:$0xff]  ;;  %v19097_v45 = vld [vmem:[#allocation102_spill] sm:$0xff] }
 0x62a   : >> { %v7212_v19 = vpop.f32.mrf.mxu1  ;;  %v7520_v48 = vpop.f32.mrf.mxu0  ;;  %13882 = vmatpush3.bf16.msra.mxu1 %v14433_v42  ;;  %13930 = vmatpush3.bf16.msra.mxu0 %v14434_v37  ;;  %v7075_v10 = vadd.f32 %v7050_v39, %v6767_v57  ;;  %v19087_v42 = vld [vmem:[#allocation109_spill] sm:$0xff]  ;;  %v6155_v36 = vadd.f32 %v19092_v12, %v5847_v51  ;;  %v5845_v53 = vadd.f32 %v19093_v46, %v5537_v25  ;;  %v19098_v57 = vld [vmem:[#allocation92_spill] sm:$0xff]  ;;  %v19100_v51 = vld [vmem:[#allocation7_spill] sm:$0xff] }
 0x62b   : >> { %7327 = vst [vmem:[#allocation2 + $0x20] sm:$0xff] %v7212_v19  ;;  %13883 = vmatprep.subr.bf16.mxu1 %v14435_v21  ;;  %13931 = vmatprep.subr.bf16.mxu0 %v14436_v52  ;;  %v6765_v37 = vadd.f32 %v19087_v42, %v6457_v60  ;;  %v19094_v62 = vld [vmem:[#allocation117_spill] sm:$0xff]  ;;  %v6460_v9 = vadd.f32 %v19095_v43, %v6152_v63  ;;  %v7052_v28 = vld [vmem:[#allocation2 + $0x47] sm:$0xff] }
 0x62c   : >> { %v13516_v49 = vpop.f32.mrf.mxu1  ;;  %v13564_v55 = vpop.f32.mrf.mxu0  ;;  %v6770_v4 = vadd.f32 %v19094_v62, %v6462_v59  ;;  %v5850_v60 = vadd.f32 %v19096_v27, %v5542_v20  ;;  %v6463_v3 = vadd.f32 %v19097_v45, %v6155_v36  ;;  %v6153_v19 = vadd.f32 %v19098_v57, %v5845_v53  ;;  %v14439_v25 = vld [vmem:[%s18726_s4 + $0x590] sm:$0xff]   ;;  %v19106_v12 = vld [vmem:[#allocation47_spill] sm:$0xff]  ;;  %v19108_v53 = vld [vmem:[#allocation60_spill] sm:$0xff] }
 0x62d   : >> { %7638 = vst [vmem:[#allocation2 + $0x38] sm:$0xff] %v13564_v55  ;;  %v17860_v1 = vadd.f32 %v13516_v49, %v7075_v10  ;;  %v7073_v39 = vadd.f32 %v7048_v8, %v6765_v37  ;;  %v14440_v8 = vld [vmem:[%s18726_s4 + $0x5d0] sm:$0xff]   ;;  %v19104_v37 = vld [vmem:[#allocation8_spill] sm:$0xff]  ;;  %v5851_v36 = vadd.f32 %v19106_v12, %v5543_v40  ;;  %v7055_v40 = vld [vmem:[#allocation2 + $0x5f] sm:$0xff] }
 0x62e   : >> { %v7215_v33 = vpop.f32.mrf.mxu1  ;;  %v7523_v26 = vpop.f32.mrf.mxu0  ;;  %13884 = vmatpush3.bf16.msra.mxu1 %v14435_v21  ;;  %13932 = vmatpush3.bf16.msra.mxu0 %v14436_v52  ;;  %v7078_v48 = vadd.f32 %v7053_v41, %v6770_v4  ;;  %v19099_v21 = vld [vmem:[#allocation113_spill] sm:$0xff]  ;;  %v19105_v41 = vld [vmem:[#allocation116_spill] sm:$0xff] }
 0x62f   : >> { %7636 = vst [vmem:[#allocation2 + $0x28] sm:$0xff] %v7523_v26  ;;  %13885 = vmatprep.subr.bf16.mxu1 %v14437_v5  ;;  %13933 = vmatprep.subr.bf16.mxu0 %v14438_v32  ;;  %v6768_v52 = vadd.f32 %v19099_v21, %v6460_v9  ;;  %v17872_v47 = vadd.f32 %v7215_v33, %v7073_v39  ;;  %v7054_v15 = vld [vmem:[#allocation2 + $0x57] sm:$0xff]  ;;  %v14441_v4 = vld [vmem:[%s18726_s4 + $0x588] sm:$0xff]  }
 0x630   : >> { %v13519_v20 = vpop.f32.mrf.mxu1  ;;  %v13567_v58 = vpop.f32.mrf.mxu0  ;;  %13806 = vmatmul.mubr.bf16.gmra.mxu1 %v19100_v51  ;;  %13854 = vmatmul.mubr.bf16.gmra.mxu0 %v19100_v51  ;;  %v19101_v18 = vld [vmem:[#allocation57_spill] sm:$0xff]  ;;  %v6771_v49 = vadd.f32 %v19105_v41, %v6463_v3  ;;  %v19110_v27 = vld [vmem:[#allocation72_spill] sm:$0xff] }
 0x631   : >> { %v6158_v63 = vadd.f32 %v19101_v18, %v5850_v60  ;;  %v19102_v38 = vld [vmem:[#allocation49_spill] sm:$0xff]  ;;  %7641 = vst [vmem:[#allocation2 + $0x50] sm:$0xff] %v13567_v58  ;;  %13809 = vmatprep.mubr.bf16.mxu1 %v19104_v37  ;;  %13857 = vmatprep.mubr.bf16.mxu0 %v19104_v37  ;;  %v17883_v55 = vadd.f32 %v13519_v20, %v7078_v48  ;;  %v19114_v48 = vld [vmem:[#allocation27_spill] sm:$0xff]  ;;  %v19118_v41 = vld [vmem:[#allocation56_spill] sm:$0xff] }
 0x632   : >> { %v5848_v59 = vadd.f32 %v19102_v38, %v17801_v30  ;;  %v19103_v10 = vld [vmem:[#allocation5_spill] sm:$0xff]  ;;  %v7076_v24 = vadd.f32 %v7051_v56, %v6768_v52  ;;  %v7228_v54 = vpop.f32.mrf.mxu1  ;;  %v7536_v35 = vpop.f32.mrf.mxu0  ;;  %13886 = vmatpush3.bf16.msra.mxu1 %v14437_v5  ;;  %13934 = vmatpush3.bf16.msra.mxu0 %v14438_v32  ;;  %v19107_v30 = vld [vmem:[#allocation110_spill] sm:$0xff]  ;;  %v14442_v56 = vld [vmem:[%s18726_s4 + $0x5c8] sm:$0xff]   ;;  %v7079_v43 = vadd.f32 %v7054_v15, %v6771_v49 }
 0x633   : >> { %v6461_v42 = vadd.f32 %v19103_v10, %v6153_v19  ;;  %v6466_v46 = vadd.f32 %v19107_v30, %v6158_v63  ;;  %7639 = vst [vmem:[#allocation2 + $0x40] sm:$0xff] %v7536_v35  ;;  %13887 = vmatprep.subr.bf16.mxu1 %v14439_v25  ;;  %13935 = vmatprep.subr.bf16.mxu0 %v14440_v8  ;;  %v19109_v5 = vld [vmem:[#allocation115_spill] sm:$0xff]  ;;  %v7057_v39 = vld [vmem:[#allocation2 + $0x6f] sm:$0xff]  ;;  %v19115_v52 = vld [vmem:[#allocation62_spill] sm:$0xff] }
 0x634   : >> { %v6156_v62 = vadd.f32 %v19108_v53, %v5848_v59  ;;  %v17895_v9 = vadd.f32 %v7228_v54, %v7076_v24  ;;  %v13520_v33 = vpop.f32.mrf.mxu1  ;;  %v13568_v26 = vpop.f32.mrf.mxu0  ;;  %v19111_v60 = vld [vmem:[#allocation53_spill] sm:$0xff]  ;;  %v6159_v21 = vadd.f32 %v19114_v48, %v5851_v36  ;;  %v5849_v20 = vadd.f32 %v19115_v52, %v17809_v13  ;;  %v19117_v18 = vld [vmem:[#allocation107_spill] sm:$0xff]  ;;  %v19120_v35 = vld [vmem:[#allocation30_spill] sm:$0xff] }
 0x635   : >> { %v6769_v32 = vadd.f32 %v19109_v5, %v6461_v42  ;;  %v5546_v45 = vadd.f32 %v19111_v60, %v19110_v27  ;;  %v19112_v3 = vld [vmem:[#allocation45_spill] sm:$0xff]  ;;  %7642 = vst [vmem:[#allocation2 + $0x58] sm:$0xff] %v13568_v26  ;;  %v17906_v38 = vadd.f32 %v13520_v33, %v7079_v43  ;;  %v19119_v24 = vld [vmem:[#allocation111_spill] sm:$0xff]  ;;  %v19123_v5 = vld [vmem:[#allocation98_spill] sm:$0xff] }
 0x636   : >> { %v19113_v57 = vld [vmem:[#allocation81_spill] sm:$0xff]  ;;  %v6464_v63 = vadd.f32 %v19117_v18, %v6156_v62  ;;  %v7231_v10 = vpop.f32.mrf.mxu1  ;;  %v7539_v42 = vpop.f32.mrf.mxu0  ;;  %13888 = vmatpush3.bf16.msra.mxu1 %v14439_v25  ;;  %13936 = vmatpush3.bf16.msra.mxu0 %v14440_v8  ;;  %v6467_v54 = vadd.f32 %v19119_v24, %v6159_v21  ;;  %v6157_v12 = vadd.f32 %v19120_v35, %v5849_v20  ;;  %v14443_v13 = vld [vmem:[%s18726_s4 + $0x580] sm:$0xff]   ;;  %v19125_v27 = vld [vmem:[#allocation112_spill] sm:$0xff] }
 0x637   : >> { %v5547_v19 = vadd.f32 %v19113_v57, %v19112_v3  ;;  %v19116_v15 = vld [vmem:[#allocation125_spill] sm:$0xff]  ;;  %v7077_v59 = vadd.f32 %v7052_v28, %v6769_v32  ;;  %v5854_v49 = vadd.f32 %v19118_v41, %v5546_v45  ;;  %7640 = vst [vmem:[#allocation2 + $0x48] sm:$0xff] %v7539_v42  ;;  %13889 = vmatprep.subr.bf16.mxu1 %v14441_v4  ;;  %v14444_v28 = vld [vmem:[%s18726_s4 + $0x5c0] sm:$0xff]   ;;  %v19132_v42 = vld [vmem:[#allocation124_spill] sm:$0xff] }
 0x638   : >> { %v6774_v58 = vadd.f32 %v19116_v15, %v6466_v46  ;;  %13937 = vmatprep.subr.bf16.mxu0 %v14442_v56  ;;  %v19121_v25 = vld [vmem:[#allocation121_spill] sm:$0xff]  ;;  %v13523_v53 = vpop.f32.mrf.mxu1  ;;  %v13571_v62 = vpop.f32.mrf.mxu0  ;;  %v6465_v60 = vadd.f32 %v19125_v27, %v6157_v12  ;;  %v19127_v45 = vld [vmem:[#allocation123_spill] sm:$0xff] }
 0x639   : >> { %v6772_v8 = vadd.f32 %v19121_v25, %v6464_v63  ;;  %v17918_v30 = vadd.f32 %v7231_v10, %v7077_v59  ;;  %v7058_v46 = vld [vmem:[#allocation2 + $0x77] sm:$0xff]  ;;  %v6162_v32 = vadd.f32 %v19123_v5, %v5854_v49  ;;  %v6775_v3 = vadd.f32 %v19127_v45, %v6467_v54  ;;  %v7056_v21 = vld [vmem:[#allocation2 + $0x67] sm:$0xff] }
 0x63a   : >> { %v7082_v36 = vadd.f32 %v7057_v39, %v6774_v58  ;;  %v19122_v43 = vld [vmem:[#allocation9_spill] sm:$0xff]  ;;  %7645 = vst [vmem:[#allocation2 + $0x70] sm:$0xff] %v13571_v62  ;;  %v19126_v39 = vld [vmem:[#allocation10_spill] sm:$0xff]  ;;  %v7244_v52 = vpop.f32.mrf.mxu1  ;;  %v7552_v20 = vpop.f32.mrf.mxu0  ;;  %13890 = vmatpush3.bf16.msra.mxu1 %v14441_v4  ;;  %13938 = vmatpush3.bf16.msra.mxu0 %v14442_v56  ;;  %v6773_v41 = vadd.f32 %v19132_v42, %v6465_v60  ;;  %v19134_v12 = vld [vmem:[#allocation87_spill] sm:$0xff] }
 0x63b   : >> { %13810 = vmatmul.mubr.bf16.gmra.mxu1 %v19122_v43  ;;  %13858 = vmatmul.mubr.bf16.gmra.mxu0 %v19122_v43  ;;  %v19124_v33 = vld [vmem:[#allocation25_spill] sm:$0xff]  ;;  %v7080_v48 = vadd.f32 %v7055_v40, %v6772_v8  ;;  %7643 = vst [vmem:[#allocation2 + $0x60] sm:$0xff] %v7552_v20  ;;  %v17937_v10 = vld [vmem:[%s18726_s4 + $0x638] sm:$0xff]   ;;  %v7083_v40 = vadd.f32 %v7058_v46, %v6775_v3  ;;  %v19135_v25 = vld [vmem:[#allocation79_spill] sm:$0xff] }
 0x63c   : >> { %v5852_v26 = vadd.f32 %v19124_v33, %v17826_v11  ;;  %13813 = vmatprep.mubr.bf16.mxu1 %v19126_v39  ;;  %13861 = vmatprep.mubr.bf16.mxu0 %v19126_v39  ;;  %v17929_v57 = vadd.f32 %v13523_v53, %v7082_v36  ;;  %v19129_v15 = vld [vmem:[#allocation85_spill] sm:$0xff]  ;;  %v19130_v11 = vld [vmem:[#allocation118_spill] sm:$0xff]  ;;  %v13572_v24 = vpop.f32.mrf.mxu0  ;;  %v5853_v36 = vadd.f32 %v19134_v12, %v17852_v50  ;;  %v19137_v62 = vld [vmem:[#allocation75_spill] sm:$0xff] }
 0x63d   : >> { %v5855_v58 = vadd.f32 %v19129_v15, %v5547_v19  ;;  %v6470_v18 = vadd.f32 %v19130_v11, %v6162_v32  ;;  %v19131_v63 = vld [vmem:[#allocation29_spill] sm:$0xff]  ;;  %13891 = vmatprep.subr.bf16.mxu1 %v14443_v13  ;;  %13939 = vmatprep.subr.bf16.mxu0 %v14444_v28  ;;  %v17940_v49 = vadd.f32 %v7244_v52, %v7080_v48  ;;  %v7059_v56 = vld [vmem:[#allocation2 + $0x7f] sm:$0xff]  ;;  %v13524_v19 = vpop.f32.mrf.mxu1  ;;  %v19142_v20 = vld [vmem:[#allocation24_spill] sm:$0xff] }
 0x63e   : >> { %19128 = vst [vmem:[#allocation35_spill] sm:$0xff] %v17929_v57  ;;  %v6160_v59 = vadd.f32 %v19131_v63, %v5852_v26  ;;  %v7061_v4 = vld [vmem:[#allocation2 + $0x8f] sm:$0xff]  ;;  %v19133_v54 = vld [vmem:[#allocation66_spill] sm:$0xff]  ;;  %7646 = vst [vmem:[#allocation2 + $0x78] sm:$0xff] %v13572_v24  ;;  %v17951_v60 = vadd.f32 %v13524_v19, %v7083_v40  ;;  %v7081_v45 = vadd.f32 %v7056_v21, %v6773_v41  ;;  %v7555_v48 = vpop.f32.mrf.mxu0  ;;  %13892 = vmatpush3.bf16.msra.mxu1 %v14443_v13 }
 0x63f   : >> { %v6163_v35 = vadd.f32 %v19133_v54, %v5855_v58  ;;  %v19136_v8 = vld [vmem:[#allocation78_spill] sm:$0xff]  ;;  %v19139_v46 = vld [vmem:[#allocation133_spill] sm:$0xff]  ;;  %v7247_v3 = vpop.f32.mrf.mxu1  ;;  %13940 = vmatpush3.bf16.msra.mxu0 %v14444_v28  ;;  %v19143_v15 = vld [vmem:[#allocation28_spill] sm:$0xff]  ;;  %7644 = vst [vmem:[#allocation2 + $0x68] sm:$0xff] %v7555_v48  ;;  %13973 = vmatprep.subr.bf16.mxu1 %v17937_v10 }
 0x640   : >> { %v5550_v53 = vadd.f32 %v19136_v8, %v19135_v25  ;;  %v19138_v5 = vld [vmem:[#allocation54_spill] sm:$0xff]  ;;  %v6778_v33 = vadd.f32 %v19139_v46, %v6470_v18  ;;  %v5551_v58 = vadd.f32 %v19143_v15, %v19142_v20  ;;  %v19144_v11 = vld [vmem:[#allocation55_spill] sm:$0xff]  ;;  %v19146_v40 = vld [vmem:[#allocation129_spill] sm:$0xff]  ;;  %v17960_v21 = vadd.f32 %v7247_v3, %v7081_v45  ;;  %v13575_v13 = vpop.f32.mrf.mxu0 }
 0x641   : >> { %v5548_v32 = vadd.f32 %v19138_v5, %v19137_v62  ;;  %v19140_v26 = vld [vmem:[#allocation114_spill] sm:$0xff]  ;;  %v19145_v18 = vld [vmem:[#allocation119_spill] sm:$0xff]  ;;  %v13527_v41 = vpop.f32.mrf.mxu1  ;;  %v19149_v54 = vld [vmem:[#allocation120_spill] sm:$0xff] }
 0x642   : >> { %v6468_v27 = vadd.f32 %v19140_v26, %v6160_v59  ;;  %v19141_v52 = vld [vmem:[#allocation94_spill] sm:$0xff]  ;;  %v5858_v63 = vadd.f32 %v19144_v11, %v5550_v53  ;;  %v6471_v42 = vadd.f32 %v19145_v18, %v6163_v35  ;;  %v7086_v59 = vadd.f32 %v7061_v4, %v6778_v33  ;;  %19147 = vst [vmem:[#allocation36_spill] sm:$0xff] %v17960_v21  ;;  %v19148_v28 = vld [vmem:[#allocation11_spill] sm:$0xff]  ;;  %v19151_v8 = vld [vmem:[#allocation32_spill] sm:$0xff] }
 0x643   : >> { %v6161_v50 = vadd.f32 %v19141_v52, %v5853_v36  ;;  %13814 = vmatmul.mubr.bf16.gmra.mxu1 %v19148_v28  ;;  %13862 = vmatmul.mubr.bf16.gmra.mxu0 %v19148_v28  ;;  %v7062_v24 = vld [vmem:[#allocation2 + $0x97] sm:$0xff]  ;;  %v19150_v36 = vld [vmem:[#allocation95_spill] sm:$0xff]  ;;  %v5856_v53 = vadd.f32 %v19151_v8, %v5548_v32  ;;  %v19152_v62 = vld [vmem:[#allocation12_spill] sm:$0xff]  ;;  %v7260_v26 = vpop.f32.mrf.mxu1 }
 0x644   : >> { %v6776_v19 = vadd.f32 %v19146_v40, %v6468_v27  ;;  %v6166_v25 = vadd.f32 %v19150_v36, %v5858_v63  ;;  %13817 = vmatprep.mubr.bf16.mxu1 %v19152_v62  ;;  %13865 = vmatprep.mubr.bf16.mxu0 %v19152_v62  ;;  %v19153_v4 = vld [vmem:[#allocation131_spill] sm:$0xff]  ;;  %v17970_v5 = vadd.f32 %v13527_v41, %v7086_v59  ;;  %v7568_v27 = vpop.f32.mrf.mxu0  ;;  %v19155_v45 = vld [vmem:[#allocation88_spill] sm:$0xff]  ;;  %v19156_v48 = vld [vmem:[#allocation42_spill] sm:$0xff] }
 0x645   : >> { %v6469_v12 = vadd.f32 %v19149_v54, %v6161_v50  ;;  %v6779_v35 = vadd.f32 %v19153_v4, %v6471_v42  ;;  %7649 = vst [vmem:[#allocation2 + $0x90] sm:$0xff] %v13575_v13  ;;  %v7060_v33 = vld [vmem:[#allocation2 + $0x87] sm:$0xff]  ;;  %v5859_v3 = vadd.f32 %v19155_v45, %v5551_v58  ;;  %v19157_v52 = vld [vmem:[#allocation86_spill] sm:$0xff]  ;;  %v7065_v40 = vld [vmem:[#allocation2 + $0xaf] sm:$0xff] }
 0x646   : >> { %19154 = vst [vmem:[#allocation38_spill] sm:$0xff] %v17970_v5  ;;  %v7084_v46 = vadd.f32 %v7059_v56, %v6776_v19  ;;  %v5549_v50 = vadd.f32 %v19157_v52, %v19156_v48  ;;  %v19158_v20 = vld [vmem:[#allocation100_spill] sm:$0xff]  ;;  %7647 = vst [vmem:[#allocation2 + $0x80] sm:$0xff] %v7568_v27  ;;  %v19161_v42 = vld [vmem:[#allocation126_spill] sm:$0xff]  ;;  %v13528_v56 = vpop.f32.mrf.mxu1  ;;  %v13576_v19 = vpop.f32.mrf.mxu0 }
 0x647   : >> { %v6164_v32 = vadd.f32 %v19158_v20, %v5856_v53  ;;  %v7087_v15 = vadd.f32 %v7062_v24, %v6779_v35  ;;  %v19159_v11 = vld [vmem:[#allocation132_spill] sm:$0xff]  ;;  %v6474_v59 = vadd.f32 %v19161_v42, %v6166_v25  ;;  %v7063_v41 = vld [vmem:[#allocation2 + $0x9f] sm:$0xff]  ;;  %v19170_v20 = vld [vmem:[#allocation65_spill] sm:$0xff] }
 0x648   : >> { %v6777_v63 = vadd.f32 %v19159_v11, %v6469_v12  ;;  %v17977_v18 = vadd.f32 %v7260_v26, %v7084_v46  ;;  %v19162_v13 = vld [vmem:[#allocation40_spill] sm:$0xff]  ;;  %v19163_v54 = vld [vmem:[#allocation90_spill] sm:$0xff]  ;;  %v19164_v36 = vld [vmem:[#allocation59_spill] sm:$0xff]  ;;  %7650 = vst [vmem:[#allocation2 + $0x98] sm:$0xff] %v13576_v19  ;;  %v7263_v48 = vpop.f32.mrf.mxu1  ;;  %v7571_v52 = vpop.f32.mrf.mxu0 }
 0x649   : >> { %v5554_v58 = vadd.f32 %v19163_v54, %v19162_v13  ;;  %v6167_v8 = vadd.f32 %v19164_v36, %v5859_v3  ;;  %v19165_v4 = vld [vmem:[#allocation51_spill] sm:$0xff]  ;;  %v17984_v53 = vadd.f32 %v13528_v56, %v7087_v15  ;;  %v6782_v12 = vadd.f32 %v17742_v34, %v6474_v59  ;;  %v19167_v35 = vld [vmem:[#allocation122_spill] sm:$0xff]  ;;  %v19168_v25 = vld [vmem:[#allocation44_spill] sm:$0xff]  ;;  %7648 = vst [vmem:[#allocation2 + $0x88] sm:$0xff] %v7571_v52 }
 0x64a   : >> { %19160 = vst [vmem:[#allocation70_spill] sm:$0xff] %v17977_v18  ;;  %v5857_v45 = vadd.f32 %v19165_v4, %v5549_v50  ;;  %v7085_v24 = vadd.f32 %v7060_v33, %v6777_v63  ;;  %v6472_v46 = vadd.f32 %v19167_v35, %v6164_v32  ;;  %v19169_v26 = vld [vmem:[#allocation93_spill] sm:$0xff]  ;;  %v19172_v13 = vld [vmem:[#allocation83_spill] sm:$0xff]  ;;  %v19176_v59 = vld [vmem:[#allocation34_spill] sm:$0xff]  ;;  %v13531_v19 = vpop.f32.mrf.mxu1  ;;  %v13579_v36 = vpop.f32.mrf.mxu0 }
 0x64b   : >> { %19166 = vst [vmem:[#allocation71_spill] sm:$0xff] %v17984_v53  ;;  %v5555_v27 = vadd.f32 %v19169_v26, %v19168_v25  ;;  %v5862_v11 = vadd.f32 %v19170_v20, %v5554_v58  ;;  %v19171_v42 = vld [vmem:[#allocation73_spill] sm:$0xff]  ;;  %v19173_v54 = vld [vmem:[#allocation31_spill] sm:$0xff]  ;;  %v7090_v34 = vadd.f32 %v7065_v40, %v6782_v12 }
 0x64c   : >> { %v5552_v3 = vadd.f32 %v19172_v13, %v19171_v42  ;;  %v6165_v50 = vadd.f32 %v19173_v54, %v5857_v45  ;;  %v17994_v15 = vadd.f32 %v7263_v48, %v7085_v24  ;;  %v19175_v33 = vld [vmem:[#allocation127_spill] sm:$0xff]  ;;  %v6780_v32 = vadd.f32 %v19176_v59, %v6472_v46  ;;  %v7066_v56 = vld [vmem:[#allocation2 + $0xb7] sm:$0xff]  ;;  %v19180_v45 = vld [vmem:[#allocation128_spill] sm:$0xff]  ;;  %v7276_v48 = vpop.f32.mrf.mxu1  ;;  %v7584_v20 = vpop.f32.mrf.mxu0 }
 0x64d   : >> { %v6475_v63 = vadd.f32 %v19175_v33, %v6167_v8  ;;  %v19177_v4 = vld [vmem:[#allocation13_spill] sm:$0xff]  ;;  %v19179_v25 = vld [vmem:[#allocation67_spill] sm:$0xff]  ;;  %7653 = vst [vmem:[#allocation2 + $0xb0] sm:$0xff] %v13579_v36  ;;  %v19181_v24 = vld [vmem:[#allocation14_spill] sm:$0xff]  ;;  %v18006_v8 = vadd.f32 %v13531_v19, %v7090_v34 }
 0x64e   : >> { %19174 = vst [vmem:[#allocation74_spill] sm:$0xff] %v17994_v15  ;;  %13818 = vmatmul.mubr.bf16.gmra.mxu1 %v19177_v4  ;;  %13866 = vmatmul.mubr.bf16.gmra.mxu0 %v19177_v4  ;;  %v19178_v58 = vld [vmem:[#allocation101_spill] sm:$0xff]  ;;  %v5860_v26 = vadd.f32 %v19179_v25, %v5552_v3  ;;  %v6473_v52 = vadd.f32 %v19180_v45, %v6165_v50  ;;  %v7064_v46 = vld [vmem:[#allocation2 + $0xa7] sm:$0xff]  ;;  %v19187_v59 = vld [vmem:[#allocation134_spill] sm:$0xff]  ;;  %v13532_v34 = vpop.f32.mrf.mxu1 }
 0x64f   : >> { %v6170_v35 = vadd.f32 %v19178_v58, %v5862_v11  ;;  %13821 = vmatprep.mubr.bf16.mxu1 %v19181_v24  ;;  %13869 = vmatprep.mubr.bf16.mxu0 %v19181_v24  ;;  %v6783_v40 = vadd.f32 %v17738_v7, %v6475_v63  ;;  %19182 = vst [vmem:[#allocation80_spill] sm:$0xff] %v18006_v8  ;;  %v19183_v42 = vld [vmem:[#allocation96_spill] sm:$0xff]  ;;  %v19184_v11 = vld [vmem:[#allocation77_spill] sm:$0xff]  ;;  %7651 = vst [vmem:[#allocation2 + $0xa0] sm:$0xff] %v7584_v20 }
 0x650   : >> { %v7088_v12 = vadd.f32 %v7063_v41, %v6780_v32  ;;  %v5863_v13 = vadd.f32 %v19183_v42, %v5555_v27  ;;  %v19185_v54 = vld [vmem:[#allocation48_spill] sm:$0xff]  ;;  %v6781_v25 = vadd.f32 %v17740_v0, %v6473_v52  ;;  %v7067_v63 = vld [vmem:[#allocation2 + $0xbf] sm:$0xff]  ;;  %v13580_v32 = vpop.f32.mrf.mxu0  ;;  %v19189_v19 = vld [vmem:[#allocation97_spill] sm:$0xff] }
 0x651   : >> { %v5553_v3 = vadd.f32 %v19185_v54, %v19184_v11  ;;  %v19186_v33 = vld [vmem:[#allocation68_spill] sm:$0xff]  ;;  %v6478_v36 = vadd.f32 %v19187_v59, %v6170_v35  ;;  %v7091_v58 = vadd.f32 %v7066_v56, %v6783_v40  ;;  %7654 = vst [vmem:[#allocation2 + $0xb8] sm:$0xff] %v13580_v32  ;;  %v7279_v35 = vpop.f32.mrf.mxu1  ;;  %v19193_v52 = vld [vmem:[#allocation63_spill] sm:$0xff] }
 0x652   : >> { %v6168_v50 = vadd.f32 %v19186_v33, %v5860_v26  ;;  %v18014_v7 = vadd.f32 %v7276_v48, %v7088_v12  ;;  %v7069_v41 = vld [vmem:[#allocation2 + $0xcf] sm:$0xff]  ;;  %v6171_v45 = vadd.f32 %v19189_v19, %v5863_v13  ;;  %v19191_v26 = vld [vmem:[#allocation130_spill] sm:$0xff]  ;;  %v7089_v56 = vadd.f32 %v7064_v46, %v6781_v25  ;;  %v7587_v0 = vpop.f32.mrf.mxu0  ;;  %v19194_v12 = vld [vmem:[#allocation135_spill] sm:$0xff] }
 0x653   : >> { %v19190_v27 = vld [vmem:[#allocation64_spill] sm:$0xff]  ;;  %v6786_v11 = vadd.f32 %v17767_v2, %v6478_v36  ;;  %v18020_v54 = vadd.f32 %v13532_v34, %v7091_v58  ;;  %7652 = vst [vmem:[#allocation2 + $0xa8] sm:$0xff] %v7587_v0  ;;  %v13535_v32 = vpop.f32.mrf.mxu1  ;;  %v19196_v36 = vld [vmem:[#allocation15_spill] sm:$0xff]  ;;  %v19197_v46 = vld [vmem:[#allocation18_spill] sm:$0xff] }
 0x654   : >> { %19188 = vst [vmem:[#allocation103_spill] sm:$0xff] %v18014_v7  ;;  %v5861_v42 = vadd.f32 %v19190_v27, %v5553_v3  ;;  %v6476_v20 = vadd.f32 %v19191_v26, %v6168_v50  ;;  %v6479_v48 = vadd.f32 %v19194_v12, %v6171_v45  ;;  %v18025_v59 = vadd.f32 %v7279_v35, %v7089_v56  ;;  %v7070_v3 = vld [vmem:[#allocation2 + $0xd7] sm:$0xff]  ;;  %v13583_v2 = vpop.f32.mrf.mxu0  ;;  %v19198_v58 = vld [vmem:[#allocation16_spill] sm:$0xff]  ;;  %v7071_v26 = vld [vmem:[#allocation2 + $0xdf] sm:$0xf] }
 0x655   : >> { %19192 = vst [vmem:[#allocation105_spill] sm:$0xff] %v18020_v54  ;;  %v7094_v33 = vadd.f32 %v7069_v41, %v6786_v11  ;;  %7657 = vst [vmem:[#allocation2 + $0xd0] sm:$0xff] %v13583_v2  ;;  %v7068_v34 = vld [vmem:[#allocation2 + $0xc7] sm:$0xff]  ;;  %v7292_v19 = vpop.f32.mrf.mxu1 }
 0x656   : >> { %v6169_v40 = vadd.f32 %v19193_v52, %v5861_v42  ;;  %v6784_v13 = vadd.f32 %v17751_v29, %v6476_v20  ;;  %19195 = vst [vmem:[#allocation104_spill] sm:$0xff] %v18025_v59  ;;  %13822 = vmatmul.mubr.bf16.gmra.mxu1 %v19196_v36  ;;  %13870 = vmatmul.mubr.bf16.gmra.mxu0 %v19196_v36  ;;  %v7600_v45 = vpop.f32.mrf.mxu0  ;;  %v18138_v7 = vld [vmem:[#allocation2 + $0x9a] sm:$0xff] }
 0x657   : >> { %13825 = vmatprep.mubr.bf16.mxu1 %v19198_v58  ;;  %13873 = vmatprep.mubr.bf16.mxu0 %v19198_v58  ;;  %v6787_v25 = vadd.f32 %v17765_v22, %v6479_v48  ;;  %v18033_v41 = vadd.f32 %v13535_v32, %v7094_v33  ;;  %7655 = vst [vmem:[#allocation2 + $0xc0] sm:$0xff] %v7600_v45  ;;  %v13536_v20 = vpop.f32.mrf.mxu1  ;;  %v19207_v32 = vld [vmem:[#allocation91_spill] sm:$0xff]  ;;  %19215 = vst [vmem:[#allocation21_spill] sm:$0xff] %v18138_v7 }
 0x658   : >> { %v6477_v50 = vadd.f32 %v19197_v46, %v6169_v40  ;;  %v7092_v29 = vadd.f32 %v7067_v63, %v6784_v13  ;;  %v13584_v56 = vpop.f32.mrf.mxu0  ;;  %v19202_v40 = vld [vmem:[#allocation84_spill] sm:$0xff]  ;;  %v19209_v45 = vld [vmem:[#allocation19_spill] sm:$0xff]  ;;  %v18146_v57 = vld [vmem:[#allocation2 + $0xb2] sm:$0xff] }
 0x659   : >> { %19199 = vst [vmem:[#allocation37_spill] sm:$0xff] %v18033_v41  ;;  %v7095_v27 = vadd.f32 %v7070_v3, %v6787_v25  ;;  %7658 = vst [vmem:[#allocation2 + $0xd8] sm:$0xff] %v13584_v56  ;;  %v7295_v22 = vpop.f32.mrf.mxu1  ;;  %v19203_v63 = vld [vmem:[#allocation52_spill] sm:$0xff]  ;;  %v19206_v3 = vld [vmem:[#allocation3_spill] sm:$0xff] }
 0x65a   : >> { %v6785_v42 = vadd.f32 %v17759_v44, %v6477_v50  ;;  %v18036_v11 = vadd.f32 %v7292_v19, %v7092_v29  ;;  %v7603_v52 = vpop.f32.mrf.mxu0  ;;  %v5556_v12 = vadd.f32 %v19203_v63, %v19202_v40  ;;  %v19205_v44 = vld [vmem:[#allocation17_spill] sm:$0xff]  ;;  %v18118_v41 = vld [vmem:[#allocation2 + $0x7a] sm:$0xff]  ;;  %19217 = vst [vmem:[#allocation46_spill] sm:$0xff] %v18146_v57  ;;  %v18156_v7 = vld [vmem:[#allocation2 + $0xa2] sm:$0xff] }
 0x65b   : >> { %v18038_v35 = vadd.f32 %v13536_v20, %v7095_v27  ;;  %7656 = vst [vmem:[#allocation2 + $0xc8] sm:$0xff] %v7603_v52  ;;  %v13539_v33 = vpop.f32.mrf.mxu1  ;;  %v19208_v25 = vld [vmem:[#allocation33_spill] sm:$0xff]  ;;  %19212 = vst [vmem:[#allocation61_spill] sm:$0xff] %v18118_v41 }
 0x65c   : >> { %19200 = vst [vmem:[#allocation20_spill] sm:$0xff] %v18036_v11  ;;  %v7093_v0 = vadd.f32 %v7068_v34, %v6785_v42  ;;  %v13587_v13 = vpop.f32.mrf.mxu0  ;;  %v5864_v2 = vadd.f32 %v19207_v32, %v5556_v12  ;;  %v14446_v56 = vld [vmem:[%s18726_s4 + $0x630] sm:$0xff]   ;;  %19220 = vst [vmem:[#allocation23_spill] sm:$0xff] %v18156_v7 }
 0x65d   : >> { %19201 = vst [vmem:[#allocation108_spill] sm:$0xff] %v18038_v35  ;;  %v7308_v46 = vpop.f32.mrf.mxu1 }
 0x65e   : >> { %v18042_v48 = vadd.f32 %v7295_v22, %v7093_v0  ;;  %13826 = vmatmul.mubr.bf16.gmra.mxu1 %v19205_v44  ;;  %13874 = vmatmul.mubr.bf16.gmra.mxu0 %v19205_v44  ;;  %v7616_v50 = vpop.f32.mrf.mxu0  ;;  %7351 = vst [vmem:[#allocation2 + $0xe0] sm:$0xff] %v7308_v46  ;;  %v6172_v29 = vadd.f32 %v19208_v25, %v5864_v2 }
 0x65f   : >> { %13893 = vmatprep.mubr.bf16.mxu1 %v19206_v3  ;;  %13941 = vmatprep.mubr.bf16.mxu0 %v19206_v3  ;;  %v13540_v34 = vpop.f32.mrf.mxu1 }
 0x660   : >> { %19204 = vst [vmem:[#allocation39_spill] sm:$0xff] %v18042_v48  ;;  %v13588_v19 = vpop.f32.mrf.mxu0  ;;  %v6480_v27 = vadd.f32 %v19209_v45, %v6172_v29  ;;  %v18068_v29 = vld [vmem:[#allocation2 + $0x32] sm:$0xff] }
 0x661   : >> { %v7311_v42 = vpop.f32.mrf.mxu1 }
 0x662   : >> { %v7619_v20 = vpop.f32.mrf.mxu0  ;;  %v6788_v0 = vadd.f32 %v17781_v16, %v6480_v27  ;;  %v14447_v16 = vld [vmem:[%s18726_s4 + $0x628] sm:$0xff]   ;;  %v14449_v27 = vld [vmem:[%s18726_s4 + $0x618] sm:$0xff]  }
 0x663   : >> { %7660 = vst [vmem:[#allocation2 + $0xe8] sm:$0xff] %v7619_v20  ;;  %v13607_v22 = vpop.f32.mrf.mxu1  ;;  %v18079_v42 = vld [vmem:[#allocation2 + $0x3a] sm:$0xff] }
 0x664   : >> { %v13655_v52 = vpop.f32.mrf.mxu0  ;;  %v7096_v40 = vadd.f32 %v7071_v26, %v6788_v0  ;;  %v14448_v26 = vld [vmem:[%s18726_s4 + $0x620] sm:$0xff]  }
 0x665   : >> { %v7379_v63 = vld [vmem:[#allocation2 + $0xe0] sm:$0xf]  ;;  %v7812_v12 = vpop.f32.mrf.mxu1  ;;  %v14450_v52 = vld [vmem:[%s18726_s4 + $0x610] sm:$0xff]  }
 0x666   : >> { %13894 = vmatmul.mubr.bf16.vlgmr.msra.gmra.mxu1 %v15991_v31  ;;  %13942 = vmatmul.mubr.bf16.vlgmr.msra.gmra.mxu0 %v15991_v31  ;;  %v8120_v33 = vpop.f32.mrf.mxu0  ;;  %7659 = vst [vmem:[#allocation2 + $0xe0] sm:$0xff] %v7616_v50  ;;  %v18063_v13 = vadd.f32 %v7379_v63, %v7096_v40  ;;  %v18084_v40 = vld [vmem:[#allocation2 + $0x52] sm:$0xff]  ;;  %v18086_v63 = vld [vmem:[#allocation2 + $0x4a] sm:$0xff] }
 0x667   : >> { %13897 = vmatprep.mubr.bf16.mxu1 %v18966_v61  ;;  %13945 = vmatprep.mubr.bf16.mxu0 %v18966_v61  ;;  %v13608_v32 = vpop.f32.mrf.mxu1 }
 0x668   : >> { %13974 = vmatpush3.bf16.msra.mxu1 %v17937_v10  ;;  %19210 = vst [vmem:[#allocation41_spill] sm:$0xff] %v18063_v13  ;;  %v13656_v2 = vpop.f32.mrf.mxu0  ;;  %v18070_v10 = vld [vmem:[#allocation2 + $0x2a] sm:$0xff] }
 0x669   : >> { %13975 = vmatprep.subr.bf16.mxu1 %v14446_v56  ;;  %v7815_v46 = vpop.f32.mrf.mxu1 }
 0x66a   : >> { %v8123_v25 = vpop.f32.mrf.mxu0  ;;  %v14451_v46 = vld [vmem:[%s18726_s4 + $0x608] sm:$0xff]  }
 0x66b   : >> { %v13611_v50 = vpop.f32.mrf.mxu1  ;;  %v18097_v25 = vld [vmem:[#allocation2 + $0x5a] sm:$0xff] }
 0x66c   : >> { %13976 = vmatpush3.bf16.msra.mxu1 %v14446_v56  ;;  %v13659_v34 = vpop.f32.mrf.mxu0  ;;  %7945 = vst [vmem:[#allocation2 + $0x30] sm:$0xff] %v13611_v50 }
 0x66d   : >> { %13977 = vmatprep.subr.bf16.mxu1 %v14447_v16  ;;  %v7828_v19 = vpop.f32.mrf.mxu1 }
 0x66e   : >> { %13898 = vmatmul.mubr.bf16.gmra.mxu1 %v18970_v17  ;;  %13946 = vmatmul.mubr.bf16.gmra.mxu0 %v18970_v17  ;;  %v8136_v45 = vpop.f32.mrf.mxu0 }
 0x66f   : >> { %13901 = vmatprep.mubr.bf16.mxu1 %v18971_v14  ;;  %13949 = vmatprep.mubr.bf16.mxu0 %v18971_v14  ;;  %v13612_v20 = vpop.f32.mrf.mxu1 }
 0x670   : >> { %13978 = vmatpush3.bf16.msra.mxu1 %v14447_v16  ;;  %v13660_v56 = vpop.f32.mrf.mxu0  ;;  %7946 = vst [vmem:[#allocation2 + $0x38] sm:$0xff] %v13612_v20  ;;  %v18092_v16 = vld [vmem:[#allocation2 + $0x42] sm:$0xff] }
 0x671   : >> { %13979 = vmatprep.subr.bf16.mxu1 %v14448_v26  ;;  %v7831_v0 = vpop.f32.mrf.mxu1 }
 0x672   : >> { %v8139_v22 = vpop.f32.mrf.mxu0  ;;  %7944 = vst [vmem:[#allocation2 + $0x28] sm:$0xff] %v7831_v0 }
 0x673   : >> { %v13615_v12 = vpop.f32.mrf.mxu1 }
 0x674   : >> { %13980 = vmatpush3.bf16.msra.mxu1 %v14448_v26  ;;  %v13663_v33 = vpop.f32.mrf.mxu0  ;;  %7949 = vst [vmem:[#allocation2 + $0x50] sm:$0xff] %v13615_v12  ;;  %v18106_v12 = vld [vmem:[#allocation2 + $0x72] sm:$0xff] }
 0x675   : >> { %13981 = vmatprep.subr.bf16.mxu1 %v14449_v27  ;;  %v7844_v32 = vpop.f32.mrf.mxu1  ;;  %19211 = vst [vmem:[#allocation26_spill] sm:$0xff] %v18106_v12 }
 0x676   : >> { %13902 = vmatmul.mubr.bf16.gmra.mxu1 %v19100_v51  ;;  %13950 = vmatmul.mubr.bf16.gmra.mxu0 %v19100_v51  ;;  %v8152_v2 = vpop.f32.mrf.mxu0  ;;  %7947 = vst [vmem:[#allocation2 + $0x40] sm:$0xff] %v7844_v32  ;;  %v18108_v32 = vld [vmem:[#allocation2 + $0x6a] sm:$0xff] }
 0x677   : >> { %13905 = vmatprep.mubr.bf16.mxu1 %v19104_v37  ;;  %13953 = vmatprep.mubr.bf16.mxu0 %v19104_v37  ;;  %v13616_v26 = vpop.f32.mrf.mxu1  ;;  %v18099_v19 = vld [vmem:[#allocation2 + $0x33] sm:$0xff] }
 0x678   : >> { %13982 = vmatpush3.bf16.msra.mxu1 %v14449_v27  ;;  %v13664_v50 = vpop.f32.mrf.mxu0  ;;  %7950 = vst [vmem:[#allocation2 + $0x58] sm:$0xff] %v13616_v26  ;;  %v14452_v27 = vld [vmem:[%s18726_s4 + $0x600] sm:$0xff]  }
 0x679   : >> { %13983 = vmatprep.subr.bf16.mxu1 %v14450_v52  ;;  %v18101_v45 = vld [vmem:[#allocation2 + $0x2b] sm:$0xff]  ;;  %v7847_v20 = vpop.f32.mrf.mxu1 }
 0x67a   : >> { %v8155_v0 = vpop.f32.mrf.mxu0  ;;  %8253 = vst [vmem:[#allocation2 + $0x30] sm:$0xff] %v13659_v34  ;;  %8252 = vst [vmem:[#allocation2 + $0x28] sm:$0xff] %v8139_v22  ;;  %v18114_v34 = vld [vmem:[#allocation2 + $0x62] sm:$0xff] }
 0x67b   : >> { %7948 = vst [vmem:[#allocation2 + $0x48] sm:$0xff] %v7847_v20  ;;  %v13619_v26 = vpop.f32.mrf.mxu1 }
 0x67c   : >> { %13984 = vmatpush3.bf16.msra.mxu1 %v14450_v52  ;;  %v13667_v13 = vpop.f32.mrf.mxu0  ;;  %7953 = vst [vmem:[#allocation2 + $0x70] sm:$0xff] %v13619_v26 }
 0x67d   : >> { %13985 = vmatprep.subr.bf16.mxu1 %v14451_v46  ;;  %v18116_v22 = vld [vmem:[#allocation2 + $0x3b] sm:$0xff]  ;;  %v7860_v52 = vpop.f32.mrf.mxu1 }
 0x67e   : >> { %13906 = vmatmul.mubr.bf16.gmra.mxu1 %v19122_v43  ;;  %13954 = vmatmul.mubr.bf16.gmra.mxu0 %v19122_v43  ;;  %v8168_v20 = vpop.f32.mrf.mxu0  ;;  %8254 = vst [vmem:[#allocation2 + $0x38] sm:$0xff] %v13660_v56  ;;  %7951 = vst [vmem:[#allocation2 + $0x60] sm:$0xff] %v7860_v52  ;;  %v18130_v52 = vld [vmem:[#allocation2 + $0x92] sm:$0xff] }
 0x67f   : >> { %13909 = vmatprep.mubr.bf16.mxu1 %v19126_v39  ;;  %13957 = vmatprep.mubr.bf16.mxu0 %v19126_v39  ;;  %v13620_v48 = vpop.f32.mrf.mxu1  ;;  %v18120_v26 = vld [vmem:[#allocation2 + $0x53] sm:$0xff]  ;;  %19214 = vst [vmem:[#allocation109_spill] sm:$0xff] %v18130_v52 }
 0x680   : >> { %13986 = vmatpush3.bf16.msra.mxu1 %v14451_v46  ;;  %v13668_v35 = vpop.f32.mrf.mxu0  ;;  %7954 = vst [vmem:[#allocation2 + $0x78] sm:$0xff] %v13620_v48  ;;  %v18128_v48 = vld [vmem:[#allocation2 + $0x8a] sm:$0xff] }
 0x681   : >> { %13987 = vmatprep.subr.bf16.mxu1 %v14452_v27  ;;  %v7863_v59 = vpop.f32.mrf.mxu1  ;;  %19213 = vst [vmem:[#allocation4_spill] sm:$0xff] %v18128_v48  ;;  %v18148_v48 = vld [vmem:[#allocation2 + $0xaa] sm:$0xff] }
 0x682   : >> { %v18122_v8 = vld [vmem:[#allocation2 + $0x43] sm:$0xff]  ;;  %v18124_v11 = vld [vmem:[#allocation2 + $0x4b] sm:$0xff]  ;;  %v8171_v54 = vpop.f32.mrf.mxu0  ;;  %7952 = vst [vmem:[#allocation2 + $0x68] sm:$0xff] %v7863_v59  ;;  %19218 = vst [vmem:[#allocation50_spill] sm:$0xff] %v18148_v48 }
 0x683   : >> { %8255 = vst [vmem:[#allocation2 + $0x40] sm:$0xff] %v8152_v2  ;;  %8257 = vst [vmem:[#allocation2 + $0x50] sm:$0xff] %v13663_v33  ;;  %v13623_v56 = vpop.f32.mrf.mxu1 }
 0x684   : >> { %13988 = vmatpush3.bf16.msra.mxu1 %v14452_v27  ;;  %8256 = vst [vmem:[#allocation2 + $0x48] sm:$0xff] %v8155_v0  ;;  %v13671_v46 = vpop.f32.mrf.mxu0  ;;  %7957 = vst [vmem:[#allocation2 + $0x90] sm:$0xff] %v13623_v56  ;;  %v18134_v27 = vld [vmem:[#allocation2 + $0x82] sm:$0xff] }
 0x685   : >> { %v18136_v33 = vld [vmem:[#allocation2 + $0x5b] sm:$0xff]  ;;  %v7876_v59 = vpop.f32.mrf.mxu1 }
 0x686   : >> { %13910 = vmatmul.mubr.bf16.gmra.mxu1 %v19148_v28  ;;  %13958 = vmatmul.mubr.bf16.gmra.mxu0 %v19148_v28  ;;  %v8184_v2 = vpop.f32.mrf.mxu0  ;;  %8258 = vst [vmem:[#allocation2 + $0x58] sm:$0xff] %v13664_v50  ;;  %7955 = vst [vmem:[#allocation2 + $0x80] sm:$0xff] %v7876_v59 }
 0x687   : >> { %13913 = vmatprep.mubr.bf16.mxu1 %v19152_v62  ;;  %13961 = vmatprep.mubr.bf16.mxu0 %v19152_v62  ;;  %v13624_v0 = vpop.f32.mrf.mxu1  ;;  %v18140_v53 = vld [vmem:[#allocation2 + $0x73] sm:$0xff] }
 0x688   : >> { %v13672_v5 = vpop.f32.mrf.mxu0  ;;  %7958 = vst [vmem:[#allocation2 + $0x98] sm:$0xff] %v13624_v0  ;;  %19216 = vst [vmem:[#allocation76_spill] sm:$0xff] %v18140_v53 }
 0x689   : >> { %v7879_v15 = vpop.f32.mrf.mxu1  ;;  %v18142_v41 = vld [vmem:[#allocation2 + $0x63] sm:$0xff]  ;;  %v18144_v56 = vld [vmem:[#allocation2 + $0x6b] sm:$0xff] }
 0x68a   : >> { %v8187_v52 = vpop.f32.mrf.mxu0  ;;  %7956 = vst [vmem:[#allocation2 + $0x88] sm:$0xff] %v7879_v15  ;;  %8259 = vst [vmem:[#allocation2 + $0x60] sm:$0xff] %v8168_v20 }
 0x68b   : >> { %8261 = vst [vmem:[#allocation2 + $0x70] sm:$0xff] %v13667_v13  ;;  %8260 = vst [vmem:[#allocation2 + $0x68] sm:$0xff] %v8171_v54  ;;  %v13627_v50 = vpop.f32.mrf.mxu1  ;;  %v18158_v54 = vld [vmem:[#allocation2 + $0xba] sm:$0xff] }
 0x68c   : >> { %v13675_v59 = vpop.f32.mrf.mxu0  ;;  %7961 = vst [vmem:[#allocation2 + $0xb0] sm:$0xff] %v13627_v50  ;;  %19221 = vst [vmem:[#allocation117_spill] sm:$0xff] %v18158_v54 }
 0x68d   : >> { %v18154_v0 = vld [vmem:[#allocation2 + $0x7b] sm:$0xff]  ;;  %v7892_v15 = vpop.f32.mrf.mxu1 }
 0x68e   : >> { %13914 = vmatmul.mubr.bf16.gmra.mxu1 %v19177_v4  ;;  %13962 = vmatmul.mubr.bf16.gmra.mxu0 %v19177_v4  ;;  %19219 = vst [vmem:[#allocation89_spill] sm:$0xff] %v18154_v0  ;;  %v8200_v57 = vpop.f32.mrf.mxu0  ;;  %8262 = vst [vmem:[#allocation2 + $0x78] sm:$0xff] %v13668_v35  ;;  %v18166_v0 = vld [vmem:[#allocation2 + $0xd2] sm:$0xff]  ;;  %v18168_v35 = vld [vmem:[#allocation2 + $0xca] sm:$0xff] }
 0x68f   : >> { %13917 = vmatprep.mubr.bf16.mxu1 %v19181_v24  ;;  %13965 = vmatprep.mubr.bf16.mxu0 %v19181_v24  ;;  %7959 = vst [vmem:[#allocation2 + $0xa0] sm:$0xff] %v7892_v15  ;;  %v13628_v13 = vpop.f32.mrf.mxu1  ;;  %v18164_v12 = vld [vmem:[#allocation2 + $0x93] sm:$0xff]  ;;  %19225 = vst [vmem:[#allocation92_spill] sm:$0xff] %v18166_v0 }
 0x690   : >> { %v13676_v20 = vpop.f32.mrf.mxu0  ;;  %7962 = vst [vmem:[#allocation2 + $0xb8] sm:$0xff] %v13628_v13  ;;  %19224 = vst [vmem:[#allocation102_spill] sm:$0xff] %v18164_v12  ;;  %v18174_v13 = vld [vmem:[#allocation2 + $0xc2] sm:$0xff] }
 0x691   : >> { %v7895_v48 = vpop.f32.mrf.mxu1  ;;  %v18160_v50 = vld [vmem:[#allocation2 + $0x83] sm:$0xff]  ;;  %v18162_v18 = vld [vmem:[#allocation2 + $0x8b] sm:$0xff]  ;;  %19226 = vst [vmem:[#allocation113_spill] sm:$0xff] %v18168_v35  ;;  %19227 = vst [vmem:[#allocation7_spill] sm:$0xff] %v18174_v13 }
 0x692   : >> { %v8203_v53 = vpop.f32.mrf.mxu0  ;;  %19222 = vst [vmem:[#allocation99_spill] sm:$0xff] %v18160_v50  ;;  %19223 = vst [vmem:[#allocation58_spill] sm:$0xff] %v18162_v18 }
 0x693   : >> { %7960 = vst [vmem:[#allocation2 + $0xa8] sm:$0xff] %v7895_v48  ;;  %8263 = vst [vmem:[#allocation2 + $0x80] sm:$0xff] %v8184_v2  ;;  %v13631_v15 = vpop.f32.mrf.mxu1  ;;  %v18178_v2 = vld [vmem:[#allocation2 + $0xda] sm:$0xff] }
 0x694   : >> { %8264 = vst [vmem:[#allocation2 + $0x88] sm:$0xff] %v8187_v52  ;;  %8265 = vst [vmem:[#allocation2 + $0x90] sm:$0xff] %v13671_v46  ;;  %v13679_v54 = vpop.f32.mrf.mxu0 }
 0x695   : >> { %7965 = vst [vmem:[#allocation2 + $0xd0] sm:$0xff] %v13631_v15  ;;  %v7908_v48 = vpop.f32.mrf.mxu1  ;;  %19229 = vst [vmem:[#allocation49_spill] sm:$0xff] %v18178_v2 }
 0x696   : >> { %13918 = vmatmul.mubr.bf16.gmra.mxu1 %v19196_v36  ;;  %13966 = vmatmul.mubr.bf16.gmra.mxu0 %v19196_v36  ;;  %v8216_v52 = vpop.f32.mrf.mxu0  ;;  %v18176_v46 = vld [vmem:[#allocation2 + $0x9b] sm:$0xff]  ;;  %7963 = vst [vmem:[#allocation2 + $0xc0] sm:$0xff] %v7908_v48 }
 0x697   : >> { %13921 = vmatprep.mubr.bf16.mxu1 %v19198_v58  ;;  %13969 = vmatprep.mubr.bf16.mxu0 %v19198_v58  ;;  %19228 = vst [vmem:[#allocation57_spill] sm:$0xff] %v18176_v46  ;;  %8266 = vst [vmem:[#allocation2 + $0x98] sm:$0xff] %v13672_v5  ;;  %v13632_v0 = vpop.f32.mrf.mxu1  ;;  %v18180_v12 = vld [vmem:[#allocation2 + $0xb3] sm:$0xff]  ;;  %v18189_v5 = vld [vmem:[#allocation2 + $0xe2] sm:$0xff] }
 0x698   : >> { %v13680_v35 = vpop.f32.mrf.mxu0  ;;  %7966 = vst [vmem:[#allocation2 + $0xd8] sm:$0xff] %v13632_v0  ;;  %19230 = vst [vmem:[#allocation5_spill] sm:$0xff] %v18180_v12 }
 0x699   : >> { %v7911_v15 = vpop.f32.mrf.mxu1  ;;  %19233 = vst [vmem:[#allocation47_spill] sm:$0xff] %v18189_v5 }
 0x69a   : >> { %v8219_v7 = vpop.f32.mrf.mxu0  ;;  %v18182_v18 = vld [vmem:[#allocation2 + $0xa3] sm:$0xff]  ;;  %v18184_v21 = vld [vmem:[#allocation2 + $0xab] sm:$0xff]  ;;  %7964 = vst [vmem:[#allocation2 + $0xc8] sm:$0xff] %v7911_v15 }
 0x69b   : >> { %19231 = vst [vmem:[#allocation8_spill] sm:$0xff] %v18182_v18  ;;  %19232 = vst [vmem:[#allocation116_spill] sm:$0xff] %v18184_v21  ;;  %v13635_v13 = vpop.f32.mrf.mxu1 }
 0x69c   : >> { %8267 = vst [vmem:[#allocation2 + $0xa0] sm:$0xff] %v8200_v57  ;;  %8268 = vst [vmem:[#allocation2 + $0xa8] sm:$0xff] %v8203_v53  ;;  %v13683_v48 = vpop.f32.mrf.mxu0  ;;  %v18193_v53 = vld [vmem:[#allocation2 + $0xea] sm:$0xf] }
 0x69d   : >> { %8269 = vst [vmem:[#allocation2 + $0xb0] sm:$0xff] %v13675_v59  ;;  %v18191_v0 = vld [vmem:[#allocation2 + $0xbb] sm:$0xff]  ;;  %v7924_v2 = vpop.f32.mrf.mxu1  ;;  %19235 = vst [vmem:[#allocation60_spill] sm:$0xff] %v18193_v53 }
 0x69e   : >> { %13922 = vmatmul.mubr.bf16.gmra.mxu1 %v19205_v44  ;;  %13970 = vmatmul.mubr.bf16.gmra.mxu0 %v19205_v44  ;;  %19234 = vst [vmem:[#allocation110_spill] sm:$0xff] %v18191_v0  ;;  %v8232_v12 = vpop.f32.mrf.mxu0  ;;  %8270 = vst [vmem:[#allocation2 + $0xb8] sm:$0xff] %v13676_v20 }
 0x69f   : >> { %13989 = vmatprep.mubr.bf16.mxu1 %v19206_v3  ;;  %7967 = vst [vmem:[#allocation2 + $0xe0] sm:$0xff] %v7924_v2  ;;  %v13636_v15 = vpop.f32.mrf.mxu1  ;;  %v18195_v59 = vld [vmem:[#allocation2 + $0xd3] sm:$0xff] }
 0x6a0   : >> { %v13684_v57 = vpop.f32.mrf.mxu0  ;;  %19236 = vst [vmem:[#allocation115_spill] sm:$0xff] %v18195_v59 }
 0x6a1   : >> { %v18197_v13 = vld [vmem:[#allocation2 + $0xc3] sm:$0xff]  ;;  %v18199_v48 = vld [vmem:[#allocation2 + $0xcb] sm:$0xff]  ;;  %v7927_v46 = vpop.f32.mrf.mxu1 }
 0x6a2   : >> { %19237 = vst [vmem:[#allocation72_spill] sm:$0xff] %v18197_v13  ;;  %19238 = vst [vmem:[#allocation53_spill] sm:$0xff] %v18199_v48  ;;  %v8235_v3 = vpop.f32.mrf.mxu0 }
 0x6a3   : >> { %8271 = vst [vmem:[#allocation2 + $0xc0] sm:$0xff] %v8216_v52  ;;  %8273 = vst [vmem:[#allocation2 + $0xd0] sm:$0xff] %v13679_v54  ;;  %v13703_v0 = vpop.f32.mrf.mxu1  ;;  %v18211_v52 = vld [vmem:[#allocation2 + $0x34] sm:$0xff] }
 0x6a4   : >> { %8272 = vst [vmem:[#allocation2 + $0xc8] sm:$0xff] %v8219_v7  ;;  %7968 = vst [vmem:[#allocation2 + $0xe8] sm:$0xff] %v7927_v46  ;;  %v13751_v5 = vpop.f32.mrf.mxu0  ;;  %v18209_v7 = vld [vmem:[#allocation2 + $0x2c] sm:$0xff]  ;;  %v19243_v46 = vld [vmem:[#allocation22_spill] sm:$0xff] }
 0x6a5   : >> { %v8428_v2 = vpop.f32.mrf.mxu1 }
 0x6a6   : >> { %13990 = vmatmul.mubr.bf16.vlgmr.msra.gmra.mxu1 %v15991_v31  ;;  %v18203_v20 = vld [vmem:[#allocation2 + $0xdb] sm:$0xff]  ;;  %v8736_v15 = vpop.f32.mrf.mxu0 }
 0x6a7   : >> { %13993 = vmatprep.mubr.bf16.mxu1 %v18966_v61  ;;  %19239 = vst [vmem:[#allocation45_spill] sm:$0xff] %v18203_v20  ;;  %8274 = vst [vmem:[#allocation2 + $0xd8] sm:$0xff] %v13680_v35  ;;  %v13704_v57 = vpop.f32.mrf.mxu1  ;;  %v19242_v35 = vld [vmem:[#allocation106_spill] sm:$0xff] }
 0x6a8   : >> { %v13752_v53 = vpop.f32.mrf.mxu0  ;;  %v5532_v5 = vadd.f32 %v19243_v46, %v19242_v35  ;;  %v18218_v2 = vld [vmem:[#allocation2 + $0x3c] sm:$0xff] }
 0x6a9   : >> { %v8431_v59 = vpop.f32.mrf.mxu1 }
 0x6aa   : >> { %v8739_v48 = vpop.f32.mrf.mxu0  ;;  %v19244_v59 = vld [vmem:[#allocation43_spill] sm:$0xff] }
 0x6ab   : >> { %v18205_v13 = vld [vmem:[#allocation2 + $0xe3] sm:$0xff]  ;;  %v18207_v54 = vld [vmem:[#allocation2 + $0xeb] sm:$0xf]  ;;  %v13707_v31 = vpop.f32.mrf.mxu1  ;;  %v5840_v48 = vadd.f32 %v19244_v59, %v5532_v5  ;;  %v19247_v5 = vld [vmem:[#allocation6_spill] sm:$0xff] }
 0x6ac   : >> { %19240 = vst [vmem:[#allocation81_spill] sm:$0xff] %v18205_v13  ;;  %19241 = vst [vmem:[#allocation27_spill] sm:$0xff] %v18207_v54  ;;  %v13755_v61 = vpop.f32.mrf.mxu0  ;;  %v18224_v13 = vld [vmem:[#allocation2 + $0x54] sm:$0xff] }
 0x6ad   : >> { %8275 = vst [vmem:[#allocation2 + $0xe0] sm:$0xff] %v8232_v12  ;;  %8276 = vst [vmem:[#allocation2 + $0xe8] sm:$0xff] %v8235_v3  ;;  %v8444_v0 = vpop.f32.mrf.mxu1  ;;  %v19245_v12 = vld [vmem:[#allocation82_spill] sm:$0xff] }
 0x6ae   : >> { %13994 = vmatmul.mubr.bf16.gmra.mxu1 %v18970_v17  ;;  %8561 = vst [vmem:[#allocation2 + $0x30] sm:$0xff] %v13707_v31  ;;  %v8752_v53 = vpop.f32.mrf.mxu0  ;;  %v6148_v3 = vadd.f32 %v19245_v12, %v5840_v48  ;;  %v19246_v17 = vld [vmem:[#allocation69_spill] sm:$0xff]  ;;  %v18232_v12 = vld [vmem:[#allocation2 + $0x5c] sm:$0xff] }
 0x6af   : >> { %13997 = vmatprep.mubr.bf16.mxu1 %v18971_v14  ;;  %v13708_v15 = vpop.f32.mrf.mxu1  ;;  %v18222_v14 = vld [vmem:[#allocation2 + $0x4c] sm:$0xff]  ;;  %v18229_v53 = vld [vmem:[#allocation2 + $0x44] sm:$0xff]  ;;  %19248 = vst [vmem:[#allocation62_spill] sm:$0xff] %v18232_v12 }
 0x6b0   : >> { %v13756_v57 = vpop.f32.mrf.mxu0  ;;  %8562 = vst [vmem:[#allocation2 + $0x38] sm:$0xff] %v13708_v15  ;;  %v6456_v31 = vadd.f32 %v19246_v17, %v6148_v3 }
 0x6b1   : >> { %v8447_v54 = vpop.f32.mrf.mxu1 }
 0x6b2   : >> { %v8755_v20 = vpop.f32.mrf.mxu0  ;;  %8560 = vst [vmem:[#allocation2 + $0x28] sm:$0xff] %v8447_v54  ;;  %v6764_v0 = vadd.f32 %v19247_v5, %v6456_v31  ;;  %v7355_v54 = vld [vmem:[#allocation2 + $0x20] sm:$0xff]  ;;  %v18237_v5 = vld [vmem:[#allocation2 + $0x6c] sm:$0xff] }
 0x6b3   : >> { %v13711_v35 = vpop.f32.mrf.mxu1 }
 0x6b4   : >> { %v13759_v46 = vpop.f32.mrf.mxu0  ;;  %8565 = vst [vmem:[#allocation2 + $0x50] sm:$0xff] %v13711_v35  ;;  %v7072_v15 = vadd.f32 %v17836_v23, %v6764_v0 }
 0x6b5   : >> { %v8460_v59 = vpop.f32.mrf.mxu1 }
 0x6b6   : >> { %13998 = vmatmul.mubr.bf16.gmra.mxu1 %v19100_v51  ;;  %v8768_v48 = vpop.f32.mrf.mxu0  ;;  %8563 = vst [vmem:[#allocation2 + $0x40] sm:$0xff] %v8460_v59  ;;  %v7380_v21 = vadd.f32 %v7355_v54, %v7072_v15  ;;  %v18239_v59 = vld [vmem:[#allocation2 + $0x74] sm:$0xff]  ;;  %v18244_v15 = vld [vmem:[#allocation2 + $0x64] sm:$0xff] }
 0x6b7   : >> { %14001 = vmatprep.mubr.bf16.mxu1 %v19104_v37  ;;  %v13712_v3 = vpop.f32.mrf.mxu1  ;;  %v18234_v51 = vld [vmem:[#allocation2 + $0x35] sm:$0xff]  ;;  %19249 = vst [vmem:[#allocation125_spill] sm:$0xff] %v18239_v59 }
 0x6b8   : >> { %v13760_v17 = vpop.f32.mrf.mxu0  ;;  %8566 = vst [vmem:[#allocation2 + $0x58] sm:$0xff] %v13712_v3  ;;  %v7688_v31 = vadd.f32 %v18070_v10, %v7380_v21  ;;  %v18249_v59 = vld [vmem:[#allocation2 + $0x7c] sm:$0xff] }
 0x6b9   : >> { %v8587_v35 = vld [vmem:[#allocation2 + $0x2d] sm:$0xff]  ;;  %v8463_v37 = vpop.f32.mrf.mxu1  ;;  %19250 = vst [vmem:[#allocation107_spill] sm:$0xff] %v18249_v59 }
 0x6ba   : >> { %v8771_v18 = vpop.f32.mrf.mxu0  ;;  %8869 = vst [vmem:[#allocation2 + $0x30] sm:$0xff] %v13755_v61  ;;  %8868 = vst [vmem:[#allocation2 + $0x28] sm:$0xff] %v8755_v20  ;;  %v7996_v54 = vadd.f32 %v18101_v45, %v7688_v31 }
 0x6bb   : >> { %8564 = vst [vmem:[#allocation2 + $0x48] sm:$0xff] %v8463_v37  ;;  %v13715_v23 = vpop.f32.mrf.mxu1 }
 0x6bc   : >> { %v13763_v0 = vpop.f32.mrf.mxu0  ;;  %8569 = vst [vmem:[#allocation2 + $0x70] sm:$0xff] %v13715_v23  ;;  %v8304_v21 = vadd.f32 %v18209_v7, %v7996_v54 }
 0x6bd   : >> { %v18246_v61 = vld [vmem:[#allocation2 + $0x3d] sm:$0xff]  ;;  %v8476_v20 = vpop.f32.mrf.mxu1 }
 0x6be   : >> { %14002 = vmatmul.mubr.bf16.gmra.mxu1 %v19122_v43  ;;  %v8784_v3 = vpop.f32.mrf.mxu0  ;;  %8870 = vst [vmem:[#allocation2 + $0x38] sm:$0xff] %v13756_v57  ;;  %8567 = vst [vmem:[#allocation2 + $0x60] sm:$0xff] %v8476_v20  ;;  %v18260_v20 = vld [vmem:[#allocation2 + $0x8c] sm:$0xff] }
 0x6bf   : >> { %14005 = vmatprep.mubr.bf16.mxu1 %v19126_v39  ;;  %v13716_v10 = vpop.f32.mrf.mxu1  ;;  %v18251_v43 = vld [vmem:[#allocation2 + $0x55] sm:$0xff]  ;;  %v8612_v39 = vadd.f32 %v8587_v35, %v8304_v21  ;;  %19251 = vst [vmem:[#allocation56_spill] sm:$0xff] %v18260_v20 }
 0x6c0   : >> { %v13764_v37 = vpop.f32.mrf.mxu0  ;;  %8570 = vst [vmem:[#allocation2 + $0x78] sm:$0xff] %v13716_v10  ;;  %v18262_v35 = vld [vmem:[#allocation2 + $0x94] sm:$0xff] }
 0x6c1   : >> { %v8479_v31 = vpop.f32.mrf.mxu1  ;;  %v8895_v50 = vld [vmem:[#allocation2 + $0x2e] sm:$0xff]  ;;  %19252 = vst [vmem:[#allocation111_spill] sm:$0xff] %v18262_v35 }
 0x6c2   : >> { %v18253_v23 = vld [vmem:[#allocation2 + $0x45] sm:$0xff]  ;;  %v18255_v45 = vld [vmem:[#allocation2 + $0x4d] sm:$0xff]  ;;  %v8787_v12 = vpop.f32.mrf.mxu0  ;;  %8568 = vst [vmem:[#allocation2 + $0x68] sm:$0xff] %v8479_v31  ;;  %v18257_v7 = vadd.f32 %v8895_v50, %v8612_v39  ;;  %v18269_v39 = vld [vmem:[#allocation2 + $0x9c] sm:$0xff] }
 0x6c3   : >> { %8871 = vst [vmem:[#allocation2 + $0x40] sm:$0xff] %v8768_v48  ;;  %8873 = vst [vmem:[#allocation2 + $0x50] sm:$0xff] %v13759_v46  ;;  %v13719_v57 = vpop.f32.mrf.mxu1  ;;  %v18267_v46 = vld [vmem:[#allocation2 + $0x84] sm:$0xff] }
 0x6c4   : >> { %8872 = vst [vmem:[#allocation2 + $0x48] sm:$0xff] %v8771_v18  ;;  %v13767_v54 = vpop.f32.mrf.mxu0  ;;  %8573 = vst [vmem:[#allocation2 + $0x90] sm:$0xff] %v13719_v57 }
 0x6c5   : >> { %v18265_v21 = vld [vmem:[#allocation2 + $0x5d] sm:$0xff]  ;;  %v8492_v10 = vpop.f32.mrf.mxu1  ;;  %19254 = vst [vmem:[#allocation121_spill] sm:$0xff] %v18269_v39 }
 0x6c6   : >> { %14006 = vmatmul.mubr.bf16.gmra.mxu1 %v19148_v28  ;;  %19253 = vst [vmem:[#allocation30_spill] sm:$0xff] %v18265_v21  ;;  %v8800_v48 = vpop.f32.mrf.mxu0  ;;  %8874 = vst [vmem:[#allocation2 + $0x58] sm:$0xff] %v13760_v17  ;;  %v18278_v17 = vld [vmem:[#allocation2 + $0xac] sm:$0xff]  ;;  %v18283_v21 = vld [vmem:[#allocation2 + $0xa4] sm:$0xff] }
 0x6c7   : >> { %14009 = vmatprep.mubr.bf16.mxu1 %v19152_v62  ;;  %8571 = vst [vmem:[#allocation2 + $0x80] sm:$0xff] %v8492_v10  ;;  %v13720_v18 = vpop.f32.mrf.mxu1  ;;  %v18275_v62 = vld [vmem:[#allocation2 + $0x75] sm:$0xff]  ;;  %19256 = vst [vmem:[#allocation98_spill] sm:$0xff] %v18278_v17 }
 0x6c8   : >> { %v13768_v50 = vpop.f32.mrf.mxu0  ;;  %8574 = vst [vmem:[#allocation2 + $0x98] sm:$0xff] %v13720_v18  ;;  %19255 = vst [vmem:[#allocation9_spill] sm:$0xff] %v18275_v62  ;;  %v18280_v10 = vld [vmem:[#allocation2 + $0xb4] sm:$0xff] }
 0x6c9   : >> { %v8495_v28 = vpop.f32.mrf.mxu1  ;;  %v18271_v59 = vld [vmem:[#allocation2 + $0x65] sm:$0xff]  ;;  %v18273_v35 = vld [vmem:[#allocation2 + $0x6d] sm:$0xff]  ;;  %19257 = vst [vmem:[#allocation25_spill] sm:$0xff] %v18280_v10  ;;  %19258 = vst [vmem:[#allocation112_spill] sm:$0xff] %v18283_v21 }
 0x6ca   : >> { %v8803_v31 = vpop.f32.mrf.mxu0  ;;  %8572 = vst [vmem:[#allocation2 + $0x88] sm:$0xff] %v8495_v28  ;;  %8875 = vst [vmem:[#allocation2 + $0x60] sm:$0xff] %v8784_v3 }
 0x6cb   : >> { %8876 = vst [vmem:[#allocation2 + $0x68] sm:$0xff] %v8787_v12  ;;  %v13723_v57 = vpop.f32.mrf.mxu1  ;;  %8877 = vst [vmem:[#allocation2 + $0x70] sm:$0xff] %v13763_v0  ;;  %v18287_v12 = vld [vmem:[#allocation2 + $0xbc] sm:$0xff] }
 0x6cc   : >> { %v13771_v20 = vpop.f32.mrf.mxu0  ;;  %8577 = vst [vmem:[#allocation2 + $0xb0] sm:$0xff] %v13723_v57  ;;  %19260 = vst [vmem:[#allocation123_spill] sm:$0xff] %v18287_v12  ;;  %v18295_v57 = vld [vmem:[#allocation2 + $0xcc] sm:$0xff] }
 0x6cd   : >> { %v8508_v18 = vpop.f32.mrf.mxu1  ;;  %19262 = vst [vmem:[#allocation118_spill] sm:$0xff] %v18295_v57 }
 0x6ce   : >> { %14010 = vmatmul.mubr.bf16.gmra.mxu1 %v19177_v4  ;;  %v8816_v39 = vpop.f32.mrf.mxu0  ;;  %v18285_v28 = vld [vmem:[#allocation2 + $0x7d] sm:$0xff]  ;;  %8575 = vst [vmem:[#allocation2 + $0xa0] sm:$0xff] %v8508_v18 }
 0x6cf   : >> { %14013 = vmatprep.mubr.bf16.mxu1 %v19181_v24  ;;  %19259 = vst [vmem:[#allocation10_spill] sm:$0xff] %v18285_v28  ;;  %8878 = vst [vmem:[#allocation2 + $0x78] sm:$0xff] %v13764_v37  ;;  %v13724_v3 = vpop.f32.mrf.mxu1  ;;  %v18293_v24 = vld [vmem:[#allocation2 + $0x95] sm:$0xff] }
 0x6d0   : >> { %v13772_v4 = vpop.f32.mrf.mxu0  ;;  %8578 = vst [vmem:[#allocation2 + $0xb8] sm:$0xff] %v13724_v3  ;;  %19261 = vst [vmem:[#allocation85_spill] sm:$0xff] %v18293_v24  ;;  %v18297_v37 = vld [vmem:[#allocation2 + $0xd4] sm:$0xff]  ;;  %v18301_v3 = vld [vmem:[#allocation2 + $0xc4] sm:$0xff] }
 0x6d1   : >> { %v8511_v17 = vpop.f32.mrf.mxu1  ;;  %v18289_v10 = vld [vmem:[#allocation2 + $0x85] sm:$0xff]  ;;  %v18291_v0 = vld [vmem:[#allocation2 + $0x8d] sm:$0xff]  ;;  %19263 = vst [vmem:[#allocation29_spill] sm:$0xff] %v18297_v37  ;;  %19264 = vst [vmem:[#allocation124_spill] sm:$0xff] %v18301_v3 }
 0x6d2   : >> { %v8819_v62 = vpop.f32.mrf.mxu0  ;;  %8576 = vst [vmem:[#allocation2 + $0xa8] sm:$0xff] %v8511_v17  ;;  %8879 = vst [vmem:[#allocation2 + $0x80] sm:$0xff] %v8800_v48 }
 0x6d3   : >> { %8880 = vst [vmem:[#allocation2 + $0x88] sm:$0xff] %v8803_v31  ;;  %8881 = vst [vmem:[#allocation2 + $0x90] sm:$0xff] %v13767_v54  ;;  %v13727_v18 = vpop.f32.mrf.mxu1  ;;  %v18305_v54 = vld [vmem:[#allocation2 + $0xdc] sm:$0xff] }
 0x6d4   : >> { %v13775_v12 = vpop.f32.mrf.mxu0  ;;  %8581 = vst [vmem:[#allocation2 + $0xd0] sm:$0xff] %v13727_v18  ;;  %19266 = vst [vmem:[#allocation87_spill] sm:$0xff] %v18305_v54 }
 0x6d5   : >> { %v8524_v28 = vpop.f32.mrf.mxu1  ;;  %v18303_v24 = vld [vmem:[#allocation2 + $0x9d] sm:$0xff] }
 0x6d6   : >> { %14014 = vmatmul.mubr.bf16.gmra.mxu1 %v19196_v36  ;;  %v8832_v21 = vpop.f32.mrf.mxu0  ;;  %19265 = vst [vmem:[#allocation66_spill] sm:$0xff] %v18303_v24  ;;  %8579 = vst [vmem:[#allocation2 + $0xc0] sm:$0xff] %v8524_v28 }
 0x6d7   : >> { %14017 = vmatprep.mubr.bf16.mxu1 %v19198_v58  ;;  %8882 = vst [vmem:[#allocation2 + $0x98] sm:$0xff] %v13768_v50  ;;  %v13728_v48 = vpop.f32.mrf.mxu1  ;;  %v18311_v58 = vld [vmem:[#allocation2 + $0xb5] sm:$0xff]  ;;  %v18314_v50 = vld [vmem:[#allocation2 + $0xe4] sm:$0xff] }
 0x6d8   : >> { %v13776_v31 = vpop.f32.mrf.mxu0  ;;  %8582 = vst [vmem:[#allocation2 + $0xd8] sm:$0xff] %v13728_v48  ;;  %19268 = vst [vmem:[#allocation78_spill] sm:$0xff] %v18311_v58  ;;  %v18318_v58 = vld [vmem:[#allocation2 + $0xec] sm:$0xf] }
 0x6d9   : >> { %v8527_v17 = vpop.f32.mrf.mxu1  ;;  %v18307_v57 = vld [vmem:[#allocation2 + $0xa5] sm:$0xff]  ;;  %v18309_v36 = vld [vmem:[#allocation2 + $0xad] sm:$0xff]  ;;  %19269 = vst [vmem:[#allocation75_spill] sm:$0xff] %v18314_v50  ;;  %19271 = vst [vmem:[#allocation133_spill] sm:$0xff] %v18318_v58 }
 0x6da   : >> { %v8835_v37 = vpop.f32.mrf.mxu0  ;;  %19267 = vst [vmem:[#allocation79_spill] sm:$0xff] %v18309_v36  ;;  %8580 = vst [vmem:[#allocation2 + $0xc8] sm:$0xff] %v8527_v17 }
 0x6db   : >> { %8883 = vst [vmem:[#allocation2 + $0xa0] sm:$0xff] %v8816_v39  ;;  %8884 = vst [vmem:[#allocation2 + $0xa8] sm:$0xff] %v8819_v62  ;;  %v13731_v18 = vpop.f32.mrf.mxu1 }
 0x6dc   : >> { %8885 = vst [vmem:[#allocation2 + $0xb0] sm:$0xff] %v13771_v20  ;;  %v13779_v28 = vpop.f32.mrf.mxu0  ;;  %8585 = vst [vmem:[#allocation2 + $0xf0] sm:$0xff] %v13731_v18 }
 0x6dd   : >> { %v8540_v48 = vpop.f32.mrf.mxu1  ;;  %v18316_v3 = vld [vmem:[#allocation2 + $0xbd] sm:$0xff] }
 0x6de   : >> { %14018 = vmatmul.mubr.bf16.gmra.mxu1 %v19205_v44  ;;  %v8848_v54 = vpop.f32.mrf.mxu0  ;;  %19270 = vst [vmem:[#allocation54_spill] sm:$0xff] %v18316_v3  ;;  %8583 = vst [vmem:[#allocation2 + $0xe0] sm:$0xff] %v8540_v48 }
 0x6df   : >> { %8886 = vst [vmem:[#allocation2 + $0xb8] sm:$0xff] %v13772_v4  ;;  %v13732_v24 = vpop.f32.mrf.mxu1  ;;  %v18320_v39 = vld [vmem:[#allocation2 + $0xd5] sm:$0xff] }
 0x6e0   : >> { %v13780_v36 = vpop.f32.mrf.mxu0  ;;  %19272 = vst [vmem:[#allocation114_spill] sm:$0xff] %v18320_v39 }
 0x6e1   : >> { %v18322_v20 = vld [vmem:[#allocation2 + $0xc5] sm:$0xff]  ;;  %v18324_v62 = vld [vmem:[#allocation2 + $0xcd] sm:$0xff]  ;;  %v8543_v44 = vpop.f32.mrf.mxu1 }
 0x6e2   : >> { %19273 = vst [vmem:[#allocation94_spill] sm:$0xff] %v18322_v20  ;;  %19274 = vst [vmem:[#allocation24_spill] sm:$0xff] %v18324_v62  ;;  %v8851_v17 = vpop.f32.mrf.mxu0 }
 0x6e3   : >> { %8889 = vst [vmem:[#allocation2 + $0xd0] sm:$0xff] %v13775_v12  ;;  %8888 = vst [vmem:[#allocation2 + $0xc8] sm:$0xff] %v8835_v37  ;;  %v13799_v18 = vpop.f32.mrf.mxu1 }
 0x6e4   : >> { %8584 = vst [vmem:[#allocation2 + $0xe8] sm:$0xff] %v8543_v44  ;;  %8887 = vst [vmem:[#allocation2 + $0xc0] sm:$0xff] %v8832_v21  ;;  %v13847_v3 = vpop.f32.mrf.mxu0  ;;  %v7691_v21 = vadd.f32 %v18092_v16, %v17860_v1  ;;  %v7692_v18 = vadd.f32 %v18086_v63, %v17895_v9 }
 0x6e5   : >> { %v18326_v48 = vld [vmem:[#allocation2 + $0xdd] sm:$0xff]  ;;  %v9044_v4 = vpop.f32.mrf.mxu1 }
 0x6e6   : >> { %v9352_v24 = vpop.f32.mrf.mxu0  ;;  %8890 = vst [vmem:[#allocation2 + $0xd8] sm:$0xff] %v13776_v31  ;;  %v7999_v3 = vadd.f32 %v18122_v8, %v7691_v21  ;;  %v7689_v31 = vadd.f32 %v18068_v29, %v17872_v47  ;;  %v7690_v8 = vadd.f32 %v18079_v42, %v17834_v6  ;;  %v8000_v47 = vadd.f32 %v18124_v11, %v7692_v18  ;;  %v8899_v11 = vld [vmem:[#allocation2 + $0x4e] sm:$0xff]  ;;  %v8900_v21 = vld [vmem:[#allocation2 + $0x56] sm:$0xff] }
 0x6e7   : >> { %v13800_v36 = vpop.f32.mrf.mxu1  ;;  %v7695_v24 = vadd.f32 %v18114_v34, %v17906_v38 }
 0x6e8   : >> { %v13848_v58 = vpop.f32.mrf.mxu0  ;;  %v8308_v36 = vadd.f32 %v18222_v14, %v8000_v47  ;;  %v8904_v47 = vld [vmem:[#allocation2 + $0x76] sm:$0xff] }
 0x6e9   : >> { %v9047_v62 = vpop.f32.mrf.mxu1 }
 0x6ea   : >> { %v9355_v20 = vpop.f32.mrf.mxu0  ;;  %v8897_v62 = vld [vmem:[#allocation2 + $0x3e] sm:$0xff] }
 0x6eb   : >> { %v18328_v39 = vld [vmem:[#allocation2 + $0xe5] sm:$0xff]  ;;  %v18330_v50 = vld [vmem:[#allocation2 + $0xed] sm:$0xf]  ;;  %v13803_v12 = vpop.f32.mrf.mxu1  ;;  %v8307_v20 = vadd.f32 %v18229_v53, %v7999_v3  ;;  %v7998_v53 = vadd.f32 %v18116_v22, %v7690_v8  ;;  %v8003_v22 = vadd.f32 %v18142_v41, %v7695_v24 }
 0x6ec   : >> { %8891 = vst [vmem:[#allocation2 + $0xe0] sm:$0xff] %v8848_v54  ;;  %8893 = vst [vmem:[#allocation2 + $0xf0] sm:$0xff] %v13779_v28  ;;  %v13851_v37 = vpop.f32.mrf.mxu0  ;;  %v7997_v54 = vadd.f32 %v18099_v19, %v7689_v31  ;;  %v8896_v28 = vld [vmem:[#allocation2 + $0x36] sm:$0xff]  ;;  %v8901_v41 = vld [vmem:[#allocation2 + $0x5e] sm:$0xff] }
 0x6ed   : >> { %8892 = vst [vmem:[#allocation2 + $0xe8] sm:$0xff] %v8851_v17  ;;  %v9060_v58 = vpop.f32.mrf.mxu1  ;;  %v8898_v17 = vld [vmem:[#allocation2 + $0x46] sm:$0xff]  ;;  %v8615_v29 = vadd.f32 %v18253_v23, %v8307_v20  ;;  %v8616_v37 = vadd.f32 %v18255_v45, %v8308_v36  ;;  %v8903_v8 = vld [vmem:[#allocation2 + $0x6e] sm:$0xff]  ;;  %v19279_v36 = vld [vmem:[#allocation70_spill] sm:$0xff] }
 0x6ee   : >> { %v9368_v44 = vpop.f32.mrf.mxu0  ;;  %v8305_v4 = vadd.f32 %v18211_v52, %v7997_v54  ;;  %v7693_v52 = vadd.f32 %v18084_v40, %v17918_v30  ;;  %v8311_v30 = vadd.f32 %v18244_v15, %v8003_v22  ;;  %v8902_v45 = vld [vmem:[#allocation2 + $0x66] sm:$0xff]  ;;  %v7694_v54 = vadd.f32 %v18097_v25, %v17883_v55 }
 0x6ef   : >> { %v13804_v1 = vpop.f32.mrf.mxu1  ;;  %v8923_v6 = vadd.f32 %v8898_v17, %v8615_v29  ;;  %v8924_v40 = vadd.f32 %v8899_v11, %v8616_v37  ;;  %v7699_v17 = vadd.f32 %v18134_v27, %v17951_v60  ;;  %v19278_v27 = vld [vmem:[#allocation62_spill] sm:$0xff]  ;;  %v19281_v11 = vld [vmem:[#allocation76_spill] sm:$0xff] }
 0x6f0   : >> { %v13852_v16 = vpop.f32.mrf.mxu0  ;;  %v18347_v9 = vadd.f32 %v13804_v1, %v18257_v7  ;;  %v8613_v42 = vadd.f32 %v18234_v51, %v8305_v4  ;;  %v8306_v7 = vadd.f32 %v18218_v2, %v7998_v53  ;;  %v7696_v51 = vadd.f32 %v18108_v32, %v17940_v49  ;;  %v19276_v4 = vld [vmem:[#allocation36_spill] sm:$0xff] }
 0x6f1   : >> { %9486 = vst [vmem:[#allocation2 + $0x38] sm:$0xff] %v13852_v16  ;;  %v9063_v63 = vpop.f32.mrf.mxu1  ;;  %v8001_v31 = vadd.f32 %v18120_v26, %v7693_v52  ;;  %v8619_v49 = vadd.f32 %v18271_v59, %v8311_v30  ;;  %v8002_v1 = vadd.f32 %v18136_v33, %v7694_v54  ;;  %v19285_v30 = vld [vmem:[#allocation61_spill] sm:$0xff] }
 0x6f2   : >> { %v9371_v19 = vpop.f32.mrf.mxu0  ;;  %v8921_v34 = vadd.f32 %v8896_v28, %v8613_v42  ;;  %v8614_v2 = vadd.f32 %v18246_v61, %v8306_v7  ;;  %v8004_v20 = vadd.f32 %v18144_v56, %v7696_v51  ;;  %v19277_v63 = vld [vmem:[#allocation26_spill] sm:$0xff] }
 0x6f3   : >> { %v13807_v23 = vpop.f32.mrf.mxu1  ;;  %v8309_v32 = vadd.f32 %v18224_v13, %v8001_v31  ;;  %v8927_v16 = vadd.f32 %v8902_v45, %v8619_v49  ;;  %v7697_v19 = vadd.f32 %v19277_v63, %v19276_v4  ;;  %v8310_v33 = vadd.f32 %v19278_v27, %v8002_v1  ;;  %v19282_v7 = vld [vmem:[#allocation30_spill] sm:$0xff]  ;;  %v19284_v31 = vld [vmem:[#allocation35_spill] sm:$0xff]  ;;  %v19286_v45 = vld [vmem:[#allocation125_spill] sm:$0xff] }
 0x6f4   : >> { %v13855_v12 = vpop.f32.mrf.mxu0  ;;  %v18359_v38 = vadd.f32 %v13807_v23, %v8923_v6  ;;  %v8922_v15 = vadd.f32 %v8897_v62, %v8614_v2  ;;  %v8312_v56 = vadd.f32 %v18237_v5, %v8004_v20  ;;  %v19275_v62 = vld [vmem:[#allocation99_spill] sm:$0xff]  ;;  %v19280_v6 = vld [vmem:[#allocation4_spill] sm:$0xff]  ;;  %v19293_v4 = vld [vmem:[#allocation74_spill] sm:$0xff] }
 0x6f5   : >> { %9489 = vst [vmem:[#allocation2 + $0x50] sm:$0xff] %v13855_v12  ;;  %v9076_v14 = vpop.f32.mrf.mxu1  ;;  %v8617_v55 = vadd.f32 %v18251_v43, %v8309_v32  ;;  %v8007_v29 = vadd.f32 %v19275_v62, %v7699_v17  ;;  %v7700_v42 = vadd.f32 %v19280_v6, %v19279_v36  ;;  %v8005_v23 = vadd.f32 %v19281_v11, %v7697_v19  ;;  %v19287_v49 = vld [vmem:[#allocation71_spill] sm:$0xff]  ;;  %v19290_v17 = vld [vmem:[#allocation56_spill] sm:$0xff]  ;;  %v19294_v63 = vld [vmem:[#allocation109_spill] sm:$0xff] }
 0x6f6   : >> { %v9384_v3 = vpop.f32.mrf.mxu0  ;;  %v18366_v58 = vadd.f32 %v9076_v14, %v8921_v34  ;;  %v8620_v60 = vadd.f32 %v18273_v35, %v8312_v56  ;;  %v8618_v22 = vadd.f32 %v19282_v7, %v8310_v33  ;;  %v8905_v14 = vld [vmem:[#allocation2 + $0x7e] sm:$0xff]  ;;  %v7701_v19 = vadd.f32 %v19294_v63, %v19293_v4  ;;  %v19310_v4 = vld [vmem:[#allocation121_spill] sm:$0xff] }
 0x6f7   : >> { %9487 = vst [vmem:[#allocation2 + $0x40] sm:$0xff] %v9384_v3  ;;  %v13808_v44 = vpop.f32.mrf.mxu1  ;;  %v8925_v53 = vadd.f32 %v8900_v21, %v8617_v55  ;;  %v8315_v12 = vadd.f32 %v18267_v46, %v8007_v29  ;;  %v8906_v3 = vld [vmem:[#allocation2 + $0x86] sm:$0xff]  ;;  %v19283_v21 = vld [vmem:[#allocation58_spill] sm:$0xff] }
 0x6f8   : >> { %v13856_v18 = vpop.f32.mrf.mxu0  ;;  %v18373_v26 = vadd.f32 %v13808_v44, %v8924_v40  ;;  %v8928_v52 = vadd.f32 %v8903_v8, %v8620_v60  ;;  %v8008_v51 = vadd.f32 %v19283_v21, %v7700_v42  ;;  %v7698_v40 = vadd.f32 %v19285_v30, %v19284_v31  ;;  %v19288_v32 = vld [vmem:[#allocation23_spill] sm:$0xff]  ;;  %v19292_v8 = vld [vmem:[#allocation8_spill] sm:$0xff]  ;;  %v8908_v29 = vld [vmem:[#allocation2 + $0x96] sm:$0xff] }
 0x6f9   : >> { %9490 = vst [vmem:[#allocation2 + $0x58] sm:$0xff] %v13856_v18  ;;  %v9079_v61 = vpop.f32.mrf.mxu1  ;;  %v8623_v2 = vadd.f32 %v18289_v10, %v8315_v12  ;;  %v8313_v44 = vadd.f32 %v19286_v45, %v8005_v23  ;;  %v8926_v18 = vadd.f32 %v8901_v41, %v8618_v22  ;;  %v8907_v41 = vld [vmem:[#allocation2 + $0x8e] sm:$0xff]  ;;  %v19295_v27 = vld [vmem:[#allocation107_spill] sm:$0xff]  ;;  %v19296_v6 = vld [vmem:[#allocation102_spill] sm:$0xff] }
 0x6fa   : >> { %v9387_v28 = vpop.f32.mrf.mxu0  ;;  %v18380_v25 = vadd.f32 %v9079_v61, %v8922_v15  ;;  %v7703_v15 = vadd.f32 %v19288_v32, %v19287_v49  ;;  %v19289_v61 = vld [vmem:[#allocation89_spill] sm:$0xff]  ;;  %v8316_v1 = vadd.f32 %v19290_v17, %v8008_v51  ;;  %v8009_v42 = vadd.f32 %v19296_v6, %v7701_v19  ;;  %v19297_v11 = vld [vmem:[#allocation103_spill] sm:$0xff]  ;;  %v19298_v23 = vld [vmem:[#allocation50_spill] sm:$0xff] }
 0x6fb   : >> { %9488 = vst [vmem:[#allocation2 + $0x48] sm:$0xff] %v9387_v28  ;;  %v13811_v59 = vpop.f32.mrf.mxu1  ;;  %v8006_v28 = vadd.f32 %v19289_v61, %v7698_v40  ;;  %v8931_v56 = vadd.f32 %v8906_v3, %v8623_v2  ;;  %v7704_v12 = vadd.f32 %v19298_v23, %v19297_v11  ;;  %v19301_v51 = vld [vmem:[#allocation38_spill] sm:$0xff]  ;;  %v19302_v31 = vld [vmem:[#allocation21_spill] sm:$0xff]  ;;  %v8910_v40 = vld [vmem:[#allocation2 + $0xa6] sm:$0xff] }
 0x6fc   : >> { %v13859_v13 = vpop.f32.mrf.mxu0  ;;  %v18387_v5 = vadd.f32 %v13811_v59, %v8927_v16  ;;  %v19291_v16 = vld [vmem:[#allocation9_spill] sm:$0xff]  ;;  %v8011_v62 = vadd.f32 %v19292_v8, %v7703_v15  ;;  %v8624_v60 = vadd.f32 %v18291_v0, %v8316_v1  ;;  %v8909_v30 = vld [vmem:[#allocation2 + $0x9e] sm:$0xff]  ;;  %v19303_v2 = vld [vmem:[#allocation116_spill] sm:$0xff] }
 0x6fd   : >> { %9493 = vst [vmem:[#allocation2 + $0x70] sm:$0xff] %v13859_v13  ;;  %v9092_v43 = vpop.f32.mrf.mxu1  ;;  %v8621_v55 = vadd.f32 %v19291_v16, %v8313_v44  ;;  %v8314_v33 = vadd.f32 %v19295_v27, %v8006_v28  ;;  %v8012_v45 = vadd.f32 %v19303_v2, %v7704_v12  ;;  %v19305_v61 = vld [vmem:[#allocation57_spill] sm:$0xff]  ;;  %v19307_v1 = vld [vmem:[#allocation7_spill] sm:$0xff]  ;;  %v19312_v27 = vld [vmem:[#allocation46_spill] sm:$0xff] }
 0x6fe   : >> { %v9400_v24 = vpop.f32.mrf.mxu0  ;;  %v18394_v37 = vadd.f32 %v9092_v43, %v8925_v53  ;;  %v8932_v22 = vadd.f32 %v8907_v41, %v8624_v60  ;;  %v19306_v17 = vld [vmem:[#allocation105_spill] sm:$0xff]  ;;  %v19311_v60 = vld [vmem:[#allocation104_spill] sm:$0xff] }
 0x6ff   : >> { %9491 = vst [vmem:[#allocation2 + $0x60] sm:$0xff] %v9400_v24  ;;  %v13812_v35 = vpop.f32.mrf.mxu1  ;;  %v8929_v43 = vadd.f32 %v8904_v47, %v8621_v55  ;;  %v7702_v47 = vadd.f32 %v19302_v31, %v19301_v51  ;;  %v19308_v55 = vld [vmem:[#allocation85_spill] sm:$0xff]  ;;  %v19319_v31 = vld [vmem:[#allocation124_spill] sm:$0xff] }
 0x700   : >> { %v13860_v34 = vpop.f32.mrf.mxu0  ;;  %v18401_v46 = vadd.f32 %v13812_v35, %v8928_v52  ;;  %v19299_v52 = vld [vmem:[#allocation112_spill] sm:$0xff]  ;;  %v19300_v35 = vld [vmem:[#allocation10_spill] sm:$0xff] }
 0x701   : >> { %9494 = vst [vmem:[#allocation2 + $0x78] sm:$0xff] %v13860_v34  ;;  %v9095_v20 = vpop.f32.mrf.mxu1  ;;  %v8319_v7 = vadd.f32 %v19299_v52, %v8011_v62  ;;  %v8622_v34 = vadd.f32 %v19300_v35, %v8314_v33  ;;  %v8010_v28 = vadd.f32 %v19305_v61, %v7702_v47  ;;  %v8912_v19 = vld [vmem:[#allocation2 + $0xb6] sm:$0xff]  ;;  %v7705_v33 = vadd.f32 %v19312_v27, %v19311_v60  ;;  %v19315_v52 = vld [vmem:[#allocation20_spill] sm:$0xff] }
 0x702   : >> { %v9403_v54 = vpop.f32.mrf.mxu0  ;;  %v18408_v59 = vadd.f32 %v9095_v20, %v8926_v18  ;;  %v19304_v18 = vld [vmem:[#allocation111_spill] sm:$0xff]  ;;  %v19317_v35 = vld [vmem:[#allocation5_spill] sm:$0xff]  ;;  %v19329_v27 = vld [vmem:[#allocation78_spill] sm:$0xff] }
 0x703   : >> { %9492 = vst [vmem:[#allocation2 + $0x68] sm:$0xff] %v9403_v54  ;;  %v13815_v10 = vpop.f32.mrf.mxu1  ;;  %v8627_v44 = vadd.f32 %v18307_v57, %v8319_v7  ;;  %v8317_v20 = vadd.f32 %v19304_v18, %v8009_v42  ;;  %v8930_v49 = vadd.f32 %v8905_v14, %v8622_v34  ;;  %v19309_v57 = vld [vmem:[#allocation98_spill] sm:$0xff]  ;;  %v8318_v63 = vadd.f32 %v19310_v4, %v8010_v28  ;;  %v8911_v14 = vld [vmem:[#allocation2 + $0xae] sm:$0xff]  ;;  %v19314_v42 = vld [vmem:[#allocation79_spill] sm:$0xff] }
 0x704   : >> { %v13863_v13 = vpop.f32.mrf.mxu0  ;;  %v18415_v53 = vadd.f32 %v13815_v10, %v8931_v56  ;;  %v7707_v56 = vadd.f32 %v19307_v1, %v19306_v17  ;;  %v8320_v8 = vadd.f32 %v19309_v57, %v8012_v45  ;;  %v19316_v7 = vld [vmem:[#allocation113_spill] sm:$0xff]  ;;  %v8013_v34 = vadd.f32 %v19317_v35, %v7705_v33  ;;  %v8913_v45 = vld [vmem:[#allocation2 + $0xbe] sm:$0xff]  ;;  %v19325_v57 = vld [vmem:[#allocation108_spill] sm:$0xff] }
 0x705   : >> { %9497 = vst [vmem:[#allocation2 + $0x90] sm:$0xff] %v13863_v13  ;;  %v9108_v24 = vpop.f32.mrf.mxu1  ;;  %v8935_v16 = vadd.f32 %v8910_v40, %v8627_v44  ;;  %v8625_v10 = vadd.f32 %v19308_v55, %v8317_v20  ;;  %v8914_v44 = vld [vmem:[#allocation2 + $0xc6] sm:$0xff]  ;;  %v19320_v18 = vld [vmem:[#allocation53_spill] sm:$0xff]  ;;  %v19323_v28 = vld [vmem:[#allocation94_spill] sm:$0xff] }
 0x706   : >> { %v9416_v36 = vpop.f32.mrf.mxu0  ;;  %v18422_v3 = vadd.f32 %v9108_v24, %v8929_v43  ;;  %v8628_v11 = vadd.f32 %v19314_v42, %v8320_v8  ;;  %v19324_v1 = vld [vmem:[#allocation25_spill] sm:$0xff]  ;;  %v19326_v8 = vld [vmem:[#allocation47_spill] sm:$0xff] }
 0x707   : >> { %9495 = vst [vmem:[#allocation2 + $0x80] sm:$0xff] %v9416_v36  ;;  %v13816_v0 = vpop.f32.mrf.mxu1  ;;  %v8933_v24 = vadd.f32 %v8908_v29, %v8625_v10  ;;  %v19313_v36 = vld [vmem:[#allocation72_spill] sm:$0xff] }
 0x708   : >> { %v13864_v21 = vpop.f32.mrf.mxu0  ;;  %v18429_v54 = vadd.f32 %v13816_v0, %v8932_v22  ;;  %v8015_v6 = vadd.f32 %v19313_v36, %v7707_v56  ;;  %v7708_v22 = vadd.f32 %v19316_v7, %v19315_v52  ;;  %v19318_v0 = vld [vmem:[#allocation66_spill] sm:$0xff]  ;;  %v8936_v40 = vadd.f32 %v8911_v14, %v8628_v11  ;;  %v19330_v11 = vld [vmem:[#allocation39_spill] sm:$0xff] }
 0x709   : >> { %9498 = vst [vmem:[#allocation2 + $0x98] sm:$0xff] %v13864_v21  ;;  %v9111_v32 = vpop.f32.mrf.mxu1  ;;  %v8626_v21 = vadd.f32 %v19318_v0, %v8318_v63  ;;  %v8321_v56 = vadd.f32 %v19324_v1, %v8013_v34  ;;  %v19328_v14 = vld [vmem:[#allocation118_spill] sm:$0xff]  ;;  %v19332_v52 = vld [vmem:[#allocation123_spill] sm:$0xff]  ;;  %v19334_v34 = vld [vmem:[#allocation24_spill] sm:$0xff] }
 0x70a   : >> { %v9419_v15 = vpop.f32.mrf.mxu0  ;;  %v18435_v13 = vadd.f32 %v9111_v32, %v8930_v49  ;;  %v8323_v47 = vadd.f32 %v19319_v31, %v8015_v6  ;;  %v8016_v20 = vadd.f32 %v19320_v18, %v7708_v22  ;;  %v19321_v49 = vld [vmem:[#allocation80_spill] sm:$0xff]  ;;  %v19322_v32 = vld [vmem:[#allocation117_spill] sm:$0xff] }
 0x70b   : >> { %9496 = vst [vmem:[#allocation2 + $0x88] sm:$0xff] %v9419_v15  ;;  %v7706_v15 = vadd.f32 %v19322_v32, %v19321_v49  ;;  %v8934_v61 = vadd.f32 %v8909_v30, %v8626_v21  ;;  %v8629_v33 = vadd.f32 %v19329_v27, %v8321_v56  ;;  %v8916_v36 = vld [vmem:[#allocation2 + $0xd6] sm:$0xff]  ;;  %v8918_v1 = vld [vmem:[#allocation2 + $0xe6] sm:$0xff] }
 0x70c   : >> { %v8631_v17 = vadd.f32 %v19323_v28, %v8323_v47  ;;  %v8324_v60 = vadd.f32 %v19328_v14, %v8016_v20  ;;  %v19333_v22 = vld [vmem:[#allocation81_spill] sm:$0xff]  ;;  %v19337_v49 = vld [vmem:[#allocation54_spill] sm:$0xff] }
 0x70d   : >> { %v8937_v31 = vadd.f32 %v8912_v19, %v8629_v33  ;;  %v19338_v56 = vld [vmem:[#allocation37_spill] sm:$0xff]  ;;  %v19342_v33 = vld [vmem:[#allocation114_spill] sm:$0xff] }
 0x70e   : >> { %v13819_v62 = vpop.f32.mrf.mxu1  ;;  %v13867_v41 = vpop.f32.mrf.mxu0  ;;  %v8939_v30 = vadd.f32 %v8914_v44, %v8631_v17  ;;  %v8632_v0 = vadd.f32 %v19334_v34, %v8324_v60  ;;  %v19336_v44 = vld [vmem:[#allocation75_spill] sm:$0xff]  ;;  %v19345_v34 = vld [vmem:[#allocation60_spill] sm:$0xff] }
 0x70f   : >> { %v18441_v43 = vadd.f32 %v13819_v62, %v8935_v16  ;;  %9501 = vst [vmem:[#allocation2 + $0xb0] sm:$0xff] %v13867_v41  ;;  %v7711_v62 = vadd.f32 %v19326_v8, %v19325_v57  ;;  %v19327_v41 = vld [vmem:[#allocation110_spill] sm:$0xff]  ;;  %v19340_v57 = vld [vmem:[#allocation29_spill] sm:$0xff] }
 0x710   : >> { %v9124_v23 = vpop.f32.mrf.mxu1  ;;  %v9432_v12 = vpop.f32.mrf.mxu0  ;;  %v8014_v4 = vadd.f32 %v19327_v41, %v7706_v15  ;;  %v8917_v17 = vld [vmem:[#allocation2 + $0xde] sm:$0xff] }
 0x711   : >> { %9499 = vst [vmem:[#allocation2 + $0xa0] sm:$0xff] %v9432_v12  ;;  %v18449_v51 = vadd.f32 %v9124_v23, %v8933_v24  ;;  %v8915_v24 = vld [vmem:[#allocation2 + $0xce] sm:$0xff]  ;;  %v8019_v35 = vadd.f32 %v19333_v22, %v7711_v62 }
 0x712   : >> { %v13820_v29 = vpop.f32.mrf.mxu1  ;;  %v13868_v2 = vpop.f32.mrf.mxu0  ;;  %v19331_v23 = vld [vmem:[#allocation92_spill] sm:$0xff]  ;;  %v8322_v7 = vadd.f32 %v19332_v52, %v8014_v4  ;;  %v8940_v20 = vadd.f32 %v8915_v24, %v8632_v0 }
 0x713   : >> { %9502 = vst [vmem:[#allocation2 + $0xb8] sm:$0xff] %v13868_v2  ;;  %v18457_v16 = vadd.f32 %v13820_v29, %v8936_v40  ;;  %v7709_v12 = vadd.f32 %v19331_v23, %v19330_v11  ;;  %v19335_v29 = vld [vmem:[#allocation115_spill] sm:$0xff]  ;;  %v8327_v18 = vadd.f32 %v19336_v44, %v8019_v35  ;;  %v19344_v35 = vld [vmem:[#allocation41_spill] sm:$0xff] }
 0x714   : >> { %v9127_v55 = vpop.f32.mrf.mxu1  ;;  %v9435_v10 = vpop.f32.mrf.mxu0  ;;  %v8630_v32 = vadd.f32 %v19337_v49, %v8322_v7  ;;  %v7712_v0 = vadd.f32 %v19345_v34, %v19344_v35 }
 0x715   : >> { %v18462_v63 = vadd.f32 %v9127_v55, %v8934_v61  ;;  %9500 = vst [vmem:[#allocation2 + $0xa8] sm:$0xff] %v9435_v10  ;;  %v8017_v2 = vadd.f32 %v19335_v29, %v7709_v12  ;;  %v19339_v55 = vld [vmem:[#allocation49_spill] sm:$0xff]  ;;  %v8635_v19 = vadd.f32 %v18328_v39, %v8327_v18  ;;  %v19343_v12 = vld [vmem:[#allocation87_spill] sm:$0xff] }
 0x716   : >> { %v13823_v6 = vpop.f32.mrf.mxu1  ;;  %v13871_v42 = vpop.f32.mrf.mxu0  ;;  %v7710_v10 = vadd.f32 %v19339_v55, %v19338_v56  ;;  %v8938_v41 = vadd.f32 %v8913_v45, %v8630_v32  ;;  %v19347_v32 = vld [vmem:[#allocation133_spill] sm:$0xff]  ;;  %v14725_v56 = vmov 0  }
 0x717   : >> { %9505 = vst [vmem:[#allocation2 + $0xd0] sm:$0xff] %v13871_v42  ;;  %v18471_v21 = vadd.f32 %v13823_v6, %v8939_v30  ;;  %v8325_v8 = vadd.f32 %v19340_v57, %v8017_v2  ;;  %v8943_v60 = vadd.f32 %v8918_v1, %v8635_v19  ;;  %v19341_v30 = vld [vmem:[#allocation45_spill] sm:$0xff]  ;;  %v19346_v2 = vld [vmem:[#allocation27_spill] sm:$0xff]  ;;  %10588 = vmatprep.subr.bf16.mxu0 %v14725_v56 }
 0x718   : >> { %v9140_v47 = vpop.f32.mrf.mxu1  ;;  %v9448_v40 = vpop.f32.mrf.mxu0  ;;  %v8018_v27 = vadd.f32 %v19341_v30, %v7710_v10  ;;  %v8919_v42 = vld [vmem:[#allocation2 + $0xee] sm:$0xf]  ;;  %v8020_v44 = vadd.f32 %v19346_v2, %v7712_v0  ;;  %v9515_v0 = vld [vmem:[#allocation2 + $0x59] sm:$0xff] }
 0x719   : >> { %9503 = vst [vmem:[#allocation2 + $0xc0] sm:$0xff] %v9448_v40  ;;  %v18476_v15 = vadd.f32 %v9140_v47, %v8937_v31  ;;  %v8633_v24 = vadd.f32 %v19342_v33, %v8325_v8 }
 0x71a   : >> { %v13824_v61 = vpop.f32.mrf.mxu1  ;;  %v13872_v28 = vpop.f32.mrf.mxu0  ;;  %v8326_v52 = vadd.f32 %v19343_v12, %v8018_v27 }
 0x71b   : >> { %9506 = vst [vmem:[#allocation2 + $0xd8] sm:$0xff] %v13872_v28  ;;  %v18482_v62 = vadd.f32 %v13824_v61, %v8940_v20  ;;  %v8941_v7 = vadd.f32 %v8916_v36, %v8633_v24  ;;  %v8328_v36 = vadd.f32 %v19347_v32, %v8020_v44  ;;  %v9511_v24 = vld [vmem:[#allocation2 + $0x39] sm:$0xff] }
 0x71c   : >> { %v9143_v4 = vpop.f32.mrf.mxu1  ;;  %v9451_v14 = vpop.f32.mrf.mxu0  ;;  %v8634_v31 = vadd.f32 %v18326_v48, %v8326_v52  ;;  %v9514_v52 = vld [vmem:[#allocation2 + $0x51] sm:$0xff]  ;;  %v9536_v32 = vadd.f32 %v9511_v24, %v18347_v9 }
 0x71d   : >> { %9504 = vst [vmem:[#allocation2 + $0xc8] sm:$0xff] %v9451_v14  ;;  %v18486_v6 = vadd.f32 %v9143_v4, %v8938_v41  ;;  %v8636_v48 = vadd.f32 %v18330_v50, %v8328_v36 }
 0x71e   : >> { %v13827_v11 = vpop.f32.mrf.mxu1  ;;  %v13875_v23 = vpop.f32.mrf.mxu0  ;;  %v8942_v18 = vadd.f32 %v8917_v17, %v8634_v31 }
 0x71f   : >> { %v18488_v39 = vadd.f32 %v13827_v11, %v8943_v60  ;;  %9509 = vst [vmem:[#allocation2 + $0xf0] sm:$0xff] %v13875_v23  ;;  %v8944_v19 = vadd.f32 %v8919_v42, %v8636_v48  ;;  %v9513_v42 = vld [vmem:[#allocation2 + $0x49] sm:$0xff]  ;;  %v9516_v48 = vld [vmem:[#allocation2 + $0x61] sm:$0xff] }
 0x720   : >> { %v9156_v45 = vpop.f32.mrf.mxu1  ;;  %v9464_v22 = vpop.f32.mrf.mxu0 }
 0x721   : >> { %9507 = vst [vmem:[#allocation2 + $0xe0] sm:$0xff] %v9464_v22  ;;  %v18494_v47 = vadd.f32 %v9156_v45, %v8941_v7  ;;  %v9512_v22 = vld [vmem:[#allocation2 + $0x41] sm:$0xff] }
 0x722   : >> { %v13828_v40 = vpop.f32.mrf.mxu1  ;;  %v13876_v29 = vpop.f32.mrf.mxu0  ;;  %v9537_v9 = vadd.f32 %v9512_v22, %v18366_v58 }
 0x723   : >> { %9202 = vst [vmem:[#allocation2 + $0xf8] sm:$0xff] %v13828_v40 }
 0x724   : >> { %v9159_v20 = vpop.f32.mrf.mxu1  ;;  %v9467_v49 = vpop.f32.mrf.mxu0 }
 0x725   : >> { %9508 = vst [vmem:[#allocation2 + $0xe8] sm:$0xff] %v9467_v49  ;;  %v18498_v61 = vadd.f32 %v9159_v20, %v8942_v18  ;;  %v9518_v20 = vld [vmem:[#allocation2 + $0x71] sm:$0xff]  ;;  %v9517_v49 = vld [vmem:[#allocation2 + $0x69] sm:$0xff] }
 0x726   : >> { %v13895_v28 = vpop.f32.mrf.mxu1  ;;  %v13943_v1 = vpop.f32.mrf.mxu0 }
 0x728   : >> { %v9660_v55 = vpop.f32.mrf.mxu1  ;;  %v9968_v10 = vpop.f32.mrf.mxu0 }
 0x729   : >> { %v9539_v55 = vadd.f32 %v9514_v52, %v18359_v38 }
 0x72a   : >> { %v9227_v57 = vld [vmem:[#allocation2 + $0xf8] sm:$0xf]  ;;  %v13896_v8 = vpop.f32.mrf.mxu1  ;;  %v13944_v17 = vpop.f32.mrf.mxu0 }
 0x72b   : >> { %v18502_v41 = vadd.f32 %v9227_v57, %v8944_v19  ;;  %9510 = vst [vmem:[#allocation2 + $0xf8] sm:$0xff] %v13876_v29  ;;  %v9519_v17 = vld [vmem:[#allocation2 + $0x79] sm:$0xff] }
 0x72c   : >> { %v9663_v4 = vpop.f32.mrf.mxu1  ;;  %v9971_v14 = vpop.f32.mrf.mxu0 }
 0x72d   : >> { %v9538_v4 = vadd.f32 %v9513_v42, %v18380_v25  ;;  %v9522_v25 = vld [vmem:[#allocation2 + $0x91] sm:$0xff]  ;;  %v9520_v42 = vld [vmem:[#allocation2 + $0x81] sm:$0xff] }
 0x72e   : >> { %v13899_v60 = vpop.f32.mrf.mxu1  ;;  %v13947_v30 = vpop.f32.mrf.mxu0 }
 0x730   : >> { %v9676_v27 = vpop.f32.mrf.mxu1  ;;  %v9984_v33 = vpop.f32.mrf.mxu0 }
 0x732   : >> { %v13900_v11 = vpop.f32.mrf.mxu1  ;;  %v13948_v23 = vpop.f32.mrf.mxu0 }
 0x733   : >> { %9794 = vst [vmem:[#allocation2 + $0x38] sm:$0xff] %v13900_v11 }
 0x734   : >> { %v9679_v50 = vpop.f32.mrf.mxu1  ;;  %v9987_v12 = vpop.f32.mrf.mxu0 }
 0x735   : >> { %v9521_v50 = vld [vmem:[#allocation2 + $0x89] sm:$0xff]  ;;  %v9540_v12 = vadd.f32 %v9515_v0, %v18373_v26  ;;  %v9541_v26 = vadd.f32 %v9516_v48, %v18394_v37  ;;  %v9544_v48 = vadd.f32 %v9519_v17, %v18401_v46  ;;  %v9545_v46 = vadd.f32 %v9520_v42, %v18422_v3 }
 0x736   : >> { %v13903_v7 = vpop.f32.mrf.mxu1  ;;  %v13951_v45 = vpop.f32.mrf.mxu0 }
 0x737   : >> { %9797 = vst [vmem:[#allocation2 + $0x50] sm:$0xff] %v13903_v7 }
 0x738   : >> { %v9692_v35 = vpop.f32.mrf.mxu1  ;;  %v10000_v34 = vpop.f32.mrf.mxu0 }
 0x739   : >> { %9795 = vst [vmem:[#allocation2 + $0x40] sm:$0xff] %v9692_v35 }
 0x73a   : >> { %v13904_v31 = vpop.f32.mrf.mxu1  ;;  %v13952_v40 = vpop.f32.mrf.mxu0 }
 0x73b   : >> { %9798 = vst [vmem:[#allocation2 + $0x58] sm:$0xff] %v13904_v31  ;;  %v9523_v31 = vld [vmem:[#allocation2 + $0x99] sm:$0xff] }
 0x73c   : >> { %v9695_v29 = vpop.f32.mrf.mxu1  ;;  %v10003_v2 = vpop.f32.mrf.mxu0 }
 0x73d   : >> { %9796 = vst [vmem:[#allocation2 + $0x48] sm:$0xff] %v9695_v29 }
 0x73e   : >> { %v13907_v44 = vpop.f32.mrf.mxu1  ;;  %v13955_v18 = vpop.f32.mrf.mxu0 }
 0x73f   : >> { %9801 = vst [vmem:[#allocation2 + $0x70] sm:$0xff] %v13907_v44 }
 0x740   : >> { %v9819_v36 = vld [vmem:[#allocation2 + $0x3a] sm:$0xff]  ;;  %v9708_v28 = vpop.f32.mrf.mxu1  ;;  %v10016_v1 = vpop.f32.mrf.mxu0 }
 0x741   : >> { %10102 = vst [vmem:[#allocation2 + $0x38] sm:$0xff] %v13948_v23  ;;  %9799 = vst [vmem:[#allocation2 + $0x60] sm:$0xff] %v9708_v28  ;;  %v9844_v10 = vadd.f32 %v9819_v36, %v9536_v32 }
 0x742   : >> { %v9822_v19 = vld [vmem:[#allocation2 + $0x52] sm:$0xff]  ;;  %v13908_v57 = vpop.f32.mrf.mxu1  ;;  %v18506_v8 = vpop.f32.mrf.mxu0 }
 0x743   : >> { %9802 = vst [vmem:[#allocation2 + $0x78] sm:$0xff] %v13908_v57  ;;  %v18509_v14 = vadd.f32 %v9822_v19, %v9539_v55 }
 0x744   : >> { %v9820_v60 = vld [vmem:[#allocation2 + $0x42] sm:$0xff]  ;;  %v9821_v30 = vld [vmem:[#allocation2 + $0x4a] sm:$0xff]  ;;  %v9711_v27 = vpop.f32.mrf.mxu1  ;;  %v10019_v33 = vpop.f32.mrf.mxu0 }
 0x745   : >> { %10103 = vst [vmem:[#allocation2 + $0x40] sm:$0xff] %v10000_v34  ;;  %10105 = vst [vmem:[#allocation2 + $0x50] sm:$0xff] %v13951_v45  ;;  %v18512_v38 = vadd.f32 %v9821_v30, %v9538_v4  ;;  %v18514_v24 = vadd.f32 %v9820_v60, %v9537_v9  ;;  %v9543_v45 = vadd.f32 %v9518_v20, %v18387_v5  ;;  %v9524_v4 = vld [vmem:[#allocation2 + $0xa1] sm:$0xff] }
 0x746   : >> { %10104 = vst [vmem:[#allocation2 + $0x48] sm:$0xff] %v10003_v2  ;;  %9800 = vst [vmem:[#allocation2 + $0x68] sm:$0xff] %v9711_v27  ;;  %v13911_v11 = vpop.f32.mrf.mxu1  ;;  %v13959_v23 = vpop.f32.mrf.mxu0  ;;  %v9542_v2 = vadd.f32 %v9517_v49, %v18408_v59  ;;  %v18530_v59 = vld [vmem:[#allocation2 + $0xa9] sm:$0xff]  ;;  %v18532_v49 = vld [vmem:[#allocation2 + $0xb1] sm:$0xff] }
 0x747   : >> { %9805 = vst [vmem:[#allocation2 + $0x90] sm:$0xff] %v13911_v11 }
 0x748   : >> { %v9724_v58 = vpop.f32.mrf.mxu1  ;;  %v10032_v52 = vpop.f32.mrf.mxu0  ;;  %v9823_v7 = vld [vmem:[#allocation2 + $0x5a] sm:$0xff] }
 0x749   : >> { %9803 = vst [vmem:[#allocation2 + $0x80] sm:$0xff] %v9724_v58  ;;  %10106 = vst [vmem:[#allocation2 + $0x58] sm:$0xff] %v13952_v40  ;;  %v18518_v22 = vadd.f32 %v9823_v7, %v9540_v12 }
 0x74a   : >> { %v13912_v35 = vpop.f32.mrf.mxu1  ;;  %v18520_v34 = vpop.f32.mrf.mxu0  ;;  %v9826_v29 = vld [vmem:[#allocation2 + $0x72] sm:$0xff] }
 0x74b   : >> { %9806 = vst [vmem:[#allocation2 + $0x98] sm:$0xff] %v13912_v35  ;;  %v18523_v44 = vadd.f32 %v9826_v29, %v9543_v45  ;;  %v9530_v29 = vld [vmem:[#allocation2 + $0xd1] sm:$0xff] }
 0x74c   : >> { %v9727_v0 = vpop.f32.mrf.mxu1  ;;  %v10035_v32 = vpop.f32.mrf.mxu0  ;;  %v10127_v20 = vld [vmem:[#allocation2 + $0x3b] sm:$0xff] }
 0x74d   : >> { %v9825_v36 = vld [vmem:[#allocation2 + $0x6a] sm:$0xff]  ;;  %v9824_v28 = vld [vmem:[#allocation2 + $0x62] sm:$0xff]  ;;  %9804 = vst [vmem:[#allocation2 + $0x88] sm:$0xff] %v9727_v0  ;;  %v18534_v37 = vadd.f32 %v10127_v20, %v9844_v10  ;;  %v9546_v10 = vadd.f32 %v9521_v50, %v18435_v13  ;;  %v9548_v50 = vadd.f32 %v9523_v31, %v18429_v54 }
 0x74e   : >> { %10109 = vst [vmem:[#allocation2 + $0x70] sm:$0xff] %v13955_v18  ;;  %v18526_v5 = vadd.f32 %v9825_v36, %v9542_v2  ;;  %10107 = vst [vmem:[#allocation2 + $0x60] sm:$0xff] %v10016_v1  ;;  %v18528_v40 = vadd.f32 %v9824_v28, %v9541_v26  ;;  %v13915_v55 = vpop.f32.mrf.mxu1  ;;  %v13963_v19 = vpop.f32.mrf.mxu0  ;;  %v9547_v1 = vadd.f32 %v9522_v25, %v18415_v53  ;;  %v9529_v13 = vld [vmem:[#allocation2 + $0xc9] sm:$0xff]  ;;  %v9528_v2 = vld [vmem:[#allocation2 + $0xc1] sm:$0xff] }
 0x74f   : >> { %10108 = vst [vmem:[#allocation2 + $0x68] sm:$0xff] %v10019_v33  ;;  %9809 = vst [vmem:[#allocation2 + $0xb0] sm:$0xff] %v13915_v55  ;;  %v9527_v33 = vld [vmem:[#allocation2 + $0xb9] sm:$0xff]  ;;  %v9549_v36 = vadd.f32 %v9524_v4, %v18449_v51  ;;  %v9532_v51 = vld [vmem:[#allocation2 + $0xe1] sm:$0xff] }
 0x750   : >> { %v9740_v57 = vpop.f32.mrf.mxu1  ;;  %v10048_v18 = vpop.f32.mrf.mxu0  ;;  %v9827_v9 = vld [vmem:[#allocation2 + $0x7a] sm:$0xff] }
 0x751   : >> { %9807 = vst [vmem:[#allocation2 + $0xa0] sm:$0xff] %v9740_v57  ;;  %v18538_v60 = vadd.f32 %v9827_v9, %v9544_v48  ;;  %10110 = vst [vmem:[#allocation2 + $0x78] sm:$0xff] %v18506_v8  ;;  %v9534_v57 = vld [vmem:[#allocation2 + $0xf1] sm:$0xff] }
 0x752   : >> { %v13916_v30 = vpop.f32.mrf.mxu1  ;;  %v13964_v27 = vpop.f32.mrf.mxu0  ;;  %v9830_v11 = vld [vmem:[#allocation2 + $0x92] sm:$0xff] }
 0x753   : >> { %9810 = vst [vmem:[#allocation2 + $0xb8] sm:$0xff] %v13916_v30  ;;  %v18542_v12 = vadd.f32 %v9830_v11, %v9547_v1  ;;  %v9552_v1 = vadd.f32 %v9527_v33, %v18457_v16  ;;  %v9553_v33 = vadd.f32 %v9528_v2, %v18476_v15 }
 0x754   : >> { %v9743_v17 = vpop.f32.mrf.mxu1  ;;  %v10051_v58 = vpop.f32.mrf.mxu0  ;;  %v9829_v7 = vld [vmem:[#allocation2 + $0x8a] sm:$0xff]  ;;  %v9828_v45 = vld [vmem:[#allocation2 + $0x82] sm:$0xff] }
 0x755   : >> { %9808 = vst [vmem:[#allocation2 + $0xa8] sm:$0xff] %v9743_v17  ;;  %10113 = vst [vmem:[#allocation2 + $0x90] sm:$0xff] %v13959_v23  ;;  %v18545_v53 = vadd.f32 %v9829_v7, %v9546_v10  ;;  %v18547_v8 = vadd.f32 %v9828_v45, %v9545_v46  ;;  %v9531_v23 = vld [vmem:[#allocation2 + $0xd9] sm:$0xff]  ;;  %v9555_v10 = vadd.f32 %v9530_v29, %v18471_v21 }
 0x756   : >> { %10111 = vst [vmem:[#allocation2 + $0x80] sm:$0xff] %v10032_v52  ;;  %10112 = vst [vmem:[#allocation2 + $0x88] sm:$0xff] %v10035_v32  ;;  %v13919_v25 = vpop.f32.mrf.mxu1  ;;  %v13967_v35 = vpop.f32.mrf.mxu0  ;;  %v9554_v45 = vadd.f32 %v9529_v13, %v18486_v6  ;;  %v9556_v15 = vadd.f32 %v9531_v23, %v18482_v62  ;;  %v9559_v6 = vadd.f32 %v9534_v57, %v18488_v39 }
 0x757   : >> { %9813 = vst [vmem:[#allocation2 + $0xd0] sm:$0xff] %v13919_v25  ;;  %v9557_v23 = vadd.f32 %v9532_v51, %v18494_v47  ;;  %v10129_v51 = vld [vmem:[#allocation2 + $0x4b] sm:$0xff] }
 0x758   : >> { %v9756_v3 = vpop.f32.mrf.mxu1  ;;  %v10064_v42 = vpop.f32.mrf.mxu0  ;;  %v9831_v26 = vld [vmem:[#allocation2 + $0x9a] sm:$0xff] }
 0x759   : >> { %9811 = vst [vmem:[#allocation2 + $0xc0] sm:$0xff] %v9756_v3  ;;  %v18550_v0 = vadd.f32 %v9831_v26, %v9548_v50  ;;  %10114 = vst [vmem:[#allocation2 + $0x98] sm:$0xff] %v18520_v34  ;;  %v9533_v34 = vld [vmem:[#allocation2 + $0xe9] sm:$0xff] }
 0x75a   : >> { %v13920_v52 = vpop.f32.mrf.mxu1  ;;  %v13968_v32 = vpop.f32.mrf.mxu0  ;;  %v18556_v54 = vld [vmem:[#allocation2 + $0xb2] sm:$0xff]  ;;  %v9558_v62 = vadd.f32 %v9533_v34, %v18498_v61 }
 0x75b   : >> { %9814 = vst [vmem:[#allocation2 + $0xd8] sm:$0xff] %v13920_v52  ;;  %v10130_v34 = vld [vmem:[#allocation2 + $0x53] sm:$0xff] }
 0x75c   : >> { %v9759_v28 = vpop.f32.mrf.mxu1  ;;  %v10067_v20 = vpop.f32.mrf.mxu0  ;;  %v9832_v55 = vld [vmem:[#allocation2 + $0xa2] sm:$0xff]  ;;  %v18554_v48 = vld [vmem:[#allocation2 + $0xaa] sm:$0xff] }
 0x75d   : >> { %9812 = vst [vmem:[#allocation2 + $0xc8] sm:$0xff] %v9759_v28  ;;  %10115 = vst [vmem:[#allocation2 + $0xa0] sm:$0xff] %v10048_v18  ;;  %v18558_v31 = vadd.f32 %v9832_v55, %v9549_v36  ;;  %v9535_v18 = vld [vmem:[#allocation2 + $0xf9] sm:$0xf] }
 0x75e   : >> { %10116 = vst [vmem:[#allocation2 + $0xa8] sm:$0xff] %v10051_v58  ;;  %10117 = vst [vmem:[#allocation2 + $0xb0] sm:$0xff] %v13963_v19  ;;  %v13923_v9 = vpop.f32.mrf.mxu1  ;;  %v13971_v4 = vpop.f32.mrf.mxu0  ;;  %v14455_v19 = vld [vmem:[%s18728_s6 + $0x4] ss:$8 sps:$4 sm:$0xff]   ;;  %v9560_v36 = vadd.f32 %v9535_v18, %v18502_v41 }
 0x75f   : >> { %9817 = vst [vmem:[#allocation2 + $0xf0] sm:$0xff] %v13923_v9  ;;  %11561 = vmatprep.mubr.msk.bf16.mxu0 %vm10577_vm5, %v14455_v19  ;;  %v10128_v18 = vld [vmem:[#allocation2 + $0x43] sm:$0xff] }
 0x760   : >> { %v9772_v30 = vpop.f32.mrf.mxu1  ;;  %v9835_v11 = vld [vmem:[#allocation2 + $0xba] sm:$0xff] }
 0x761   : >> { %9815 = vst [vmem:[#allocation2 + $0xe0] sm:$0xff] %v9772_v30  ;;  %10118 = vst [vmem:[#allocation2 + $0xb8] sm:$0xff] %v13964_v27  ;;  %v18562_v46 = vadd.f32 %v9835_v11, %v9552_v1  ;;  %v10080_v27 = vpop.f32.mrf.mxu0 }
 0x762   : >> { %v13924_v17 = vpop.f32.mrf.mxu1  ;;  %v9838_v58 = vld [vmem:[#allocation2 + $0xd2] sm:$0xff] }
 0x763   : >> { %9818 = vst [vmem:[#allocation2 + $0xf8] sm:$0xff] %v13924_v17  ;;  %v18567_v16 = vadd.f32 %v9838_v58, %v9555_v10  ;;  %v13972_v26 = vpop.f32.mrf.mxu0  ;;  %v10131_v17 = vld [vmem:[#allocation2 + $0x5b] sm:$0xff] }
 0x764   : >> { %v9775_v7 = vpop.f32.mrf.mxu1  ;;  %v9836_v21 = vld [vmem:[#allocation2 + $0xc2] sm:$0xff]  ;;  %v9837_v25 = vld [vmem:[#allocation2 + $0xca] sm:$0xff] }
 0x765   : >> { %9816 = vst [vmem:[#allocation2 + $0xe8] sm:$0xff] %v9775_v7  ;;  %10119 = vst [vmem:[#allocation2 + $0xc0] sm:$0xff] %v10064_v42  ;;  %v18572_v29 = vadd.f32 %v9836_v21, %v9553_v33  ;;  %v18574_v3 = vadd.f32 %v9837_v25, %v9554_v45  ;;  %v10083_v9 = vpop.f32.mrf.mxu0  ;;  %v10133_v7 = vld [vmem:[#allocation2 + $0x6b] sm:$0xff]  ;;  %v18594_v45 = vld [vmem:[%s18727_s5] ss:$0 sm:$0xff] }
 0x766   : >> { %v13991_v50 = vpop.f32.mrf.mxu1  ;;  %10121 = vst [vmem:[#allocation2 + $0xd0] sm:$0xff] %v13967_v35  ;;  %10120 = vst [vmem:[#allocation2 + $0xc8] sm:$0xff] %v10067_v20  ;;  %v10132_v25 = vld [vmem:[#allocation2 + $0x63] sm:$0xff] }
 0x767   : >> { %10405 = vst [vmem:[#allocation2 + $0x10] sm:$0xff] %v13991_v50 }
 0x768   : >> { %v9839_v2 = vld [vmem:[#allocation2 + $0xda] sm:$0xff]  ;;  %v10276_v52 = vpop.f32.mrf.mxu1 }
 0x769   : >> { %10403 = vst [vmem:[#allocation2] sm:$0xff] %v10276_v52  ;;  %v18579_v13 = vadd.f32 %v9839_v2, %v9556_v15  ;;  %10122 = vst [vmem:[#allocation2 + $0xd8] sm:$0xff] %v13968_v32  ;;  %v10155_v15 = vadd.f32 %v10130_v34, %v18509_v14  ;;  %v10135_v52 = vld [vmem:[#allocation2 + $0x7b] sm:$0xff] }
 0x76a   : >> { %v9842_v42 = vld [vmem:[#allocation2 + $0xf2] sm:$0xff]  ;;  %v9843_v28 = vld [vmem:[#allocation2 + $0xfa] sm:$0xf]  ;;  %v13992_v35 = vpop.f32.mrf.mxu1 }
 0x76b   : >> { %v18581_v20 = vadd.f32 %v9842_v42, %v9559_v6  ;;  %10126 = vst [vmem:[#allocation2 + $0xf8] sm:$0xff] %v13972_v26  ;;  %10406 = vst [vmem:[#allocation2 + $0x18] sm:$0xff] %v13992_v35  ;;  %v18583_v55 = vadd.f32 %v9843_v28, %v9560_v36  ;;  %v10154_v6 = vadd.f32 %v10129_v51, %v18512_v38 }
 0x76c   : >> { %v9840_v41 = vld [vmem:[#allocation2 + $0xe2] sm:$0xff]  ;;  %v10279_v39 = vpop.f32.mrf.mxu1  ;;  %v9841_v57 = vld [vmem:[#allocation2 + $0xea] sm:$0xff]  ;;  %v10153_v28 = vadd.f32 %v10128_v18, %v18514_v24 }
 0x76d   : >> { %10123 = vst [vmem:[#allocation2 + $0xe0] sm:$0xff] %v10080_v27  ;;  %10404 = vst [vmem:[#allocation2 + $0x8] sm:$0xff] %v10279_v39  ;;  %v18587_v32 = vadd.f32 %v9841_v57, %v9558_v62  ;;  %v18589_v1 = vadd.f32 %v9840_v41, %v9557_v23  ;;  %v10134_v27 = vld [vmem:[#allocation2 + $0x73] sm:$0xff]  ;;  %v10139_v18 = vld [vmem:[#allocation2 + $0x9b] sm:$0xff] }
 0x76e   : >> { %10124 = vst [vmem:[#allocation2 + $0xe8] sm:$0xff] %v10083_v9  ;;  %10125 = vst [vmem:[#allocation2 + $0xf0] sm:$0xff] %v13971_v4  ;;  %v13995_v30 = vpop.f32.mrf.mxu1  ;;  %v10138_v57 = vld [vmem:[#allocation2 + $0x93] sm:$0xff]  ;;  %v10159_v34 = vadd.f32 %v10134_v27, %v18523_v44 }
 0x76f   : >> { %10409 = vst [vmem:[#allocation2 + $0x30] sm:$0xff] %v13995_v30  ;;  %v10137_v30 = vld [vmem:[#allocation2 + $0x8b] sm:$0xff] }
 0x770   : >> { %v10292_v11 = vpop.f32.mrf.mxu1 }
 0x771   : >> { %10407 = vst [vmem:[#allocation2 + $0x20] sm:$0xff] %v10292_v11  ;;  %v10156_v11 = vadd.f32 %v10131_v17, %v18518_v22  ;;  %v10158_v22 = vadd.f32 %v10133_v7, %v18526_v5 }
 0x772   : >> { %v13996_v10 = vpop.f32.mrf.mxu1 }
 0x773   : >> { %10410 = vst [vmem:[#allocation2 + $0x38] sm:$0xff] %v13996_v10 }
 0x774   : >> { %v10295_v61 = vpop.f32.mrf.mxu1 }
 0x775   : >> { %10408 = vst [vmem:[#allocation2 + $0x28] sm:$0xff] %v10295_v61  ;;  %v10136_v61 = vld [vmem:[#allocation2 + $0x83] sm:$0xff] }
 0x776   : >> { %v13999_v47 = vpop.f32.mrf.mxu1 }
 0x777   : >> { %10413 = vst [vmem:[#allocation2 + $0x50] sm:$0xff] %v13999_v47 }
 0x778   : >> { %v10308_v19 = vpop.f32.mrf.mxu1 }
 0x779   : >> { %10411 = vst [vmem:[#allocation2 + $0x40] sm:$0xff] %v10308_v19 }
 0x77a   : >> { %v14000_v4 = vpop.f32.mrf.mxu1 }
 0x77b   : >> { %10414 = vst [vmem:[#allocation2 + $0x58] sm:$0xff] %v14000_v4 }
 0x77c   : >> { %v10311_v58 = vpop.f32.mrf.mxu1 }
 0x77d   : >> { %10412 = vst [vmem:[#allocation2 + $0x48] sm:$0xff] %v10311_v58  ;;  %v10157_v58 = vadd.f32 %v10132_v25, %v18528_v40  ;;  %v10140_v25 = vld [vmem:[#allocation2 + $0xa3] sm:$0xff] }
 0x77e   : >> { %v14003_v33 = vpop.f32.mrf.mxu1 }
 0x77f   : >> { %10417 = vst [vmem:[#allocation2 + $0x70] sm:$0xff] %v14003_v33 }
 0x780   : >> { %v10324_v21 = vpop.f32.mrf.mxu1  ;;  %v10435_v50 = vld [vmem:[#allocation2 + $0x3c] sm:$0xff] }
 0x781   : >> { %10415 = vst [vmem:[#allocation2 + $0x60] sm:$0xff] %v10324_v21  ;;  %v10460_v2 = vadd.f32 %v10435_v50, %v18534_v37 }
 0x782   : >> { %v14004_v26 = vpop.f32.mrf.mxu1  ;;  %v10438_v36 = vld [vmem:[#allocation2 + $0x54] sm:$0xff] }
 0x783   : >> { %10418 = vst [vmem:[#allocation2 + $0x78] sm:$0xff] %v14004_v26  ;;  %v10463_v42 = vadd.f32 %v10438_v36, %v10155_v15  ;;  %v10492_v35 = vadd.f32 %v18594_v45, %v10460_v2  ;;  %v10141_v36 = vld [vmem:[#allocation2 + $0xab] sm:$0xff] }
 0x784   : >> { %v10327_v62 = vpop.f32.mrf.mxu1  ;;  %v10437_v23 = vld [vmem:[#allocation2 + $0x4c] sm:$0xff]  ;;  %v10436_v41 = vld [vmem:[#allocation2 + $0x44] sm:$0xff] }
 0x785   : >> { %10416 = vst [vmem:[#allocation2 + $0x68] sm:$0xff] %v10327_v62  ;;  %v10462_v9 = vadd.f32 %v10437_v23, %v10154_v6  ;;  %v10495_v14 = vadd.f32 %v18594_v45, %v10463_v42  ;;  %v10461_v39 = vadd.f32 %v10436_v41, %v10153_v28  ;;  %14655 = vtanh.f32 %v10492_v35  ;;  %v10142_v6 = vld [vmem:[#allocation2 + $0xb3] sm:$0xff]  ;;  %v18614_v41 = vld [vmem:[#allocation2 + $0xbb] sm:$0xff] }
 0x786   : >> { %v14007_v37 = vpop.f32.mrf.mxu1  ;;  %v10160_v42 = vadd.f32 %v10135_v52, %v18538_v60  ;;  %v10163_v35 = vadd.f32 %v10138_v57, %v18542_v12  ;;  %v10162_v60 = vadd.f32 %v10137_v30, %v18545_v53  ;;  %v9551_v12 = vadd.f32 %v18532_v49, %v18441_v43  ;;  %v10146_v43 = vld [vmem:[#allocation2 + $0xd3] sm:$0xff]  ;;  %v10145_v49 = vld [vmem:[#allocation2 + $0xcb] sm:$0xff] }
 0x787   : >> { %10421 = vst [vmem:[#allocation2 + $0x90] sm:$0xff] %v14007_v37  ;;  %v10494_v38 = vadd.f32 %v18594_v45, %v10462_v9  ;;  %v10493_v24 = vadd.f32 %v18594_v45, %v10461_v39  ;;  %14657 = vtanh.f32 %v10495_v14  ;;  %v10161_v14 = vadd.f32 %v10136_v61, %v18547_v8 }
 0x788   : >> { %v10340_v10 = vpop.f32.mrf.mxu1  ;;  %v10439_v47 = vld [vmem:[#allocation2 + $0x5c] sm:$0xff]  ;;  %v9550_v61 = vadd.f32 %v18530_v59, %v18462_v63 }
 0x789   : >> { %10419 = vst [vmem:[#allocation2 + $0x80] sm:$0xff] %v10340_v10  ;;  %v10464_v51 = vadd.f32 %v10439_v47, %v10156_v11  ;;  %14659 = vtanh.f32 %v10494_v38  ;;  %v10144_v59 = vld [vmem:[#allocation2 + $0xc3] sm:$0xff] }
 0x78a   : >> { %v14008_v19 = vpop.f32.mrf.mxu1  ;;  %v10442_v4 = vld [vmem:[#allocation2 + $0x74] sm:$0xff]  ;;  %14661 = vtanh.f32 %v10493_v24 }
 0x78b   : >> { %10422 = vst [vmem:[#allocation2 + $0x98] sm:$0xff] %v14008_v19  ;;  %v10467_v17 = vadd.f32 %v10442_v4, %v10159_v34  ;;  %v10496_v33 = vadd.f32 %v18594_v45, %v10464_v51  ;;  %v9859_v34 = vadd.f32 %v18556_v54, %v9551_v12  ;;  %v10164_v51 = vadd.f32 %v10139_v18, %v18550_v0 }
 0x78c   : >> { %v10343_v21 = vpop.f32.mrf.mxu1  ;;  %v10441_v50 = vld [vmem:[#allocation2 + $0x6c] sm:$0xff]  ;;  %v10440_v15 = vld [vmem:[#allocation2 + $0x64] sm:$0xff]  ;;  %v9858_v0 = vadd.f32 %v18554_v48, %v9550_v61  ;;  %v10169_v61 = vadd.f32 %v10144_v59, %v18572_v29 }
 0x78d   : >> { %10420 = vst [vmem:[#allocation2 + $0x88] sm:$0xff] %v10343_v21  ;;  %v10466_v2 = vadd.f32 %v10441_v50, %v10158_v22  ;;  %v10499_v44 = vadd.f32 %v18594_v45, %v10467_v17  ;;  %v10465_v27 = vadd.f32 %v10440_v15, %v10157_v58  ;;  %14663 = vtanh.f32 %v10496_v33  ;;  %v10147_v15 = vld [vmem:[#allocation2 + $0xdb] sm:$0xff] }
 0x78e   : >> { %v14011_v26 = vpop.f32.mrf.mxu1  ;;  %v10167_v54 = vadd.f32 %v10142_v6, %v9859_v34 }
 0x78f   : >> { %10425 = vst [vmem:[#allocation2 + $0xb0] sm:$0xff] %v14011_v26  ;;  %v10498_v5 = vadd.f32 %v18594_v45, %v10466_v2  ;;  %v10497_v40 = vadd.f32 %v18594_v45, %v10465_v27  ;;  %14665 = vtanh.f32 %v10499_v44  ;;  %v10166_v2 = vadd.f32 %v10141_v36, %v9858_v0  ;;  %v10149_v36 = vld [vmem:[#allocation2 + $0xeb] sm:$0xff] }
 0x790   : >> { %v10356_v7 = vpop.f32.mrf.mxu1  ;;  %v10443_v28 = vld [vmem:[#allocation2 + $0x7c] sm:$0xff]  ;;  %v10165_v27 = vadd.f32 %v10140_v25, %v18558_v31  ;;  %v10168_v25 = vadd.f32 %v18614_v41, %v18562_v46  ;;  %v10171_v46 = vadd.f32 %v10146_v43, %v18567_v16 }
 0x791   : >> { %10423 = vst [vmem:[#allocation2 + $0xa0] sm:$0xff] %v10356_v7  ;;  %v10468_v62 = vadd.f32 %v10443_v28, %v10160_v42  ;;  %14667 = vtanh.f32 %v10498_v5 }
 0x792   : >> { %v14012_v23 = vpop.f32.mrf.mxu1  ;;  %v10446_v9 = vld [vmem:[#allocation2 + $0x94] sm:$0xff]  ;;  %14669 = vtanh.f32 %v10497_v40  ;;  %v18619_v37 = vpop.eup %14655 }
 0x793   : >> { %10426 = vst [vmem:[#allocation2 + $0xb8] sm:$0xff] %v14012_v23  ;;  %v10471_v52 = vadd.f32 %v10446_v9, %v10163_v35  ;;  %v10500_v39 = vadd.f32 %v18594_v45, %v10468_v62  ;;  %v10150_v23 = vld [vmem:[#allocation2 + $0xf3] sm:$0xff] }
 0x794   : >> { %v10359_v11 = vpop.f32.mrf.mxu1  ;;  %v10445_v57 = vld [vmem:[#allocation2 + $0x8c] sm:$0xff]  ;;  %v10444_v38 = vld [vmem:[#allocation2 + $0x84] sm:$0xff]  ;;  %v18623_v24 = vpop.eup %14657 }
 0x795   : >> { %10424 = vst [vmem:[#allocation2 + $0xa8] sm:$0xff] %v10359_v11  ;;  %v10470_v10 = vadd.f32 %v10445_v57, %v10162_v60  ;;  %v10503_v47 = vadd.f32 %v18594_v45, %v10471_v52  ;;  %v10469_v53 = vadd.f32 %v10444_v38, %v10161_v14  ;;  %14671 = vtanh.f32 %v10500_v39  ;;  %v10148_v39 = vld [vmem:[#allocation2 + $0xe3] sm:$0xff] }
 0x796   : >> { %v18626_v30 = vpop.eup %14659  ;;  %v14015_v8 = vpop.f32.mrf.mxu1 }
 0x797   : >> { %v18632_v19 = vpop.eup %14661  ;;  %v10502_v4 = vadd.f32 %v18594_v45, %v10470_v10  ;;  %v10501_v22 = vadd.f32 %v18594_v45, %v10469_v53  ;;  %v10543_v17 = vpack.c.bf16 %v18623_v24, %v18626_v30  ;;  %10429 = vst [vmem:[#allocation2 + $0xd0] sm:$0xff] %v14015_v8  ;;  %14673 = vtanh.f32 %v10503_v47  ;;  %v10151_v10 = vld [vmem:[#allocation2 + $0xfb] sm:$0xf]  ;;  %v14458_v30 = vld [vmem:[%s18728_s6 + $0x10] ss:$8 sps:$4 sm:$0x1f]  }
 0x798   : >> { %v10372_v58 = vpop.f32.mrf.mxu1  ;;  %v10447_v33 = vld [vmem:[#allocation2 + $0x9c] sm:$0xff]  ;;  %v10542_v63 = vpack.c.bf16 %v18632_v19, %v18619_v37  ;;  %v10170_v53 = vadd.f32 %v10145_v49, %v18574_v3 }
 0x799   : >> { %v10472_v18 = vadd.f32 %v10447_v33, %v10164_v51  ;;  %14675 = vtanh.f32 %v10502_v4  ;;  %10427 = vst [vmem:[#allocation2 + $0xc0] sm:$0xff] %v10372_v58  ;;  %v14453_v37 = vld [vmem:[%s18728_s6] ss:$8 sps:$4 sm:$0xff]   ;;  %v14456_v24 = vld [vmem:[%s18728_s6 + $0x14] ss:$8 sps:$4 sm:$0x1f]  }
 0x79a   : >> { %v14016_v21 = vpop.f32.mrf.mxu1  ;;  %v10450_v50 = vld [vmem:[#allocation2 + $0xb4] sm:$0xff]  ;;  %14677 = vtanh.f32 %v10501_v22  ;;  %v18643_v42 = vpop.eup %14663 }
 0x79b   : >> { %v10475_v44 = vadd.f32 %v10450_v50, %v10167_v54  ;;  %v10504_v26 = vadd.f32 %v18594_v45, %v10472_v18  ;;  %10430 = vst [vmem:[#allocation2 + $0xd8] sm:$0xff] %v14016_v21  ;;  %v10172_v18 = vadd.f32 %v10147_v15, %v18579_v13  ;;  %v10173_v15 = vadd.f32 %v10148_v39, %v18589_v1 }
 0x79c   : >> { %v10375_v5 = vpop.f32.mrf.mxu1  ;;  %v10449_v40 = vld [vmem:[#allocation2 + $0xac] sm:$0xff]  ;;  %v10448_v48 = vld [vmem:[#allocation2 + $0xa4] sm:$0xff]  ;;  %v18645_v6 = vpop.eup %14665  ;;  %v10176_v39 = vadd.f32 %v10151_v10, %v18583_v55 }
 0x79d   : >> { %v10474_v7 = vadd.f32 %v10449_v40, %v10166_v2  ;;  %v10507_v28 = vadd.f32 %v18594_v45, %v10475_v44  ;;  %v10473_v35 = vadd.f32 %v10448_v48, %v10165_v27  ;;  %10428 = vst [vmem:[#allocation2 + $0xc8] sm:$0xff] %v10375_v5  ;;  %14679 = vtanh.f32 %v10504_v26 }
 0x79e   : >> { %v18648_v62 = vpop.eup %14667  ;;  %v14019_v31 = vpop.f32.mrf.mxu1  ;;  %v10175_v2 = vadd.f32 %v10150_v23, %v18581_v20  ;;  %v10174_v26 = vadd.f32 %v10149_v36, %v18587_v32 }
 0x79f   : >> { %v18652_v9 = vpop.eup %14669  ;;  %10433 = vst [vmem:[#allocation2 + $0xf0] sm:$0xff] %v14019_v31  ;;  %v10506_v60 = vadd.f32 %v18594_v45, %v10474_v7  ;;  %v10505_v52 = vadd.f32 %v18594_v45, %v10473_v35  ;;  %v10545_v14 = vpack.c.bf16 %v18645_v6, %v18648_v62  ;;  %14681 = vtanh.f32 %v10507_v28 }
 0x7a0   : >> { %v10388_v11 = vpop.f32.mrf.mxu1  ;;  %v10544_v12 = vpack.c.bf16 %v18652_v9, %v18643_v42  ;;  %v10451_v57 = vld [vmem:[#allocation2 + $0xbc] sm:$0xff] }
 0x7a1   : >> { %14683 = vtanh.f32 %v10506_v60  ;;  %10431 = vst [vmem:[#allocation2 + $0xe0] sm:$0xff] %v10388_v11  ;;  %v10476_v41 = vadd.f32 %v10451_v57, %v10168_v25 }
 0x7a2   : >> { %v14020_v38 = vpop.f32.mrf.mxu1  ;;  %14685 = vtanh.f32 %v10505_v52  ;;  %v10454_v47 = vld [vmem:[#allocation2 + $0xd4] sm:$0xff]  ;;  %v18664_v51 = vpop.eup %14671 }
 0x7a3   : >> { %10434 = vst [vmem:[#allocation2 + $0xf8] sm:$0xff] %v14020_v38  ;;  %v10479_v8 = vadd.f32 %v10454_v47, %v10171_v46  ;;  %v10508_v34 = vadd.f32 %v18594_v45, %v10476_v41 }
 0x7a4   : >> { %v10391_v4 = vpop.f32.mrf.mxu1  ;;  %v10453_v22 = vld [vmem:[#allocation2 + $0xcc] sm:$0xff]  ;;  %v10452_v58 = vld [vmem:[#allocation2 + $0xc4] sm:$0xff]  ;;  %v14674_v33 = vpop.eup %14673 }
 0x7a5   : >> { %10432 = vst [vmem:[#allocation2 + $0xe8] sm:$0xff] %v10391_v4  ;;  %v10478_v16 = vadd.f32 %v10453_v22, %v10170_v53  ;;  %v10511_v43 = vadd.f32 %v18594_v45, %v10479_v8  ;;  %v10477_v0 = vadd.f32 %v10452_v58, %v10169_v61  ;;  %14687 = vtanh.f32 %v10508_v34  ;;  %v10662_v58 = vld [vmem:[%s10655_s10 + $0xc] sm:$0x1] }
 0x7a6   : >> { %v14676_v54 = vpop.eup %14675 }
 0x7a7   : >> { %v14678_v3 = vpop.eup %14677  ;;  %v10547_v49 = vpack.c.bf16 %v14674_v33, %v14676_v54  ;;  %v10510_v29 = vadd.f32 %v18594_v45, %v10478_v16  ;;  %v10509_v59 = vadd.f32 %v18594_v45, %v10477_v0  ;;  %14689 = vtanh.f32 %v10511_v43 }
 0x7a8   : >> { %v10546_v21 = vpack.c.bf16 %v14678_v3, %v18664_v51  ;;  %v10455_v50 = vld [vmem:[#allocation2 + $0xdc] sm:$0xff] }
 0x7a9   : >> { %v10480_v44 = vadd.f32 %v10455_v50, %v10172_v18  ;;  %14691 = vtanh.f32 %v10510_v29 }
 0x7aa   : >> { %v10458_v27 = vld [vmem:[#allocation2 + $0xf4] sm:$0xff]  ;;  %14693 = vtanh.f32 %v10509_v59  ;;  %v14680_v40 = vpop.eup %14679  ;;  %v10459_v1 = vld [vmem:[#allocation2 + $0xfc] sm:$0xf] }
 0x7ab   : >> { %v10483_v13 = vadd.f32 %v10458_v27, %v10175_v2  ;;  %v10512_v5 = vadd.f32 %v18594_v45, %v10480_v44  ;;  %v10484_v57 = vadd.f32 %v10459_v1, %v10176_v39 }
 0x7ac   : >> { %v10457_v48 = vld [vmem:[#allocation2 + $0xec] sm:$0xff]  ;;  %v10456_v7 = vld [vmem:[#allocation2 + $0xe4] sm:$0xff]  ;;  %v14682_v28 = vpop.eup %14681 }
 0x7ad   : >> { %v10482_v35 = vadd.f32 %v10457_v48, %v10174_v26  ;;  %v10515_v31 = vadd.f32 %v18594_v45, %v10483_v13  ;;  %v10481_v25 = vadd.f32 %v10456_v7, %v10173_v15  ;;  %14695 = vtanh.f32 %v10512_v5 }
 0x7ae   : >> { %v14684_v20 = vpop.eup %14683  ;;  %v10516_v53 = vadd.f32 %v18594_v45, %v10484_v57 }
 0x7af   : >> { %v14686_v23 = vpop.eup %14685  ;;  %v10549_v60 = vpack.c.bf16 %v14682_v28, %v14684_v20  ;;  %v10514_v52 = vadd.f32 %v18594_v45, %v10482_v35  ;;  %v10513_v32 = vadd.f32 %v18594_v45, %v10481_v25  ;;  %14697 = vtanh.f32 %v10515_v31 }
 0x7b0   : >> { %v10548_v36 = vpack.c.bf16 %v14686_v23, %v14680_v40 }
 0x7b1   : >> { %10589 = vmatpush1.bf16.msra.mxu0 %v10549_v60  ;;  %14699 = vtanh.f32 %v10514_v52 }
 0x7b2   : >> { %10590 = vmatprep.subr.bf16.mxu0 %v14725_v56  ;;  %14701 = vtanh.f32 %v10513_v32  ;;  %v14688_v11 = vpop.eup %14687 }
 0x7b3   : >> { %14703 = vtanh.f32 %v10516_v53 }
 0x7b4   : >> { %v14690_v46 = vpop.eup %14689 }
 0x7b5   : >> { %10591 = vmatpush1.bf16.msra.mxu0 %v10548_v36 }
 0x7b6   : >> { %v14692_v41 = vpop.eup %14691  ;;  %10592 = vmatprep.subr.bf16.mxu0 %v14725_v56 }
 0x7b7   : >> { %v14694_v38 = vpop.eup %14693  ;;  %v10551_v47 = vpack.c.bf16 %v14690_v46, %v14692_v41 }
 0x7b8   : >> { %v10550_v8 = vpack.c.bf16 %v14694_v38, %v14688_v11 }
 0x7b9   : >> { %10593 = vmatpush1.bf16.msra.mxu0 %v10547_v49 }
 0x7ba   : >> { %10594 = vmatprep.subr.bf16.mxu0 %v14725_v56  ;;  %v14696_v61 = vpop.eup %14695 }
 0x7bc   : >> { %v14698_v34 = vpop.eup %14697 }
 0x7bd   : >> { %10595 = vmatpush1.bf16.msra.mxu0 %v10546_v21 }
 0x7be   : >> { %v14700_v55 = vpop.eup %14699  ;;  %10596 = vmatprep.subr.bf16.mxu0 %v14725_v56 }
 0x7bf   : >> { %v14702_v10 = vpop.eup %14701  ;;  %v10553_v51 = vpack.c.bf16 %v14698_v34, %v14700_v55 }
 0x7c0   : >> { %v10552_v4 = vpack.c.bf16 %v14702_v10, %v14696_v61  ;;  %v14704_v45 = vpop.eup %14703 }
 0x7c1   : >> { %10597 = vmatpush1.bf16.msra.mxu0 %v10545_v14  ;;  %v10554_v22 = vpack.c.bf16 %v14704_v45, %v14704_v45 }
 0x7c2   : >> { %10598 = vmatprep.subr.bf16.mxu0 %v14725_v56 }
 0x7c3   : >> { %v10586_v6 = vsel %vm10584_vm6, %v10554_v22, 0 }
 0x7c5   : >> { %10599 = vmatpush1.bf16.msra.mxu0 %v10544_v12 }
 0x7c6   : >> { %10600 = vmatprep.subr.bf16.mxu0 %v14725_v56 }
 0x7c9   : >> { %10601 = vmatpush1.bf16.msra.mxu0 %v10543_v17 }
 0x7ca   : >> { %10602 = vmatprep.subr.bf16.mxu0 %v14725_v56 }
 0x7cd   : >> { %10603 = vmatpush1.bf16.msra.mxu0 %v10542_v63 }
 0x7ce   : >> { %10610 = vmatprep.subr.bf16.mxu0 %v14725_v56 }
 0x7d1   : >> { %10611 = vmatpush2.bf16.msra.mxu0 %v10586_v6 }
 0x7d2   : >> { %10612 = vmatprep.subr.bf16.mxu0 %v14725_v56 }
 0x7d5   : >> { %10613 = vmatpush2.bf16.msra.mxu0 %v10553_v51 }
 0x7d6   : >> { %10614 = vmatprep.subr.bf16.mxu0 %v14725_v56 }
 0x7d9   : >> { %10615 = vmatpush2.bf16.msra.mxu0 %v10552_v4 }
 0x7da   : >> { %10616 = vmatprep.subr.bf16.mxu0 %v14725_v56 }
 0x7dd   : >> { %10617 = vmatpush2.bf16.msra.mxu0 %v10551_v47 }
 0x7de   : >> { %10618 = vmatprep.subr.bf16.mxu0 %v14725_v56 }
 0x7e1   : >> { %10619 = vmatpush2.bf16.msra.mxu0 %v10550_v8 }
 0x7e4   : >> { %10621 = vmatmul.mubr.bf16.vlgmr.msra.gmra.mxu0 %v14453_v37 }
 0x7e5   : >> { %11562 = vmatprep.mubr.msk.bf16.mxu0 %vm10577_vm5, %v14456_v24 }
 0x7ec   : >> { %10629 = vmatmul.mubr.bf16.gmra.mxu0 %v14458_v30 }
 0x8a4   : >> { %v10622_v19 = vpop.f32.mrf.mxu0 }
 0x8a6   : >> { %v10624_v56 = vpop.f32.mrf.mxu0 }
 0x8a8   : >> { %v10625_v17 = vpop.f32.mrf.mxu0 }
 0x8a9   : >> { %v11581_v63 = vpack.c.bf16 %v10625_v17, %v10622_v19 }
 0x8aa   : >> { %v10627_v42 = vpop.f32.mrf.mxu0 }
 0x8ab   : >> { %11582 = vst [vmem:[%s10655_s10] sm:$0xff] %v11581_v63  }
 0x8ac   : >> { %v10630_v62 = vpop.f32.mrf.mxu0 }
 0x8ad   : >> { %v11575_v9 = vpack.c.bf16 %v10630_v62, %v10630_v62 }
 0x8ae   : >> { %v10632_v14 = vpop.f32.mrf.mxu0 }
 0x8af   : >> { %10658 = vst [vmem:[%s10655_s10 + $0x8] sm:$0xf] %v11575_v9 }
 0x8b0   : >> { %v10633_v12 = vpop.f32.mrf.mxu0  ;;  %292 = sbr.rel (!%p290_p4) target bundleno = 15 (0xf), region = 111 }
 0x8b1   : >> { %v11576_v33 = vpack.c.bf16 %v10633_v12, %v10633_v12 }
 0x8b2   : >> { %v10635_v16 = vpop.f32.mrf.mxu0 }
 0x8b3   : >> { %v10663_v43 = vsel %vm10661_vm9, %v11576_v33, %v10662_v58 }
 0x8b4   : >> { %10664 = vst [vmem:[%s10655_s10 + $0xc] sm:$0x1] %v10663_v43 }
 0x8b5 PF: > { %s17_s24 = sadd.s32 1, %s14716_s24  }
 0x8b6   : > { %p14_p5 = scmp.ge.s32.totalorder %s17_s24, 4  }
 0x8b8   :  { %16 = sbr.rel (!%p14_p5) target bundleno = 1 (0x1), region = 122 }

</bundles_post_ra>
